<compile_context>
chip_gen: v7x
topology: tpu7x:2x2x1
jax: 0.10.0
libtpu: 0.0.40
codegen_flags: <defaults>
</compile_context>

<pallas_src>
import functools

import jax
import jax.numpy as jnp
from jax.experimental import pallas as pl
from jax.experimental.pallas import tpu as pltpu


# ----------------------------------------------------------------------------
# Pallas kernels
# ----------------------------------------------------------------------------
def _matmul_bias_kernel(x_ref, w_ref, b_ref, o_ref, *, relu):
    # x: (tm, K) bf16, w: (K, N) bf16, b: (1, N) f32  ->  o: (tm, N)
    acc = jnp.dot(x_ref[...], w_ref[...], preferred_element_type=jnp.float32)
    acc = acc + b_ref[...]
    if relu:
        acc = jnp.maximum(acc, 0.0)
    o_ref[...] = acc.astype(o_ref.dtype)


def matmul_bias(x, w, b2, *, relu, out_dtype, tm_target=512):
    """out = [relu](x @ w + b2). x:(M,K) w:(K,N) b2:(1,N). Tiled over M with a
    tile that divides M exactly -> no jnp.pad / out[:M] HBM copies."""
    M, K = x.shape
    N = w.shape[1]
    if M <= tm_target or M % 16 != 0:
        tm = M                                  # single M block (layers here are tiny)
    else:
        tm = tm_target - tm_target % 16
        while M % tm != 0:                      # largest multiple-of-16 divisor
            tm -= 16
    return pl.pallas_call(
        functools.partial(_matmul_bias_kernel, relu=relu),
        out_shape=jax.ShapeDtypeStruct((M, N), out_dtype),
        grid=(M // tm,),
        in_specs=[
            pl.BlockSpec((tm, K), lambda i: (i, 0)),
            pl.BlockSpec((K, N), lambda i: (0, 0)),
            pl.BlockSpec((1, N), lambda i: (0, 0)),
        ],
        out_specs=pl.BlockSpec((tm, N), lambda i: (i, 0)),
        compiler_params=pltpu.CompilerParams(
            dimension_semantics=("parallel",)),
    )(x, w, b2)


def _conv4_head_kernel(p4_ref, w4_ref, b4_ref, wfc_ref, bfc_ref, eps_ref,
                       yaw_ref, s_ref, mu_ref, lv_ref, *, batch):
    # conv4 as one MXU matmul: (4*B, 2048) x (2048, 256), f32 accumulate.
    h4 = jnp.dot(p4_ref[...], w4_ref[...], preferred_element_type=jnp.float32)
    h4 = jnp.maximum(h4 + b4_ref[...], 0.0)          # (4*B, 256); rows = (hw, b)

    # Fused fc1|fc21|fc22 head:  out[b] = sum_hw h4[hw*B + b] @ Wfc[hw] + bias
    acc = jnp.zeros((batch, 18), jnp.float32) + bfc_ref[...]
    for hw in range(4):
        h_g = h4[hw * batch:(hw + 1) * batch, :].astype(wfc_ref.dtype)
        acc = acc + jnp.dot(h_g, wfc_ref[hw],
                            preferred_element_type=jnp.float32)

    yaw = acc[:, 0:2]
    # TODO(synk): PyTorch's `print(torch.norm(yaw))` host side-effect is not
    # reproduced; the norm is only used for the normalization below.
    inv_norm = jax.lax.rsqrt(jnp.sum(yaw * yaw))      # Frobenius norm, whole batch
    yaw_ref[...] = yaw * inv_norm

    mu = acc[:, 2:10]
    lv = acc[:, 10:18]
    mu_ref[...] = mu
    lv_ref[...] = lv
    s_ref[...] = eps_ref[...] * jnp.exp(0.5 * lv) + mu   # reparameterize


# ----------------------------------------------------------------------------
# Glue (plain JAX): NHWC im2col + layer wrappers
# ----------------------------------------------------------------------------
def im2col_nhwc(x, k, stride, row_order="bhw"):
    """NHWC (B,H,W,C) -> patch matrix, columns ordered (kh, kw, c).
    row_order 'bhw' -> rows (b, ho, wo); 'hwb' -> rows (ho, wo, b)."""
    B, H, W, C = x.shape
    Ho = (H - k) // stride + 1
    Wo = (W - k) // stride + 1
    taps = [x[:, i:i + stride * Ho:stride, j:j + stride * Wo:stride, :]
            for i in range(k) for j in range(k)]
    p = jnp.stack(taps, axis=3)                       # (B, Ho, Wo, k*k, C)
    if row_order == "hwb":
        p = p.transpose(1, 2, 0, 3, 4)                # (Ho, Wo, B, k*k, C)
        return p.reshape(Ho * Wo * B, k * k * C), Ho, Wo
    return p.reshape(B * Ho * Wo, k * k * C), Ho, Wo


def conv2d_relu_nhwc(x, w_mat, b_row):
    """Conv2d(k=4, s=2, VALID) + ReLU on NHWC activations via im2col + Pallas
    matmul.  w_mat:(k*k*Cin, Cout) bf16, b_row:(1, Cout) f32.  Output NHWC bf16."""
    B = x.shape[0]
    cout = w_mat.shape[1]
    # TODO(synk): patch matrix is still materialized by XLA; a fully implicit
    # GEMM (in-kernel strided window loads) was not adopted at these tiny sizes.
    patches, Ho, Wo = im2col_nhwc(x, 4, 2)
    out = matmul_bias(patches, w_mat, b_row, relu=True, out_dtype=jnp.bfloat16)
    return out.reshape(B, Ho, Wo, cout)               # stays NHWC, no transpose


def conv4_and_heads(p4, kp, eps, *, batch):
    vm = pl.BlockSpec(memory_space=pltpu.MemorySpace.VMEM)
    out_shapes = (
        jax.ShapeDtypeStruct((batch, 2), jnp.float32),   # yaw
        jax.ShapeDtypeStruct((batch, 8), jnp.float32),   # s
        jax.ShapeDtypeStruct((batch, 8), jnp.float32),   # mu
        jax.ShapeDtypeStruct((batch, 8), jnp.float32),   # logvar
    )
    return pl.pallas_call(
        functools.partial(_conv4_head_kernel, batch=batch),
        out_shape=out_shapes,
        in_specs=[vm] * 6,
        out_specs=(vm, vm, vm, vm),
    )(p4, kp["conv4_w"], kp["conv4_b"], kp["fc_w"], kp["fc_b"], eps)


def encoder_forward(x_nchw, kp, eps):
    B = x_nchw.shape[0]
    x = x_nchw.transpose(0, 2, 3, 1).astype(jnp.bfloat16)   # one-time NCHW->NHWC
    h = conv2d_relu_nhwc(x, kp["conv1_w"], kp["conv1_b"])   # (B, 31, 31, 32)
    h = conv2d_relu_nhwc(h, kp["conv2_w"], kp["conv2_b"])   # (B, 14, 14, 64)
    h = conv2d_relu_nhwc(h, kp["conv3_w"], kp["conv3_b"])   # (B, 6, 6, 128)
    # conv4 patches with rows ordered (ho, wo, b) so the fused head kernel can
    # use contiguous per-(ho,wo) row groups (no in-kernel reshape needed).
    p4, _, _ = im2col_nhwc(h, 4, 2, row_order="hwb")        # (4*B, 2048)
    yaw, s, mu, logvar = conv4_and_heads(p4, kp, eps, batch=B)
    return yaw, (s, mu, logvar)


# ----------------------------------------------------------------------------
# Parameters: canonical PyTorch-layout synthetic weights + one-time repack
# ----------------------------------------------------------------------------
def init_params(key):
    """Canonical (PyTorch-layout) synthetic weights: conv OIHW; fc stored as
    (in=1024, out) with rows in PyTorch's (C,H,W) flatten order; biases (1,out)."""
    ks = jax.random.split(key, 14)

    def w_init(k, shape, fan_in):
        return jax.random.normal(k, shape, jnp.float32) / jnp.sqrt(float(fan_in))

    return {
        "conv1_w": w_init(ks[0], (32, 3, 4, 4), 3 * 16),
        "conv1_b": w_init(ks[1], (32,), 3 * 16),
        "conv2_w": w_init(ks[2], (64, 32, 4, 4), 32 * 16),
        "conv2_b": w_init(ks[3], (64,), 32 * 16),
        "conv3_w": w_init(ks[4], (128, 64, 4, 4), 64 * 16),
        "conv3_b": w_init(ks[5], (128,), 64 * 16),
        "conv4_w": w_init(ks[6], (256, 128, 4, 4), 128 * 16),
        "conv4_b": w_init(ks[7], (256,), 128 * 16),
        "fc1_w": w_init(ks[8], (1024, 2), 1024),
        "fc1_b": w_init(ks[9], (1, 2), 1024),
        "fc21_w": w_init(ks[10], (1024, 8), 1024),
        "fc21_b": w_init(ks[11], (1, 8), 1024),
        "fc22_w": w_init(ks[12], (1024, 8), 1024),
        "fc22_b": w_init(ks[13], (1, 8), 1024),
    }


def prepare_params(p):
    """One-time conversion to kernel-ready layout: conv OIHW -> (kh*kw*Cin, Cout)
    bf16; fc rows permuted from (C,H,W) to NHWC (H,W,C) flatten order, the three
    heads packed into one (4, 256, 18) bf16 tensor grouped by the (h,w) position."""
    kp = {}
    for name in ("conv1", "conv2", "conv3", "conv4"):
        w = p[name + "_w"]                                   # (Cout, Cin, 4, 4)
        cout = w.shape[0]
        kp[name + "_w"] = (w.transpose(2, 3, 1, 0)
                            .reshape(-1, cout).astype(jnp.bfloat16))
        kp[name + "_b"] = p[name + "_b"].reshape(1, cout).astype(jnp.float32)

    def permute_rows(w):   # rows: PyTorch (c, h, w) order -> (h, w, c) order
        out = w.shape[1]
        return w.reshape(256, 2, 2, out).transpose(1, 2, 0, 3).reshape(1024, out)

    w_fc = jnp.concatenate([permute_rows(p["fc1_w"]),
                            permute_rows(p["fc21_w"]),
                            permute_rows(p["fc22_w"])], axis=1)    # (1024, 18)
    kp["fc_w"] = w_fc.reshape(4, 256, 18).astype(jnp.bfloat16)     # grouped by (h,w)
    kp["fc_b"] = jnp.concatenate(
        [p["fc1_b"], p["fc21_b"], p["fc22_b"]], axis=1).astype(jnp.float32)
    return kp


# Pure-f32 JAX reference (canonical params, same math) used as a sanity check.
def reference_forward(x, p, eps):
    h = x
    for name in ("conv1", "conv2", "conv3", "conv4"):
        w, b = p[name + "_w"], p[name + "_b"]
        dn = jax.lax.conv_dimension_numbers(h.shape, w.shape,
                                            ("NCHW", "OIHW", "NCHW"))
        h = jax.lax.conv_general_dilated(h, w, (2, 2), "VALID",
                                         dimension_numbers=dn)
        h = jax.nn.relu(h + b.reshape(1, -1, 1, 1))
    h = h.reshape(x.shape[0], 1024)                 # PyTorch (C,H,W) flatten order
    yaw = h @ p["fc1_w"] + p["fc1_b"][0]
    yaw = yaw / jnp.sqrt(jnp.sum(yaw * yaw))
    mu = h @ p["fc21_w"] + p["fc21_b"][0]
    lv = h @ p["fc22_w"] + p["fc22_b"][0]
    s = eps * jnp.exp(0.5 * lv) + mu
    return yaw, (s, mu, lv)


if __name__ == "__main__":
    key = jax.random.PRNGKey(0)
    kx, keps, kparam = jax.random.split(key, 3)

    B = 2
    x = jax.random.normal(kx, (B, 3, 64, 64), jnp.float32)    # NCHW, like PyTorch
    eps = jax.random.normal(keps, (B, 8), jnp.float32)        # reparam noise
    params = init_params(kparam)
    kparams = prepare_params(params)                          # one-time repack

    fwd = jax.jit(encoder_forward)
    yaw, (s, mu, logvar) = fwd(x, kparams, eps)
    jax.block_until_ready((yaw, s, mu, logvar))

    # Sanity check against a pure-f32 JAX reference (bf16 MXU => loose tol).
    ryaw, (rs, rmu, rlv) = reference_forward(x, params, eps)
    for a, b in ((yaw, ryaw), (s, rs), (mu, rmu), (logvar, rlv)):
        assert a.shape == b.shape and a.dtype == jnp.float32
        assert bool(jnp.all(jnp.isfinite(a)))
        assert bool(jnp.allclose(a, b, rtol=5e-2, atol=5e-2))

    print("KERNEL_OK")
</pallas_src>

<mosaic_0001>
module attributes {stable_mosaic.version = 11 : i64} {
  func.func @_matmul_bias_kernel(%arg0: i32, %arg1: memref<1922x48xbf16, #tpu.memory_space<vmem>>, %arg2: memref<48x32xbf16, #tpu.memory_space<vmem>>, %arg3: memref<1x32xf32, #tpu.memory_space<vmem>>, %arg4: memref<1922x32xbf16, #tpu.memory_space<vmem>>) attributes {dimension_semantics = [#tpu.dimension_semantics<parallel>], iteration_bounds = array<i64: 1>, scalar_prefetch = 0 : i64, scratch_operands = 0 : i64, tpu.core_type = #tpu.core_type<tc>, window_params = [{transform_indices = @transform_0, window_bounds = array<i64: 1922, 48>}, {pipeline_mode = #tpu.pipeline_mode<synchronous>, transform_indices = @transform_1, window_bounds = array<i64: 48, 32>}, {pipeline_mode = #tpu.pipeline_mode<synchronous>, transform_indices = @transform_2, window_bounds = array<i64: 1, 32>}, {transform_indices = @transform_3, window_bounds = array<i64: 1922, 32>}]} {
    %c0 = arith.constant 0 : index
    %c0_0 = arith.constant 0 : index
    %0 = vector.load %arg1[%c0, %c0_0] : memref<1922x48xbf16, #tpu.memory_space<vmem>>, vector<1922x48xbf16>
    %c0_1 = arith.constant 0 : index
    %c0_2 = arith.constant 0 : index
    %1 = vector.load %arg2[%c0_1, %c0_2] : memref<48x32xbf16, #tpu.memory_space<vmem>>, vector<48x32xbf16>
    %cst = arith.constant dense<0.000000e+00> : vector<1922x32xf32>
    %2 = tpu.matmul %0, %1, %cst {dimension_numbers = #tpu.dot_dimension_numbers<[1], [0], [0], [1], [0, 0, 1, 1], [], []>} : vector<1922x48xbf16>, vector<48x32xbf16>, vector<1922x32xf32> -> vector<1922x32xf32>
    %c0_3 = arith.constant 0 : index
    %c0_4 = arith.constant 0 : index
    %3 = vector.load %arg3[%c0_3, %c0_4] : memref<1x32xf32, #tpu.memory_space<vmem>>, vector<1x32xf32>
    %4 = vector.broadcast %3 : vector<1x32xf32> to vector<1922x32xf32>
    %5 = arith.addf %2, %4 : vector<1922x32xf32>
    %cst_5 = arith.constant 0.000000e+00 : f32
    %6 = vector.broadcast %cst_5 : f32 to vector<1922x32xf32>
    %7 = arith.maximumf %5, %6 : vector<1922x32xf32>
    %8 = arith.truncf %7 : vector<1922x32xf32> to vector<1922x32xbf16>
    %c0_6 = arith.constant 0 : index
    %c0_7 = arith.constant 0 : index
    %9 = vector.load %arg4[%c0_6, %c0_7] : memref<1922x32xbf16, #tpu.memory_space<vmem>>, vector<1922x32xbf16>
    tpu.vector_store %arg4[%c0_6, %c0_7], %8 {strides = array<i32>} : memref<1922x32xbf16, #tpu.memory_space<vmem>>, vector<1922x32xbf16>,
    return
  }
  func.func @transform_0(%arg0: i32) -> (i32, i32) {
    %c0_i32 = arith.constant 0 : i32
    %c0_i32_0 = arith.constant 0 : i32
    return %arg0, %c0_i32 : i32, i32
  }
  func.func @transform_1(%arg0: i32) -> (i32, i32) {
    %c0_i32 = arith.constant 0 : i32
    %c0_i32_0 = arith.constant 0 : i32
    %c0_i32_1 = arith.constant 0 : i32
    return %c0_i32, %c0_i32_0 : i32, i32
  }
  func.func @transform_2(%arg0: i32) -> (i32, i32) {
    %c0_i32 = arith.constant 0 : i32
    %c0_i32_0 = arith.constant 0 : i32
    %c0_i32_1 = arith.constant 0 : i32
    return %c0_i32, %c0_i32_0 : i32, i32
  }
  func.func @transform_3(%arg0: i32) -> (i32, i32) {
    %c0_i32 = arith.constant 0 : i32
    %c0_i32_0 = arith.constant 0 : i32
    return %arg0, %c0_i32 : i32, i32
  }
}

module attributes {stable_mosaic.version = 11 : i64} {
  func.func @_matmul_bias_kernel(%arg0: i32, %arg1: memref<392x512xbf16, #tpu.memory_space<vmem>>, %arg2: memref<512x64xbf16, #tpu.memory_space<vmem>>, %arg3: memref<1x64xf32, #tpu.memory_space<vmem>>, %arg4: memref<392x64xbf16, #tpu.memory_space<vmem>>) attributes {dimension_semantics = [#tpu.dimension_semantics<parallel>], iteration_bounds = array<i64: 1>, scalar_prefetch = 0 : i64, scratch_operands = 0 : i64, tpu.core_type = #tpu.core_type<tc>, window_params = [{transform_indices = @transform_0, window_bounds = array<i64: 392, 512>}, {pipeline_mode = #tpu.pipeline_mode<synchronous>, transform_indices = @transform_1, window_bounds = array<i64: 512, 64>}, {pipeline_mode = #tpu.pipeline_mode<synchronous>, transform_indices = @transform_2, window_bounds = array<i64: 1, 64>}, {transform_indices = @transform_3, window_bounds = array<i64: 392, 64>}]} {
    %c0 = arith.constant 0 : index
    %c0_0 = arith.constant 0 : index
    %0 = vector.load %arg1[%c0, %c0_0] : memref<392x512xbf16, #tpu.memory_space<vmem>>, vector<392x512xbf16>
    %c0_1 = arith.constant 0 : index
    %c0_2 = arith.constant 0 : index
    %1 = vector.load %arg2[%c0_1, %c0_2] : memref<512x64xbf16, #tpu.memory_space<vmem>>, vector<512x64xbf16>
    %cst = arith.constant dense<0.000000e+00> : vector<392x64xf32>
    %2 = tpu.matmul %0, %1, %cst {dimension_numbers = #tpu.dot_dimension_numbers<[1], [0], [0], [1], [0, 0, 1, 1], [], []>} : vector<392x512xbf16>, vector<512x64xbf16>, vector<392x64xf32> -> vector<392x64xf32>
    %c0_3 = arith.constant 0 : index
    %c0_4 = arith.constant 0 : index
    %3 = vector.load %arg3[%c0_3, %c0_4] : memref<1x64xf32, #tpu.memory_space<vmem>>, vector<1x64xf32>
    %4 = vector.broadcast %3 : vector<1x64xf32> to vector<392x64xf32>
    %5 = arith.addf %2, %4 : vector<392x64xf32>
    %cst_5 = arith.constant 0.000000e+00 : f32
    %6 = vector.broadcast %cst_5 : f32 to vector<392x64xf32>
    %7 = arith.maximumf %5, %6 : vector<392x64xf32>
    %8 = arith.truncf %7 : vector<392x64xf32> to vector<392x64xbf16>
    %c0_6 = arith.constant 0 : index
    %c0_7 = arith.constant 0 : index
    %9 = vector.load %arg4[%c0_6, %c0_7] : memref<392x64xbf16, #tpu.memory_space<vmem>>, vector<392x64xbf16>
    tpu.vector_store %arg4[%c0_6, %c0_7], %8 {strides = array<i32>} : memref<392x64xbf16, #tpu.memory_space<vmem>>, vector<392x64xbf16>,
    return
  }
  func.func @transform_0(%arg0: i32) -> (i32, i32) {
    %c0_i32 = arith.constant 0 : i32
    %c0_i32_0 = arith.constant 0 : i32
    return %arg0, %c0_i32 : i32, i32
  }
  func.func @transform_1(%arg0: i32) -> (i32, i32) {
    %c0_i32 = arith.constant 0 : i32
    %c0_i32_0 = arith.constant 0 : i32
    %c0_i32_1 = arith.constant 0 : i32
    return %c0_i32, %c0_i32_0 : i32, i32
  }
  func.func @transform_2(%arg0: i32) -> (i32, i32) {
    %c0_i32 = arith.constant 0 : i32
    %c0_i32_0 = arith.constant 0 : i32
    %c0_i32_1 = arith.constant 0 : i32
    return %c0_i32, %c0_i32_0 : i32, i32
  }
  func.func @transform_3(%arg0: i32) -> (i32, i32) {
    %c0_i32 = arith.constant 0 : i32
    %c0_i32_0 = arith.constant 0 : i32
    return %arg0, %c0_i32 : i32, i32
  }
}

module attributes {stable_mosaic.version = 11 : i64} {
  func.func @_matmul_bias_kernel(%arg0: i32, %arg1: memref<72x1024xbf16, #tpu.memory_space<vmem>>, %arg2: memref<1024x128xbf16, #tpu.memory_space<vmem>>, %arg3: memref<1x128xf32, #tpu.memory_space<vmem>>, %arg4: memref<72x128xbf16, #tpu.memory_space<vmem>>) attributes {dimension_semantics = [#tpu.dimension_semantics<parallel>], iteration_bounds = array<i64: 1>, scalar_prefetch = 0 : i64, scratch_operands = 0 : i64, tpu.core_type = #tpu.core_type<tc>, window_params = [{transform_indices = @transform_0, window_bounds = array<i64: 72, 1024>}, {pipeline_mode = #tpu.pipeline_mode<synchronous>, transform_indices = @transform_1, window_bounds = array<i64: 1024, 128>}, {pipeline_mode = #tpu.pipeline_mode<synchronous>, transform_indices = @transform_2, window_bounds = array<i64: 1, 128>}, {transform_indices = @transform_3, window_bounds = array<i64: 72, 128>}]} {
    %c0 = arith.constant 0 : index
    %c0_0 = arith.constant 0 : index
    %0 = vector.load %arg1[%c0, %c0_0] : memref<72x1024xbf16, #tpu.memory_space<vmem>>, vector<72x1024xbf16>
    %c0_1 = arith.constant 0 : index
    %c0_2 = arith.constant 0 : index
    %1 = vector.load %arg2[%c0_1, %c0_2] : memref<1024x128xbf16, #tpu.memory_space<vmem>>, vector<1024x128xbf16>
    %cst = arith.constant dense<0.000000e+00> : vector<72x128xf32>
    %2 = tpu.matmul %0, %1, %cst {dimension_numbers = #tpu.dot_dimension_numbers<[1], [0], [0], [1], [0, 0, 1, 1], [], []>} : vector<72x1024xbf16>, vector<1024x128xbf16>, vector<72x128xf32> -> vector<72x128xf32>
    %c0_3 = arith.constant 0 : index
    %c0_4 = arith.constant 0 : index
    %3 = vector.load %arg3[%c0_3, %c0_4] : memref<1x128xf32, #tpu.memory_space<vmem>>, vector<1x128xf32>
    %4 = vector.broadcast %3 : vector<1x128xf32> to vector<72x128xf32>
    %5 = arith.addf %2, %4 : vector<72x128xf32>
    %cst_5 = arith.constant 0.000000e+00 : f32
    %6 = vector.broadcast %cst_5 : f32 to vector<72x128xf32>
    %7 = arith.maximumf %5, %6 : vector<72x128xf32>
    %8 = arith.truncf %7 : vector<72x128xf32> to vector<72x128xbf16>
    %c0_6 = arith.constant 0 : index
    %c0_7 = arith.constant 0 : index
    %9 = vector.load %arg4[%c0_6, %c0_7] : memref<72x128xbf16, #tpu.memory_space<vmem>>, vector<72x128xbf16>
    tpu.vector_store %arg4[%c0_6, %c0_7], %8 {strides = array<i32>} : memref<72x128xbf16, #tpu.memory_space<vmem>>, vector<72x128xbf16>,
    return
  }
  func.func @transform_0(%arg0: i32) -> (i32, i32) {
    %c0_i32 = arith.constant 0 : i32
    %c0_i32_0 = arith.constant 0 : i32
    return %arg0, %c0_i32 : i32, i32
  }
  func.func @transform_1(%arg0: i32) -> (i32, i32) {
    %c0_i32 = arith.constant 0 : i32
    %c0_i32_0 = arith.constant 0 : i32
    %c0_i32_1 = arith.constant 0 : i32
    return %c0_i32, %c0_i32_0 : i32, i32
  }
  func.func @transform_2(%arg0: i32) -> (i32, i32) {
    %c0_i32 = arith.constant 0 : i32
    %c0_i32_0 = arith.constant 0 : i32
    %c0_i32_1 = arith.constant 0 : i32
    return %c0_i32, %c0_i32_0 : i32, i32
  }
  func.func @transform_3(%arg0: i32) -> (i32, i32) {
    %c0_i32 = arith.constant 0 : i32
    %c0_i32_0 = arith.constant 0 : i32
    return %arg0, %c0_i32 : i32, i32
  }
}

module attributes {stable_mosaic.version = 11 : i64} {
  func.func @_conv4_head_kernel(%arg0: memref<8x2048xbf16, #tpu.memory_space<vmem>>, %arg1: memref<2048x256xbf16, #tpu.memory_space<vmem>>, %arg2: memref<1x256xf32, #tpu.memory_space<vmem>>, %arg3: memref<4x256x18xbf16, #tpu.memory_space<vmem>>, %arg4: memref<1x18xf32, #tpu.memory_space<vmem>>, %arg5: memref<2x8xf32, #tpu.memory_space<vmem>>, %arg6: memref<2x2xf32, #tpu.memory_space<vmem>>, %arg7: memref<2x8xf32, #tpu.memory_space<vmem>>, %arg8: memref<2x8xf32, #tpu.memory_space<vmem>>, %arg9: memref<2x8xf32, #tpu.memory_space<vmem>>) attributes {dimension_semantics = [], scalar_prefetch = 0 : i64, scratch_operands = 0 : i64, tpu.core_type = #tpu.core_type<tc>} {
    %c0 = arith.constant 0 : index
    %c0_0 = arith.constant 0 : index
    %0 = vector.load %arg0[%c0, %c0_0] : memref<8x2048xbf16, #tpu.memory_space<vmem>>, vector<8x2048xbf16>
    %c0_1 = arith.constant 0 : index
    %c0_2 = arith.constant 0 : index
    %1 = vector.load %arg1[%c0_1, %c0_2] : memref<2048x256xbf16, #tpu.memory_space<vmem>>, vector<2048x256xbf16>
    %cst = arith.constant dense<0.000000e+00> : vector<8x256xf32>
    %2 = tpu.matmul %0, %1, %cst {dimension_numbers = #tpu.dot_dimension_numbers<[1], [0], [0], [1], [0, 0, 1, 1], [], []>} : vector<8x2048xbf16>, vector<2048x256xbf16>, vector<8x256xf32> -> vector<8x256xf32>
    %c0_3 = arith.constant 0 : index
    %c0_4 = arith.constant 0 : index
    %3 = vector.load %arg2[%c0_3, %c0_4] : memref<1x256xf32, #tpu.memory_space<vmem>>, vector<1x256xf32>
    %4 = vector.broadcast %3 : vector<1x256xf32> to vector<8x256xf32>
    %5 = arith.addf %2, %4 : vector<8x256xf32>
    %cst_5 = arith.constant 0.000000e+00 : f32
    %6 = vector.broadcast %cst_5 : f32 to vector<8x256xf32>
    %7 = arith.maximumf %5, %6 : vector<8x256xf32>
    %cst_6 = arith.constant 0.000000e+00 : f32
    %8 = vector.broadcast %cst_6 : f32 to vector<2x18xf32>
    %c0_7 = arith.constant 0 : index
    %c0_8 = arith.constant 0 : index
    %9 = vector.load %arg4[%c0_7, %c0_8] : memref<1x18xf32, #tpu.memory_space<vmem>>, vector<1x18xf32>
    %10 = vector.broadcast %9 : vector<1x18xf32> to vector<2x18xf32>
    %11 = arith.addf %8, %10 : vector<2x18xf32>
    %12 = vector.extract_strided_slice %7 {offsets = [0, 0], sizes = [2, 256], strides = [1, 1]} : vector<8x256xf32> to vector<2x256xf32>
    %13 = arith.truncf %12 : vector<2x256xf32> to vector<2x256xbf16>
    %c0_9 = arith.constant 0 : index
    %c0_10 = arith.constant 0 : index
    %c0_11 = arith.constant 0 : index
    %14 = vector.load %arg3[%c0_9, %c0_10, %c0_11] : memref<4x256x18xbf16, #tpu.memory_space<vmem>>, vector<1x256x18xbf16>
    %15 = vector.shape_cast %14 : vector<1x256x18xbf16> to vector<256x18xbf16>
    %cst_12 = arith.constant dense<0.000000e+00> : vector<2x18xf32>
    %16 = tpu.matmul %13, %15, %cst_12 {dimension_numbers = #tpu.dot_dimension_numbers<[1], [0], [0], [1], [0, 0, 1, 1], [], []>} : vector<2x256xbf16>, vector<256x18xbf16>, vector<2x18xf32> -> vector<2x18xf32>
    %17 = arith.addf %11, %16 : vector<2x18xf32>
    %18 = vector.extract_strided_slice %7 {offsets = [2, 0], sizes = [2, 256], strides = [1, 1]} : vector<8x256xf32> to vector<2x256xf32>
    %19 = arith.truncf %18 : vector<2x256xf32> to vector<2x256xbf16>
    %c1 = arith.constant 1 : index
    %c0_13 = arith.constant 0 : index
    %c0_14 = arith.constant 0 : index
    %20 = vector.load %arg3[%c1, %c0_13, %c0_14] : memref<4x256x18xbf16, #tpu.memory_space<vmem>>, vector<1x256x18xbf16>
    %21 = vector.shape_cast %20 : vector<1x256x18xbf16> to vector<256x18xbf16>
    %cst_15 = arith.constant dense<0.000000e+00> : vector<2x18xf32>
    %22 = tpu.matmul %19, %21, %cst_15 {dimension_numbers = #tpu.dot_dimension_numbers<[1], [0], [0], [1], [0, 0, 1, 1], [], []>} : vector<2x256xbf16>, vector<256x18xbf16>, vector<2x18xf32> -> vector<2x18xf32>
    %23 = arith.addf %17, %22 : vector<2x18xf32>
    %24 = vector.extract_strided_slice %7 {offsets = [4, 0], sizes = [2, 256], strides = [1, 1]} : vector<8x256xf32> to vector<2x256xf32>
    %25 = arith.truncf %24 : vector<2x256xf32> to vector<2x256xbf16>
    %c2 = arith.constant 2 : index
    %c0_16 = arith.constant 0 : index
    %c0_17 = arith.constant 0 : index
    %26 = vector.load %arg3[%c2, %c0_16, %c0_17] : memref<4x256x18xbf16, #tpu.memory_space<vmem>>, vector<1x256x18xbf16>
    %27 = vector.shape_cast %26 : vector<1x256x18xbf16> to vector<256x18xbf16>
    %cst_18 = arith.constant dense<0.000000e+00> : vector<2x18xf32>
    %28 = tpu.matmul %25, %27, %cst_18 {dimension_numbers = #tpu.dot_dimension_numbers<[1], [0], [0], [1], [0, 0, 1, 1], [], []>} : vector<2x256xbf16>, vector<256x18xbf16>, vector<2x18xf32> -> vector<2x18xf32>
    %29 = arith.addf %23, %28 : vector<2x18xf32>
    %30 = vector.extract_strided_slice %7 {offsets = [6, 0], sizes = [2, 256], strides = [1, 1]} : vector<8x256xf32> to vector<2x256xf32>
    %31 = arith.truncf %30 : vector<2x256xf32> to vector<2x256xbf16>
    %c3 = arith.constant 3 : index
    %c0_19 = arith.constant 0 : index
    %c0_20 = arith.constant 0 : index
    %32 = vector.load %arg3[%c3, %c0_19, %c0_20] : memref<4x256x18xbf16, #tpu.memory_space<vmem>>, vector<1x256x18xbf16>
    %33 = vector.shape_cast %32 : vector<1x256x18xbf16> to vector<256x18xbf16>
    %cst_21 = arith.constant dense<0.000000e+00> : vector<2x18xf32>
    %34 = tpu.matmul %31, %33, %cst_21 {dimension_numbers = #tpu.dot_dimension_numbers<[1], [0], [0], [1], [0, 0, 1, 1], [], []>} : vector<2x256xbf16>, vector<256x18xbf16>, vector<2x18xf32> -> vector<2x18xf32>
    %35 = arith.addf %29, %34 : vector<2x18xf32>
    %36 = vector.extract_strided_slice %35 {offsets = [0, 0], sizes = [2, 2], strides = [1, 1]} : vector<2x18xf32> to vector<2x2xf32>
    %37 = arith.mulf %36, %36 : vector<2x2xf32>
    %38 = vector.shape_cast %37 : vector<2x2xf32> to vector<1x2x2xf32>
    %cst_22 = arith.constant dense<0.000000e+00> : vector<1xf32>
    %39 = vector.multi_reduction <add>, %38, %cst_22 [1, 2] : vector<1x2x2xf32> to vector<1xf32>
    %40 = vector.shape_cast %39 : vector<1xf32> to vector<1x1x1xf32>
    %41 = vector.extract %40[0, 0, 0] : f32 from vector<1x1x1xf32>
    %42 = math.rsqrt %41 : f32
    %43 = vector.broadcast %42 : f32 to vector<2x2xf32>
    %44 = arith.mulf %36, %43 : vector<2x2xf32>
    %c0_23 = arith.constant 0 : index
    %c0_24 = arith.constant 0 : index
    %45 = vector.load %arg6[%c0_23, %c0_24] : memref<2x2xf32, #tpu.memory_space<vmem>>, vector<2x2xf32>
    tpu.vector_store %arg6[%c0_23, %c0_24], %44 {strides = array<i32>} : memref<2x2xf32, #tpu.memory_space<vmem>>, vector<2x2xf32>,
    %46 = vector.extract_strided_slice %35 {offsets = [0, 2], sizes = [2, 8], strides = [1, 1]} : vector<2x18xf32> to vector<2x8xf32>
    %47 = vector.extract_strided_slice %35 {offsets = [0, 10], sizes = [2, 8], strides = [1, 1]} : vector<2x18xf32> to vector<2x8xf32>
    %c0_25 = arith.constant 0 : index
    %c0_26 = arith.constant 0 : index
    %48 = vector.load %arg8[%c0_25, %c0_26] : memref<2x8xf32, #tpu.memory_space<vmem>>, vector<2x8xf32>
    tpu.vector_store %arg8[%c0_25, %c0_26], %46 {strides = array<i32>} : memref<2x8xf32, #tpu.memory_space<vmem>>, vector<2x8xf32>,
    %c0_27 = arith.constant 0 : index
    %c0_28 = arith.constant 0 : index
    %49 = vector.load %arg9[%c0_27, %c0_28] : memref<2x8xf32, #tpu.memory_space<vmem>>, vector<2x8xf32>
    tpu.vector_store %arg9[%c0_27, %c0_28], %47 {strides = array<i32>} : memref<2x8xf32, #tpu.memory_space<vmem>>, vector<2x8xf32>,
    %c0_29 = arith.constant 0 : index
    %c0_30 = arith.constant 0 : index
    %50 = vector.load %arg5[%c0_29, %c0_30] : memref<2x8xf32, #tpu.memory_space<vmem>>, vector<2x8xf32>
    %cst_31 = arith.constant 5.000000e-01 : f32
    %51 = vector.broadcast %cst_31 : f32 to vector<2x8xf32>
    %52 = arith.mulf %51, %47 : vector<2x8xf32>
    %53 = math.exp %52 : vector<2x8xf32>
    %54 = arith.mulf %50, %53 : vector<2x8xf32>
    %55 = arith.addf %54, %46 : vector<2x8xf32>
    %c0_32 = arith.constant 0 : index
    %c0_33 = arith.constant 0 : index
    %56 = vector.load %arg7[%c0_32, %c0_33] : memref<2x8xf32, #tpu.memory_space<vmem>>, vector<2x8xf32>
    tpu.vector_store %arg7[%c0_32, %c0_33], %55 {strides = array<i32>} : memref<2x8xf32, #tpu.memory_space<vmem>>, vector<2x8xf32>,
    return
  }
}

</mosaic_0001>

<bundles_post_ra>
// kernel: encoder_forward.4
= control target key start
LH: loop header
LB: loop body
LE: loop exit
PB: predicated region body
PF: predicated region fallthrough
CT: control target
= control target key end

     0   :  { %v5184_v0 = vmov 0.0   ;;  %vm5185_vm0 = vmmov 0   ;;  %vm890_vm1 = vcmask 392192   ;;  %vm3460_vm2 = vcmask 257024   ;;  %s7171_s1 = inlined_call_operand.vmem [shape: bf16[48,32], index: 1, kind: input, shape index: {}]   ;;  %s7172_s0 = inlined_call_operand.vmem [shape: bf16[1922,48], index: 0, kind: input, shape index: {}]   ;;  %s7173_s2 = inlined_call_operand.vmem [shape: f32[1,32], index: 2, kind: input, shape index: {}]   ;;  %s7174_s3 = inlined_call_operand.vmem [shape: bf16[1922,32], index: 3, kind: output, shape index: {}]  }
   0x1   :  { %4559 = vmatprep.subr.bf16.mxu0 %v5184_v0  ;;  %v5057_v1 = vld [vmem:[%s7171_s1] sm:$0xff]   ;;  %5049 = vmatprep.subr.bf16.mxu1 %v5184_v0  ;;  %v5058_v2 = vld [vmem:[%s7171_s1 + $0x8] sm:$0xff]   ;;  %v5059_v3 = vld [vmem:[%s7171_s1 + $0x10] sm:$0xff]   ;;  %vm3701_vm3 = vcmask 253952  }
   0x2   :  { %4565 = vmatprep.mubr.msk.bf16.mxu0 %vm5185_vm0, %v5184_v0  ;;  %4809 = vmatprep.mubr.msk.bf16.mxu1 %vm5185_vm0, %v5184_v0  ;;  %v5060_v4 = vld [vmem:[%s7172_s0] sm:$0xff]   ;;  %v5061_v5 = vld [vmem:[%s7172_s0 + $0x1e8] sm:$0xff]   ;;  %v5063_v7 = vld [vmem:[%s7172_s0 + $0x1f0] sm:$0xff]  }
   0x3   :  { %4560 = vmatpush3.bf16.msra.mxu0 %v5057_v1  ;;  %5052 = vmatpush3.bf16.msra.mxu1 %v5057_v1  ;;  %v5062_v6 = vld [vmem:[%s7172_s0 + $0x8] sm:$0xff]   ;;  %v5064_v8 = vld [vmem:[%s7172_s0 + $0x10] sm:$0xff]   ;;  %v5065_v9 = vld [vmem:[%s7172_s0 + $0x1f8] sm:$0xff]  }
   0x4   :  { %4561 = vmatprep.subr.bf16.mxu0 %v5184_v0  ;;  %5050 = vmatprep.subr.bf16.mxu1 %v5184_v0  ;;  %v5066_v10 = vld [vmem:[%s7172_s0 + $0x18] sm:$0xff]   ;;  %v5067_v11 = vld [vmem:[%s7172_s0 + $0x200] sm:$0xff]   ;;  %v5069_v13 = vld [vmem:[%s7172_s0 + $0x208] sm:$0xff]  }
   0x5   :  { %v5068_v12 = vld [vmem:[%s7172_s0 + $0x20] sm:$0xff]   ;;  %v5070_v14 = vld [vmem:[%s7172_s0 + $0x28] sm:$0xff]   ;;  %v5071_v15 = vld [vmem:[%s7172_s0 + $0x210] sm:$0xff]  }
   0x6   :  { %v5072_v16 = vld [vmem:[%s7172_s0 + $0x30] sm:$0xff]   ;;  %v5073_v17 = vld [vmem:[%s7172_s0 + $0x218] sm:$0xff]   ;;  %v5075_v19 = vld [vmem:[%s7172_s0 + $0x220] sm:$0xff]  }
   0x7   :  { %4562 = vmatpush3.bf16.msra.mxu0 %v5058_v2  ;;  %5053 = vmatpush3.bf16.msra.mxu1 %v5058_v2  ;;  %v5074_v18 = vld [vmem:[%s7172_s0 + $0x38] sm:$0xff]   ;;  %v5076_v20 = vld [vmem:[%s7172_s0 + $0x40] sm:$0xff]   ;;  %v5077_v21 = vld [vmem:[%s7172_s0 + $0x228] sm:$0xff]  }
   0x8   :  { %4563 = vmatprep.subr.bf16.mxu0 %v5184_v0  ;;  %5051 = vmatprep.subr.bf16.mxu1 %v5184_v0  ;;  %v5078_v22 = vld [vmem:[%s7172_s0 + $0x48] sm:$0xff]   ;;  %v5079_v23 = vld [vmem:[%s7172_s0 + $0x230] sm:$0xff]   ;;  %v5081_v25 = vld [vmem:[%s7172_s0 + $0x238] sm:$0xff]  }
   0x9   :  { %v5080_v24 = vld [vmem:[%s7172_s0 + $0x50] sm:$0xff]   ;;  %v5082_v26 = vld [vmem:[%s7172_s0 + $0x58] sm:$0xff]   ;;  %v5083_v27 = vld [vmem:[%s7172_s0 + $0x240] sm:$0xff]  }
   0xa   :  { %v5084_v28 = vld [vmem:[%s7172_s0 + $0x60] sm:$0xff]   ;;  %v5085_v29 = vld [vmem:[%s7172_s0 + $0x248] sm:$0xff]   ;;  %v5087_v31 = vld [vmem:[%s7172_s0 + $0x250] sm:$0xff]  }
   0xb   :  { %4564 = vmatpush3.bf16.msra.mxu0 %v5059_v3  ;;  %5054 = vmatpush3.bf16.msra.mxu1 %v5059_v3  ;;  %v5086_v30 = vld [vmem:[%s7172_s0 + $0x68] sm:$0xff]   ;;  %v5088_v32 = vld [vmem:[%s7172_s0 + $0x70] sm:$0xff]   ;;  %v5089_v33 = vld [vmem:[%s7172_s0 + $0x258] sm:$0xff]  }
   0xc   :  { %v5090_v34 = vld [vmem:[%s7172_s0 + $0x78] sm:$0xff]   ;;  %v5091_v35 = vld [vmem:[%s7172_s0 + $0x260] sm:$0xff]   ;;  %v5093_v37 = vld [vmem:[%s7172_s0 + $0x268] sm:$0xff]  }
   0xd   :  { %v5092_v36 = vld [vmem:[%s7172_s0 + $0x80] sm:$0xff]   ;;  %v5094_v38 = vld [vmem:[%s7172_s0 + $0x88] sm:$0xff]   ;;  %v5095_v39 = vld [vmem:[%s7172_s0 + $0x270] sm:$0xff]  }
   0xe   :  { %4566 = vmatmul.mubr.msk.bf16.vlgmr.msra.gmra.mrb[0].mxu0 %vm890_vm1, %v5060_v4  ;;  %4810 = vmatmul.mubr.msk.bf16.vlgmr.msra.gmra.mrb[0].mxu1 %vm890_vm1, %v5061_v5  ;;  %v5096_v40 = vld [vmem:[%s7172_s0 + $0x90] sm:$0xff]   ;;  %v5097_v41 = vld [vmem:[%s7172_s0 + $0x278] sm:$0xff]   ;;  %v5099_v43 = vld [vmem:[%s7172_s0 + $0x280] sm:$0xff]  }
   0xf   :  { %4569 = vmatprep.mubr.msk.bf16.mxu0 %vm5185_vm0, %v5184_v0  ;;  %4813 = vmatprep.mubr.msk.bf16.mxu1 %vm5185_vm0, %v5184_v0  ;;  %v5098_v42 = vld [vmem:[%s7172_s0 + $0x98] sm:$0xff]   ;;  %v5100_v44 = vld [vmem:[%s7172_s0 + $0xa0] sm:$0xff]   ;;  %v5101_v45 = vld [vmem:[%s7172_s0 + $0x288] sm:$0xff]  }
  0x10   :  { %v5102_v46 = vld [vmem:[%s7172_s0 + $0xa8] sm:$0xff]   ;;  %v5103_v47 = vld [vmem:[%s7172_s0 + $0x290] sm:$0xff]   ;;  %v5105_v49 = vld [vmem:[%s7172_s0 + $0x298] sm:$0xff]  }
  0x11   :  { %v5104_v48 = vld [vmem:[%s7172_s0 + $0xb0] sm:$0xff]   ;;  %v5106_v50 = vld [vmem:[%s7172_s0 + $0xb8] sm:$0xff]   ;;  %v5107_v51 = vld [vmem:[%s7172_s0 + $0x2a0] sm:$0xff]  }
  0x12   :  { %v5108_v52 = vld [vmem:[%s7172_s0 + $0xc0] sm:$0xff]   ;;  %v5109_v53 = vld [vmem:[%s7172_s0 + $0x2a8] sm:$0xff]   ;;  %v5111_v55 = vld [vmem:[%s7172_s0 + $0x2b0] sm:$0xff]  }
  0x13   :  { %v5110_v54 = vld [vmem:[%s7172_s0 + $0xc8] sm:$0xff]   ;;  %v5112_v56 = vld [vmem:[%s7172_s0 + $0xd0] sm:$0xff]   ;;  %v5113_v57 = vld [vmem:[%s7172_s0 + $0x2b8] sm:$0xff]  }
  0x14   :  { %v5548_v58 = vld [vmem:[%s7173_s2] ss:$0 sm:$0xff]  ;;  %v5114_v63 = vld [vmem:[%s7172_s0 + $0xd8] sm:$0xff]  }
  0x15   :  { %v5115_v3 = vld [vmem:[%s7172_s0 + $0x2c0] sm:$0xff]  }
  0x16   :  { %4570 = vmatmul.mubr.msk.bf16.gmra.mrb[4].mxu0 %vm890_vm1, %v5062_v6  ;;  %4814 = vmatmul.mubr.msk.bf16.gmra.mrb[4].mxu1 %vm890_vm1, %v5063_v7 }
  0x17   :  { %4573 = vmatprep.mubr.msk.bf16.mxu0 %vm5185_vm0, %v5184_v0  ;;  %4817 = vmatprep.mubr.msk.bf16.mxu1 %vm5185_vm0, %v5184_v0 }
  0x1e   :  { %4574 = vmatmul.mubr.msk.bf16.gmra.mrb[8].mxu0 %vm890_vm1, %v5064_v8  ;;  %4818 = vmatmul.mubr.msk.bf16.gmra.mrb[8].mxu1 %vm890_vm1, %v5065_v9 }
  0x1f   :  { %4577 = vmatprep.mubr.msk.bf16.mxu0 %vm5185_vm0, %v5184_v0  ;;  %4821 = vmatprep.mubr.msk.bf16.mxu1 %vm5185_vm0, %v5184_v0 }
  0x26   :  { %4578 = vmatmul.mubr.msk.bf16.gmra.mrb[12].mxu0 %vm890_vm1, %v5066_v10  ;;  %4822 = vmatmul.mubr.msk.bf16.gmra.mrb[12].mxu1 %vm890_vm1, %v5067_v11 }
  0x27   :  { %4581 = vmatprep.mubr.msk.bf16.mxu0 %vm5185_vm0, %v5184_v0  ;;  %4825 = vmatprep.mubr.msk.bf16.mxu1 %vm5185_vm0, %v5184_v0 }
  0x2e   :  { %4582 = vmatmul.mubr.msk.bf16.gmra.mrb[16].mxu0 %vm890_vm1, %v5068_v12  ;;  %4826 = vmatmul.mubr.msk.bf16.gmra.mrb[16].mxu1 %vm890_vm1, %v5069_v13 }
  0x2f   :  { %4585 = vmatprep.mubr.msk.bf16.mxu0 %vm5185_vm0, %v5184_v0  ;;  %4829 = vmatprep.mubr.msk.bf16.mxu1 %vm5185_vm0, %v5184_v0 }
  0x36   :  { %4586 = vmatmul.mubr.msk.bf16.gmra.mrb[20].mxu0 %vm890_vm1, %v5070_v14  ;;  %4830 = vmatmul.mubr.msk.bf16.gmra.mrb[20].mxu1 %vm890_vm1, %v5071_v15 }
  0x37   :  { %4589 = vmatprep.mubr.msk.bf16.mxu0 %vm5185_vm0, %v5184_v0  ;;  %4833 = vmatprep.mubr.msk.bf16.mxu1 %vm5185_vm0, %v5184_v0 }
  0x3e   :  { %4590 = vmatmul.mubr.msk.bf16.gmra.mrb[24].mxu0 %vm890_vm1, %v5072_v16  ;;  %4834 = vmatmul.mubr.msk.bf16.gmra.mrb[24].mxu1 %vm890_vm1, %v5073_v17 }
  0x3f   :  { %4593 = vmatprep.mubr.msk.bf16.mxu0 %vm5185_vm0, %v5184_v0  ;;  %4837 = vmatprep.mubr.msk.bf16.mxu1 %vm5185_vm0, %v5184_v0 }
  0x46   :  { %4594 = vmatmul.mubr.msk.bf16.gmra.mrb[28].mxu0 %vm890_vm1, %v5074_v18  ;;  %4838 = vmatmul.mubr.msk.bf16.gmra.mrb[28].mxu1 %vm890_vm1, %v5075_v19 }
  0x47   :  { %4597 = vmatprep.mubr.msk.bf16.mxu0 %vm5185_vm0, %v5184_v0  ;;  %4841 = vmatprep.mubr.msk.bf16.mxu1 %vm5185_vm0, %v5184_v0 }
  0x4e   :  { %4598 = vmatmul.mubr.msk.bf16.gmra.mrb[32].mxu0 %vm890_vm1, %v5076_v20  ;;  %4842 = vmatmul.mubr.msk.bf16.gmra.mrb[32].mxu1 %vm890_vm1, %v5077_v21 }
  0x4f   :  { %4601 = vmatprep.mubr.msk.bf16.mxu0 %vm5185_vm0, %v5184_v0  ;;  %4845 = vmatprep.mubr.msk.bf16.mxu1 %vm5185_vm0, %v5184_v0 }
  0x56   :  { %4602 = vmatmul.mubr.msk.bf16.gmra.mrb[36].mxu0 %vm890_vm1, %v5078_v22  ;;  %4846 = vmatmul.mubr.msk.bf16.gmra.mrb[36].mxu1 %vm890_vm1, %v5079_v23  ;;  %v5116_v22 = vld [vmem:[%s7172_s0 + $0xe0] sm:$0xff]  }
  0x57   :  { %4605 = vmatprep.mubr.msk.bf16.mxu0 %vm5185_vm0, %v5184_v0  ;;  %4849 = vmatprep.mubr.msk.bf16.mxu1 %vm5185_vm0, %v5184_v0 }
  0x5e   :  { %4606 = vmatmul.mubr.msk.bf16.gmra.mrb[40].mxu0 %vm890_vm1, %v5080_v24  ;;  %4850 = vmatmul.mubr.msk.bf16.gmra.mrb[40].mxu1 %vm890_vm1, %v5081_v25  ;;  %v5117_v25 = vld [vmem:[%s7172_s0 + $0x2c8] sm:$0xff]  }
  0x5f   :  { %4609 = vmatprep.mubr.msk.bf16.mxu0 %vm5185_vm0, %v5184_v0  ;;  %4853 = vmatprep.mubr.msk.bf16.mxu1 %vm5185_vm0, %v5184_v0 }
  0x66   :  { %4610 = vmatmul.mubr.msk.bf16.gmra.mrb[44].mxu0 %vm890_vm1, %v5082_v26  ;;  %4854 = vmatmul.mubr.msk.bf16.gmra.mrb[44].mxu1 %vm890_vm1, %v5083_v27 }
  0x67   :  { %4613 = vmatprep.mubr.msk.bf16.mxu0 %vm5185_vm0, %v5184_v0  ;;  %4857 = vmatprep.mubr.msk.bf16.mxu1 %vm5185_vm0, %v5184_v0 }
  0x6e   :  { %4614 = vmatmul.mubr.msk.bf16.gmra.mrb[48].mxu0 %vm890_vm1, %v5084_v28  ;;  %4858 = vmatmul.mubr.msk.bf16.gmra.mrb[48].mxu1 %vm890_vm1, %v5085_v29 }
  0x6f   :  { %4617 = vmatprep.mubr.msk.bf16.mxu0 %vm5185_vm0, %v5184_v0  ;;  %4861 = vmatprep.mubr.msk.bf16.mxu1 %vm5185_vm0, %v5184_v0 }
  0x76   :  { %4618 = vmatmul.mubr.msk.bf16.gmra.mrb[52].mxu0 %vm890_vm1, %v5086_v30  ;;  %4862 = vmatmul.mubr.msk.bf16.gmra.mrb[52].mxu1 %vm890_vm1, %v5087_v31 }
  0x77   :  { %4621 = vmatprep.mubr.msk.bf16.mxu0 %vm5185_vm0, %v5184_v0  ;;  %4865 = vmatprep.mubr.msk.bf16.mxu1 %vm5185_vm0, %v5184_v0 }
  0x7e   :  { %4622 = vmatmul.mubr.msk.bf16.gmra.mrb[56].mxu0 %vm890_vm1, %v5088_v32  ;;  %4866 = vmatmul.mubr.msk.bf16.gmra.mrb[56].mxu1 %vm890_vm1, %v5089_v33 }
  0x7f   :  { %4625 = vmatprep.mubr.msk.bf16.mxu0 %vm5185_vm0, %v5184_v0  ;;  %4869 = vmatprep.mubr.msk.bf16.mxu1 %vm5185_vm0, %v5184_v0 }
  0x86   :  { %4626 = vmatmul.mubr.msk.bf16.gmra.mrb[60].mxu0 %vm890_vm1, %v5090_v34  ;;  %4870 = vmatmul.mubr.msk.bf16.gmra.mrb[60].mxu1 %vm890_vm1, %v5091_v35 }
  0x87   :  { %4629 = vmatprep.mubr.msk.bf16.mxu0 %vm5185_vm0, %v5184_v0  ;;  %4873 = vmatprep.mubr.msk.bf16.mxu1 %vm5185_vm0, %v5184_v0 }
  0x8e   :  { %4630 = vmatmul.mubr.msk.bf16.gmra.mrb[64].mxu0 %vm890_vm1, %v5092_v36  ;;  %4874 = vmatmul.mubr.msk.bf16.gmra.mrb[64].mxu1 %vm890_vm1, %v5093_v37 }
  0x8f   :  { %4633 = vmatprep.mubr.msk.bf16.mxu0 %vm5185_vm0, %v5184_v0  ;;  %4877 = vmatprep.mubr.msk.bf16.mxu1 %vm5185_vm0, %v5184_v0 }
  0x96   :  { %4634 = vmatmul.mubr.msk.bf16.gmra.mrb[68].mxu0 %vm890_vm1, %v5094_v38  ;;  %4878 = vmatmul.mubr.msk.bf16.gmra.mrb[68].mxu1 %vm890_vm1, %v5095_v39 }
  0x97   :  { %4637 = vmatprep.mubr.msk.bf16.mxu0 %vm5185_vm0, %v5184_v0  ;;  %4881 = vmatprep.mubr.msk.bf16.mxu1 %vm5185_vm0, %v5184_v0 }
  0x9e   :  { %4638 = vmatmul.mubr.msk.bf16.gmra.mrb[72].mxu0 %vm890_vm1, %v5096_v40  ;;  %4882 = vmatmul.mubr.msk.bf16.gmra.mrb[72].mxu1 %vm890_vm1, %v5097_v41 }
  0x9f   :  { %4641 = vmatprep.mubr.msk.bf16.mxu0 %vm5185_vm0, %v5184_v0  ;;  %4885 = vmatprep.mubr.msk.bf16.mxu1 %vm5185_vm0, %v5184_v0 }
  0xa6   :  { %4642 = vmatmul.mubr.msk.bf16.gmra.mrb[76].mxu0 %vm890_vm1, %v5098_v42  ;;  %4886 = vmatmul.mubr.msk.bf16.gmra.mrb[76].mxu1 %vm890_vm1, %v5099_v43 }
  0xa7   :  { %4645 = vmatprep.mubr.msk.bf16.mxu0 %vm5185_vm0, %v5184_v0  ;;  %4889 = vmatprep.mubr.msk.bf16.mxu1 %vm5185_vm0, %v5184_v0 }
  0xae   :  { %4646 = vmatmul.mubr.msk.bf16.gmra.mrb[80].mxu0 %vm890_vm1, %v5100_v44  ;;  %4890 = vmatmul.mubr.msk.bf16.gmra.mrb[80].mxu1 %vm890_vm1, %v5101_v45  ;;  %v5118_v44 = vld [vmem:[%s7172_s0 + $0xe8] sm:$0xff]  }
  0xaf   :  { %4649 = vmatprep.mubr.msk.bf16.mxu0 %vm5185_vm0, %v5184_v0  ;;  %4893 = vmatprep.mubr.msk.bf16.mxu1 %vm5185_vm0, %v5184_v0 }
  0xb6   :  { %4650 = vmatmul.mubr.msk.bf16.gmra.mrb[84].mxu0 %vm890_vm1, %v5102_v46  ;;  %4894 = vmatmul.mubr.msk.bf16.gmra.mrb[84].mxu1 %vm890_vm1, %v5103_v47  ;;  %v5119_v47 = vld [vmem:[%s7172_s0 + $0x2d0] sm:$0xff]  }
  0xb7   :  { %4653 = vmatprep.mubr.msk.bf16.mxu0 %vm5185_vm0, %v5184_v0  ;;  %4897 = vmatprep.mubr.msk.bf16.mxu1 %vm5185_vm0, %v5184_v0 }
  0xbe   :  { %4654 = vmatmul.mubr.msk.bf16.gmra.mrb[88].mxu0 %vm890_vm1, %v5104_v48  ;;  %4898 = vmatmul.mubr.msk.bf16.gmra.mrb[88].mxu1 %vm890_vm1, %v5105_v49 }
  0xbf   :  { %4657 = vmatprep.mubr.msk.bf16.mxu0 %vm5185_vm0, %v5184_v0  ;;  %4901 = vmatprep.mubr.msk.bf16.mxu1 %vm5185_vm0, %v5184_v0 }
  0xc6   :  { %4658 = vmatmul.mubr.msk.bf16.gmra.mrb[92].mxu0 %vm890_vm1, %v5106_v50  ;;  %4902 = vmatmul.mubr.msk.bf16.gmra.mrb[92].mxu1 %vm890_vm1, %v5107_v51 }
  0xc7   :  { %4661 = vmatprep.mubr.msk.bf16.mxu0 %vm5185_vm0, %v5184_v0  ;;  %4905 = vmatprep.mubr.msk.bf16.mxu1 %vm5185_vm0, %v5184_v0 }
  0xce   :  { %4662 = vmatmul.mubr.msk.bf16.gmra.mrb[96].mxu0 %vm890_vm1, %v5108_v52  ;;  %4906 = vmatmul.mubr.msk.bf16.gmra.mrb[96].mxu1 %vm890_vm1, %v5109_v53 }
  0xcf   :  { %4665 = vmatprep.mubr.msk.bf16.mxu0 %vm5185_vm0, %v5184_v0  ;;  %4909 = vmatprep.mubr.msk.bf16.mxu1 %vm5185_vm0, %v5184_v0 }
  0xd6   :  { %4666 = vmatmul.mubr.msk.bf16.gmra.mrb[100].mxu0 %vm890_vm1, %v5110_v54  ;;  %4910 = vmatmul.mubr.msk.bf16.gmra.mrb[100].mxu1 %vm890_vm1, %v5111_v55 }
  0xd7   :  { %4669 = vmatprep.mubr.msk.bf16.mxu0 %vm5185_vm0, %v5184_v0  ;;  %4913 = vmatprep.mubr.msk.bf16.mxu1 %vm5185_vm0, %v5184_v0 }
  0xde   :  { %4670 = vmatmul.mubr.msk.bf16.gmra.mrb[104].mxu0 %vm890_vm1, %v5112_v56  ;;  %4914 = vmatmul.mubr.msk.bf16.gmra.mrb[104].mxu1 %vm890_vm1, %v5113_v57 }
  0xdf   :  { %4673 = vmatprep.mubr.msk.bf16.mxu0 %vm5185_vm0, %v5184_v0  ;;  %4917 = vmatprep.mubr.msk.bf16.mxu1 %vm5185_vm0, %v5184_v0 }
  0xe1   :  { %v1288_v59 = vpop.f32.mrb[0].mxu0  ;;  %v1776_v60 = vpop.f32.mrb[0].mxu1 }
  0xe2   :  { %v1289_v61 = vadd.f32 %v5548_v58, %v1288_v59  ;;  %v4567_v62 = vpop.f32.mrb[1].mxu0  ;;  %v1777_v1 = vadd.f32 %v5548_v58, %v1776_v60  ;;  %v4811_v2 = vpop.f32.mrb[1].mxu1 }
  0xe3   :  { %v1291_v4 = vpop.f32.mrb[2].mxu0  ;;  %v1779_v5 = vpop.f32.mrb[2].mxu1 }
  0xe4   :  { %v2254_v6 = vmax.f32 %v1289_v61, 0.0  ;;  %v1292_v7 = vadd.f32 %v5548_v58, %v1291_v4  ;;  %v4568_v8 = vpop.f32.mrb[3].mxu0  ;;  %v2376_v9 = vmax.f32 %v1777_v1, 0.0  ;;  %v1780_v10 = vadd.f32 %v5548_v58, %v1779_v5  ;;  %v4812_v11 = vpop.f32.mrb[3].mxu1  ;;  %v5120_v4 = vld [vmem:[%s7172_s0 + $0xf0] sm:$0xff]  }
  0xe6   :  { %v4194_v12 = vpack.c.bf16 %v2254_v6, %v2254_v6  ;;  %v2255_v13 = vmax.f32 %v1292_v7, 0.0  ;;  %4674 = vmatmul.mubr.msk.bf16.gmra.mrb[108].mxu0 %vm890_vm1, %v5114_v63  ;;  %v4316_v14 = vpack.c.bf16 %v2376_v9, %v2376_v9  ;;  %v2377_v15 = vmax.f32 %v1780_v10, 0.0  ;;  %4918 = vmatmul.mubr.msk.bf16.gmra.mrb[108].mxu1 %vm890_vm1, %v5115_v3  ;;  %v5121_v7 = vld [vmem:[%s7172_s0 + $0x2d8] sm:$0xff]  }
  0xe7   :  { %4677 = vmatprep.mubr.msk.bf16.mxu0 %vm5185_vm0, %v5184_v0  ;;  %4921 = vmatprep.mubr.msk.bf16.mxu1 %vm5185_vm0, %v5184_v0 }
  0xe8   :  { %3461 = vst.msk [vmem:[%s7174_s3] sm:$0xf] %vm3460_vm2, %v4194_v12  ;;  %v4195_v16 = vpack.c.bf16 %v2255_v13, %v2255_v13  ;;  %3583 = vst.msk [vmem:[%s7174_s3 + $0x1e8] sm:$0xf] %vm3460_vm2, %v4316_v14  ;;  %v4317_v17 = vpack.c.bf16 %v2377_v15, %v2377_v15 }
  0xe9   :  { %v1296_v18 = vpop.f32.mrb[4].mxu0  ;;  %v1784_v19 = vpop.f32.mrb[4].mxu1 }
  0xea   :  { %3462 = vst.msk [vmem:[%s7174_s3 + $0x4] sm:$0xf] %vm3460_vm2, %v4195_v16  ;;  %v1297_v20 = vadd.f32 %v5548_v58, %v1296_v18  ;;  %v4571_v21 = vpop.f32.mrb[5].mxu0  ;;  %3584 = vst.msk [vmem:[%s7174_s3 + $0x1ec] sm:$0xf] %vm3460_vm2, %v4317_v17  ;;  %v1785_v23 = vadd.f32 %v5548_v58, %v1784_v19  ;;  %v4815_v24 = vpop.f32.mrb[5].mxu1 }
  0xeb   :  { %v1299_v26 = vpop.f32.mrb[6].mxu0  ;;  %v1787_v27 = vpop.f32.mrb[6].mxu1 }
  0xec   :  { %v2256_v28 = vmax.f32 %v1297_v20, 0.0  ;;  %v1300_v29 = vadd.f32 %v5548_v58, %v1299_v26  ;;  %v4572_v30 = vpop.f32.mrb[7].mxu0  ;;  %v2378_v31 = vmax.f32 %v1785_v23, 0.0  ;;  %v1788_v32 = vadd.f32 %v5548_v58, %v1787_v27  ;;  %v4816_v33 = vpop.f32.mrb[7].mxu1  ;;  %v5122_v26 = vld [vmem:[%s7172_s0 + $0xf8] sm:$0xff]  }
  0xee   :  { %v4196_v34 = vpack.c.bf16 %v2256_v28, %v2256_v28  ;;  %v2257_v35 = vmax.f32 %v1300_v29, 0.0  ;;  %4678 = vmatmul.mubr.msk.bf16.gmra.mrb[112].mxu0 %vm890_vm1, %v5116_v22  ;;  %v4318_v36 = vpack.c.bf16 %v2378_v31, %v2378_v31  ;;  %v2379_v37 = vmax.f32 %v1788_v32, 0.0  ;;  %4922 = vmatmul.mubr.msk.bf16.gmra.mrb[112].mxu1 %vm890_vm1, %v5117_v25  ;;  %v5123_v29 = vld [vmem:[%s7172_s0 + $0x2e0] sm:$0xff]  }
  0xef   :  { %4681 = vmatprep.mubr.msk.bf16.mxu0 %vm5185_vm0, %v5184_v0  ;;  %4925 = vmatprep.mubr.msk.bf16.mxu1 %vm5185_vm0, %v5184_v0 }
  0xf0   :  { %3463 = vst.msk [vmem:[%s7174_s3 + $0x8] sm:$0xf] %vm3460_vm2, %v4196_v34  ;;  %v4197_v38 = vpack.c.bf16 %v2257_v35, %v2257_v35  ;;  %3585 = vst.msk [vmem:[%s7174_s3 + $0x1f0] sm:$0xf] %vm3460_vm2, %v4318_v36  ;;  %v4319_v39 = vpack.c.bf16 %v2379_v37, %v2379_v37 }
  0xf1   :  { %v1304_v40 = vpop.f32.mrb[8].mxu0  ;;  %v1792_v41 = vpop.f32.mrb[8].mxu1 }
  0xf2   :  { %3464 = vst.msk [vmem:[%s7174_s3 + $0xc] sm:$0xf] %vm3460_vm2, %v4197_v38  ;;  %v1305_v42 = vadd.f32 %v5548_v58, %v1304_v40  ;;  %v4575_v43 = vpop.f32.mrb[9].mxu0  ;;  %3586 = vst.msk [vmem:[%s7174_s3 + $0x1f4] sm:$0xf] %vm3460_vm2, %v4319_v39  ;;  %v1793_v45 = vadd.f32 %v5548_v58, %v1792_v41  ;;  %v4819_v46 = vpop.f32.mrb[9].mxu1 }
  0xf3   :  { %v1307_v48 = vpop.f32.mrb[10].mxu0  ;;  %v1795_v49 = vpop.f32.mrb[10].mxu1 }
  0xf4   :  { %v2258_v50 = vmax.f32 %v1305_v42, 0.0  ;;  %v1308_v51 = vadd.f32 %v5548_v58, %v1307_v48  ;;  %v4576_v52 = vpop.f32.mrb[11].mxu0  ;;  %v2380_v53 = vmax.f32 %v1793_v45, 0.0  ;;  %v1796_v54 = vadd.f32 %v5548_v58, %v1795_v49  ;;  %v4820_v55 = vpop.f32.mrb[11].mxu1  ;;  %v5124_v48 = vld [vmem:[%s7172_s0 + $0x100] sm:$0xff]  }
  0xf6   :  { %v4198_v56 = vpack.c.bf16 %v2258_v50, %v2258_v50  ;;  %v2259_v57 = vmax.f32 %v1308_v51, 0.0  ;;  %4682 = vmatmul.mubr.msk.bf16.gmra.mrb[116].mxu0 %vm890_vm1, %v5118_v44  ;;  %v4320_v59 = vpack.c.bf16 %v2380_v53, %v2380_v53  ;;  %v2381_v60 = vmax.f32 %v1796_v54, 0.0  ;;  %4926 = vmatmul.mubr.msk.bf16.gmra.mrb[116].mxu1 %vm890_vm1, %v5119_v47  ;;  %v5125_v51 = vld [vmem:[%s7172_s0 + $0x2e8] sm:$0xff]  }
  0xf7   :  { %4685 = vmatprep.mubr.msk.bf16.mxu0 %vm5185_vm0, %v5184_v0  ;;  %4929 = vmatprep.mubr.msk.bf16.mxu1 %vm5185_vm0, %v5184_v0 }
  0xf8   :  { %3465 = vst.msk [vmem:[%s7174_s3 + $0x10] sm:$0xf] %vm3460_vm2, %v4198_v56  ;;  %v4199_v61 = vpack.c.bf16 %v2259_v57, %v2259_v57  ;;  %3587 = vst.msk [vmem:[%s7174_s3 + $0x1f8] sm:$0xf] %vm3460_vm2, %v4320_v59  ;;  %v4321_v62 = vpack.c.bf16 %v2381_v60, %v2381_v60 }
  0xf9   :  { %v1312_v63 = vpop.f32.mrb[12].mxu0  ;;  %v1800_v1 = vpop.f32.mrb[12].mxu1 }
  0xfa   :  { %3466 = vst.msk [vmem:[%s7174_s3 + $0x14] sm:$0xf] %vm3460_vm2, %v4199_v61  ;;  %v1313_v2 = vadd.f32 %v5548_v58, %v1312_v63  ;;  %v4579_v3 = vpop.f32.mrb[13].mxu0  ;;  %3588 = vst.msk [vmem:[%s7174_s3 + $0x1fc] sm:$0xf] %vm3460_vm2, %v4321_v62  ;;  %v1801_v5 = vadd.f32 %v5548_v58, %v1800_v1  ;;  %v4823_v6 = vpop.f32.mrb[13].mxu1 }
  0xfb   :  { %v1315_v8 = vpop.f32.mrb[14].mxu0  ;;  %v1803_v9 = vpop.f32.mrb[14].mxu1 }
  0xfc   :  { %v2260_v10 = vmax.f32 %v1313_v2, 0.0  ;;  %v1316_v11 = vadd.f32 %v5548_v58, %v1315_v8  ;;  %v4580_v12 = vpop.f32.mrb[15].mxu0  ;;  %v2382_v13 = vmax.f32 %v1801_v5, 0.0  ;;  %v1804_v14 = vadd.f32 %v5548_v58, %v1803_v9  ;;  %v4824_v15 = vpop.f32.mrb[15].mxu1  ;;  %v5126_v8 = vld [vmem:[%s7172_s0 + $0x108] sm:$0xff]  }
  0xfe   :  { %v4200_v16 = vpack.c.bf16 %v2260_v10, %v2260_v10  ;;  %v2261_v17 = vmax.f32 %v1316_v11, 0.0  ;;  %4686 = vmatmul.mubr.msk.bf16.gmra.mrb[120].mxu0 %vm890_vm1, %v5120_v4  ;;  %v4322_v18 = vpack.c.bf16 %v2382_v13, %v2382_v13  ;;  %v2383_v19 = vmax.f32 %v1804_v14, 0.0  ;;  %4930 = vmatmul.mubr.msk.bf16.gmra.mrb[120].mxu1 %vm890_vm1, %v5121_v7  ;;  %v5127_v11 = vld [vmem:[%s7172_s0 + $0x2f0] sm:$0xff]  }
  0xff   :  { %4689 = vmatprep.mubr.msk.bf16.mxu0 %vm5185_vm0, %v5184_v0  ;;  %4933 = vmatprep.mubr.msk.bf16.mxu1 %vm5185_vm0, %v5184_v0 }
 0x100   :  { %3467 = vst.msk [vmem:[%s7174_s3 + $0x18] sm:$0xf] %vm3460_vm2, %v4200_v16  ;;  %v4201_v20 = vpack.c.bf16 %v2261_v17, %v2261_v17  ;;  %3589 = vst.msk [vmem:[%s7174_s3 + $0x200] sm:$0xf] %vm3460_vm2, %v4322_v18  ;;  %v4323_v21 = vpack.c.bf16 %v2383_v19, %v2383_v19 }
 0x101   :  { %v1320_v22 = vpop.f32.mrb[16].mxu0  ;;  %v1808_v23 = vpop.f32.mrb[16].mxu1 }
 0x102   :  { %3468 = vst.msk [vmem:[%s7174_s3 + $0x1c] sm:$0xf] %vm3460_vm2, %v4201_v20  ;;  %v1321_v24 = vadd.f32 %v5548_v58, %v1320_v22  ;;  %v4583_v25 = vpop.f32.mrb[17].mxu0  ;;  %3590 = vst.msk [vmem:[%s7174_s3 + $0x204] sm:$0xf] %vm3460_vm2, %v4323_v21  ;;  %v1809_v27 = vadd.f32 %v5548_v58, %v1808_v23  ;;  %v4827_v28 = vpop.f32.mrb[17].mxu1 }
 0x103   :  { %v1323_v30 = vpop.f32.mrb[18].mxu0  ;;  %v1811_v31 = vpop.f32.mrb[18].mxu1 }
 0x104   :  { %v2262_v32 = vmax.f32 %v1321_v24, 0.0  ;;  %v1324_v33 = vadd.f32 %v5548_v58, %v1323_v30  ;;  %v4584_v34 = vpop.f32.mrb[19].mxu0  ;;  %v2384_v35 = vmax.f32 %v1809_v27, 0.0  ;;  %v1812_v36 = vadd.f32 %v5548_v58, %v1811_v31  ;;  %v4828_v37 = vpop.f32.mrb[19].mxu1  ;;  %v5128_v30 = vld [vmem:[%s7172_s0 + $0x110] sm:$0xff]  }
 0x106   :  { %v4202_v38 = vpack.c.bf16 %v2262_v32, %v2262_v32  ;;  %v2263_v39 = vmax.f32 %v1324_v33, 0.0  ;;  %4690 = vmatmul.mubr.msk.bf16.gmra.mrb[124].mxu0 %vm890_vm1, %v5122_v26  ;;  %v4324_v40 = vpack.c.bf16 %v2384_v35, %v2384_v35  ;;  %v2385_v41 = vmax.f32 %v1812_v36, 0.0  ;;  %4934 = vmatmul.mubr.msk.bf16.gmra.mrb[124].mxu1 %vm890_vm1, %v5123_v29  ;;  %v5129_v33 = vld [vmem:[%s7172_s0 + $0x2f8] sm:$0xff]  }
 0x107   :  { %4693 = vmatprep.mubr.msk.bf16.mxu0 %vm5185_vm0, %v5184_v0  ;;  %4937 = vmatprep.mubr.msk.bf16.mxu1 %vm5185_vm0, %v5184_v0 }
 0x108   :  { %3469 = vst.msk [vmem:[%s7174_s3 + $0x20] sm:$0xf] %vm3460_vm2, %v4202_v38  ;;  %v4203_v42 = vpack.c.bf16 %v2263_v39, %v2263_v39  ;;  %3591 = vst.msk [vmem:[%s7174_s3 + $0x208] sm:$0xf] %vm3460_vm2, %v4324_v40  ;;  %v4325_v43 = vpack.c.bf16 %v2385_v41, %v2385_v41 }
 0x109   :  { %v1328_v44 = vpop.f32.mrb[20].mxu0  ;;  %v1816_v45 = vpop.f32.mrb[20].mxu1 }
 0x10a   :  { %3470 = vst.msk [vmem:[%s7174_s3 + $0x24] sm:$0xf] %vm3460_vm2, %v4203_v42  ;;  %v1329_v46 = vadd.f32 %v5548_v58, %v1328_v44  ;;  %v4587_v47 = vpop.f32.mrb[21].mxu0  ;;  %3592 = vst.msk [vmem:[%s7174_s3 + $0x20c] sm:$0xf] %vm3460_vm2, %v4325_v43  ;;  %v1817_v49 = vadd.f32 %v5548_v58, %v1816_v45  ;;  %v4831_v50 = vpop.f32.mrb[21].mxu1 }
 0x10b   :  { %v1331_v52 = vpop.f32.mrb[22].mxu0  ;;  %v1819_v53 = vpop.f32.mrb[22].mxu1 }
 0x10c   :  { %v2264_v54 = vmax.f32 %v1329_v46, 0.0  ;;  %v1332_v55 = vadd.f32 %v5548_v58, %v1331_v52  ;;  %v4588_v56 = vpop.f32.mrb[23].mxu0  ;;  %v2386_v57 = vmax.f32 %v1817_v49, 0.0  ;;  %v1820_v59 = vadd.f32 %v5548_v58, %v1819_v53  ;;  %v4832_v60 = vpop.f32.mrb[23].mxu1  ;;  %v5130_v52 = vld [vmem:[%s7172_s0 + $0x118] sm:$0xff]  }
 0x10e   :  { %v4204_v61 = vpack.c.bf16 %v2264_v54, %v2264_v54  ;;  %v2265_v62 = vmax.f32 %v1332_v55, 0.0  ;;  %4694 = vmatmul.mubr.msk.bf16.gmra.mrb[128].mxu0 %vm890_vm1, %v5124_v48  ;;  %v4326_v63 = vpack.c.bf16 %v2386_v57, %v2386_v57  ;;  %v2387_v1 = vmax.f32 %v1820_v59, 0.0  ;;  %4938 = vmatmul.mubr.msk.bf16.gmra.mrb[128].mxu1 %vm890_vm1, %v5125_v51  ;;  %v5131_v55 = vld [vmem:[%s7172_s0 + $0x300] sm:$0xff]  }
 0x10f   :  { %4697 = vmatprep.mubr.msk.bf16.mxu0 %vm5185_vm0, %v5184_v0  ;;  %4941 = vmatprep.mubr.msk.bf16.mxu1 %vm5185_vm0, %v5184_v0 }
 0x110   :  { %3471 = vst.msk [vmem:[%s7174_s3 + $0x28] sm:$0xf] %vm3460_vm2, %v4204_v61  ;;  %v4205_v2 = vpack.c.bf16 %v2265_v62, %v2265_v62  ;;  %3593 = vst.msk [vmem:[%s7174_s3 + $0x210] sm:$0xf] %vm3460_vm2, %v4326_v63  ;;  %v4327_v3 = vpack.c.bf16 %v2387_v1, %v2387_v1 }
 0x111   :  { %v1336_v4 = vpop.f32.mrb[24].mxu0  ;;  %v1824_v5 = vpop.f32.mrb[24].mxu1 }
 0x112   :  { %3472 = vst.msk [vmem:[%s7174_s3 + $0x2c] sm:$0xf] %vm3460_vm2, %v4205_v2  ;;  %v1337_v6 = vadd.f32 %v5548_v58, %v1336_v4  ;;  %v4591_v7 = vpop.f32.mrb[25].mxu0  ;;  %3594 = vst.msk [vmem:[%s7174_s3 + $0x214] sm:$0xf] %vm3460_vm2, %v4327_v3  ;;  %v1825_v9 = vadd.f32 %v5548_v58, %v1824_v5  ;;  %v4835_v10 = vpop.f32.mrb[25].mxu1 }
 0x113   :  { %v1339_v12 = vpop.f32.mrb[26].mxu0  ;;  %v1827_v13 = vpop.f32.mrb[26].mxu1 }
 0x114   :  { %v2266_v14 = vmax.f32 %v1337_v6, 0.0  ;;  %v1340_v15 = vadd.f32 %v5548_v58, %v1339_v12  ;;  %v4592_v16 = vpop.f32.mrb[27].mxu0  ;;  %v2388_v17 = vmax.f32 %v1825_v9, 0.0  ;;  %v1828_v18 = vadd.f32 %v5548_v58, %v1827_v13  ;;  %v4836_v19 = vpop.f32.mrb[27].mxu1  ;;  %v5132_v12 = vld [vmem:[%s7172_s0 + $0x120] sm:$0xff]  }
 0x116   :  { %v4206_v20 = vpack.c.bf16 %v2266_v14, %v2266_v14  ;;  %v2267_v21 = vmax.f32 %v1340_v15, 0.0  ;;  %4698 = vmatmul.mubr.msk.bf16.gmra.mrb[132].mxu0 %vm890_vm1, %v5126_v8  ;;  %v4328_v22 = vpack.c.bf16 %v2388_v17, %v2388_v17  ;;  %v2389_v23 = vmax.f32 %v1828_v18, 0.0  ;;  %4942 = vmatmul.mubr.msk.bf16.gmra.mrb[132].mxu1 %vm890_vm1, %v5127_v11  ;;  %v5133_v15 = vld [vmem:[%s7172_s0 + $0x308] sm:$0xff]  }
 0x117   :  { %4701 = vmatprep.mubr.msk.bf16.mxu0 %vm5185_vm0, %v5184_v0  ;;  %4945 = vmatprep.mubr.msk.bf16.mxu1 %vm5185_vm0, %v5184_v0 }
 0x118   :  { %3473 = vst.msk [vmem:[%s7174_s3 + $0x30] sm:$0xf] %vm3460_vm2, %v4206_v20  ;;  %v4207_v24 = vpack.c.bf16 %v2267_v21, %v2267_v21  ;;  %3595 = vst.msk [vmem:[%s7174_s3 + $0x218] sm:$0xf] %vm3460_vm2, %v4328_v22  ;;  %v4329_v25 = vpack.c.bf16 %v2389_v23, %v2389_v23 }
 0x119   :  { %v1344_v26 = vpop.f32.mrb[28].mxu0  ;;  %v1832_v27 = vpop.f32.mrb[28].mxu1 }
 0x11a   :  { %3474 = vst.msk [vmem:[%s7174_s3 + $0x34] sm:$0xf] %vm3460_vm2, %v4207_v24  ;;  %v1345_v28 = vadd.f32 %v5548_v58, %v1344_v26  ;;  %v4595_v29 = vpop.f32.mrb[29].mxu0  ;;  %3596 = vst.msk [vmem:[%s7174_s3 + $0x21c] sm:$0xf] %vm3460_vm2, %v4329_v25  ;;  %v1833_v31 = vadd.f32 %v5548_v58, %v1832_v27  ;;  %v4839_v32 = vpop.f32.mrb[29].mxu1 }
 0x11b   :  { %v1347_v34 = vpop.f32.mrb[30].mxu0  ;;  %v1835_v35 = vpop.f32.mrb[30].mxu1 }
 0x11c   :  { %v2268_v36 = vmax.f32 %v1345_v28, 0.0  ;;  %v1348_v37 = vadd.f32 %v5548_v58, %v1347_v34  ;;  %v4596_v38 = vpop.f32.mrb[31].mxu0  ;;  %v2390_v39 = vmax.f32 %v1833_v31, 0.0  ;;  %v1836_v40 = vadd.f32 %v5548_v58, %v1835_v35  ;;  %v4840_v41 = vpop.f32.mrb[31].mxu1  ;;  %v5134_v34 = vld [vmem:[%s7172_s0 + $0x128] sm:$0xff]  }
 0x11e   :  { %v4208_v42 = vpack.c.bf16 %v2268_v36, %v2268_v36  ;;  %v2269_v43 = vmax.f32 %v1348_v37, 0.0  ;;  %4702 = vmatmul.mubr.msk.bf16.gmra.mrb[136].mxu0 %vm890_vm1, %v5128_v30  ;;  %v4330_v44 = vpack.c.bf16 %v2390_v39, %v2390_v39  ;;  %v2391_v45 = vmax.f32 %v1836_v40, 0.0  ;;  %4946 = vmatmul.mubr.msk.bf16.gmra.mrb[136].mxu1 %vm890_vm1, %v5129_v33  ;;  %v5135_v37 = vld [vmem:[%s7172_s0 + $0x310] sm:$0xff]  }
 0x11f   :  { %4705 = vmatprep.mubr.msk.bf16.mxu0 %vm5185_vm0, %v5184_v0  ;;  %4949 = vmatprep.mubr.msk.bf16.mxu1 %vm5185_vm0, %v5184_v0 }
 0x120   :  { %3475 = vst.msk [vmem:[%s7174_s3 + $0x38] sm:$0xf] %vm3460_vm2, %v4208_v42  ;;  %v4209_v46 = vpack.c.bf16 %v2269_v43, %v2269_v43  ;;  %3597 = vst.msk [vmem:[%s7174_s3 + $0x220] sm:$0xf] %vm3460_vm2, %v4330_v44  ;;  %v4331_v47 = vpack.c.bf16 %v2391_v45, %v2391_v45 }
 0x121   :  { %v1352_v48 = vpop.f32.mrb[32].mxu0  ;;  %v1840_v49 = vpop.f32.mrb[32].mxu1 }
 0x122   :  { %3476 = vst.msk [vmem:[%s7174_s3 + $0x3c] sm:$0xf] %vm3460_vm2, %v4209_v46  ;;  %v1353_v50 = vadd.f32 %v5548_v58, %v1352_v48  ;;  %v4599_v51 = vpop.f32.mrb[33].mxu0  ;;  %3598 = vst.msk [vmem:[%s7174_s3 + $0x224] sm:$0xf] %vm3460_vm2, %v4331_v47  ;;  %v1841_v53 = vadd.f32 %v5548_v58, %v1840_v49  ;;  %v4843_v54 = vpop.f32.mrb[33].mxu1 }
 0x123   :  { %v1355_v56 = vpop.f32.mrb[34].mxu0  ;;  %v1843_v57 = vpop.f32.mrb[34].mxu1 }
 0x124   :  { %v2270_v59 = vmax.f32 %v1353_v50, 0.0  ;;  %v1356_v60 = vadd.f32 %v5548_v58, %v1355_v56  ;;  %v4600_v61 = vpop.f32.mrb[35].mxu0  ;;  %v2392_v62 = vmax.f32 %v1841_v53, 0.0  ;;  %v1844_v63 = vadd.f32 %v5548_v58, %v1843_v57  ;;  %v4844_v1 = vpop.f32.mrb[35].mxu1  ;;  %v5136_v56 = vld [vmem:[%s7172_s0 + $0x130] sm:$0xff]  }
 0x126   :  { %v4210_v2 = vpack.c.bf16 %v2270_v59, %v2270_v59  ;;  %v2271_v3 = vmax.f32 %v1356_v60, 0.0  ;;  %4706 = vmatmul.mubr.msk.bf16.gmra.mrb[140].mxu0 %vm890_vm1, %v5130_v52  ;;  %v4332_v4 = vpack.c.bf16 %v2392_v62, %v2392_v62  ;;  %v2393_v5 = vmax.f32 %v1844_v63, 0.0  ;;  %4950 = vmatmul.mubr.msk.bf16.gmra.mrb[140].mxu1 %vm890_vm1, %v5131_v55  ;;  %v5137_v60 = vld [vmem:[%s7172_s0 + $0x318] sm:$0xff]  }
 0x127   :  { %4709 = vmatprep.mubr.msk.bf16.mxu0 %vm5185_vm0, %v5184_v0  ;;  %4953 = vmatprep.mubr.msk.bf16.mxu1 %vm5185_vm0, %v5184_v0 }
 0x128   :  { %3477 = vst.msk [vmem:[%s7174_s3 + $0x40] sm:$0xf] %vm3460_vm2, %v4210_v2  ;;  %v4211_v6 = vpack.c.bf16 %v2271_v3, %v2271_v3  ;;  %3599 = vst.msk [vmem:[%s7174_s3 + $0x228] sm:$0xf] %vm3460_vm2, %v4332_v4  ;;  %v4333_v7 = vpack.c.bf16 %v2393_v5, %v2393_v5 }
 0x129   :  { %v1360_v8 = vpop.f32.mrb[36].mxu0  ;;  %v1848_v9 = vpop.f32.mrb[36].mxu1 }
 0x12a   :  { %3478 = vst.msk [vmem:[%s7174_s3 + $0x44] sm:$0xf] %vm3460_vm2, %v4211_v6  ;;  %v1361_v10 = vadd.f32 %v5548_v58, %v1360_v8  ;;  %v4603_v11 = vpop.f32.mrb[37].mxu0  ;;  %3600 = vst.msk [vmem:[%s7174_s3 + $0x22c] sm:$0xf] %vm3460_vm2, %v4333_v7  ;;  %v1849_v13 = vadd.f32 %v5548_v58, %v1848_v9  ;;  %v4847_v14 = vpop.f32.mrb[37].mxu1 }
 0x12b   :  { %v1363_v16 = vpop.f32.mrb[38].mxu0  ;;  %v1851_v17 = vpop.f32.mrb[38].mxu1 }
 0x12c   :  { %v2272_v18 = vmax.f32 %v1361_v10, 0.0  ;;  %v1364_v19 = vadd.f32 %v5548_v58, %v1363_v16  ;;  %v4604_v20 = vpop.f32.mrb[39].mxu0  ;;  %v2394_v21 = vmax.f32 %v1849_v13, 0.0  ;;  %v1852_v22 = vadd.f32 %v5548_v58, %v1851_v17  ;;  %v4848_v23 = vpop.f32.mrb[39].mxu1  ;;  %v5138_v16 = vld [vmem:[%s7172_s0 + $0x138] sm:$0xff]  }
 0x12e   :  { %v4212_v24 = vpack.c.bf16 %v2272_v18, %v2272_v18  ;;  %v2273_v25 = vmax.f32 %v1364_v19, 0.0  ;;  %4710 = vmatmul.mubr.msk.bf16.gmra.mrb[144].mxu0 %vm890_vm1, %v5132_v12  ;;  %v4334_v26 = vpack.c.bf16 %v2394_v21, %v2394_v21  ;;  %v2395_v27 = vmax.f32 %v1852_v22, 0.0  ;;  %4954 = vmatmul.mubr.msk.bf16.gmra.mrb[144].mxu1 %vm890_vm1, %v5133_v15  ;;  %v5139_v19 = vld [vmem:[%s7172_s0 + $0x320] sm:$0xff]  }
 0x12f   :  { %4713 = vmatprep.mubr.msk.bf16.mxu0 %vm5185_vm0, %v5184_v0  ;;  %4957 = vmatprep.mubr.msk.bf16.mxu1 %vm5185_vm0, %v5184_v0 }
 0x130   :  { %3479 = vst.msk [vmem:[%s7174_s3 + $0x48] sm:$0xf] %vm3460_vm2, %v4212_v24  ;;  %v4213_v28 = vpack.c.bf16 %v2273_v25, %v2273_v25  ;;  %3601 = vst.msk [vmem:[%s7174_s3 + $0x230] sm:$0xf] %vm3460_vm2, %v4334_v26  ;;  %v4335_v29 = vpack.c.bf16 %v2395_v27, %v2395_v27 }
 0x131   :  { %v1368_v30 = vpop.f32.mrb[40].mxu0  ;;  %v1856_v31 = vpop.f32.mrb[40].mxu1 }
 0x132   :  { %3480 = vst.msk [vmem:[%s7174_s3 + $0x4c] sm:$0xf] %vm3460_vm2, %v4213_v28  ;;  %v1369_v32 = vadd.f32 %v5548_v58, %v1368_v30  ;;  %v4607_v33 = vpop.f32.mrb[41].mxu0  ;;  %3602 = vst.msk [vmem:[%s7174_s3 + $0x234] sm:$0xf] %vm3460_vm2, %v4335_v29  ;;  %v1857_v35 = vadd.f32 %v5548_v58, %v1856_v31  ;;  %v4851_v36 = vpop.f32.mrb[41].mxu1 }
 0x133   :  { %v1371_v38 = vpop.f32.mrb[42].mxu0  ;;  %v1859_v39 = vpop.f32.mrb[42].mxu1 }
 0x134   :  { %v2274_v40 = vmax.f32 %v1369_v32, 0.0  ;;  %v1372_v41 = vadd.f32 %v5548_v58, %v1371_v38  ;;  %v4608_v42 = vpop.f32.mrb[43].mxu0  ;;  %v2396_v43 = vmax.f32 %v1857_v35, 0.0  ;;  %v1860_v44 = vadd.f32 %v5548_v58, %v1859_v39  ;;  %v4852_v45 = vpop.f32.mrb[43].mxu1  ;;  %v5140_v38 = vld [vmem:[%s7172_s0 + $0x140] sm:$0xff]  }
 0x136   :  { %v4214_v46 = vpack.c.bf16 %v2274_v40, %v2274_v40  ;;  %v2275_v47 = vmax.f32 %v1372_v41, 0.0  ;;  %4714 = vmatmul.mubr.msk.bf16.gmra.mrb[148].mxu0 %vm890_vm1, %v5134_v34  ;;  %v4336_v48 = vpack.c.bf16 %v2396_v43, %v2396_v43  ;;  %v2397_v49 = vmax.f32 %v1860_v44, 0.0  ;;  %4958 = vmatmul.mubr.msk.bf16.gmra.mrb[148].mxu1 %vm890_vm1, %v5135_v37  ;;  %v5141_v41 = vld [vmem:[%s7172_s0 + $0x328] sm:$0xff]  }
 0x137   :  { %4717 = vmatprep.mubr.msk.bf16.mxu0 %vm5185_vm0, %v5184_v0  ;;  %4961 = vmatprep.mubr.msk.bf16.mxu1 %vm5185_vm0, %v5184_v0 }
 0x138   :  { %3481 = vst.msk [vmem:[%s7174_s3 + $0x50] sm:$0xf] %vm3460_vm2, %v4214_v46  ;;  %v4215_v50 = vpack.c.bf16 %v2275_v47, %v2275_v47  ;;  %3603 = vst.msk [vmem:[%s7174_s3 + $0x238] sm:$0xf] %vm3460_vm2, %v4336_v48  ;;  %v4337_v51 = vpack.c.bf16 %v2397_v49, %v2397_v49 }
 0x139   :  { %v1376_v52 = vpop.f32.mrb[44].mxu0  ;;  %v1864_v53 = vpop.f32.mrb[44].mxu1 }
 0x13a   :  { %3482 = vst.msk [vmem:[%s7174_s3 + $0x54] sm:$0xf] %vm3460_vm2, %v4215_v50  ;;  %v1377_v54 = vadd.f32 %v5548_v58, %v1376_v52  ;;  %v4611_v55 = vpop.f32.mrb[45].mxu0  ;;  %3604 = vst.msk [vmem:[%s7174_s3 + $0x23c] sm:$0xf] %vm3460_vm2, %v4337_v51  ;;  %v1865_v57 = vadd.f32 %v5548_v58, %v1864_v53  ;;  %v4855_v59 = vpop.f32.mrb[45].mxu1 }
 0x13b   :  { %v1379_v61 = vpop.f32.mrb[46].mxu0  ;;  %v1867_v62 = vpop.f32.mrb[46].mxu1 }
 0x13c   :  { %v2276_v63 = vmax.f32 %v1377_v54, 0.0  ;;  %v1380_v1 = vadd.f32 %v5548_v58, %v1379_v61  ;;  %v4612_v2 = vpop.f32.mrb[47].mxu0  ;;  %v2398_v3 = vmax.f32 %v1865_v57, 0.0  ;;  %v1868_v4 = vadd.f32 %v5548_v58, %v1867_v62  ;;  %v4856_v5 = vpop.f32.mrb[47].mxu1  ;;  %v5142_v61 = vld [vmem:[%s7172_s0 + $0x148] sm:$0xff]  }
 0x13e   :  { %v4216_v6 = vpack.c.bf16 %v2276_v63, %v2276_v63  ;;  %v2277_v7 = vmax.f32 %v1380_v1, 0.0  ;;  %4718 = vmatmul.mubr.msk.bf16.gmra.mrb[152].mxu0 %vm890_vm1, %v5136_v56  ;;  %v4338_v8 = vpack.c.bf16 %v2398_v3, %v2398_v3  ;;  %v2399_v9 = vmax.f32 %v1868_v4, 0.0  ;;  %4962 = vmatmul.mubr.msk.bf16.gmra.mrb[152].mxu1 %vm890_vm1, %v5137_v60  ;;  %v5143_v1 = vld [vmem:[%s7172_s0 + $0x330] sm:$0xff]  }
 0x13f   :  { %4721 = vmatprep.mubr.msk.bf16.mxu0 %vm5185_vm0, %v5184_v0  ;;  %4965 = vmatprep.mubr.msk.bf16.mxu1 %vm5185_vm0, %v5184_v0 }
 0x140   :  { %3483 = vst.msk [vmem:[%s7174_s3 + $0x58] sm:$0xf] %vm3460_vm2, %v4216_v6  ;;  %v4217_v10 = vpack.c.bf16 %v2277_v7, %v2277_v7  ;;  %3605 = vst.msk [vmem:[%s7174_s3 + $0x240] sm:$0xf] %vm3460_vm2, %v4338_v8  ;;  %v4339_v11 = vpack.c.bf16 %v2399_v9, %v2399_v9 }
 0x141   :  { %v1384_v12 = vpop.f32.mrb[48].mxu0  ;;  %v1872_v13 = vpop.f32.mrb[48].mxu1 }
 0x142   :  { %3484 = vst.msk [vmem:[%s7174_s3 + $0x5c] sm:$0xf] %vm3460_vm2, %v4217_v10  ;;  %v1385_v14 = vadd.f32 %v5548_v58, %v1384_v12  ;;  %v4615_v15 = vpop.f32.mrb[49].mxu0  ;;  %3606 = vst.msk [vmem:[%s7174_s3 + $0x244] sm:$0xf] %vm3460_vm2, %v4339_v11  ;;  %v1873_v17 = vadd.f32 %v5548_v58, %v1872_v13  ;;  %v4859_v18 = vpop.f32.mrb[49].mxu1 }
 0x143   :  { %v1387_v20 = vpop.f32.mrb[50].mxu0  ;;  %v1875_v21 = vpop.f32.mrb[50].mxu1 }
 0x144   :  { %v2278_v22 = vmax.f32 %v1385_v14, 0.0  ;;  %v1388_v23 = vadd.f32 %v5548_v58, %v1387_v20  ;;  %v4616_v24 = vpop.f32.mrb[51].mxu0  ;;  %v2400_v25 = vmax.f32 %v1873_v17, 0.0  ;;  %v1876_v26 = vadd.f32 %v5548_v58, %v1875_v21  ;;  %v4860_v27 = vpop.f32.mrb[51].mxu1  ;;  %v5144_v20 = vld [vmem:[%s7172_s0 + $0x150] sm:$0xff]  }
 0x146   :  { %v4218_v28 = vpack.c.bf16 %v2278_v22, %v2278_v22  ;;  %v2279_v29 = vmax.f32 %v1388_v23, 0.0  ;;  %4722 = vmatmul.mubr.msk.bf16.gmra.mrb[156].mxu0 %vm890_vm1, %v5138_v16  ;;  %v4340_v30 = vpack.c.bf16 %v2400_v25, %v2400_v25  ;;  %v2401_v31 = vmax.f32 %v1876_v26, 0.0  ;;  %4966 = vmatmul.mubr.msk.bf16.gmra.mrb[156].mxu1 %vm890_vm1, %v5139_v19  ;;  %v5145_v23 = vld [vmem:[%s7172_s0 + $0x338] sm:$0xff]  }
 0x147   :  { %4725 = vmatprep.mubr.msk.bf16.mxu0 %vm5185_vm0, %v5184_v0  ;;  %4969 = vmatprep.mubr.msk.bf16.mxu1 %vm5185_vm0, %v5184_v0 }
 0x148   :  { %3485 = vst.msk [vmem:[%s7174_s3 + $0x60] sm:$0xf] %vm3460_vm2, %v4218_v28  ;;  %v4219_v32 = vpack.c.bf16 %v2279_v29, %v2279_v29  ;;  %3607 = vst.msk [vmem:[%s7174_s3 + $0x248] sm:$0xf] %vm3460_vm2, %v4340_v30  ;;  %v4341_v33 = vpack.c.bf16 %v2401_v31, %v2401_v31 }
 0x149   :  { %v1392_v34 = vpop.f32.mrb[52].mxu0  ;;  %v1880_v35 = vpop.f32.mrb[52].mxu1 }
 0x14a   :  { %3486 = vst.msk [vmem:[%s7174_s3 + $0x64] sm:$0xf] %vm3460_vm2, %v4219_v32  ;;  %v1393_v36 = vadd.f32 %v5548_v58, %v1392_v34  ;;  %v4619_v37 = vpop.f32.mrb[53].mxu0  ;;  %3608 = vst.msk [vmem:[%s7174_s3 + $0x24c] sm:$0xf] %vm3460_vm2, %v4341_v33  ;;  %v1881_v39 = vadd.f32 %v5548_v58, %v1880_v35  ;;  %v4863_v40 = vpop.f32.mrb[53].mxu1 }
 0x14b   :  { %v1395_v42 = vpop.f32.mrb[54].mxu0  ;;  %v1883_v43 = vpop.f32.mrb[54].mxu1 }
 0x14c   :  { %v2280_v44 = vmax.f32 %v1393_v36, 0.0  ;;  %v1396_v45 = vadd.f32 %v5548_v58, %v1395_v42  ;;  %v4620_v46 = vpop.f32.mrb[55].mxu0  ;;  %v2402_v47 = vmax.f32 %v1881_v39, 0.0  ;;  %v1884_v48 = vadd.f32 %v5548_v58, %v1883_v43  ;;  %v4864_v49 = vpop.f32.mrb[55].mxu1  ;;  %v5146_v42 = vld [vmem:[%s7172_s0 + $0x158] sm:$0xff]  }
 0x14e   :  { %v4220_v50 = vpack.c.bf16 %v2280_v44, %v2280_v44  ;;  %v2281_v51 = vmax.f32 %v1396_v45, 0.0  ;;  %4726 = vmatmul.mubr.msk.bf16.gmra.mrb[160].mxu0 %vm890_vm1, %v5140_v38  ;;  %v4342_v52 = vpack.c.bf16 %v2402_v47, %v2402_v47  ;;  %v2403_v53 = vmax.f32 %v1884_v48, 0.0  ;;  %4970 = vmatmul.mubr.msk.bf16.gmra.mrb[160].mxu1 %vm890_vm1, %v5141_v41  ;;  %v5147_v45 = vld [vmem:[%s7172_s0 + $0x340] sm:$0xff]  }
 0x14f   :  { %4729 = vmatprep.mubr.msk.bf16.mxu0 %vm5185_vm0, %v5184_v0  ;;  %4973 = vmatprep.mubr.msk.bf16.mxu1 %vm5185_vm0, %v5184_v0 }
 0x150   :  { %3487 = vst.msk [vmem:[%s7174_s3 + $0x68] sm:$0xf] %vm3460_vm2, %v4220_v50  ;;  %v4221_v54 = vpack.c.bf16 %v2281_v51, %v2281_v51  ;;  %3609 = vst.msk [vmem:[%s7174_s3 + $0x250] sm:$0xf] %vm3460_vm2, %v4342_v52  ;;  %v4343_v55 = vpack.c.bf16 %v2403_v53, %v2403_v53 }
 0x151   :  { %v1400_v56 = vpop.f32.mrb[56].mxu0  ;;  %v1888_v57 = vpop.f32.mrb[56].mxu1 }
 0x152   :  { %3488 = vst.msk [vmem:[%s7174_s3 + $0x6c] sm:$0xf] %vm3460_vm2, %v4221_v54  ;;  %v1401_v59 = vadd.f32 %v5548_v58, %v1400_v56  ;;  %v4623_v60 = vpop.f32.mrb[57].mxu0  ;;  %3610 = vst.msk [vmem:[%s7174_s3 + $0x254] sm:$0xf] %vm3460_vm2, %v4343_v55  ;;  %v1889_v62 = vadd.f32 %v5548_v58, %v1888_v57  ;;  %v4867_v63 = vpop.f32.mrb[57].mxu1 }
 0x153   :  { %v1403_v2 = vpop.f32.mrb[58].mxu0  ;;  %v1891_v3 = vpop.f32.mrb[58].mxu1 }
 0x154   :  { %v2282_v4 = vmax.f32 %v1401_v59, 0.0  ;;  %v1404_v5 = vadd.f32 %v5548_v58, %v1403_v2  ;;  %v4624_v6 = vpop.f32.mrb[59].mxu0  ;;  %v2404_v7 = vmax.f32 %v1889_v62, 0.0  ;;  %v1892_v8 = vadd.f32 %v5548_v58, %v1891_v3  ;;  %v4868_v9 = vpop.f32.mrb[59].mxu1  ;;  %v6097_v62 = vld [vmem:[%s7173_s2] ss:$0 sm:$0xff] }
 0x155   :  { %v5148_v2 = vld [vmem:[%s7172_s0 + $0x160] sm:$0xff]  }
 0x156   :  { %v4222_v10 = vpack.c.bf16 %v2282_v4, %v2282_v4  ;;  %v2283_v11 = vmax.f32 %v1404_v5, 0.0  ;;  %4730 = vmatmul.mubr.msk.bf16.gmra.mrb[164].mxu0 %vm890_vm1, %v5142_v61  ;;  %v4344_v12 = vpack.c.bf16 %v2404_v7, %v2404_v7  ;;  %v2405_v13 = vmax.f32 %v1892_v8, 0.0  ;;  %4974 = vmatmul.mubr.msk.bf16.gmra.mrb[164].mxu1 %vm890_vm1, %v5143_v1  ;;  %v5149_v5 = vld [vmem:[%s7172_s0 + $0x348] sm:$0xff]  }
 0x157   :  { %4733 = vmatprep.mubr.msk.bf16.mxu0 %vm5185_vm0, %v5184_v0  ;;  %4977 = vmatprep.mubr.msk.bf16.mxu1 %vm5185_vm0, %v5184_v0 }
 0x158   :  { %3489 = vst.msk [vmem:[%s7174_s3 + $0x70] sm:$0xf] %vm3460_vm2, %v4222_v10  ;;  %v4223_v14 = vpack.c.bf16 %v2283_v11, %v2283_v11  ;;  %3611 = vst.msk [vmem:[%s7174_s3 + $0x258] sm:$0xf] %vm3460_vm2, %v4344_v12  ;;  %v4345_v15 = vpack.c.bf16 %v2405_v13, %v2405_v13 }
 0x159   :  { %v1408_v16 = vpop.f32.mrb[60].mxu0  ;;  %v1896_v17 = vpop.f32.mrb[60].mxu1 }
 0x15a   :  { %3490 = vst.msk [vmem:[%s7174_s3 + $0x74] sm:$0xf] %vm3460_vm2, %v4223_v14  ;;  %v1409_v18 = vadd.f32 %v5548_v58, %v1408_v16  ;;  %v4627_v19 = vpop.f32.mrb[61].mxu0  ;;  %3612 = vst.msk [vmem:[%s7174_s3 + $0x25c] sm:$0xf] %vm3460_vm2, %v4345_v15  ;;  %v1897_v21 = vadd.f32 %v5548_v58, %v1896_v17  ;;  %v4871_v22 = vpop.f32.mrb[61].mxu1 }
 0x15b   :  { %v1411_v24 = vpop.f32.mrb[62].mxu0  ;;  %v1899_v25 = vpop.f32.mrb[62].mxu1 }
 0x15c   :  { %v2284_v26 = vmax.f32 %v1409_v18, 0.0  ;;  %v1412_v27 = vadd.f32 %v5548_v58, %v1411_v24  ;;  %v4628_v28 = vpop.f32.mrb[63].mxu0  ;;  %v2406_v29 = vmax.f32 %v1897_v21, 0.0  ;;  %v1900_v30 = vadd.f32 %v5548_v58, %v1899_v25  ;;  %v4872_v31 = vpop.f32.mrb[63].mxu1  ;;  %v5150_v24 = vld [vmem:[%s7172_s0 + $0x168] sm:$0xff]  }
 0x15e   :  { %v4224_v32 = vpack.c.bf16 %v2284_v26, %v2284_v26  ;;  %v2285_v33 = vmax.f32 %v1412_v27, 0.0  ;;  %4734 = vmatmul.mubr.msk.bf16.gmra.mrb[168].mxu0 %vm890_vm1, %v5144_v20  ;;  %v4346_v34 = vpack.c.bf16 %v2406_v29, %v2406_v29  ;;  %v2407_v35 = vmax.f32 %v1900_v30, 0.0  ;;  %4978 = vmatmul.mubr.msk.bf16.gmra.mrb[168].mxu1 %vm890_vm1, %v5145_v23  ;;  %v5151_v27 = vld [vmem:[%s7172_s0 + $0x350] sm:$0xff]  }
 0x15f   :  { %4737 = vmatprep.mubr.msk.bf16.mxu0 %vm5185_vm0, %v5184_v0  ;;  %4981 = vmatprep.mubr.msk.bf16.mxu1 %vm5185_vm0, %v5184_v0 }
 0x160   :  { %3491 = vst.msk [vmem:[%s7174_s3 + $0x78] sm:$0xf] %vm3460_vm2, %v4224_v32  ;;  %v4225_v36 = vpack.c.bf16 %v2285_v33, %v2285_v33  ;;  %3613 = vst.msk [vmem:[%s7174_s3 + $0x260] sm:$0xf] %vm3460_vm2, %v4346_v34  ;;  %v4347_v37 = vpack.c.bf16 %v2407_v35, %v2407_v35 }
 0x161   :  { %v1416_v38 = vpop.f32.mrb[64].mxu0  ;;  %v1904_v39 = vpop.f32.mrb[64].mxu1 }
 0x162   :  { %3492 = vst.msk [vmem:[%s7174_s3 + $0x7c] sm:$0xf] %vm3460_vm2, %v4225_v36  ;;  %v1417_v40 = vadd.f32 %v5548_v58, %v1416_v38  ;;  %v4631_v41 = vpop.f32.mrb[65].mxu0  ;;  %3614 = vst.msk [vmem:[%s7174_s3 + $0x264] sm:$0xf] %vm3460_vm2, %v4347_v37  ;;  %v1905_v43 = vadd.f32 %v5548_v58, %v1904_v39  ;;  %v4875_v44 = vpop.f32.mrb[65].mxu1 }
 0x163   :  { %v1419_v46 = vpop.f32.mrb[66].mxu0  ;;  %v1907_v47 = vpop.f32.mrb[66].mxu1 }
 0x164   :  { %v2286_v48 = vmax.f32 %v1417_v40, 0.0  ;;  %v1420_v49 = vadd.f32 %v5548_v58, %v1419_v46  ;;  %v4632_v50 = vpop.f32.mrb[67].mxu0  ;;  %v2408_v51 = vmax.f32 %v1905_v43, 0.0  ;;  %v1908_v52 = vadd.f32 %v5548_v58, %v1907_v47  ;;  %v4876_v53 = vpop.f32.mrb[67].mxu1  ;;  %v5152_v46 = vld [vmem:[%s7172_s0 + $0x170] sm:$0xff]  }
 0x166   :  { %v4226_v54 = vpack.c.bf16 %v2286_v48, %v2286_v48  ;;  %v2287_v55 = vmax.f32 %v1420_v49, 0.0  ;;  %4738 = vmatmul.mubr.msk.bf16.gmra.mrb[172].mxu0 %vm890_vm1, %v5146_v42  ;;  %v4348_v56 = vpack.c.bf16 %v2408_v51, %v2408_v51  ;;  %v2409_v57 = vmax.f32 %v1908_v52, 0.0  ;;  %4982 = vmatmul.mubr.msk.bf16.gmra.mrb[172].mxu1 %vm890_vm1, %v5147_v45  ;;  %v5153_v49 = vld [vmem:[%s7172_s0 + $0x358] sm:$0xff]  }
 0x167   :  { %4741 = vmatprep.mubr.msk.bf16.mxu0 %vm5185_vm0, %v5184_v0  ;;  %4985 = vmatprep.mubr.msk.bf16.mxu1 %vm5185_vm0, %v5184_v0 }
 0x168   :  { %3493 = vst.msk [vmem:[%s7174_s3 + $0x80] sm:$0xf] %vm3460_vm2, %v4226_v54  ;;  %v4227_v58 = vpack.c.bf16 %v2287_v55, %v2287_v55  ;;  %3615 = vst.msk [vmem:[%s7174_s3 + $0x268] sm:$0xf] %vm3460_vm2, %v4348_v56  ;;  %v4349_v59 = vpack.c.bf16 %v2409_v57, %v2409_v57 }
 0x169   :  { %v1424_v60 = vpop.f32.mrb[68].mxu0  ;;  %v1912_v61 = vpop.f32.mrb[68].mxu1 }
 0x16a   :  { %3494 = vst.msk [vmem:[%s7174_s3 + $0x84] sm:$0xf] %vm3460_vm2, %v4227_v58  ;;  %v1425_v63 = vadd.f32 %v6097_v62, %v1424_v60  ;;  %v4635_v1 = vpop.f32.mrb[69].mxu0  ;;  %3616 = vst.msk [vmem:[%s7174_s3 + $0x26c] sm:$0xf] %vm3460_vm2, %v4349_v59  ;;  %v1913_v3 = vadd.f32 %v6097_v62, %v1912_v61  ;;  %v4879_v4 = vpop.f32.mrb[69].mxu1 }
 0x16b   :  { %v1427_v6 = vpop.f32.mrb[70].mxu0  ;;  %v1915_v7 = vpop.f32.mrb[70].mxu1 }
 0x16c   :  { %v2288_v8 = vmax.f32 %v1425_v63, 0.0  ;;  %v1428_v9 = vadd.f32 %v6097_v62, %v1427_v6  ;;  %v4636_v10 = vpop.f32.mrb[71].mxu0  ;;  %v2410_v11 = vmax.f32 %v1913_v3, 0.0  ;;  %v1916_v12 = vadd.f32 %v6097_v62, %v1915_v7  ;;  %v4880_v13 = vpop.f32.mrb[71].mxu1  ;;  %v5154_v6 = vld [vmem:[%s7172_s0 + $0x178] sm:$0xff]  }
 0x16e   :  { %v4228_v14 = vpack.c.bf16 %v2288_v8, %v2288_v8  ;;  %v2289_v15 = vmax.f32 %v1428_v9, 0.0  ;;  %4742 = vmatmul.mubr.msk.bf16.gmra.mrb[176].mxu0 %vm890_vm1, %v5148_v2  ;;  %v4350_v16 = vpack.c.bf16 %v2410_v11, %v2410_v11  ;;  %v2411_v17 = vmax.f32 %v1916_v12, 0.0  ;;  %4986 = vmatmul.mubr.msk.bf16.gmra.mrb[176].mxu1 %vm890_vm1, %v5149_v5  ;;  %v5155_v9 = vld [vmem:[%s7172_s0 + $0x360] sm:$0xff]  }
 0x16f   :  { %4745 = vmatprep.mubr.msk.bf16.mxu0 %vm5185_vm0, %v5184_v0  ;;  %4989 = vmatprep.mubr.msk.bf16.mxu1 %vm5185_vm0, %v5184_v0 }
 0x170   :  { %3495 = vst.msk [vmem:[%s7174_s3 + $0x88] sm:$0xf] %vm3460_vm2, %v4228_v14  ;;  %v4229_v18 = vpack.c.bf16 %v2289_v15, %v2289_v15  ;;  %3617 = vst.msk [vmem:[%s7174_s3 + $0x270] sm:$0xf] %vm3460_vm2, %v4350_v16  ;;  %v4351_v19 = vpack.c.bf16 %v2411_v17, %v2411_v17 }
 0x171   :  { %v1432_v20 = vpop.f32.mrb[72].mxu0  ;;  %v1920_v21 = vpop.f32.mrb[72].mxu1 }
 0x172   :  { %3496 = vst.msk [vmem:[%s7174_s3 + $0x8c] sm:$0xf] %vm3460_vm2, %v4229_v18  ;;  %v1433_v22 = vadd.f32 %v6097_v62, %v1432_v20  ;;  %v4639_v23 = vpop.f32.mrb[73].mxu0  ;;  %3618 = vst.msk [vmem:[%s7174_s3 + $0x274] sm:$0xf] %vm3460_vm2, %v4351_v19  ;;  %v1921_v25 = vadd.f32 %v6097_v62, %v1920_v21  ;;  %v4883_v26 = vpop.f32.mrb[73].mxu1 }
 0x173   :  { %v1435_v28 = vpop.f32.mrb[74].mxu0  ;;  %v1923_v29 = vpop.f32.mrb[74].mxu1 }
 0x174   :  { %v2290_v30 = vmax.f32 %v1433_v22, 0.0  ;;  %v1436_v31 = vadd.f32 %v6097_v62, %v1435_v28  ;;  %v4640_v32 = vpop.f32.mrb[75].mxu0  ;;  %v2412_v33 = vmax.f32 %v1921_v25, 0.0  ;;  %v1924_v34 = vadd.f32 %v6097_v62, %v1923_v29  ;;  %v4884_v35 = vpop.f32.mrb[75].mxu1  ;;  %v5156_v28 = vld [vmem:[%s7172_s0 + $0x180] sm:$0xff]  }
 0x176   :  { %v4230_v36 = vpack.c.bf16 %v2290_v30, %v2290_v30  ;;  %v2291_v37 = vmax.f32 %v1436_v31, 0.0  ;;  %4746 = vmatmul.mubr.msk.bf16.gmra.mrb[180].mxu0 %vm890_vm1, %v5150_v24  ;;  %v4352_v38 = vpack.c.bf16 %v2412_v33, %v2412_v33  ;;  %v2413_v39 = vmax.f32 %v1924_v34, 0.0  ;;  %4990 = vmatmul.mubr.msk.bf16.gmra.mrb[180].mxu1 %vm890_vm1, %v5151_v27  ;;  %v5157_v31 = vld [vmem:[%s7172_s0 + $0x368] sm:$0xff]  }
 0x177   :  { %4749 = vmatprep.mubr.msk.bf16.mxu0 %vm5185_vm0, %v5184_v0  ;;  %4993 = vmatprep.mubr.msk.bf16.mxu1 %vm5185_vm0, %v5184_v0 }
 0x178   :  { %3497 = vst.msk [vmem:[%s7174_s3 + $0x90] sm:$0xf] %vm3460_vm2, %v4230_v36  ;;  %v4231_v40 = vpack.c.bf16 %v2291_v37, %v2291_v37  ;;  %3619 = vst.msk [vmem:[%s7174_s3 + $0x278] sm:$0xf] %vm3460_vm2, %v4352_v38  ;;  %v4353_v41 = vpack.c.bf16 %v2413_v39, %v2413_v39 }
 0x179   :  { %v1440_v42 = vpop.f32.mrb[76].mxu0  ;;  %v1928_v43 = vpop.f32.mrb[76].mxu1 }
 0x17a   :  { %3498 = vst.msk [vmem:[%s7174_s3 + $0x94] sm:$0xf] %vm3460_vm2, %v4231_v40  ;;  %v1441_v44 = vadd.f32 %v6097_v62, %v1440_v42  ;;  %v4643_v45 = vpop.f32.mrb[77].mxu0  ;;  %3620 = vst.msk [vmem:[%s7174_s3 + $0x27c] sm:$0xf] %vm3460_vm2, %v4353_v41  ;;  %v1929_v47 = vadd.f32 %v6097_v62, %v1928_v43  ;;  %v4887_v48 = vpop.f32.mrb[77].mxu1 }
 0x17b   :  { %v1443_v50 = vpop.f32.mrb[78].mxu0  ;;  %v1931_v51 = vpop.f32.mrb[78].mxu1 }
 0x17c   :  { %v2292_v52 = vmax.f32 %v1441_v44, 0.0  ;;  %v1444_v53 = vadd.f32 %v6097_v62, %v1443_v50  ;;  %v4644_v54 = vpop.f32.mrb[79].mxu0  ;;  %v2414_v55 = vmax.f32 %v1929_v47, 0.0  ;;  %v1932_v56 = vadd.f32 %v6097_v62, %v1931_v51  ;;  %v4888_v57 = vpop.f32.mrb[79].mxu1  ;;  %v5158_v50 = vld [vmem:[%s7172_s0 + $0x188] sm:$0xff]  }
 0x17e   :  { %v4232_v58 = vpack.c.bf16 %v2292_v52, %v2292_v52  ;;  %v2293_v59 = vmax.f32 %v1444_v53, 0.0  ;;  %4750 = vmatmul.mubr.msk.bf16.gmra.mrb[184].mxu0 %vm890_vm1, %v5152_v46  ;;  %v4354_v60 = vpack.c.bf16 %v2414_v55, %v2414_v55  ;;  %v2415_v61 = vmax.f32 %v1932_v56, 0.0  ;;  %4994 = vmatmul.mubr.msk.bf16.gmra.mrb[184].mxu1 %vm890_vm1, %v5153_v49  ;;  %v5159_v53 = vld [vmem:[%s7172_s0 + $0x370] sm:$0xff]  }
 0x17f   :  { %4753 = vmatprep.mubr.msk.bf16.mxu0 %vm5185_vm0, %v5184_v0  ;;  %4997 = vmatprep.mubr.msk.bf16.mxu1 %vm5185_vm0, %v5184_v0 }
 0x180   :  { %3499 = vst.msk [vmem:[%s7174_s3 + $0x98] sm:$0xf] %vm3460_vm2, %v4232_v58  ;;  %v4233_v63 = vpack.c.bf16 %v2293_v59, %v2293_v59  ;;  %3621 = vst.msk [vmem:[%s7174_s3 + $0x280] sm:$0xf] %vm3460_vm2, %v4354_v60  ;;  %v4355_v1 = vpack.c.bf16 %v2415_v61, %v2415_v61 }
 0x181   :  { %v1448_v2 = vpop.f32.mrb[80].mxu0  ;;  %v1936_v3 = vpop.f32.mrb[80].mxu1 }
 0x182   :  { %3500 = vst.msk [vmem:[%s7174_s3 + $0x9c] sm:$0xf] %vm3460_vm2, %v4233_v63  ;;  %v1449_v4 = vadd.f32 %v6097_v62, %v1448_v2  ;;  %v4647_v5 = vpop.f32.mrb[81].mxu0  ;;  %3622 = vst.msk [vmem:[%s7174_s3 + $0x284] sm:$0xf] %vm3460_vm2, %v4355_v1  ;;  %v1937_v7 = vadd.f32 %v6097_v62, %v1936_v3  ;;  %v4891_v8 = vpop.f32.mrb[81].mxu1 }
 0x183   :  { %v1451_v10 = vpop.f32.mrb[82].mxu0  ;;  %v1939_v11 = vpop.f32.mrb[82].mxu1 }
 0x184   :  { %v2294_v12 = vmax.f32 %v1449_v4, 0.0  ;;  %v1452_v13 = vadd.f32 %v6097_v62, %v1451_v10  ;;  %v4648_v14 = vpop.f32.mrb[83].mxu0  ;;  %v2416_v15 = vmax.f32 %v1937_v7, 0.0  ;;  %v1940_v16 = vadd.f32 %v6097_v62, %v1939_v11  ;;  %v4892_v17 = vpop.f32.mrb[83].mxu1  ;;  %v5160_v10 = vld [vmem:[%s7172_s0 + $0x190] sm:$0xff]  }
 0x186   :  { %v4234_v18 = vpack.c.bf16 %v2294_v12, %v2294_v12  ;;  %v2295_v19 = vmax.f32 %v1452_v13, 0.0  ;;  %4754 = vmatmul.mubr.msk.bf16.gmra.mrb[188].mxu0 %vm890_vm1, %v5154_v6  ;;  %v4356_v20 = vpack.c.bf16 %v2416_v15, %v2416_v15  ;;  %v2417_v21 = vmax.f32 %v1940_v16, 0.0  ;;  %4998 = vmatmul.mubr.msk.bf16.gmra.mrb[188].mxu1 %vm890_vm1, %v5155_v9  ;;  %v5161_v13 = vld [vmem:[%s7172_s0 + $0x378] sm:$0xff]  }
 0x187   :  { %4757 = vmatprep.mubr.msk.bf16.mxu0 %vm5185_vm0, %v5184_v0  ;;  %5001 = vmatprep.mubr.msk.bf16.mxu1 %vm5185_vm0, %v5184_v0 }
 0x188   :  { %3501 = vst.msk [vmem:[%s7174_s3 + $0xa0] sm:$0xf] %vm3460_vm2, %v4234_v18  ;;  %v4235_v22 = vpack.c.bf16 %v2295_v19, %v2295_v19  ;;  %3623 = vst.msk [vmem:[%s7174_s3 + $0x288] sm:$0xf] %vm3460_vm2, %v4356_v20  ;;  %v4357_v23 = vpack.c.bf16 %v2417_v21, %v2417_v21 }
 0x189   :  { %v1456_v24 = vpop.f32.mrb[84].mxu0  ;;  %v1944_v25 = vpop.f32.mrb[84].mxu1 }
 0x18a   :  { %3502 = vst.msk [vmem:[%s7174_s3 + $0xa4] sm:$0xf] %vm3460_vm2, %v4235_v22  ;;  %v1457_v26 = vadd.f32 %v6097_v62, %v1456_v24  ;;  %v4651_v27 = vpop.f32.mrb[85].mxu0  ;;  %3624 = vst.msk [vmem:[%s7174_s3 + $0x28c] sm:$0xf] %vm3460_vm2, %v4357_v23  ;;  %v1945_v29 = vadd.f32 %v6097_v62, %v1944_v25  ;;  %v4895_v30 = vpop.f32.mrb[85].mxu1 }
 0x18b   :  { %v1459_v32 = vpop.f32.mrb[86].mxu0  ;;  %v1947_v33 = vpop.f32.mrb[86].mxu1 }
 0x18c   :  { %v2296_v34 = vmax.f32 %v1457_v26, 0.0  ;;  %v1460_v35 = vadd.f32 %v6097_v62, %v1459_v32  ;;  %v4652_v36 = vpop.f32.mrb[87].mxu0  ;;  %v2418_v37 = vmax.f32 %v1945_v29, 0.0  ;;  %v1948_v38 = vadd.f32 %v6097_v62, %v1947_v33  ;;  %v4896_v39 = vpop.f32.mrb[87].mxu1  ;;  %v5162_v32 = vld [vmem:[%s7172_s0 + $0x198] sm:$0xff]  }
 0x18e   :  { %v4236_v40 = vpack.c.bf16 %v2296_v34, %v2296_v34  ;;  %v2297_v41 = vmax.f32 %v1460_v35, 0.0  ;;  %4758 = vmatmul.mubr.msk.bf16.gmra.mrb[192].mxu0 %vm890_vm1, %v5156_v28  ;;  %v4358_v42 = vpack.c.bf16 %v2418_v37, %v2418_v37  ;;  %v2419_v43 = vmax.f32 %v1948_v38, 0.0  ;;  %5002 = vmatmul.mubr.msk.bf16.gmra.mrb[192].mxu1 %vm890_vm1, %v5157_v31  ;;  %v5163_v35 = vld [vmem:[%s7172_s0 + $0x380] sm:$0xff]  }
 0x18f   :  { %4761 = vmatprep.mubr.msk.bf16.mxu0 %vm5185_vm0, %v5184_v0  ;;  %5005 = vmatprep.mubr.msk.bf16.mxu1 %vm5185_vm0, %v5184_v0 }
 0x190   :  { %3503 = vst.msk [vmem:[%s7174_s3 + $0xa8] sm:$0xf] %vm3460_vm2, %v4236_v40  ;;  %v4237_v44 = vpack.c.bf16 %v2297_v41, %v2297_v41  ;;  %3625 = vst.msk [vmem:[%s7174_s3 + $0x290] sm:$0xf] %vm3460_vm2, %v4358_v42  ;;  %v4359_v45 = vpack.c.bf16 %v2419_v43, %v2419_v43 }
 0x191   :  { %v1464_v46 = vpop.f32.mrb[88].mxu0  ;;  %v1952_v47 = vpop.f32.mrb[88].mxu1 }
 0x192   :  { %3504 = vst.msk [vmem:[%s7174_s3 + $0xac] sm:$0xf] %vm3460_vm2, %v4237_v44  ;;  %v1465_v48 = vadd.f32 %v6097_v62, %v1464_v46  ;;  %v4655_v49 = vpop.f32.mrb[89].mxu0  ;;  %3626 = vst.msk [vmem:[%s7174_s3 + $0x294] sm:$0xf] %vm3460_vm2, %v4359_v45  ;;  %v1953_v51 = vadd.f32 %v6097_v62, %v1952_v47  ;;  %v4899_v52 = vpop.f32.mrb[89].mxu1 }
 0x193   :  { %v1467_v54 = vpop.f32.mrb[90].mxu0  ;;  %v1955_v55 = vpop.f32.mrb[90].mxu1 }
 0x194   :  { %v2298_v56 = vmax.f32 %v1465_v48, 0.0  ;;  %v1468_v57 = vadd.f32 %v6097_v62, %v1467_v54  ;;  %v4656_v58 = vpop.f32.mrb[91].mxu0  ;;  %v2420_v59 = vmax.f32 %v1953_v51, 0.0  ;;  %v1956_v60 = vadd.f32 %v6097_v62, %v1955_v55  ;;  %v4900_v61 = vpop.f32.mrb[91].mxu1  ;;  %v5164_v54 = vld [vmem:[%s7172_s0 + $0x1a0] sm:$0xff]  }
 0x196   :  { %v4238_v63 = vpack.c.bf16 %v2298_v56, %v2298_v56  ;;  %v2299_v1 = vmax.f32 %v1468_v57, 0.0  ;;  %4762 = vmatmul.mubr.msk.bf16.gmra.mrb[196].mxu0 %vm890_vm1, %v5158_v50  ;;  %v4360_v2 = vpack.c.bf16 %v2420_v59, %v2420_v59  ;;  %v2421_v3 = vmax.f32 %v1956_v60, 0.0  ;;  %5006 = vmatmul.mubr.msk.bf16.gmra.mrb[196].mxu1 %vm890_vm1, %v5159_v53  ;;  %v5165_v57 = vld [vmem:[%s7172_s0 + $0x388] sm:$0xff]  }
 0x197   :  { %4765 = vmatprep.mubr.msk.bf16.mxu0 %vm5185_vm0, %v5184_v0  ;;  %5009 = vmatprep.mubr.msk.bf16.mxu1 %vm5185_vm0, %v5184_v0 }
 0x198   :  { %3505 = vst.msk [vmem:[%s7174_s3 + $0xb0] sm:$0xf] %vm3460_vm2, %v4238_v63  ;;  %v4239_v4 = vpack.c.bf16 %v2299_v1, %v2299_v1  ;;  %3627 = vst.msk [vmem:[%s7174_s3 + $0x298] sm:$0xf] %vm3460_vm2, %v4360_v2  ;;  %v4361_v5 = vpack.c.bf16 %v2421_v3, %v2421_v3 }
 0x199   :  { %v1472_v6 = vpop.f32.mrb[92].mxu0  ;;  %v1960_v7 = vpop.f32.mrb[92].mxu1 }
 0x19a   :  { %3506 = vst.msk [vmem:[%s7174_s3 + $0xb4] sm:$0xf] %vm3460_vm2, %v4239_v4  ;;  %v1473_v8 = vadd.f32 %v6097_v62, %v1472_v6  ;;  %v4659_v9 = vpop.f32.mrb[93].mxu0  ;;  %3628 = vst.msk [vmem:[%s7174_s3 + $0x29c] sm:$0xf] %vm3460_vm2, %v4361_v5  ;;  %v1961_v11 = vadd.f32 %v6097_v62, %v1960_v7  ;;  %v4903_v12 = vpop.f32.mrb[93].mxu1 }
 0x19b   :  { %v1475_v14 = vpop.f32.mrb[94].mxu0  ;;  %v1963_v15 = vpop.f32.mrb[94].mxu1 }
 0x19c   :  { %v2300_v16 = vmax.f32 %v1473_v8, 0.0  ;;  %v1476_v17 = vadd.f32 %v6097_v62, %v1475_v14  ;;  %v4660_v18 = vpop.f32.mrb[95].mxu0  ;;  %v2422_v19 = vmax.f32 %v1961_v11, 0.0  ;;  %v1964_v20 = vadd.f32 %v6097_v62, %v1963_v15  ;;  %v4904_v21 = vpop.f32.mrb[95].mxu1  ;;  %v5166_v14 = vld [vmem:[%s7172_s0 + $0x1a8] sm:$0xff]  }
 0x19e   :  { %v4240_v22 = vpack.c.bf16 %v2300_v16, %v2300_v16  ;;  %v2301_v23 = vmax.f32 %v1476_v17, 0.0  ;;  %4766 = vmatmul.mubr.msk.bf16.gmra.mrb[200].mxu0 %vm890_vm1, %v5160_v10  ;;  %v4362_v24 = vpack.c.bf16 %v2422_v19, %v2422_v19  ;;  %v2423_v25 = vmax.f32 %v1964_v20, 0.0  ;;  %5010 = vmatmul.mubr.msk.bf16.gmra.mrb[200].mxu1 %vm890_vm1, %v5161_v13  ;;  %v5167_v17 = vld [vmem:[%s7172_s0 + $0x390] sm:$0xff]  }
 0x19f   :  { %4769 = vmatprep.mubr.msk.bf16.mxu0 %vm5185_vm0, %v5184_v0  ;;  %5013 = vmatprep.mubr.msk.bf16.mxu1 %vm5185_vm0, %v5184_v0 }
 0x1a0   :  { %3507 = vst.msk [vmem:[%s7174_s3 + $0xb8] sm:$0xf] %vm3460_vm2, %v4240_v22  ;;  %v4241_v26 = vpack.c.bf16 %v2301_v23, %v2301_v23  ;;  %3629 = vst.msk [vmem:[%s7174_s3 + $0x2a0] sm:$0xf] %vm3460_vm2, %v4362_v24  ;;  %v4363_v27 = vpack.c.bf16 %v2423_v25, %v2423_v25 }
 0x1a1   :  { %v1480_v28 = vpop.f32.mrb[96].mxu0  ;;  %v1968_v29 = vpop.f32.mrb[96].mxu1 }
 0x1a2   :  { %3508 = vst.msk [vmem:[%s7174_s3 + $0xbc] sm:$0xf] %vm3460_vm2, %v4241_v26  ;;  %v1481_v30 = vadd.f32 %v6097_v62, %v1480_v28  ;;  %v4663_v31 = vpop.f32.mrb[97].mxu0  ;;  %3630 = vst.msk [vmem:[%s7174_s3 + $0x2a4] sm:$0xf] %vm3460_vm2, %v4363_v27  ;;  %v1969_v33 = vadd.f32 %v6097_v62, %v1968_v29  ;;  %v4907_v34 = vpop.f32.mrb[97].mxu1 }
 0x1a3   :  { %v1483_v36 = vpop.f32.mrb[98].mxu0  ;;  %v1971_v37 = vpop.f32.mrb[98].mxu1 }
 0x1a4   :  { %v2302_v38 = vmax.f32 %v1481_v30, 0.0  ;;  %v1484_v39 = vadd.f32 %v6097_v62, %v1483_v36  ;;  %v4664_v40 = vpop.f32.mrb[99].mxu0  ;;  %v2424_v41 = vmax.f32 %v1969_v33, 0.0  ;;  %v1972_v42 = vadd.f32 %v6097_v62, %v1971_v37  ;;  %v4908_v43 = vpop.f32.mrb[99].mxu1  ;;  %v5168_v36 = vld [vmem:[%s7172_s0 + $0x1b0] sm:$0xff]  }
 0x1a6   :  { %v4242_v44 = vpack.c.bf16 %v2302_v38, %v2302_v38  ;;  %v2303_v45 = vmax.f32 %v1484_v39, 0.0  ;;  %4770 = vmatmul.mubr.msk.bf16.gmra.mrb[204].mxu0 %vm890_vm1, %v5162_v32  ;;  %v4364_v46 = vpack.c.bf16 %v2424_v41, %v2424_v41  ;;  %v2425_v47 = vmax.f32 %v1972_v42, 0.0  ;;  %5014 = vmatmul.mubr.msk.bf16.gmra.mrb[204].mxu1 %vm890_vm1, %v5163_v35  ;;  %v5169_v39 = vld [vmem:[%s7172_s0 + $0x398] sm:$0xff]  }
 0x1a7   :  { %4773 = vmatprep.mubr.msk.bf16.mxu0 %vm5185_vm0, %v5184_v0  ;;  %5017 = vmatprep.mubr.msk.bf16.mxu1 %vm5185_vm0, %v5184_v0 }
 0x1a8   :  { %3509 = vst.msk [vmem:[%s7174_s3 + $0xc0] sm:$0xf] %vm3460_vm2, %v4242_v44  ;;  %v4243_v48 = vpack.c.bf16 %v2303_v45, %v2303_v45  ;;  %3631 = vst.msk [vmem:[%s7174_s3 + $0x2a8] sm:$0xf] %vm3460_vm2, %v4364_v46  ;;  %v4365_v49 = vpack.c.bf16 %v2425_v47, %v2425_v47 }
 0x1a9   :  { %v1488_v50 = vpop.f32.mrb[100].mxu0  ;;  %v1976_v51 = vpop.f32.mrb[100].mxu1 }
 0x1aa   :  { %3510 = vst.msk [vmem:[%s7174_s3 + $0xc4] sm:$0xf] %vm3460_vm2, %v4243_v48  ;;  %v1489_v52 = vadd.f32 %v6097_v62, %v1488_v50  ;;  %v4667_v53 = vpop.f32.mrb[101].mxu0  ;;  %3632 = vst.msk [vmem:[%s7174_s3 + $0x2ac] sm:$0xf] %vm3460_vm2, %v4365_v49  ;;  %v1977_v55 = vadd.f32 %v6097_v62, %v1976_v51  ;;  %v4911_v56 = vpop.f32.mrb[101].mxu1 }
 0x1ab   :  { %v1491_v58 = vpop.f32.mrb[102].mxu0  ;;  %v1979_v59 = vpop.f32.mrb[102].mxu1 }
 0x1ac   :  { %v2304_v60 = vmax.f32 %v1489_v52, 0.0  ;;  %v1492_v61 = vadd.f32 %v6097_v62, %v1491_v58  ;;  %v4668_v63 = vpop.f32.mrb[103].mxu0  ;;  %v2426_v1 = vmax.f32 %v1977_v55, 0.0  ;;  %v1980_v2 = vadd.f32 %v6097_v62, %v1979_v59  ;;  %v4912_v3 = vpop.f32.mrb[103].mxu1  ;;  %v5170_v58 = vld [vmem:[%s7172_s0 + $0x1b8] sm:$0xff]  }
 0x1ae   :  { %v4244_v4 = vpack.c.bf16 %v2304_v60, %v2304_v60  ;;  %v2305_v5 = vmax.f32 %v1492_v61, 0.0  ;;  %4774 = vmatmul.mubr.msk.bf16.gmra.mrb[208].mxu0 %vm890_vm1, %v5164_v54  ;;  %v4366_v6 = vpack.c.bf16 %v2426_v1, %v2426_v1  ;;  %v2427_v7 = vmax.f32 %v1980_v2, 0.0  ;;  %5018 = vmatmul.mubr.msk.bf16.gmra.mrb[208].mxu1 %vm890_vm1, %v5165_v57  ;;  %v5171_v61 = vld [vmem:[%s7172_s0 + $0x3a0] sm:$0xff]  }
 0x1af   :  { %4777 = vmatprep.mubr.msk.bf16.mxu0 %vm5185_vm0, %v5184_v0  ;;  %5021 = vmatprep.mubr.msk.bf16.mxu1 %vm5185_vm0, %v5184_v0 }
 0x1b0   :  { %3511 = vst.msk [vmem:[%s7174_s3 + $0xc8] sm:$0xf] %vm3460_vm2, %v4244_v4  ;;  %v4245_v8 = vpack.c.bf16 %v2305_v5, %v2305_v5  ;;  %3633 = vst.msk [vmem:[%s7174_s3 + $0x2b0] sm:$0xf] %vm3460_vm2, %v4366_v6  ;;  %v4367_v9 = vpack.c.bf16 %v2427_v7, %v2427_v7 }
 0x1b1   :  { %v1496_v10 = vpop.f32.mrb[104].mxu0  ;;  %v1984_v11 = vpop.f32.mrb[104].mxu1 }
 0x1b2   :  { %3512 = vst.msk [vmem:[%s7174_s3 + $0xcc] sm:$0xf] %vm3460_vm2, %v4245_v8  ;;  %v1497_v12 = vadd.f32 %v6097_v62, %v1496_v10  ;;  %v4671_v13 = vpop.f32.mrb[105].mxu0  ;;  %3634 = vst.msk [vmem:[%s7174_s3 + $0x2b4] sm:$0xf] %vm3460_vm2, %v4367_v9  ;;  %v1985_v15 = vadd.f32 %v6097_v62, %v1984_v11  ;;  %v4915_v16 = vpop.f32.mrb[105].mxu1 }
 0x1b3   :  { %v1499_v18 = vpop.f32.mrb[106].mxu0  ;;  %v1987_v19 = vpop.f32.mrb[106].mxu1 }
 0x1b4   :  { %v2306_v20 = vmax.f32 %v1497_v12, 0.0  ;;  %v1500_v21 = vadd.f32 %v6097_v62, %v1499_v18  ;;  %v4672_v22 = vpop.f32.mrb[107].mxu0  ;;  %v2428_v23 = vmax.f32 %v1985_v15, 0.0  ;;  %v1988_v24 = vadd.f32 %v6097_v62, %v1987_v19  ;;  %v4916_v25 = vpop.f32.mrb[107].mxu1  ;;  %v5172_v18 = vld [vmem:[%s7172_s0 + $0x1c0] sm:$0xff]  }
 0x1b6   :  { %v4246_v26 = vpack.c.bf16 %v2306_v20, %v2306_v20  ;;  %v2307_v27 = vmax.f32 %v1500_v21, 0.0  ;;  %4778 = vmatmul.mubr.msk.bf16.gmra.mrb[212].mxu0 %vm890_vm1, %v5166_v14  ;;  %v4368_v28 = vpack.c.bf16 %v2428_v23, %v2428_v23  ;;  %v2429_v29 = vmax.f32 %v1988_v24, 0.0  ;;  %5022 = vmatmul.mubr.msk.bf16.gmra.mrb[212].mxu1 %vm890_vm1, %v5167_v17  ;;  %v5173_v21 = vld [vmem:[%s7172_s0 + $0x3a8] sm:$0xff]  }
 0x1b7   :  { %4781 = vmatprep.mubr.msk.bf16.mxu0 %vm5185_vm0, %v5184_v0  ;;  %5025 = vmatprep.mubr.msk.bf16.mxu1 %vm5185_vm0, %v5184_v0 }
 0x1b8   :  { %3513 = vst.msk [vmem:[%s7174_s3 + $0xd0] sm:$0xf] %vm3460_vm2, %v4246_v26  ;;  %v4247_v30 = vpack.c.bf16 %v2307_v27, %v2307_v27  ;;  %3635 = vst.msk [vmem:[%s7174_s3 + $0x2b8] sm:$0xf] %vm3460_vm2, %v4368_v28  ;;  %v4369_v31 = vpack.c.bf16 %v2429_v29, %v2429_v29 }
 0x1b9   :  { %v1504_v32 = vpop.f32.mrb[108].mxu0  ;;  %v1992_v33 = vpop.f32.mrb[108].mxu1 }
 0x1ba   :  { %3514 = vst.msk [vmem:[%s7174_s3 + $0xd4] sm:$0xf] %vm3460_vm2, %v4247_v30  ;;  %v1505_v34 = vadd.f32 %v6097_v62, %v1504_v32  ;;  %v4675_v35 = vpop.f32.mrb[109].mxu0  ;;  %3636 = vst.msk [vmem:[%s7174_s3 + $0x2bc] sm:$0xf] %vm3460_vm2, %v4369_v31  ;;  %v1993_v37 = vadd.f32 %v6097_v62, %v1992_v33  ;;  %v4919_v38 = vpop.f32.mrb[109].mxu1 }
 0x1bb   :  { %v1507_v40 = vpop.f32.mrb[110].mxu0  ;;  %v1995_v41 = vpop.f32.mrb[110].mxu1 }
 0x1bc   :  { %v2308_v42 = vmax.f32 %v1505_v34, 0.0  ;;  %v1508_v43 = vadd.f32 %v6097_v62, %v1507_v40  ;;  %v4676_v44 = vpop.f32.mrb[111].mxu0  ;;  %v2430_v45 = vmax.f32 %v1993_v37, 0.0  ;;  %v1996_v46 = vadd.f32 %v6097_v62, %v1995_v41  ;;  %v4920_v47 = vpop.f32.mrb[111].mxu1  ;;  %v5174_v40 = vld [vmem:[%s7172_s0 + $0x1c8] sm:$0xff]  }
 0x1be   :  { %v4248_v48 = vpack.c.bf16 %v2308_v42, %v2308_v42  ;;  %v2309_v49 = vmax.f32 %v1508_v43, 0.0  ;;  %4782 = vmatmul.mubr.msk.bf16.gmra.mrb[216].mxu0 %vm890_vm1, %v5168_v36  ;;  %v4370_v50 = vpack.c.bf16 %v2430_v45, %v2430_v45  ;;  %v2431_v51 = vmax.f32 %v1996_v46, 0.0  ;;  %5026 = vmatmul.mubr.msk.bf16.gmra.mrb[216].mxu1 %vm890_vm1, %v5169_v39  ;;  %v5175_v43 = vld [vmem:[%s7172_s0 + $0x3b0] sm:$0xff]  }
 0x1bf   :  { %4785 = vmatprep.mubr.msk.bf16.mxu0 %vm5185_vm0, %v5184_v0  ;;  %5029 = vmatprep.mubr.msk.bf16.mxu1 %vm5185_vm0, %v5184_v0 }
 0x1c0   :  { %3515 = vst.msk [vmem:[%s7174_s3 + $0xd8] sm:$0xf] %vm3460_vm2, %v4248_v48  ;;  %v4249_v52 = vpack.c.bf16 %v2309_v49, %v2309_v49  ;;  %3637 = vst.msk [vmem:[%s7174_s3 + $0x2c0] sm:$0xf] %vm3460_vm2, %v4370_v50  ;;  %v4371_v53 = vpack.c.bf16 %v2431_v51, %v2431_v51 }
 0x1c1   :  { %v1512_v54 = vpop.f32.mrb[112].mxu0  ;;  %v2000_v55 = vpop.f32.mrb[112].mxu1 }
 0x1c2   :  { %3516 = vst.msk [vmem:[%s7174_s3 + $0xdc] sm:$0xf] %vm3460_vm2, %v4249_v52  ;;  %v1513_v56 = vadd.f32 %v6097_v62, %v1512_v54  ;;  %v4679_v57 = vpop.f32.mrb[113].mxu0  ;;  %3638 = vst.msk [vmem:[%s7174_s3 + $0x2c4] sm:$0xf] %vm3460_vm2, %v4371_v53  ;;  %v2001_v59 = vadd.f32 %v6097_v62, %v2000_v55  ;;  %v4923_v60 = vpop.f32.mrb[113].mxu1 }
 0x1c3   :  { %v1515_v63 = vpop.f32.mrb[114].mxu0  ;;  %v2003_v1 = vpop.f32.mrb[114].mxu1 }
 0x1c4   :  { %v2310_v2 = vmax.f32 %v1513_v56, 0.0  ;;  %v1516_v3 = vadd.f32 %v6097_v62, %v1515_v63  ;;  %v4680_v4 = vpop.f32.mrb[115].mxu0  ;;  %v2432_v5 = vmax.f32 %v2001_v59, 0.0  ;;  %v2004_v6 = vadd.f32 %v6097_v62, %v2003_v1  ;;  %v4924_v7 = vpop.f32.mrb[115].mxu1  ;;  %v5176_v63 = vld [vmem:[%s7172_s0 + $0x1d0] sm:$0xff]  }
 0x1c6   :  { %v4250_v8 = vpack.c.bf16 %v2310_v2, %v2310_v2  ;;  %v2311_v9 = vmax.f32 %v1516_v3, 0.0  ;;  %4786 = vmatmul.mubr.msk.bf16.gmra.mrb[220].mxu0 %vm890_vm1, %v5170_v58  ;;  %v4372_v10 = vpack.c.bf16 %v2432_v5, %v2432_v5  ;;  %v2433_v11 = vmax.f32 %v2004_v6, 0.0  ;;  %5030 = vmatmul.mubr.msk.bf16.gmra.mrb[220].mxu1 %vm890_vm1, %v5171_v61  ;;  %v5177_v3 = vld [vmem:[%s7172_s0 + $0x3b8] sm:$0xff]  }
 0x1c7   :  { %4789 = vmatprep.mubr.msk.bf16.mxu0 %vm5185_vm0, %v5184_v0  ;;  %5033 = vmatprep.mubr.msk.bf16.mxu1 %vm5185_vm0, %v5184_v0 }
 0x1c8   :  { %3517 = vst.msk [vmem:[%s7174_s3 + $0xe0] sm:$0xf] %vm3460_vm2, %v4250_v8  ;;  %v4251_v12 = vpack.c.bf16 %v2311_v9, %v2311_v9  ;;  %3639 = vst.msk [vmem:[%s7174_s3 + $0x2c8] sm:$0xf] %vm3460_vm2, %v4372_v10  ;;  %v4373_v13 = vpack.c.bf16 %v2433_v11, %v2433_v11 }
 0x1c9   :  { %v1520_v14 = vpop.f32.mrb[116].mxu0  ;;  %v2008_v15 = vpop.f32.mrb[116].mxu1 }
 0x1ca   :  { %3518 = vst.msk [vmem:[%s7174_s3 + $0xe4] sm:$0xf] %vm3460_vm2, %v4251_v12  ;;  %v1521_v16 = vadd.f32 %v6097_v62, %v1520_v14  ;;  %v4683_v17 = vpop.f32.mrb[117].mxu0  ;;  %3640 = vst.msk [vmem:[%s7174_s3 + $0x2cc] sm:$0xf] %vm3460_vm2, %v4373_v13  ;;  %v2009_v19 = vadd.f32 %v6097_v62, %v2008_v15  ;;  %v4927_v20 = vpop.f32.mrb[117].mxu1 }
 0x1cb   :  { %v1523_v22 = vpop.f32.mrb[118].mxu0  ;;  %v2011_v23 = vpop.f32.mrb[118].mxu1 }
 0x1cc   :  { %v2312_v24 = vmax.f32 %v1521_v16, 0.0  ;;  %v1524_v25 = vadd.f32 %v6097_v62, %v1523_v22  ;;  %v4684_v26 = vpop.f32.mrb[119].mxu0  ;;  %v2434_v27 = vmax.f32 %v2009_v19, 0.0  ;;  %v2012_v28 = vadd.f32 %v6097_v62, %v2011_v23  ;;  %v4928_v29 = vpop.f32.mrb[119].mxu1  ;;  %v5178_v22 = vld [vmem:[%s7172_s0 + $0x1d8] sm:$0xff]  }
 0x1ce   :  { %v4252_v30 = vpack.c.bf16 %v2312_v24, %v2312_v24  ;;  %v2313_v31 = vmax.f32 %v1524_v25, 0.0  ;;  %4790 = vmatmul.mubr.msk.bf16.gmra.mrb[224].mxu0 %vm890_vm1, %v5172_v18  ;;  %v4374_v32 = vpack.c.bf16 %v2434_v27, %v2434_v27  ;;  %v2435_v33 = vmax.f32 %v2012_v28, 0.0  ;;  %5034 = vmatmul.mubr.msk.bf16.gmra.mrb[224].mxu1 %vm890_vm1, %v5173_v21  ;;  %v5179_v25 = vld [vmem:[%s7172_s0 + $0x3c0] ss:$0 sps:$4 sm:$0x11]  }
 0x1cf   :  { %4793 = vmatprep.mubr.msk.bf16.mxu0 %vm5185_vm0, %v5184_v0  ;;  %5037 = vmatprep.mubr.msk.bf16.mxu1 %vm5185_vm0, %v5184_v0 }
 0x1d0   :  { %3519 = vst.msk [vmem:[%s7174_s3 + $0xe8] sm:$0xf] %vm3460_vm2, %v4252_v30  ;;  %v4253_v34 = vpack.c.bf16 %v2313_v31, %v2313_v31  ;;  %3641 = vst.msk [vmem:[%s7174_s3 + $0x2d0] sm:$0xf] %vm3460_vm2, %v4374_v32  ;;  %v4375_v35 = vpack.c.bf16 %v2435_v33, %v2435_v33 }
 0x1d1   :  { %v1528_v36 = vpop.f32.mrb[120].mxu0  ;;  %v2016_v37 = vpop.f32.mrb[120].mxu1 }
 0x1d2   :  { %3520 = vst.msk [vmem:[%s7174_s3 + $0xec] sm:$0xf] %vm3460_vm2, %v4253_v34  ;;  %v1529_v38 = vadd.f32 %v6097_v62, %v1528_v36  ;;  %v4687_v39 = vpop.f32.mrb[121].mxu0  ;;  %3642 = vst.msk [vmem:[%s7174_s3 + $0x2d4] sm:$0xf] %vm3460_vm2, %v4375_v35  ;;  %v2017_v41 = vadd.f32 %v6097_v62, %v2016_v37  ;;  %v4931_v42 = vpop.f32.mrb[121].mxu1 }
 0x1d3   :  { %v1531_v44 = vpop.f32.mrb[122].mxu0  ;;  %v2019_v45 = vpop.f32.mrb[122].mxu1 }
 0x1d4   :  { %v2314_v46 = vmax.f32 %v1529_v38, 0.0  ;;  %v1532_v47 = vadd.f32 %v6097_v62, %v1531_v44  ;;  %v4688_v48 = vpop.f32.mrb[123].mxu0  ;;  %v2436_v49 = vmax.f32 %v2017_v41, 0.0  ;;  %v2020_v50 = vadd.f32 %v6097_v62, %v2019_v45  ;;  %v4932_v51 = vpop.f32.mrb[123].mxu1 }
 0x1d6   :  { %v4254_v52 = vpack.c.bf16 %v2314_v46, %v2314_v46  ;;  %v2315_v53 = vmax.f32 %v1532_v47, 0.0  ;;  %4794 = vmatmul.mubr.msk.bf16.gmra.mrb[228].mxu0 %vm890_vm1, %v5174_v40  ;;  %v4376_v54 = vpack.c.bf16 %v2436_v49, %v2436_v49  ;;  %v2437_v55 = vmax.f32 %v2020_v50, 0.0  ;;  %5038 = vmatmul.mubr.msk.bf16.gmra.mrb[228].mxu1 %vm890_vm1, %v5175_v43  ;;  %v5180_v43 = vld [vmem:[%s7172_s0 + $0x1e0] sm:$0xff]  }
 0x1d7   :  { %4797 = vmatprep.mubr.msk.bf16.mxu0 %vm5185_vm0, %v5184_v0  ;;  %5041 = vmatprep.mubr.msk.bf16.mxu1 %vm5185_vm0, %v5184_v0 }
 0x1d8   :  { %3521 = vst.msk [vmem:[%s7174_s3 + $0xf0] sm:$0xf] %vm3460_vm2, %v4254_v52  ;;  %v4255_v56 = vpack.c.bf16 %v2315_v53, %v2315_v53  ;;  %3643 = vst.msk [vmem:[%s7174_s3 + $0x2d8] sm:$0xf] %vm3460_vm2, %v4376_v54  ;;  %v4377_v57 = vpack.c.bf16 %v2437_v55, %v2437_v55 }
 0x1d9   :  { %v1536_v58 = vpop.f32.mrb[124].mxu0  ;;  %v2024_v59 = vpop.f32.mrb[124].mxu1 }
 0x1da   :  { %3522 = vst.msk [vmem:[%s7174_s3 + $0xf4] sm:$0xf] %vm3460_vm2, %v4255_v56  ;;  %v1537_v60 = vadd.f32 %v6097_v62, %v1536_v58  ;;  %v4691_v61 = vpop.f32.mrb[125].mxu0  ;;  %3644 = vst.msk [vmem:[%s7174_s3 + $0x2dc] sm:$0xf] %vm3460_vm2, %v4377_v57  ;;  %v2025_v1 = vadd.f32 %v6097_v62, %v2024_v59  ;;  %v4935_v2 = vpop.f32.mrb[125].mxu1 }
 0x1db   :  { %v1539_v4 = vpop.f32.mrb[126].mxu0  ;;  %v2027_v5 = vpop.f32.mrb[126].mxu1 }
 0x1dc   :  { %v2316_v6 = vmax.f32 %v1537_v60, 0.0  ;;  %v1540_v7 = vadd.f32 %v6097_v62, %v1539_v4  ;;  %v4692_v8 = vpop.f32.mrb[127].mxu0  ;;  %v2438_v9 = vmax.f32 %v2025_v1, 0.0  ;;  %v2028_v10 = vadd.f32 %v6097_v62, %v2027_v5  ;;  %v4936_v11 = vpop.f32.mrb[127].mxu1 }
 0x1de   :  { %v4256_v12 = vpack.c.bf16 %v2316_v6, %v2316_v6  ;;  %v2317_v13 = vmax.f32 %v1540_v7, 0.0  ;;  %4798 = vmatmul.mubr.msk.bf16.gmra.mrb[232].mxu0 %vm890_vm1, %v5176_v63  ;;  %v4378_v14 = vpack.c.bf16 %v2438_v9, %v2438_v9  ;;  %v2439_v15 = vmax.f32 %v2028_v10, 0.0  ;;  %5042 = vmatmul.mubr.msk.bf16.gmra.mrb[232].mxu1 %vm890_vm1, %v5177_v3  ;;  %v6642_v7 = vld [vmem:[%s7173_s2] ss:$0 sm:$0xff] }
 0x1df   :  { %4801 = vmatprep.mubr.msk.bf16.mxu0 %vm5185_vm0, %v5184_v0  ;;  %5045 = vmatprep.mubr.msk.bf16.mxu1 %vm5185_vm0, %v5184_v0 }
 0x1e0   :  { %3523 = vst.msk [vmem:[%s7174_s3 + $0xf8] sm:$0xf] %vm3460_vm2, %v4256_v12  ;;  %v4257_v16 = vpack.c.bf16 %v2317_v13, %v2317_v13  ;;  %3645 = vst.msk [vmem:[%s7174_s3 + $0x2e0] sm:$0xf] %vm3460_vm2, %v4378_v14  ;;  %v4379_v17 = vpack.c.bf16 %v2439_v15, %v2439_v15 }
 0x1e1   :  { %v1544_v18 = vpop.f32.mrb[128].mxu0  ;;  %v2032_v19 = vpop.f32.mrb[128].mxu1 }
 0x1e2   :  { %3524 = vst.msk [vmem:[%s7174_s3 + $0xfc] sm:$0xf] %vm3460_vm2, %v4257_v16  ;;  %v1545_v20 = vadd.f32 %v6097_v62, %v1544_v18  ;;  %v4695_v21 = vpop.f32.mrb[129].mxu0  ;;  %3646 = vst.msk [vmem:[%s7174_s3 + $0x2e4] sm:$0xf] %vm3460_vm2, %v4379_v17  ;;  %v2033_v23 = vadd.f32 %v6097_v62, %v2032_v19  ;;  %v4939_v24 = vpop.f32.mrb[129].mxu1 }
 0x1e3   :  { %v1547_v26 = vpop.f32.mrb[130].mxu0  ;;  %v2035_v27 = vpop.f32.mrb[130].mxu1 }
 0x1e4   :  { %v2318_v28 = vmax.f32 %v1545_v20, 0.0  ;;  %v1548_v29 = vadd.f32 %v6097_v62, %v1547_v26  ;;  %v4696_v30 = vpop.f32.mrb[131].mxu0  ;;  %v2440_v31 = vmax.f32 %v2033_v23, 0.0  ;;  %v2036_v32 = vadd.f32 %v6097_v62, %v2035_v27  ;;  %v4940_v33 = vpop.f32.mrb[131].mxu1 }
 0x1e6   :  { %v4258_v34 = vpack.c.bf16 %v2318_v28, %v2318_v28  ;;  %v2319_v35 = vmax.f32 %v1548_v29, 0.0  ;;  %4802 = vmatmul.mubr.msk.bf16.gmra.mrb[236].mxu0 %vm890_vm1, %v5178_v22  ;;  %v4380_v36 = vpack.c.bf16 %v2440_v31, %v2440_v31  ;;  %v2441_v37 = vmax.f32 %v2036_v32, 0.0  ;;  %5046 = vmatmul.mubr.msk.bf16.gmra.mrb[236].mxu1 %vm890_vm1, %v5179_v25 }
 0x1e7   :  { %4805 = vmatprep.mubr.msk.bf16.mxu0 %vm5185_vm0, %v5184_v0 }
 0x1e8   :  { %3525 = vst.msk [vmem:[%s7174_s3 + $0x100] sm:$0xf] %vm3460_vm2, %v4258_v34  ;;  %v4259_v38 = vpack.c.bf16 %v2319_v35, %v2319_v35  ;;  %3647 = vst.msk [vmem:[%s7174_s3 + $0x2e8] sm:$0xf] %vm3460_vm2, %v4380_v36  ;;  %v4381_v39 = vpack.c.bf16 %v2441_v37, %v2441_v37 }
 0x1e9   :  { %v1552_v40 = vpop.f32.mrb[132].mxu0  ;;  %v2040_v41 = vpop.f32.mrb[132].mxu1 }
 0x1ea   :  { %3526 = vst.msk [vmem:[%s7174_s3 + $0x104] sm:$0xf] %vm3460_vm2, %v4259_v38  ;;  %v1553_v0 = vadd.f32 %v6097_v62, %v1552_v40  ;;  %v4699_v42 = vpop.f32.mrb[133].mxu0  ;;  %3648 = vst.msk [vmem:[%s7174_s3 + $0x2ec] sm:$0xf] %vm3460_vm2, %v4381_v39  ;;  %v2041_v44 = vadd.f32 %v6097_v62, %v2040_v41  ;;  %v4943_v45 = vpop.f32.mrb[133].mxu1 }
 0x1eb   :  { %v1555_v46 = vpop.f32.mrb[134].mxu0  ;;  %v2043_v47 = vpop.f32.mrb[134].mxu1 }
 0x1ec   :  { %v2320_v48 = vmax.f32 %v1553_v0, 0.0  ;;  %v1556_v49 = vadd.f32 %v6097_v62, %v1555_v46  ;;  %v4700_v50 = vpop.f32.mrb[135].mxu0  ;;  %v2442_v51 = vmax.f32 %v2041_v44, 0.0  ;;  %v2044_v52 = vadd.f32 %v6097_v62, %v2043_v47  ;;  %v4944_v53 = vpop.f32.mrb[135].mxu1 }
 0x1ee   :  { %v4260_v54 = vpack.c.bf16 %v2320_v48, %v2320_v48  ;;  %v2321_v55 = vmax.f32 %v1556_v49, 0.0  ;;  %4806 = vmatmul.mubr.msk.bf16.gmra.mrb[240].mxu0 %vm890_vm1, %v5180_v43  ;;  %v4382_v56 = vpack.c.bf16 %v2442_v51, %v2442_v51  ;;  %v2443_v57 = vmax.f32 %v2044_v52, 0.0 }
 0x1f0   :  { %3527 = vst.msk [vmem:[%s7174_s3 + $0x108] sm:$0xf] %vm3460_vm2, %v4260_v54  ;;  %v4261_v58 = vpack.c.bf16 %v2321_v55, %v2321_v55  ;;  %3649 = vst.msk [vmem:[%s7174_s3 + $0x2f0] sm:$0xf] %vm3460_vm2, %v4382_v56  ;;  %v4383_v59 = vpack.c.bf16 %v2443_v57, %v2443_v57 }
 0x1f1   :  { %v1560_v60 = vpop.f32.mrb[136].mxu0  ;;  %v2048_v61 = vpop.f32.mrb[136].mxu1 }
 0x1f2   :  { %3528 = vst.msk [vmem:[%s7174_s3 + $0x10c] sm:$0xf] %vm3460_vm2, %v4261_v58  ;;  %v1561_v63 = vadd.f32 %v6097_v62, %v1560_v60  ;;  %v4703_v1 = vpop.f32.mrb[137].mxu0  ;;  %3650 = vst.msk [vmem:[%s7174_s3 + $0x2f4] sm:$0xf] %vm3460_vm2, %v4383_v59  ;;  %v2049_v2 = vadd.f32 %v6097_v62, %v2048_v61  ;;  %v4947_v3 = vpop.f32.mrb[137].mxu1 }
 0x1f3   :  { %v1563_v4 = vpop.f32.mrb[138].mxu0  ;;  %v2051_v5 = vpop.f32.mrb[138].mxu1 }
 0x1f4   :  { %v2322_v6 = vmax.f32 %v1561_v63, 0.0  ;;  %v1564_v8 = vadd.f32 %v6642_v7, %v1563_v4  ;;  %v4704_v9 = vpop.f32.mrb[139].mxu0  ;;  %v2444_v10 = vmax.f32 %v2049_v2, 0.0  ;;  %v2052_v11 = vadd.f32 %v6642_v7, %v2051_v5  ;;  %v4948_v12 = vpop.f32.mrb[139].mxu1 }
 0x1f6   :  { %v4262_v13 = vpack.c.bf16 %v2322_v6, %v2322_v6  ;;  %v2323_v14 = vmax.f32 %v1564_v8, 0.0  ;;  %v4384_v15 = vpack.c.bf16 %v2444_v10, %v2444_v10  ;;  %v2445_v62 = vmax.f32 %v2052_v11, 0.0 }
 0x1f8   :  { %3529 = vst.msk [vmem:[%s7174_s3 + $0x110] sm:$0xf] %vm3460_vm2, %v4262_v13  ;;  %v4263_v16 = vpack.c.bf16 %v2323_v14, %v2323_v14  ;;  %3651 = vst.msk [vmem:[%s7174_s3 + $0x2f8] sm:$0xf] %vm3460_vm2, %v4384_v15  ;;  %v4385_v17 = vpack.c.bf16 %v2445_v62, %v2445_v62 }
 0x1f9   :  { %v1568_v18 = vpop.f32.mrb[140].mxu0  ;;  %v2056_v19 = vpop.f32.mrb[140].mxu1 }
 0x1fa   :  { %3530 = vst.msk [vmem:[%s7174_s3 + $0x114] sm:$0xf] %vm3460_vm2, %v4263_v16  ;;  %v1569_v20 = vadd.f32 %v6642_v7, %v1568_v18  ;;  %v4707_v21 = vpop.f32.mrb[141].mxu0  ;;  %3652 = vst.msk [vmem:[%s7174_s3 + $0x2fc] sm:$0xf] %vm3460_vm2, %v4385_v17  ;;  %v2057_v22 = vadd.f32 %v6642_v7, %v2056_v19  ;;  %v4951_v23 = vpop.f32.mrb[141].mxu1 }
 0x1fb   :  { %v1571_v24 = vpop.f32.mrb[142].mxu0  ;;  %v2059_v25 = vpop.f32.mrb[142].mxu1 }
 0x1fc   :  { %v2324_v26 = vmax.f32 %v1569_v20, 0.0  ;;  %v1572_v27 = vadd.f32 %v6642_v7, %v1571_v24  ;;  %v4708_v28 = vpop.f32.mrb[143].mxu0  ;;  %v2446_v29 = vmax.f32 %v2057_v22, 0.0  ;;  %v2060_v30 = vadd.f32 %v6642_v7, %v2059_v25  ;;  %v4952_v31 = vpop.f32.mrb[143].mxu1 }
 0x1fe   :  { %v4264_v32 = vpack.c.bf16 %v2324_v26, %v2324_v26  ;;  %v2325_v33 = vmax.f32 %v1572_v27, 0.0  ;;  %v4386_v34 = vpack.c.bf16 %v2446_v29, %v2446_v29  ;;  %v2447_v35 = vmax.f32 %v2060_v30, 0.0 }
 0x200   :  { %3531 = vst.msk [vmem:[%s7174_s3 + $0x118] sm:$0xf] %vm3460_vm2, %v4264_v32  ;;  %v4265_v36 = vpack.c.bf16 %v2325_v33, %v2325_v33  ;;  %3653 = vst.msk [vmem:[%s7174_s3 + $0x300] sm:$0xf] %vm3460_vm2, %v4386_v34  ;;  %v4387_v37 = vpack.c.bf16 %v2447_v35, %v2447_v35 }
 0x201   :  { %v1576_v38 = vpop.f32.mrb[144].mxu0  ;;  %v2064_v39 = vpop.f32.mrb[144].mxu1 }
 0x202   :  { %3532 = vst.msk [vmem:[%s7174_s3 + $0x11c] sm:$0xf] %vm3460_vm2, %v4265_v36  ;;  %v1577_v40 = vadd.f32 %v6642_v7, %v1576_v38  ;;  %v4711_v41 = vpop.f32.mrb[145].mxu0  ;;  %3654 = vst.msk [vmem:[%s7174_s3 + $0x304] sm:$0xf] %vm3460_vm2, %v4387_v37  ;;  %v2065_v0 = vadd.f32 %v6642_v7, %v2064_v39  ;;  %v4955_v42 = vpop.f32.mrb[145].mxu1 }
 0x203   :  { %v1579_v43 = vpop.f32.mrb[146].mxu0  ;;  %v2067_v44 = vpop.f32.mrb[146].mxu1 }
 0x204   :  { %v2326_v45 = vmax.f32 %v1577_v40, 0.0  ;;  %v1580_v46 = vadd.f32 %v6642_v7, %v1579_v43  ;;  %v4712_v47 = vpop.f32.mrb[147].mxu0  ;;  %v2448_v48 = vmax.f32 %v2065_v0, 0.0  ;;  %v2068_v49 = vadd.f32 %v6642_v7, %v2067_v44  ;;  %v4956_v50 = vpop.f32.mrb[147].mxu1 }
 0x206   :  { %v4266_v51 = vpack.c.bf16 %v2326_v45, %v2326_v45  ;;  %v2327_v52 = vmax.f32 %v1580_v46, 0.0  ;;  %v4388_v53 = vpack.c.bf16 %v2448_v48, %v2448_v48  ;;  %v2449_v54 = vmax.f32 %v2068_v49, 0.0 }
 0x208   :  { %3533 = vst.msk [vmem:[%s7174_s3 + $0x120] sm:$0xf] %vm3460_vm2, %v4266_v51  ;;  %v4267_v55 = vpack.c.bf16 %v2327_v52, %v2327_v52  ;;  %3655 = vst.msk [vmem:[%s7174_s3 + $0x308] sm:$0xf] %vm3460_vm2, %v4388_v53  ;;  %v4389_v56 = vpack.c.bf16 %v2449_v54, %v2449_v54 }
 0x209   :  { %v1584_v57 = vpop.f32.mrb[148].mxu0  ;;  %v2072_v58 = vpop.f32.mrb[148].mxu1 }
 0x20a   :  { %3534 = vst.msk [vmem:[%s7174_s3 + $0x124] sm:$0xf] %vm3460_vm2, %v4267_v55  ;;  %v1585_v59 = vadd.f32 %v6642_v7, %v1584_v57  ;;  %v4715_v60 = vpop.f32.mrb[149].mxu0  ;;  %3656 = vst.msk [vmem:[%s7174_s3 + $0x30c] sm:$0xf] %vm3460_vm2, %v4389_v56  ;;  %v2073_v61 = vadd.f32 %v6642_v7, %v2072_v58  ;;  %v4959_v63 = vpop.f32.mrb[149].mxu1 }
 0x20b   :  { %v1587_v1 = vpop.f32.mrb[150].mxu0  ;;  %v2075_v2 = vpop.f32.mrb[150].mxu1 }
 0x20c   :  { %v2328_v3 = vmax.f32 %v1585_v59, 0.0  ;;  %v1588_v4 = vadd.f32 %v6642_v7, %v1587_v1  ;;  %v4716_v5 = vpop.f32.mrb[151].mxu0  ;;  %v2450_v6 = vmax.f32 %v2073_v61, 0.0  ;;  %v2076_v8 = vadd.f32 %v6642_v7, %v2075_v2  ;;  %v4960_v9 = vpop.f32.mrb[151].mxu1 }
 0x20e   :  { %v4268_v10 = vpack.c.bf16 %v2328_v3, %v2328_v3  ;;  %v2329_v11 = vmax.f32 %v1588_v4, 0.0  ;;  %v4390_v12 = vpack.c.bf16 %v2450_v6, %v2450_v6  ;;  %v2451_v13 = vmax.f32 %v2076_v8, 0.0 }
 0x210   :  { %3535 = vst.msk [vmem:[%s7174_s3 + $0x128] sm:$0xf] %vm3460_vm2, %v4268_v10  ;;  %v4269_v14 = vpack.c.bf16 %v2329_v11, %v2329_v11  ;;  %3657 = vst.msk [vmem:[%s7174_s3 + $0x310] sm:$0xf] %vm3460_vm2, %v4390_v12  ;;  %v4391_v15 = vpack.c.bf16 %v2451_v13, %v2451_v13 }
 0x211   :  { %v1592_v62 = vpop.f32.mrb[152].mxu0  ;;  %v2080_v16 = vpop.f32.mrb[152].mxu1 }
 0x212   :  { %3536 = vst.msk [vmem:[%s7174_s3 + $0x12c] sm:$0xf] %vm3460_vm2, %v4269_v14  ;;  %v1593_v17 = vadd.f32 %v6642_v7, %v1592_v62  ;;  %v4719_v18 = vpop.f32.mrb[153].mxu0  ;;  %3658 = vst.msk [vmem:[%s7174_s3 + $0x314] sm:$0xf] %vm3460_vm2, %v4391_v15  ;;  %v2081_v19 = vadd.f32 %v6642_v7, %v2080_v16  ;;  %v4963_v20 = vpop.f32.mrb[153].mxu1 }
 0x213   :  { %v1595_v21 = vpop.f32.mrb[154].mxu0  ;;  %v2083_v22 = vpop.f32.mrb[154].mxu1 }
 0x214   :  { %v2330_v23 = vmax.f32 %v1593_v17, 0.0  ;;  %v1596_v24 = vadd.f32 %v6642_v7, %v1595_v21  ;;  %v4720_v25 = vpop.f32.mrb[155].mxu0  ;;  %v2452_v26 = vmax.f32 %v2081_v19, 0.0  ;;  %v2084_v27 = vadd.f32 %v6642_v7, %v2083_v22  ;;  %v4964_v28 = vpop.f32.mrb[155].mxu1 }
 0x216   :  { %v4270_v29 = vpack.c.bf16 %v2330_v23, %v2330_v23  ;;  %v2331_v30 = vmax.f32 %v1596_v24, 0.0  ;;  %v4392_v31 = vpack.c.bf16 %v2452_v26, %v2452_v26  ;;  %v2453_v32 = vmax.f32 %v2084_v27, 0.0 }
 0x218   :  { %3537 = vst.msk [vmem:[%s7174_s3 + $0x130] sm:$0xf] %vm3460_vm2, %v4270_v29  ;;  %v4271_v33 = vpack.c.bf16 %v2331_v30, %v2331_v30  ;;  %3659 = vst.msk [vmem:[%s7174_s3 + $0x318] sm:$0xf] %vm3460_vm2, %v4392_v31  ;;  %v4393_v34 = vpack.c.bf16 %v2453_v32, %v2453_v32 }
 0x219   :  { %v1600_v35 = vpop.f32.mrb[156].mxu0  ;;  %v2088_v36 = vpop.f32.mrb[156].mxu1 }
 0x21a   :  { %3538 = vst.msk [vmem:[%s7174_s3 + $0x134] sm:$0xf] %vm3460_vm2, %v4271_v33  ;;  %v1601_v37 = vadd.f32 %v6642_v7, %v1600_v35  ;;  %v4723_v38 = vpop.f32.mrb[157].mxu0  ;;  %3660 = vst.msk [vmem:[%s7174_s3 + $0x31c] sm:$0xf] %vm3460_vm2, %v4393_v34  ;;  %v2089_v39 = vadd.f32 %v6642_v7, %v2088_v36  ;;  %v4967_v40 = vpop.f32.mrb[157].mxu1 }
 0x21b   :  { %v1603_v41 = vpop.f32.mrb[158].mxu0  ;;  %v2091_v0 = vpop.f32.mrb[158].mxu1 }
 0x21c   :  { %v2332_v42 = vmax.f32 %v1601_v37, 0.0  ;;  %v1604_v43 = vadd.f32 %v6642_v7, %v1603_v41  ;;  %v4724_v44 = vpop.f32.mrb[159].mxu0  ;;  %v2454_v45 = vmax.f32 %v2089_v39, 0.0  ;;  %v2092_v46 = vadd.f32 %v6642_v7, %v2091_v0  ;;  %v4968_v47 = vpop.f32.mrb[159].mxu1 }
 0x21e   :  { %v4272_v48 = vpack.c.bf16 %v2332_v42, %v2332_v42  ;;  %v2333_v49 = vmax.f32 %v1604_v43, 0.0  ;;  %v4394_v50 = vpack.c.bf16 %v2454_v45, %v2454_v45  ;;  %v2455_v51 = vmax.f32 %v2092_v46, 0.0 }
 0x220   :  { %3539 = vst.msk [vmem:[%s7174_s3 + $0x138] sm:$0xf] %vm3460_vm2, %v4272_v48  ;;  %v4273_v52 = vpack.c.bf16 %v2333_v49, %v2333_v49  ;;  %3661 = vst.msk [vmem:[%s7174_s3 + $0x320] sm:$0xf] %vm3460_vm2, %v4394_v50  ;;  %v4395_v53 = vpack.c.bf16 %v2455_v51, %v2455_v51 }
 0x221   :  { %v1608_v54 = vpop.f32.mrb[160].mxu0  ;;  %v2096_v55 = vpop.f32.mrb[160].mxu1 }
 0x222   :  { %3540 = vst.msk [vmem:[%s7174_s3 + $0x13c] sm:$0xf] %vm3460_vm2, %v4273_v52  ;;  %v1609_v56 = vadd.f32 %v6642_v7, %v1608_v54  ;;  %v4727_v57 = vpop.f32.mrb[161].mxu0  ;;  %3662 = vst.msk [vmem:[%s7174_s3 + $0x324] sm:$0xf] %vm3460_vm2, %v4395_v53  ;;  %v2097_v58 = vadd.f32 %v6642_v7, %v2096_v55  ;;  %v4971_v59 = vpop.f32.mrb[161].mxu1 }
 0x223   :  { %v1611_v60 = vpop.f32.mrb[162].mxu0  ;;  %v2099_v61 = vpop.f32.mrb[162].mxu1 }
 0x224   :  { %v2334_v63 = vmax.f32 %v1609_v56, 0.0  ;;  %v1612_v1 = vadd.f32 %v6642_v7, %v1611_v60  ;;  %v4728_v2 = vpop.f32.mrb[163].mxu0  ;;  %v2456_v3 = vmax.f32 %v2097_v58, 0.0  ;;  %v2100_v4 = vadd.f32 %v6642_v7, %v2099_v61  ;;  %v4972_v5 = vpop.f32.mrb[163].mxu1 }
 0x226   :  { %v4274_v6 = vpack.c.bf16 %v2334_v63, %v2334_v63  ;;  %v2335_v8 = vmax.f32 %v1612_v1, 0.0  ;;  %v4396_v9 = vpack.c.bf16 %v2456_v3, %v2456_v3  ;;  %v2457_v10 = vmax.f32 %v2100_v4, 0.0 }
 0x228   :  { %3541 = vst.msk [vmem:[%s7174_s3 + $0x140] sm:$0xf] %vm3460_vm2, %v4274_v6  ;;  %v4275_v11 = vpack.c.bf16 %v2335_v8, %v2335_v8  ;;  %3663 = vst.msk [vmem:[%s7174_s3 + $0x328] sm:$0xf] %vm3460_vm2, %v4396_v9  ;;  %v4397_v12 = vpack.c.bf16 %v2457_v10, %v2457_v10 }
 0x229   :  { %v1616_v13 = vpop.f32.mrb[164].mxu0  ;;  %v2104_v14 = vpop.f32.mrb[164].mxu1 }
 0x22a   :  { %3542 = vst.msk [vmem:[%s7174_s3 + $0x144] sm:$0xf] %vm3460_vm2, %v4275_v11  ;;  %v1617_v15 = vadd.f32 %v6642_v7, %v1616_v13  ;;  %v4731_v62 = vpop.f32.mrb[165].mxu0  ;;  %3664 = vst.msk [vmem:[%s7174_s3 + $0x32c] sm:$0xf] %vm3460_vm2, %v4397_v12  ;;  %v2105_v16 = vadd.f32 %v6642_v7, %v2104_v14  ;;  %v4975_v17 = vpop.f32.mrb[165].mxu1 }
 0x22b   :  { %v1619_v18 = vpop.f32.mrb[166].mxu0  ;;  %v2107_v19 = vpop.f32.mrb[166].mxu1 }
 0x22c   :  { %v2336_v20 = vmax.f32 %v1617_v15, 0.0  ;;  %v1620_v21 = vadd.f32 %v6642_v7, %v1619_v18  ;;  %v4732_v22 = vpop.f32.mrb[167].mxu0  ;;  %v2458_v23 = vmax.f32 %v2105_v16, 0.0  ;;  %v2108_v24 = vadd.f32 %v6642_v7, %v2107_v19  ;;  %v4976_v25 = vpop.f32.mrb[167].mxu1 }
 0x22e   :  { %v4276_v26 = vpack.c.bf16 %v2336_v20, %v2336_v20  ;;  %v2337_v27 = vmax.f32 %v1620_v21, 0.0  ;;  %v4398_v28 = vpack.c.bf16 %v2458_v23, %v2458_v23  ;;  %v2459_v29 = vmax.f32 %v2108_v24, 0.0 }
 0x230   :  { %3543 = vst.msk [vmem:[%s7174_s3 + $0x148] sm:$0xf] %vm3460_vm2, %v4276_v26  ;;  %v4277_v30 = vpack.c.bf16 %v2337_v27, %v2337_v27  ;;  %3665 = vst.msk [vmem:[%s7174_s3 + $0x330] sm:$0xf] %vm3460_vm2, %v4398_v28  ;;  %v4399_v31 = vpack.c.bf16 %v2459_v29, %v2459_v29 }
 0x231   :  { %v1624_v32 = vpop.f32.mrb[168].mxu0  ;;  %v2112_v33 = vpop.f32.mrb[168].mxu1 }
 0x232   :  { %3544 = vst.msk [vmem:[%s7174_s3 + $0x14c] sm:$0xf] %vm3460_vm2, %v4277_v30  ;;  %v1625_v34 = vadd.f32 %v6642_v7, %v1624_v32  ;;  %v4735_v35 = vpop.f32.mrb[169].mxu0  ;;  %3666 = vst.msk [vmem:[%s7174_s3 + $0x334] sm:$0xf] %vm3460_vm2, %v4399_v31  ;;  %v2113_v36 = vadd.f32 %v6642_v7, %v2112_v33  ;;  %v4979_v37 = vpop.f32.mrb[169].mxu1 }
 0x233   :  { %v1627_v38 = vpop.f32.mrb[170].mxu0  ;;  %v2115_v39 = vpop.f32.mrb[170].mxu1 }
 0x234   :  { %v2338_v40 = vmax.f32 %v1625_v34, 0.0  ;;  %v1628_v41 = vadd.f32 %v6642_v7, %v1627_v38  ;;  %v4736_v0 = vpop.f32.mrb[171].mxu0  ;;  %v2460_v42 = vmax.f32 %v2113_v36, 0.0  ;;  %v2116_v43 = vadd.f32 %v6642_v7, %v2115_v39  ;;  %v4980_v44 = vpop.f32.mrb[171].mxu1 }
 0x236   :  { %v4278_v45 = vpack.c.bf16 %v2338_v40, %v2338_v40  ;;  %v2339_v46 = vmax.f32 %v1628_v41, 0.0  ;;  %v4400_v47 = vpack.c.bf16 %v2460_v42, %v2460_v42  ;;  %v2461_v48 = vmax.f32 %v2116_v43, 0.0 }
 0x238   :  { %3545 = vst.msk [vmem:[%s7174_s3 + $0x150] sm:$0xf] %vm3460_vm2, %v4278_v45  ;;  %v4279_v49 = vpack.c.bf16 %v2339_v46, %v2339_v46  ;;  %3667 = vst.msk [vmem:[%s7174_s3 + $0x338] sm:$0xf] %vm3460_vm2, %v4400_v47  ;;  %v4401_v50 = vpack.c.bf16 %v2461_v48, %v2461_v48 }
 0x239   :  { %v1632_v51 = vpop.f32.mrb[172].mxu0  ;;  %v2120_v52 = vpop.f32.mrb[172].mxu1 }
 0x23a   :  { %3546 = vst.msk [vmem:[%s7174_s3 + $0x154] sm:$0xf] %vm3460_vm2, %v4279_v49  ;;  %v1633_v53 = vadd.f32 %v6642_v7, %v1632_v51  ;;  %v4739_v54 = vpop.f32.mrb[173].mxu0  ;;  %3668 = vst.msk [vmem:[%s7174_s3 + $0x33c] sm:$0xf] %vm3460_vm2, %v4401_v50  ;;  %v2121_v55 = vadd.f32 %v6642_v7, %v2120_v52  ;;  %v4983_v56 = vpop.f32.mrb[173].mxu1 }
 0x23b   :  { %v1635_v57 = vpop.f32.mrb[174].mxu0  ;;  %v2123_v58 = vpop.f32.mrb[174].mxu1 }
 0x23c   :  { %v2340_v59 = vmax.f32 %v1633_v53, 0.0  ;;  %v1636_v60 = vadd.f32 %v6642_v7, %v1635_v57  ;;  %v4740_v61 = vpop.f32.mrb[175].mxu0  ;;  %v2462_v63 = vmax.f32 %v2121_v55, 0.0  ;;  %v2124_v1 = vadd.f32 %v6642_v7, %v2123_v58  ;;  %v4984_v2 = vpop.f32.mrb[175].mxu1 }
 0x23e   :  { %v4280_v3 = vpack.c.bf16 %v2340_v59, %v2340_v59  ;;  %v2341_v4 = vmax.f32 %v1636_v60, 0.0  ;;  %v4402_v5 = vpack.c.bf16 %v2462_v63, %v2462_v63  ;;  %v2463_v6 = vmax.f32 %v2124_v1, 0.0 }
 0x240   :  { %3547 = vst.msk [vmem:[%s7174_s3 + $0x158] sm:$0xf] %vm3460_vm2, %v4280_v3  ;;  %v4281_v8 = vpack.c.bf16 %v2341_v4, %v2341_v4  ;;  %3669 = vst.msk [vmem:[%s7174_s3 + $0x340] sm:$0xf] %vm3460_vm2, %v4402_v5  ;;  %v4403_v9 = vpack.c.bf16 %v2463_v6, %v2463_v6 }
 0x241   :  { %v1640_v10 = vpop.f32.mrb[176].mxu0  ;;  %v2128_v11 = vpop.f32.mrb[176].mxu1 }
 0x242   :  { %3548 = vst.msk [vmem:[%s7174_s3 + $0x15c] sm:$0xf] %vm3460_vm2, %v4281_v8  ;;  %v1641_v12 = vadd.f32 %v6642_v7, %v1640_v10  ;;  %v4743_v13 = vpop.f32.mrb[177].mxu0  ;;  %3670 = vst.msk [vmem:[%s7174_s3 + $0x344] sm:$0xf] %vm3460_vm2, %v4403_v9  ;;  %v2129_v14 = vadd.f32 %v6642_v7, %v2128_v11  ;;  %v4987_v15 = vpop.f32.mrb[177].mxu1 }
 0x243   :  { %v1643_v62 = vpop.f32.mrb[178].mxu0  ;;  %v2131_v16 = vpop.f32.mrb[178].mxu1 }
 0x244   :  { %v2342_v17 = vmax.f32 %v1641_v12, 0.0  ;;  %v1644_v18 = vadd.f32 %v6642_v7, %v1643_v62  ;;  %v4744_v19 = vpop.f32.mrb[179].mxu0  ;;  %v2464_v20 = vmax.f32 %v2129_v14, 0.0  ;;  %v2132_v21 = vadd.f32 %v6642_v7, %v2131_v16  ;;  %v4988_v22 = vpop.f32.mrb[179].mxu1 }
 0x246   :  { %v4282_v23 = vpack.c.bf16 %v2342_v17, %v2342_v17  ;;  %v2343_v24 = vmax.f32 %v1644_v18, 0.0  ;;  %v4404_v25 = vpack.c.bf16 %v2464_v20, %v2464_v20  ;;  %v2465_v26 = vmax.f32 %v2132_v21, 0.0 }
 0x248   :  { %3549 = vst.msk [vmem:[%s7174_s3 + $0x160] sm:$0xf] %vm3460_vm2, %v4282_v23  ;;  %v4283_v27 = vpack.c.bf16 %v2343_v24, %v2343_v24  ;;  %3671 = vst.msk [vmem:[%s7174_s3 + $0x348] sm:$0xf] %vm3460_vm2, %v4404_v25  ;;  %v4405_v28 = vpack.c.bf16 %v2465_v26, %v2465_v26 }
 0x249   :  { %v1648_v29 = vpop.f32.mrb[180].mxu0  ;;  %v2136_v30 = vpop.f32.mrb[180].mxu1 }
 0x24a   :  { %3550 = vst.msk [vmem:[%s7174_s3 + $0x164] sm:$0xf] %vm3460_vm2, %v4283_v27  ;;  %v1649_v31 = vadd.f32 %v6642_v7, %v1648_v29  ;;  %v4747_v32 = vpop.f32.mrb[181].mxu0  ;;  %3672 = vst.msk [vmem:[%s7174_s3 + $0x34c] sm:$0xf] %vm3460_vm2, %v4405_v28  ;;  %v2137_v33 = vadd.f32 %v6642_v7, %v2136_v30  ;;  %v4991_v34 = vpop.f32.mrb[181].mxu1 }
 0x24b   :  { %v1651_v35 = vpop.f32.mrb[182].mxu0  ;;  %v2139_v36 = vpop.f32.mrb[182].mxu1 }
 0x24c   :  { %v2344_v37 = vmax.f32 %v1649_v31, 0.0  ;;  %v1652_v38 = vadd.f32 %v6642_v7, %v1651_v35  ;;  %v4748_v39 = vpop.f32.mrb[183].mxu0  ;;  %v2466_v40 = vmax.f32 %v2137_v33, 0.0  ;;  %v2140_v41 = vadd.f32 %v6642_v7, %v2139_v36  ;;  %v4992_v0 = vpop.f32.mrb[183].mxu1 }
 0x24e   :  { %v4284_v42 = vpack.c.bf16 %v2344_v37, %v2344_v37  ;;  %v2345_v43 = vmax.f32 %v1652_v38, 0.0  ;;  %v4406_v44 = vpack.c.bf16 %v2466_v40, %v2466_v40  ;;  %v2467_v45 = vmax.f32 %v2140_v41, 0.0 }
 0x250   :  { %3551 = vst.msk [vmem:[%s7174_s3 + $0x168] sm:$0xf] %vm3460_vm2, %v4284_v42  ;;  %v4285_v46 = vpack.c.bf16 %v2345_v43, %v2345_v43  ;;  %3673 = vst.msk [vmem:[%s7174_s3 + $0x350] sm:$0xf] %vm3460_vm2, %v4406_v44  ;;  %v4407_v47 = vpack.c.bf16 %v2467_v45, %v2467_v45 }
 0x251   :  { %v1656_v48 = vpop.f32.mrb[184].mxu0  ;;  %v2144_v49 = vpop.f32.mrb[184].mxu1 }
 0x252   :  { %3552 = vst.msk [vmem:[%s7174_s3 + $0x16c] sm:$0xf] %vm3460_vm2, %v4285_v46  ;;  %v1657_v50 = vadd.f32 %v6642_v7, %v1656_v48  ;;  %v4751_v51 = vpop.f32.mrb[185].mxu0  ;;  %3674 = vst.msk [vmem:[%s7174_s3 + $0x354] sm:$0xf] %vm3460_vm2, %v4407_v47  ;;  %v2145_v52 = vadd.f32 %v6642_v7, %v2144_v49  ;;  %v4995_v53 = vpop.f32.mrb[185].mxu1 }
 0x253   :  { %v1659_v54 = vpop.f32.mrb[186].mxu0  ;;  %v2147_v55 = vpop.f32.mrb[186].mxu1 }
 0x254   :  { %v2346_v56 = vmax.f32 %v1657_v50, 0.0  ;;  %v1660_v57 = vadd.f32 %v6642_v7, %v1659_v54  ;;  %v4752_v58 = vpop.f32.mrb[187].mxu0  ;;  %v2468_v59 = vmax.f32 %v2145_v52, 0.0  ;;  %v2148_v60 = vadd.f32 %v6642_v7, %v2147_v55  ;;  %v4996_v61 = vpop.f32.mrb[187].mxu1 }
 0x256   :  { %v4286_v63 = vpack.c.bf16 %v2346_v56, %v2346_v56  ;;  %v2347_v1 = vmax.f32 %v1660_v57, 0.0  ;;  %v4408_v2 = vpack.c.bf16 %v2468_v59, %v2468_v59  ;;  %v2469_v3 = vmax.f32 %v2148_v60, 0.0 }
 0x258   :  { %3553 = vst.msk [vmem:[%s7174_s3 + $0x170] sm:$0xf] %vm3460_vm2, %v4286_v63  ;;  %v4287_v4 = vpack.c.bf16 %v2347_v1, %v2347_v1  ;;  %3675 = vst.msk [vmem:[%s7174_s3 + $0x358] sm:$0xf] %vm3460_vm2, %v4408_v2  ;;  %v4409_v5 = vpack.c.bf16 %v2469_v3, %v2469_v3 }
 0x259   :  { %v1664_v6 = vpop.f32.mrb[188].mxu0  ;;  %v2152_v8 = vpop.f32.mrb[188].mxu1 }
 0x25a   :  { %3554 = vst.msk [vmem:[%s7174_s3 + $0x174] sm:$0xf] %vm3460_vm2, %v4287_v4  ;;  %v1665_v9 = vadd.f32 %v6642_v7, %v1664_v6  ;;  %v4755_v10 = vpop.f32.mrb[189].mxu0  ;;  %3676 = vst.msk [vmem:[%s7174_s3 + $0x35c] sm:$0xf] %vm3460_vm2, %v4409_v5  ;;  %v2153_v11 = vadd.f32 %v6642_v7, %v2152_v8  ;;  %v4999_v12 = vpop.f32.mrb[189].mxu1 }
 0x25b   :  { %v1667_v13 = vpop.f32.mrb[190].mxu0  ;;  %v2155_v14 = vpop.f32.mrb[190].mxu1 }
 0x25c   :  { %v2348_v15 = vmax.f32 %v1665_v9, 0.0  ;;  %v1668_v62 = vadd.f32 %v6642_v7, %v1667_v13  ;;  %v4756_v16 = vpop.f32.mrb[191].mxu0  ;;  %v2470_v17 = vmax.f32 %v2153_v11, 0.0  ;;  %v2156_v18 = vadd.f32 %v6642_v7, %v2155_v14  ;;  %v5000_v19 = vpop.f32.mrb[191].mxu1 }
 0x25e   :  { %v4288_v20 = vpack.c.bf16 %v2348_v15, %v2348_v15  ;;  %v2349_v21 = vmax.f32 %v1668_v62, 0.0  ;;  %v4410_v22 = vpack.c.bf16 %v2470_v17, %v2470_v17  ;;  %v2471_v23 = vmax.f32 %v2156_v18, 0.0 }
 0x260   :  { %3555 = vst.msk [vmem:[%s7174_s3 + $0x178] sm:$0xf] %vm3460_vm2, %v4288_v20  ;;  %v4289_v24 = vpack.c.bf16 %v2349_v21, %v2349_v21  ;;  %3677 = vst.msk [vmem:[%s7174_s3 + $0x360] sm:$0xf] %vm3460_vm2, %v4410_v22  ;;  %v4411_v25 = vpack.c.bf16 %v2471_v23, %v2471_v23 }
 0x261   :  { %v1672_v26 = vpop.f32.mrb[192].mxu0  ;;  %v2160_v27 = vpop.f32.mrb[192].mxu1 }
 0x262   :  { %3556 = vst.msk [vmem:[%s7174_s3 + $0x17c] sm:$0xf] %vm3460_vm2, %v4289_v24  ;;  %v1673_v28 = vadd.f32 %v6642_v7, %v1672_v26  ;;  %v4759_v29 = vpop.f32.mrb[193].mxu0  ;;  %3678 = vst.msk [vmem:[%s7174_s3 + $0x364] sm:$0xf] %vm3460_vm2, %v4411_v25  ;;  %v2161_v30 = vadd.f32 %v6642_v7, %v2160_v27  ;;  %v5003_v31 = vpop.f32.mrb[193].mxu1 }
 0x263   :  { %v1675_v32 = vpop.f32.mrb[194].mxu0  ;;  %v2163_v33 = vpop.f32.mrb[194].mxu1 }
 0x264   :  { %v2350_v34 = vmax.f32 %v1673_v28, 0.0  ;;  %v1676_v35 = vadd.f32 %v6642_v7, %v1675_v32  ;;  %v4760_v36 = vpop.f32.mrb[195].mxu0  ;;  %v2472_v37 = vmax.f32 %v2161_v30, 0.0  ;;  %v2164_v38 = vadd.f32 %v6642_v7, %v2163_v33  ;;  %v5004_v39 = vpop.f32.mrb[195].mxu1 }
 0x266   :  { %v4290_v40 = vpack.c.bf16 %v2350_v34, %v2350_v34  ;;  %v2351_v41 = vmax.f32 %v1676_v35, 0.0  ;;  %v4412_v0 = vpack.c.bf16 %v2472_v37, %v2472_v37  ;;  %v2473_v42 = vmax.f32 %v2164_v38, 0.0 }
 0x268   :  { %3557 = vst.msk [vmem:[%s7174_s3 + $0x180] sm:$0xf] %vm3460_vm2, %v4290_v40  ;;  %v4291_v43 = vpack.c.bf16 %v2351_v41, %v2351_v41  ;;  %3679 = vst.msk [vmem:[%s7174_s3 + $0x368] sm:$0xf] %vm3460_vm2, %v4412_v0  ;;  %v4413_v44 = vpack.c.bf16 %v2473_v42, %v2473_v42 }
 0x269   :  { %v1680_v45 = vpop.f32.mrb[196].mxu0  ;;  %v2168_v46 = vpop.f32.mrb[196].mxu1 }
 0x26a   :  { %3558 = vst.msk [vmem:[%s7174_s3 + $0x184] sm:$0xf] %vm3460_vm2, %v4291_v43  ;;  %v1681_v47 = vadd.f32 %v6642_v7, %v1680_v45  ;;  %v4763_v48 = vpop.f32.mrb[197].mxu0  ;;  %3680 = vst.msk [vmem:[%s7174_s3 + $0x36c] sm:$0xf] %vm3460_vm2, %v4413_v44  ;;  %v2169_v49 = vadd.f32 %v6642_v7, %v2168_v46  ;;  %v5007_v50 = vpop.f32.mrb[197].mxu1 }
 0x26b   :  { %v1683_v51 = vpop.f32.mrb[198].mxu0  ;;  %v2171_v52 = vpop.f32.mrb[198].mxu1 }
 0x26c   :  { %v2352_v53 = vmax.f32 %v1681_v47, 0.0  ;;  %v1684_v54 = vadd.f32 %v6642_v7, %v1683_v51  ;;  %v4764_v55 = vpop.f32.mrb[199].mxu0  ;;  %v2474_v56 = vmax.f32 %v2169_v49, 0.0  ;;  %v2172_v57 = vadd.f32 %v6642_v7, %v2171_v52  ;;  %v5008_v58 = vpop.f32.mrb[199].mxu1 }
 0x26e   :  { %v4292_v59 = vpack.c.bf16 %v2352_v53, %v2352_v53  ;;  %v2353_v60 = vmax.f32 %v1684_v54, 0.0  ;;  %v4414_v61 = vpack.c.bf16 %v2474_v56, %v2474_v56  ;;  %v2475_v63 = vmax.f32 %v2172_v57, 0.0 }
 0x270   :  { %3559 = vst.msk [vmem:[%s7174_s3 + $0x188] sm:$0xf] %vm3460_vm2, %v4292_v59  ;;  %v4293_v1 = vpack.c.bf16 %v2353_v60, %v2353_v60  ;;  %3681 = vst.msk [vmem:[%s7174_s3 + $0x370] sm:$0xf] %vm3460_vm2, %v4414_v61  ;;  %v4415_v2 = vpack.c.bf16 %v2475_v63, %v2475_v63 }
 0x271   :  { %v1688_v3 = vpop.f32.mrb[200].mxu0  ;;  %v2176_v4 = vpop.f32.mrb[200].mxu1 }
 0x272   :  { %3560 = vst.msk [vmem:[%s7174_s3 + $0x18c] sm:$0xf] %vm3460_vm2, %v4293_v1  ;;  %v1689_v5 = vadd.f32 %v6642_v7, %v1688_v3  ;;  %v4767_v6 = vpop.f32.mrb[201].mxu0  ;;  %3682 = vst.msk [vmem:[%s7174_s3 + $0x374] sm:$0xf] %vm3460_vm2, %v4415_v2  ;;  %v2177_v8 = vadd.f32 %v6642_v7, %v2176_v4  ;;  %v5011_v9 = vpop.f32.mrb[201].mxu1 }
 0x273   :  { %v1691_v10 = vpop.f32.mrb[202].mxu0  ;;  %v2179_v11 = vpop.f32.mrb[202].mxu1 }
 0x274   :  { %v2354_v12 = vmax.f32 %v1689_v5, 0.0  ;;  %v1692_v13 = vadd.f32 %v6642_v7, %v1691_v10  ;;  %v4768_v14 = vpop.f32.mrb[203].mxu0  ;;  %v2476_v15 = vmax.f32 %v2177_v8, 0.0  ;;  %v2180_v62 = vadd.f32 %v6642_v7, %v2179_v11  ;;  %v5012_v16 = vpop.f32.mrb[203].mxu1 }
 0x276   :  { %v4294_v17 = vpack.c.bf16 %v2354_v12, %v2354_v12  ;;  %v2355_v18 = vmax.f32 %v1692_v13, 0.0  ;;  %v4416_v19 = vpack.c.bf16 %v2476_v15, %v2476_v15  ;;  %v2477_v20 = vmax.f32 %v2180_v62, 0.0 }
 0x278   :  { %3561 = vst.msk [vmem:[%s7174_s3 + $0x190] sm:$0xf] %vm3460_vm2, %v4294_v17  ;;  %v4295_v21 = vpack.c.bf16 %v2355_v18, %v2355_v18  ;;  %3683 = vst.msk [vmem:[%s7174_s3 + $0x378] sm:$0xf] %vm3460_vm2, %v4416_v19  ;;  %v4417_v22 = vpack.c.bf16 %v2477_v20, %v2477_v20 }
 0x279   :  { %v1696_v23 = vpop.f32.mrb[204].mxu0  ;;  %v2184_v24 = vpop.f32.mrb[204].mxu1 }
 0x27a   :  { %3562 = vst.msk [vmem:[%s7174_s3 + $0x194] sm:$0xf] %vm3460_vm2, %v4295_v21  ;;  %v1697_v25 = vadd.f32 %v6642_v7, %v1696_v23  ;;  %v4771_v26 = vpop.f32.mrb[205].mxu0  ;;  %3684 = vst.msk [vmem:[%s7174_s3 + $0x37c] sm:$0xf] %vm3460_vm2, %v4417_v22  ;;  %v2185_v27 = vadd.f32 %v6642_v7, %v2184_v24  ;;  %v5015_v28 = vpop.f32.mrb[205].mxu1 }
 0x27b   :  { %v1699_v29 = vpop.f32.mrb[206].mxu0  ;;  %v2187_v30 = vpop.f32.mrb[206].mxu1 }
 0x27c   :  { %v2356_v31 = vmax.f32 %v1697_v25, 0.0  ;;  %v1700_v32 = vadd.f32 %v6642_v7, %v1699_v29  ;;  %v4772_v33 = vpop.f32.mrb[207].mxu0  ;;  %v2478_v34 = vmax.f32 %v2185_v27, 0.0  ;;  %v2188_v35 = vadd.f32 %v6642_v7, %v2187_v30  ;;  %v5016_v36 = vpop.f32.mrb[207].mxu1 }
 0x27e   :  { %v4296_v37 = vpack.c.bf16 %v2356_v31, %v2356_v31  ;;  %v2357_v38 = vmax.f32 %v1700_v32, 0.0  ;;  %v4418_v39 = vpack.c.bf16 %v2478_v34, %v2478_v34  ;;  %v2479_v40 = vmax.f32 %v2188_v35, 0.0 }
 0x280   :  { %3563 = vst.msk [vmem:[%s7174_s3 + $0x198] sm:$0xf] %vm3460_vm2, %v4296_v37  ;;  %v4297_v41 = vpack.c.bf16 %v2357_v38, %v2357_v38  ;;  %3685 = vst.msk [vmem:[%s7174_s3 + $0x380] sm:$0xf] %vm3460_vm2, %v4418_v39  ;;  %v4419_v0 = vpack.c.bf16 %v2479_v40, %v2479_v40 }
 0x281   :  { %v1704_v42 = vpop.f32.mrb[208].mxu0  ;;  %v2192_v43 = vpop.f32.mrb[208].mxu1 }
 0x282   :  { %3564 = vst.msk [vmem:[%s7174_s3 + $0x19c] sm:$0xf] %vm3460_vm2, %v4297_v41  ;;  %v1705_v44 = vadd.f32 %v6642_v7, %v1704_v42  ;;  %v4775_v45 = vpop.f32.mrb[209].mxu0  ;;  %3686 = vst.msk [vmem:[%s7174_s3 + $0x384] sm:$0xf] %vm3460_vm2, %v4419_v0  ;;  %v2193_v46 = vadd.f32 %v6642_v7, %v2192_v43  ;;  %v5019_v47 = vpop.f32.mrb[209].mxu1 }
 0x283   :  { %v1707_v48 = vpop.f32.mrb[210].mxu0  ;;  %v2195_v49 = vpop.f32.mrb[210].mxu1 }
 0x284   :  { %v2358_v50 = vmax.f32 %v1705_v44, 0.0  ;;  %v1708_v51 = vadd.f32 %v6642_v7, %v1707_v48  ;;  %v4776_v52 = vpop.f32.mrb[211].mxu0  ;;  %v2480_v53 = vmax.f32 %v2193_v46, 0.0  ;;  %v2196_v54 = vadd.f32 %v6642_v7, %v2195_v49  ;;  %v5020_v55 = vpop.f32.mrb[211].mxu1 }
 0x286   :  { %v4298_v56 = vpack.c.bf16 %v2358_v50, %v2358_v50  ;;  %v2359_v57 = vmax.f32 %v1708_v51, 0.0  ;;  %v4420_v58 = vpack.c.bf16 %v2480_v53, %v2480_v53  ;;  %v2481_v59 = vmax.f32 %v2196_v54, 0.0 }
 0x288   :  { %3565 = vst.msk [vmem:[%s7174_s3 + $0x1a0] sm:$0xf] %vm3460_vm2, %v4298_v56  ;;  %v4299_v60 = vpack.c.bf16 %v2359_v57, %v2359_v57  ;;  %3687 = vst.msk [vmem:[%s7174_s3 + $0x388] sm:$0xf] %vm3460_vm2, %v4420_v58  ;;  %v4421_v61 = vpack.c.bf16 %v2481_v59, %v2481_v59 }
 0x289   :  { %v1712_v63 = vpop.f32.mrb[212].mxu0  ;;  %v2200_v1 = vpop.f32.mrb[212].mxu1 }
 0x28a   :  { %3566 = vst.msk [vmem:[%s7174_s3 + $0x1a4] sm:$0xf] %vm3460_vm2, %v4299_v60  ;;  %v1713_v2 = vadd.f32 %v6642_v7, %v1712_v63  ;;  %v4779_v3 = vpop.f32.mrb[213].mxu0  ;;  %3688 = vst.msk [vmem:[%s7174_s3 + $0x38c] sm:$0xf] %vm3460_vm2, %v4421_v61  ;;  %v2201_v4 = vadd.f32 %v6642_v7, %v2200_v1  ;;  %v5023_v5 = vpop.f32.mrb[213].mxu1 }
 0x28b   :  { %v1715_v6 = vpop.f32.mrb[214].mxu0  ;;  %v2203_v8 = vpop.f32.mrb[214].mxu1 }
 0x28c   :  { %v2360_v9 = vmax.f32 %v1713_v2, 0.0  ;;  %v1716_v10 = vadd.f32 %v6642_v7, %v1715_v6  ;;  %v4780_v11 = vpop.f32.mrb[215].mxu0  ;;  %v2482_v12 = vmax.f32 %v2201_v4, 0.0  ;;  %v2204_v13 = vadd.f32 %v6642_v7, %v2203_v8  ;;  %v5024_v14 = vpop.f32.mrb[215].mxu1 }
 0x28e   :  { %v4300_v15 = vpack.c.bf16 %v2360_v9, %v2360_v9  ;;  %v2361_v62 = vmax.f32 %v1716_v10, 0.0  ;;  %v4422_v16 = vpack.c.bf16 %v2482_v12, %v2482_v12  ;;  %v2483_v17 = vmax.f32 %v2204_v13, 0.0 }
 0x290   :  { %3567 = vst.msk [vmem:[%s7174_s3 + $0x1a8] sm:$0xf] %vm3460_vm2, %v4300_v15  ;;  %v4301_v18 = vpack.c.bf16 %v2361_v62, %v2361_v62  ;;  %3689 = vst.msk [vmem:[%s7174_s3 + $0x390] sm:$0xf] %vm3460_vm2, %v4422_v16  ;;  %v4423_v19 = vpack.c.bf16 %v2483_v17, %v2483_v17 }
 0x291   :  { %v1720_v20 = vpop.f32.mrb[216].mxu0  ;;  %v2208_v21 = vpop.f32.mrb[216].mxu1 }
 0x292   :  { %3568 = vst.msk [vmem:[%s7174_s3 + $0x1ac] sm:$0xf] %vm3460_vm2, %v4301_v18  ;;  %v1721_v22 = vadd.f32 %v6642_v7, %v1720_v20  ;;  %v4783_v23 = vpop.f32.mrb[217].mxu0  ;;  %3690 = vst.msk [vmem:[%s7174_s3 + $0x394] sm:$0xf] %vm3460_vm2, %v4423_v19  ;;  %v2209_v24 = vadd.f32 %v6642_v7, %v2208_v21  ;;  %v5027_v25 = vpop.f32.mrb[217].mxu1 }
 0x293   :  { %v1723_v26 = vpop.f32.mrb[218].mxu0  ;;  %v2211_v27 = vpop.f32.mrb[218].mxu1 }
 0x294   :  { %v2362_v28 = vmax.f32 %v1721_v22, 0.0  ;;  %v1724_v29 = vadd.f32 %v6642_v7, %v1723_v26  ;;  %v4784_v30 = vpop.f32.mrb[219].mxu0  ;;  %v2484_v31 = vmax.f32 %v2209_v24, 0.0  ;;  %v2212_v32 = vadd.f32 %v6642_v7, %v2211_v27  ;;  %v5028_v33 = vpop.f32.mrb[219].mxu1 }
 0x296   :  { %v4302_v34 = vpack.c.bf16 %v2362_v28, %v2362_v28  ;;  %v2363_v35 = vmax.f32 %v1724_v29, 0.0  ;;  %v4424_v36 = vpack.c.bf16 %v2484_v31, %v2484_v31  ;;  %v2485_v37 = vmax.f32 %v2212_v32, 0.0 }
 0x298   :  { %3569 = vst.msk [vmem:[%s7174_s3 + $0x1b0] sm:$0xf] %vm3460_vm2, %v4302_v34  ;;  %v4303_v38 = vpack.c.bf16 %v2363_v35, %v2363_v35  ;;  %3691 = vst.msk [vmem:[%s7174_s3 + $0x398] sm:$0xf] %vm3460_vm2, %v4424_v36  ;;  %v4425_v39 = vpack.c.bf16 %v2485_v37, %v2485_v37 }
 0x299   :  { %v1728_v40 = vpop.f32.mrb[220].mxu0  ;;  %v2216_v41 = vpop.f32.mrb[220].mxu1 }
 0x29a   :  { %3570 = vst.msk [vmem:[%s7174_s3 + $0x1b4] sm:$0xf] %vm3460_vm2, %v4303_v38  ;;  %v1729_v0 = vadd.f32 %v6642_v7, %v1728_v40  ;;  %v4787_v42 = vpop.f32.mrb[221].mxu0  ;;  %3692 = vst.msk [vmem:[%s7174_s3 + $0x39c] sm:$0xf] %vm3460_vm2, %v4425_v39  ;;  %v2217_v43 = vadd.f32 %v6642_v7, %v2216_v41  ;;  %v5031_v44 = vpop.f32.mrb[221].mxu1 }
 0x29b   :  { %v1731_v45 = vpop.f32.mrb[222].mxu0  ;;  %v2219_v46 = vpop.f32.mrb[222].mxu1 }
 0x29c   :  { %v2364_v47 = vmax.f32 %v1729_v0, 0.0  ;;  %v1732_v48 = vadd.f32 %v6642_v7, %v1731_v45  ;;  %v4788_v49 = vpop.f32.mrb[223].mxu0  ;;  %v2486_v50 = vmax.f32 %v2217_v43, 0.0  ;;  %v2220_v51 = vadd.f32 %v6642_v7, %v2219_v46  ;;  %v5032_v52 = vpop.f32.mrb[223].mxu1  ;;  %v7081_v7 = vld [vmem:[%s7173_s2] ss:$0 sm:$0xff] }
 0x29e   :  { %v4304_v53 = vpack.c.bf16 %v2364_v47, %v2364_v47  ;;  %v2365_v54 = vmax.f32 %v1732_v48, 0.0  ;;  %v4426_v55 = vpack.c.bf16 %v2486_v50, %v2486_v50  ;;  %v2487_v56 = vmax.f32 %v2220_v51, 0.0 }
 0x2a0   :  { %3571 = vst.msk [vmem:[%s7174_s3 + $0x1b8] sm:$0xf] %vm3460_vm2, %v4304_v53  ;;  %v4305_v57 = vpack.c.bf16 %v2365_v54, %v2365_v54  ;;  %3693 = vst.msk [vmem:[%s7174_s3 + $0x3a0] sm:$0xf] %vm3460_vm2, %v4426_v55  ;;  %v4427_v58 = vpack.c.bf16 %v2487_v56, %v2487_v56 }
 0x2a1   :  { %v1736_v59 = vpop.f32.mrb[224].mxu0  ;;  %v2224_v60 = vpop.f32.mrb[224].mxu1 }
 0x2a2   :  { %3572 = vst.msk [vmem:[%s7174_s3 + $0x1bc] sm:$0xf] %vm3460_vm2, %v4305_v57  ;;  %v1737_v61 = vadd.f32 %v7081_v7, %v1736_v59  ;;  %v4791_v63 = vpop.f32.mrb[225].mxu0  ;;  %3694 = vst.msk [vmem:[%s7174_s3 + $0x3a4] sm:$0xf] %vm3460_vm2, %v4427_v58  ;;  %v2225_v1 = vadd.f32 %v7081_v7, %v2224_v60  ;;  %v5035_v2 = vpop.f32.mrb[225].mxu1 }
 0x2a3   :  { %v1739_v3 = vpop.f32.mrb[226].mxu0  ;;  %v2227_v4 = vpop.f32.mrb[226].mxu1 }
 0x2a4   :  { %v2366_v5 = vmax.f32 %v1737_v61, 0.0  ;;  %v1740_v6 = vadd.f32 %v7081_v7, %v1739_v3  ;;  %v4792_v8 = vpop.f32.mrb[227].mxu0  ;;  %v2488_v9 = vmax.f32 %v2225_v1, 0.0  ;;  %v2228_v10 = vadd.f32 %v7081_v7, %v2227_v4  ;;  %v5036_v11 = vpop.f32.mrb[227].mxu1 }
 0x2a6   :  { %v4306_v12 = vpack.c.bf16 %v2366_v5, %v2366_v5  ;;  %v2367_v13 = vmax.f32 %v1740_v6, 0.0  ;;  %v4428_v14 = vpack.c.bf16 %v2488_v9, %v2488_v9  ;;  %v2489_v15 = vmax.f32 %v2228_v10, 0.0 }
 0x2a8   :  { %3573 = vst.msk [vmem:[%s7174_s3 + $0x1c0] sm:$0xf] %vm3460_vm2, %v4306_v12  ;;  %v4307_v62 = vpack.c.bf16 %v2367_v13, %v2367_v13  ;;  %3695 = vst.msk [vmem:[%s7174_s3 + $0x3a8] sm:$0xf] %vm3460_vm2, %v4428_v14  ;;  %v4429_v16 = vpack.c.bf16 %v2489_v15, %v2489_v15 }
 0x2a9   :  { %v1744_v17 = vpop.f32.mrb[228].mxu0  ;;  %v2232_v18 = vpop.f32.mrb[228].mxu1 }
 0x2aa   :  { %3574 = vst.msk [vmem:[%s7174_s3 + $0x1c4] sm:$0xf] %vm3460_vm2, %v4307_v62  ;;  %v1745_v19 = vadd.f32 %v7081_v7, %v1744_v17  ;;  %v4795_v20 = vpop.f32.mrb[229].mxu0  ;;  %3696 = vst.msk [vmem:[%s7174_s3 + $0x3ac] sm:$0xf] %vm3460_vm2, %v4429_v16  ;;  %v2233_v21 = vadd.f32 %v7081_v7, %v2232_v18  ;;  %v5039_v22 = vpop.f32.mrb[229].mxu1 }
 0x2ab   :  { %v1747_v23 = vpop.f32.mrb[230].mxu0  ;;  %v2235_v24 = vpop.f32.mrb[230].mxu1 }
 0x2ac   :  { %v2368_v25 = vmax.f32 %v1745_v19, 0.0  ;;  %v1748_v26 = vadd.f32 %v7081_v7, %v1747_v23  ;;  %v4796_v27 = vpop.f32.mrb[231].mxu0  ;;  %v2490_v28 = vmax.f32 %v2233_v21, 0.0  ;;  %v2236_v29 = vadd.f32 %v7081_v7, %v2235_v24  ;;  %v5040_v30 = vpop.f32.mrb[231].mxu1 }
 0x2ae   :  { %v4308_v31 = vpack.c.bf16 %v2368_v25, %v2368_v25  ;;  %v2369_v32 = vmax.f32 %v1748_v26, 0.0  ;;  %v4430_v33 = vpack.c.bf16 %v2490_v28, %v2490_v28  ;;  %v2491_v34 = vmax.f32 %v2236_v29, 0.0 }
 0x2b0   :  { %3575 = vst.msk [vmem:[%s7174_s3 + $0x1c8] sm:$0xf] %vm3460_vm2, %v4308_v31  ;;  %v4309_v35 = vpack.c.bf16 %v2369_v32, %v2369_v32  ;;  %3697 = vst.msk [vmem:[%s7174_s3 + $0x3b0] sm:$0xf] %vm3460_vm2, %v4430_v33  ;;  %v4431_v36 = vpack.c.bf16 %v2491_v34, %v2491_v34 }
 0x2b1   :  { %v1752_v37 = vpop.f32.mrb[232].mxu0  ;;  %v2240_v38 = vpop.f32.mrb[232].mxu1 }
 0x2b2   :  { %3576 = vst.msk [vmem:[%s7174_s3 + $0x1cc] sm:$0xf] %vm3460_vm2, %v4309_v35  ;;  %v1753_v39 = vadd.f32 %v7081_v7, %v1752_v37  ;;  %v4799_v40 = vpop.f32.mrb[233].mxu0  ;;  %3698 = vst.msk [vmem:[%s7174_s3 + $0x3b4] sm:$0xf] %vm3460_vm2, %v4431_v36  ;;  %v2241_v41 = vadd.f32 %v7081_v7, %v2240_v38  ;;  %v5043_v0 = vpop.f32.mrb[233].mxu1 }
 0x2b3   :  { %v1755_v42 = vpop.f32.mrb[234].mxu0  ;;  %v2243_v43 = vpop.f32.mrb[234].mxu1 }
 0x2b4   :  { %v2370_v44 = vmax.f32 %v1753_v39, 0.0  ;;  %v1756_v45 = vadd.f32 %v7081_v7, %v1755_v42  ;;  %v4800_v46 = vpop.f32.mrb[235].mxu0  ;;  %v2492_v47 = vmax.f32 %v2241_v41, 0.0  ;;  %v2244_v48 = vadd.f32 %v7081_v7, %v2243_v43  ;;  %v5044_v49 = vpop.f32.mrb[235].mxu1 }
 0x2b6   :  { %v4310_v50 = vpack.c.bf16 %v2370_v44, %v2370_v44  ;;  %v2371_v51 = vmax.f32 %v1756_v45, 0.0  ;;  %v4432_v52 = vpack.c.bf16 %v2492_v47, %v2492_v47  ;;  %v2493_v53 = vmax.f32 %v2244_v48, 0.0 }
 0x2b8   :  { %3577 = vst.msk [vmem:[%s7174_s3 + $0x1d0] sm:$0xf] %vm3460_vm2, %v4310_v50  ;;  %v4311_v54 = vpack.c.bf16 %v2371_v51, %v2371_v51  ;;  %3699 = vst.msk [vmem:[%s7174_s3 + $0x3b8] sm:$0xf] %vm3460_vm2, %v4432_v52  ;;  %v4433_v55 = vpack.c.bf16 %v2493_v53, %v2493_v53 }
 0x2b9   :  { %v1760_v56 = vpop.f32.mrb[236].mxu0  ;;  %v2248_v57 = vpop.f32.mrb[236].mxu1 }
 0x2ba   :  { %3578 = vst.msk [vmem:[%s7174_s3 + $0x1d4] sm:$0xf] %vm3460_vm2, %v4311_v54  ;;  %v1761_v58 = vadd.f32 %v7081_v7, %v1760_v56  ;;  %v4803_v59 = vpop.f32.mrb[237].mxu0  ;;  %3700 = vst.msk [vmem:[%s7174_s3 + $0x3bc] sm:$0xf] %vm3460_vm2, %v4433_v55  ;;  %v2249_v60 = vadd.f32 %v7081_v7, %v2248_v57  ;;  %v5047_v61 = vpop.f32.mrb[237].mxu1 }
 0x2bb   :  { %v1763_v63 = vpop.f32.mrb[238].mxu0  ;;  %v2251_v1 = vpop.f32.mrb[238].mxu1 }
 0x2bc   :  { %v2372_v2 = vmax.f32 %v1761_v58, 0.0  ;;  %v1764_v3 = vadd.f32 %v7081_v7, %v1763_v63  ;;  %v4804_v4 = vpop.f32.mrb[239].mxu0  ;;  %v2494_v5 = vmax.f32 %v2249_v60, 0.0  ;;  %v5048_v6 = vpop.f32.mrb[239].mxu1 }
 0x2be   :  { %v4312_v8 = vpack.c.bf16 %v2372_v2, %v2372_v2  ;;  %v2373_v9 = vmax.f32 %v1764_v3, 0.0  ;;  %v4434_v10 = vpack.c.bf16 %v2494_v5, %v2494_v5 }
 0x2c0   :  { %3579 = vst.msk [vmem:[%s7174_s3 + $0x1d8] sm:$0xf] %vm3460_vm2, %v4312_v8  ;;  %v4313_v11 = vpack.c.bf16 %v2373_v9, %v2373_v9 }
 0x2c1   :  { %3702 = vst.msk [vmem:[%s7174_s3 + $0x3c0] sm:$0x1] %vm3701_vm3, %v4434_v10  ;;  %v1768_v12 = vpop.f32.mrb[240].mxu0 }
 0x2c2   :  { %3580 = vst.msk [vmem:[%s7174_s3 + $0x1dc] sm:$0xf] %vm3460_vm2, %v4313_v11  ;;  %v1769_v13 = vadd.f32 %v7081_v7, %v1768_v12  ;;  %v4807_v14 = vpop.f32.mrb[241].mxu0 }
 0x2c3   :  { %v1771_v15 = vpop.f32.mrb[242].mxu0 }
 0x2c4   :  { %v2374_v62 = vmax.f32 %v1769_v13, 0.0  ;;  %v1772_v16 = vadd.f32 %v7081_v7, %v1771_v15  ;;  %v4808_v17 = vpop.f32.mrb[243].mxu0 }
 0x2c6   :  { %v4314_v18 = vpack.c.bf16 %v2374_v62, %v2374_v62  ;;  %v2375_v19 = vmax.f32 %v1772_v16, 0.0 }
 0x2c8   :  { %3581 = vst.msk [vmem:[%s7174_s3 + $0x1e0] sm:$0xf] %vm3460_vm2, %v4314_v18  ;;  %v4315_v20 = vpack.c.bf16 %v2375_v19, %v2375_v19 }
 0x2ca   :  { %3582 = vst.msk [vmem:[%s7174_s3 + $0x1e4] sm:$0xf] %vm3460_vm2, %v4315_v20 }

// kernel: encoder_forward.5
= control target key start
LH: loop header
LB: loop body
LE: loop exit
PB: predicated region body
PF: predicated region fallthrough
CT: control target
= control target key end

     0   :  { %v2144_v0 = vmov 0   ;;  %vm1580_vm0 = vcmask 519168   ;;  %s2837_s1 = inlined_call_operand.vmem [shape: bf16[512,64], index: 1, kind: input, shape index: {}]   ;;  %s2838_s0 = inlined_call_operand.vmem [shape: bf16[392,512], index: 0, kind: input, shape index: {}]   ;;  %s2839_s2 = inlined_call_operand.vmem [shape: f32[1,64], index: 2, kind: input, shape index: {}]   ;;  %s2840_s3 = inlined_call_operand.vmem [shape: bf16[392,64], index: 3, kind: output, shape index: {}]  }
   0x1   :  { %870 = vmatprep.subr.bf16.mxu1 %v2144_v0  ;;  %1102 = vmatprep.subr.bf16.mxu0 %v2144_v0  ;;  %v1964_v1 = vld [vmem:[%s2837_s1] sm:$0xff]   ;;  %v1966_v3 = vld [vmem:[%s2837_s1 + $0x8] sm:$0xff]   ;;  %v1968_v5 = vld [vmem:[%s2837_s1 + $0x10] sm:$0xff]  }
   0x2   :  { %v1965_v2 = vld [vmem:[%s2837_s1 + $0x80] sm:$0xff]   ;;  %871 = vmatpush1.bf16.msra.mxu1 %v1964_v1  ;;  %v1967_v4 = vld [vmem:[%s2837_s1 + $0x88] sm:$0xff]   ;;  %v1969_v6 = vld [vmem:[%s2837_s1 + $0x90] sm:$0xff]  }
   0x3   :  { %1103 = vmatpush1.bf16.msra.mxu0 %v1965_v2  ;;  %872 = vmatprep.subr.bf16.mxu1 %v2144_v0  ;;  %v1970_v7 = vld [vmem:[%s2837_s1 + $0x18] sm:$0xff]   ;;  %v1972_v9 = vld [vmem:[%s2837_s1 + $0x20] sm:$0xff]   ;;  %v1974_v11 = vld [vmem:[%s2837_s1 + $0x28] sm:$0xff]  }
   0x4   :  { %1104 = vmatprep.subr.bf16.mxu0 %v2144_v0  ;;  %v1971_v8 = vld [vmem:[%s2837_s1 + $0x98] sm:$0xff]   ;;  %v1973_v10 = vld [vmem:[%s2837_s1 + $0xa0] sm:$0xff]   ;;  %v1975_v12 = vld [vmem:[%s2837_s1 + $0xa8] sm:$0xff]  }
   0x5   :  { %v1976_v13 = vld [vmem:[%s2837_s1 + $0x30] sm:$0xff]   ;;  %v1978_v15 = vld [vmem:[%s2837_s1 + $0x38] sm:$0xff]   ;;  %v1980_v17 = vld [vmem:[%s2837_s1 + $0x40] sm:$0xff]  }
   0x6   :  { %873 = vmatpush1.bf16.msra.mxu1 %v1966_v3  ;;  %v1977_v14 = vld [vmem:[%s2837_s1 + $0xb0] sm:$0xff]   ;;  %v1979_v16 = vld [vmem:[%s2837_s1 + $0xb8] sm:$0xff]   ;;  %v1981_v18 = vld [vmem:[%s2837_s1 + $0xc0] sm:$0xff]  }
   0x7   :  { %1105 = vmatpush1.bf16.msra.mxu0 %v1967_v4  ;;  %874 = vmatprep.subr.bf16.mxu1 %v2144_v0  ;;  %v1998_v19 = vld [vmem:[%s2838_s0 + $0x4] ss:$16 sps:$4 sm:$0xff]   ;;  %v1982_v20 = vld [vmem:[%s2837_s1 + $0x48] sm:$0xff]   ;;  %v1986_v25 = vld [vmem:[%s2837_s1 + $0x58] sm:$0xff]  }
   0x8   :  { %1106 = vmatprep.subr.bf16.mxu0 %v2144_v0  ;;  %v2001_v21 = vld [vmem:[%s2838_s0 + $0xc] ss:$16 sps:$4 sm:$0xff]   ;;  %902 = vmatprep.mubr.bf16.mxu1 %v1998_v19  ;;  %v1984_v23 = vld [vmem:[%s2837_s1 + $0x50] sm:$0xff]   ;;  %v1988_v27 = vld [vmem:[%s2837_s1 + $0x60] sm:$0xff]  }
   0x9   :  { %v1983_v22 = vld [vmem:[%s2837_s1 + $0xc8] sm:$0xff]   ;;  %1134 = vmatprep.mubr.bf16.mxu0 %v2001_v21  ;;  %v1985_v24 = vld [vmem:[%s2837_s1 + $0xd0] sm:$0xff]   ;;  %v1987_v26 = vld [vmem:[%s2837_s1 + $0xd8] sm:$0xff]  }
   0xa   :  { %875 = vmatpush1.bf16.msra.mxu1 %v1968_v5  ;;  %v1989_v28 = vld [vmem:[%s2837_s1 + $0xe0] sm:$0xff]   ;;  %v1990_v29 = vld [vmem:[%s2837_s1 + $0x68] sm:$0xff]   ;;  %v1992_v31 = vld [vmem:[%s2837_s1 + $0x70] sm:$0xff]  }
   0xb   :  { %1107 = vmatpush1.bf16.msra.mxu0 %v1969_v6  ;;  %876 = vmatprep.subr.bf16.mxu1 %v2144_v0  ;;  %v1991_v30 = vld [vmem:[%s2837_s1 + $0xe8] sm:$0xff]   ;;  %v1993_v32 = vld [vmem:[%s2837_s1 + $0xf0] sm:$0xff]   ;;  %v1994_v33 = vld [vmem:[%s2837_s1 + $0x78] sm:$0xff]  }
   0xc   :  { %1108 = vmatprep.subr.bf16.mxu0 %v2144_v0  ;;  %v1995_v34 = vld [vmem:[%s2837_s1 + $0xf8] sm:$0xff]   ;;  %v1996_v35 = vld [vmem:[%s2838_s0] ss:$16 sps:$4 sm:$0xff]   ;;  %v2002_v37 = vld [vmem:[%s2838_s0 + $0x24] ss:$16 sps:$4 sm:$0xff]  }
   0xd   :  { %v1999_v36 = vld [vmem:[%s2838_s0 + $0x8] ss:$16 sps:$4 sm:$0xff]   ;;  %v2004_v38 = vld [vmem:[%s2838_s0 + $0x2c] ss:$16 sps:$4 sm:$0xff]   ;;  %v2006_v39 = vld [vmem:[%s2838_s0 + $0x20] ss:$16 sps:$4 sm:$0xff]  }
   0xe   :  { %877 = vmatpush1.bf16.msra.mxu1 %v1970_v7  ;;  %v2007_v40 = vld [vmem:[%s2838_s0 + $0x28] ss:$16 sps:$4 sm:$0xff]   ;;  %v2008_v41 = vld [vmem:[%s2838_s0 + $0x44] ss:$16 sps:$4 sm:$0xff]   ;;  %v2010_v42 = vld [vmem:[%s2838_s0 + $0x4c] ss:$16 sps:$4 sm:$0xff]  }
   0xf   :  { %1109 = vmatpush1.bf16.msra.mxu0 %v1971_v8  ;;  %878 = vmatprep.subr.bf16.mxu1 %v2144_v0  ;;  %v2012_v43 = vld [vmem:[%s2838_s0 + $0x40] ss:$16 sps:$4 sm:$0xff]   ;;  %v2013_v44 = vld [vmem:[%s2838_s0 + $0x48] ss:$16 sps:$4 sm:$0xff]   ;;  %v2014_v45 = vld [vmem:[%s2838_s0 + $0x64] ss:$16 sps:$4 sm:$0xff]  }
  0x10   :  { %1110 = vmatprep.subr.bf16.mxu0 %v2144_v0  ;;  %v2016_v46 = vld [vmem:[%s2838_s0 + $0x6c] ss:$16 sps:$4 sm:$0xff]   ;;  %v2018_v47 = vld [vmem:[%s2838_s0 + $0x60] ss:$16 sps:$4 sm:$0xff]   ;;  %v2019_v48 = vld [vmem:[%s2838_s0 + $0x68] ss:$16 sps:$4 sm:$0xff]  }
  0x11   :  { %v2020_v49 = vld [vmem:[%s2838_s0 + $0x84] ss:$16 sps:$4 sm:$0xff]   ;;  %v2022_v50 = vld [vmem:[%s2838_s0 + $0x8c] ss:$16 sps:$4 sm:$0xff]   ;;  %v2024_v51 = vld [vmem:[%s2838_s0 + $0x80] ss:$16 sps:$4 sm:$0xff]  }
  0x12   :  { %879 = vmatpush1.bf16.msra.mxu1 %v1972_v9  ;;  %v2025_v52 = vld [vmem:[%s2838_s0 + $0x88] ss:$16 sps:$4 sm:$0xff]   ;;  %v2026_v53 = vld [vmem:[%s2838_s0 + $0xa4] ss:$16 sps:$4 sm:$0xff]   ;;  %v2028_v54 = vld [vmem:[%s2838_s0 + $0xac] ss:$16 sps:$4 sm:$0xff]  }
  0x13   :  { %1111 = vmatpush1.bf16.msra.mxu0 %v1973_v10  ;;  %880 = vmatprep.subr.bf16.mxu1 %v2144_v0  ;;  %v2030_v55 = vld [vmem:[%s2838_s0 + $0xa0] ss:$16 sps:$4 sm:$0xff]   ;;  %v2031_v56 = vld [vmem:[%s2838_s0 + $0xa8] ss:$16 sps:$4 sm:$0xff]   ;;  %v2032_v57 = vld [vmem:[%s2838_s0 + $0xc4] ss:$16 sps:$4 sm:$0xff]  }
  0x14   :  { %1112 = vmatprep.subr.bf16.mxu0 %v2144_v0  ;;  %v2034_v58 = vld [vmem:[%s2838_s0 + $0xcc] ss:$16 sps:$4 sm:$0xff]   ;;  %v2036_v59 = vld [vmem:[%s2838_s0 + $0xc0] ss:$16 sps:$4 sm:$0xff]   ;;  %v2037_v60 = vld [vmem:[%s2838_s0 + $0xc8] ss:$16 sps:$4 sm:$0xff]  }
  0x15   :  { %v2038_v61 = vld [vmem:[%s2838_s0 + $0xe4] ss:$16 sps:$4 sm:$0xff]   ;;  %v2040_v62 = vld [vmem:[%s2838_s0 + $0xec] ss:$16 sps:$4 sm:$0xff]   ;;  %v2042_v63 = vld [vmem:[%s2838_s0 + $0xe0] ss:$16 sps:$4 sm:$0xff]  }
  0x16   :  { %881 = vmatpush1.bf16.msra.mxu1 %v1974_v11  ;;  %v2044_v1 = vld [vmem:[%s2838_s0 + $0x104] ss:$16 sps:$4 sm:$0xff]   ;;  %v2046_v2 = vld [vmem:[%s2838_s0 + $0x10c] ss:$16 sps:$4 sm:$0xff]   ;;  %v2048_v3 = vld [vmem:[%s2838_s0 + $0x100] ss:$16 sps:$4 sm:$0xff]  }
  0x17   :  { %1113 = vmatpush1.bf16.msra.mxu0 %v1975_v12  ;;  %882 = vmatprep.subr.bf16.mxu1 %v2144_v0  ;;  %v2049_v4 = vld [vmem:[%s2838_s0 + $0x108] ss:$16 sps:$4 sm:$0xff]   ;;  %v2050_v5 = vld [vmem:[%s2838_s0 + $0x124] ss:$16 sps:$4 sm:$0xff]   ;;  %v2052_v6 = vld [vmem:[%s2838_s0 + $0x12c] ss:$16 sps:$4 sm:$0xff]  }
  0x18   :  { %1114 = vmatprep.subr.bf16.mxu0 %v2144_v0  ;;  %v2054_v7 = vld [vmem:[%s2838_s0 + $0x120] ss:$16 sps:$4 sm:$0xff]   ;;  %v2055_v8 = vld [vmem:[%s2838_s0 + $0x128] ss:$16 sps:$4 sm:$0xff]   ;;  %v2056_v9 = vld [vmem:[%s2838_s0 + $0x144] ss:$16 sps:$4 sm:$0xff]  }
  0x19   :  { %v2058_v10 = vld [vmem:[%s2838_s0 + $0x14c] ss:$16 sps:$4 sm:$0xff]   ;;  %v2060_v11 = vld [vmem:[%s2838_s0 + $0x140] ss:$16 sps:$4 sm:$0xff]   ;;  %v2061_v12 = vld [vmem:[%s2838_s0 + $0x148] ss:$16 sps:$4 sm:$0xff]  }
  0x1a   :  { %883 = vmatpush1.bf16.msra.mxu1 %v1976_v13  ;;  %v2062_v13 = vld [vmem:[%s2838_s0 + $0x164] ss:$16 sps:$4 sm:$0xff]   ;;  %v2072_v19 = vld [vmem:[%s2838_s0 + $0x180] ss:$16 sps:$4 sm:$0xff]  }
  0x1b   :  { %1115 = vmatpush1.bf16.msra.mxu0 %v1977_v14  ;;  %884 = vmatprep.subr.bf16.mxu1 %v2144_v0  ;;  %v2064_v14 = vld [vmem:[%s2838_s0 + $0x16c] ss:$16 sps:$4 sm:$0xff]   ;;  %v2074_v21 = vld [vmem:[%s2838_s0 + $0x1a4] ss:$16 sps:$4 sm:$0xff]  }
  0x1c   :  { %1116 = vmatprep.subr.bf16.mxu0 %v2144_v0 }
  0x1e   :  { %885 = vmatpush1.bf16.msra.mxu1 %v1978_v15  ;;  %v2066_v15 = vld [vmem:[%s2838_s0 + $0x160] ss:$16 sps:$4 sm:$0xff]  }
  0x1f   :  { %1117 = vmatpush1.bf16.msra.mxu0 %v1979_v16  ;;  %886 = vmatprep.subr.bf16.mxu1 %v2144_v0  ;;  %v2067_v16 = vld [vmem:[%s2838_s0 + $0x168] ss:$16 sps:$4 sm:$0xff]  }
  0x20   :  { %1118 = vmatprep.subr.bf16.mxu0 %v2144_v0 }
  0x22   :  { %887 = vmatpush1.bf16.msra.mxu1 %v1980_v17  ;;  %v2068_v17 = vld [vmem:[%s2838_s0 + $0x184] ss:$16 sps:$4 sm:$0xff]  }
  0x23   :  { %1119 = vmatpush1.bf16.msra.mxu0 %v1981_v18  ;;  %888 = vmatprep.subr.bf16.mxu1 %v2144_v0  ;;  %v2070_v18 = vld [vmem:[%s2838_s0 + $0x18c] ss:$16 sps:$4 sm:$0xff]  }
  0x24   :  { %1120 = vmatprep.subr.bf16.mxu0 %v2144_v0 }
  0x26   :  { %889 = vmatpush1.bf16.msra.mxu1 %v1982_v20  ;;  %v2073_v20 = vld [vmem:[%s2838_s0 + $0x188] ss:$16 sps:$4 sm:$0xff]  }
  0x27   :  { %1121 = vmatpush1.bf16.msra.mxu0 %v1983_v22  ;;  %890 = vmatprep.subr.bf16.mxu1 %v2144_v0  ;;  %v2076_v22 = vld [vmem:[%s2838_s0 + $0x1ac] ss:$16 sps:$4 sm:$0xff]  }
  0x28   :  { %1122 = vmatprep.subr.bf16.mxu0 %v2144_v0 }
  0x2a   :  { %891 = vmatpush1.bf16.msra.mxu1 %v1984_v23  ;;  %v2078_v23 = vld [vmem:[%s2838_s0 + $0x1a0] ss:$16 sps:$4 sm:$0xff]  }
  0x2b   :  { %1123 = vmatpush1.bf16.msra.mxu0 %v1985_v24  ;;  %892 = vmatprep.subr.bf16.mxu1 %v2144_v0  ;;  %v2079_v24 = vld [vmem:[%s2838_s0 + $0x1a8] ss:$16 sps:$4 sm:$0xff]  }
  0x2c   :  { %1124 = vmatprep.subr.bf16.mxu0 %v2144_v0 }
  0x2e   :  { %893 = vmatpush1.bf16.msra.mxu1 %v1986_v25  ;;  %v2080_v25 = vld [vmem:[%s2838_s0 + $0x1c4] ss:$16 sps:$4 sm:$0xff]  }
  0x2f   :  { %1125 = vmatpush1.bf16.msra.mxu0 %v1987_v26  ;;  %894 = vmatprep.subr.bf16.mxu1 %v2144_v0  ;;  %v2082_v26 = vld [vmem:[%s2838_s0 + $0x1cc] ss:$16 sps:$4 sm:$0xff]  }
  0x30   :  { %1126 = vmatprep.subr.bf16.mxu0 %v2144_v0 }
  0x32   :  { %895 = vmatpush1.bf16.msra.mxu1 %v1988_v27  ;;  %v2084_v27 = vld [vmem:[%s2838_s0 + $0x1c0] ss:$16 sps:$4 sm:$0xff]  }
  0x33   :  { %1127 = vmatpush1.bf16.msra.mxu0 %v1989_v28  ;;  %896 = vmatprep.subr.bf16.mxu1 %v2144_v0  ;;  %v2085_v28 = vld [vmem:[%s2838_s0 + $0x1c8] ss:$16 sps:$4 sm:$0xff]  }
  0x34   :  { %1128 = vmatprep.subr.bf16.mxu0 %v2144_v0 }
  0x36   :  { %897 = vmatpush1.bf16.msra.mxu1 %v1990_v29  ;;  %v2086_v29 = vld [vmem:[%s2838_s0 + $0x1e4] ss:$16 sps:$4 sm:$0xff]  }
  0x37   :  { %1129 = vmatpush1.bf16.msra.mxu0 %v1991_v30  ;;  %898 = vmatprep.subr.bf16.mxu1 %v2144_v0  ;;  %v2088_v30 = vld [vmem:[%s2838_s0 + $0x1ec] ss:$16 sps:$4 sm:$0xff]  }
  0x38   :  { %1130 = vmatprep.subr.bf16.mxu0 %v2144_v0 }
  0x3a   :  { %899 = vmatpush1.bf16.msra.mxu1 %v1992_v31  ;;  %v2090_v31 = vld [vmem:[%s2838_s0 + $0x1e0] ss:$16 sps:$4 sm:$0xff]  }
  0x3b   :  { %1131 = vmatpush1.bf16.msra.mxu0 %v1993_v32  ;;  %900 = vmatprep.subr.bf16.mxu1 %v2144_v0  ;;  %v2091_v32 = vld [vmem:[%s2838_s0 + $0x1e8] ss:$16 sps:$4 sm:$0xff]  }
  0x3c   :  { %1132 = vmatprep.subr.bf16.mxu0 %v2144_v0  ;;  %v2043_v0 = vld [vmem:[%s2838_s0 + $0xe8] ss:$16 sps:$4 sm:$0xff]  }
  0x3e   :  { %901 = vmatpush1.bf16.msra.mxu1 %v1994_v33  ;;  %v2092_v33 = vld [vmem:[%s2838_s0 + $0x204] ss:$16 sps:$4 sm:$0xff]  }
  0x3f   :  { %1133 = vmatpush1.bf16.msra.mxu0 %v1995_v34  ;;  %v2094_v34 = vld [vmem:[%s2838_s0 + $0x20c] ss:$16 sps:$4 sm:$0xff]  }
  0x41   :  { %903 = vmatmul.mubr.bf16.vlgmr.msra.gmra.mrb[0].mxu1 %v1996_v35  ;;  %v2096_v35 = vld [vmem:[%s2838_s0 + $0x200] ss:$16 sps:$4 sm:$0xff]  }
  0x42   :  { %1135 = vmatmul.mubr.bf16.vlgmr.msra.gmra.mrb[0].mxu0 %v1999_v36  ;;  %910 = vmatprep.mubr.bf16.mxu1 %v2002_v37  ;;  %v2097_v36 = vld [vmem:[%s2838_s0 + $0x208] ss:$16 sps:$4 sm:$0xff]   ;;  %v2098_v37 = vld [vmem:[%s2838_s0 + $0x224] ss:$16 sps:$4 sm:$0xff]  }
  0x43   :  { %1142 = vmatprep.mubr.bf16.mxu0 %v2004_v38  ;;  %v2100_v38 = vld [vmem:[%s2838_s0 + $0x22c] ss:$16 sps:$4 sm:$0xff]  }
  0x49   :  { %911 = vmatmul.mubr.bf16.gmra.mrb[4].mxu1 %v2006_v39  ;;  %v2102_v39 = vld [vmem:[%s2838_s0 + $0x220] ss:$16 sps:$4 sm:$0xff]  }
  0x4a   :  { %1143 = vmatmul.mubr.bf16.gmra.mrb[4].mxu0 %v2007_v40  ;;  %918 = vmatprep.mubr.bf16.mxu1 %v2008_v41  ;;  %v2103_v40 = vld [vmem:[%s2838_s0 + $0x228] ss:$16 sps:$4 sm:$0xff]   ;;  %v2104_v41 = vld [vmem:[%s2838_s0 + $0x244] ss:$16 sps:$4 sm:$0xff]  }
  0x4b   :  { %1150 = vmatprep.mubr.bf16.mxu0 %v2010_v42  ;;  %v2106_v42 = vld [vmem:[%s2838_s0 + $0x24c] ss:$16 sps:$4 sm:$0xff]  }
  0x51   :  { %919 = vmatmul.mubr.bf16.gmra.mrb[8].mxu1 %v2012_v43  ;;  %v2108_v43 = vld [vmem:[%s2838_s0 + $0x240] ss:$16 sps:$4 sm:$0xff]  }
  0x52   :  { %1151 = vmatmul.mubr.bf16.gmra.mrb[8].mxu0 %v2013_v44  ;;  %926 = vmatprep.mubr.bf16.mxu1 %v2014_v45  ;;  %v2109_v44 = vld [vmem:[%s2838_s0 + $0x248] ss:$16 sps:$4 sm:$0xff]   ;;  %v2110_v45 = vld [vmem:[%s2838_s0 + $0x264] ss:$16 sps:$4 sm:$0xff]  }
  0x53   :  { %1158 = vmatprep.mubr.bf16.mxu0 %v2016_v46  ;;  %v2112_v46 = vld [vmem:[%s2838_s0 + $0x26c] ss:$16 sps:$4 sm:$0xff]  }
  0x59   :  { %927 = vmatmul.mubr.bf16.gmra.mrb[12].mxu1 %v2018_v47  ;;  %v2114_v47 = vld [vmem:[%s2838_s0 + $0x260] ss:$16 sps:$4 sm:$0xff]  }
  0x5a   :  { %1159 = vmatmul.mubr.bf16.gmra.mrb[12].mxu0 %v2019_v48  ;;  %934 = vmatprep.mubr.bf16.mxu1 %v2020_v49  ;;  %v2115_v48 = vld [vmem:[%s2838_s0 + $0x268] ss:$16 sps:$4 sm:$0xff]   ;;  %v2116_v49 = vld [vmem:[%s2838_s0 + $0x284] ss:$16 sps:$4 sm:$0xff]  }
  0x5b   :  { %1166 = vmatprep.mubr.bf16.mxu0 %v2022_v50  ;;  %v2118_v50 = vld [vmem:[%s2838_s0 + $0x28c] ss:$16 sps:$4 sm:$0xff]  }
  0x61   :  { %935 = vmatmul.mubr.bf16.gmra.mrb[16].mxu1 %v2024_v51  ;;  %v2120_v51 = vld [vmem:[%s2838_s0 + $0x280] ss:$16 sps:$4 sm:$0xff]  }
  0x62   :  { %1167 = vmatmul.mubr.bf16.gmra.mrb[16].mxu0 %v2025_v52  ;;  %942 = vmatprep.mubr.bf16.mxu1 %v2026_v53  ;;  %v2121_v52 = vld [vmem:[%s2838_s0 + $0x288] ss:$16 sps:$4 sm:$0xff]   ;;  %v2122_v53 = vld [vmem:[%s2838_s0 + $0x2a4] ss:$16 sps:$4 sm:$0xff]  }
  0x63   :  { %1174 = vmatprep.mubr.bf16.mxu0 %v2028_v54  ;;  %v2124_v54 = vld [vmem:[%s2838_s0 + $0x2ac] ss:$16 sps:$4 sm:$0xff]  }
  0x69   :  { %943 = vmatmul.mubr.bf16.gmra.mrb[20].mxu1 %v2030_v55  ;;  %v2126_v55 = vld [vmem:[%s2838_s0 + $0x2a0] ss:$16 sps:$4 sm:$0xff]  }
  0x6a   :  { %1175 = vmatmul.mubr.bf16.gmra.mrb[20].mxu0 %v2031_v56  ;;  %950 = vmatprep.mubr.bf16.mxu1 %v2032_v57  ;;  %v2127_v56 = vld [vmem:[%s2838_s0 + $0x2a8] ss:$16 sps:$4 sm:$0xff]   ;;  %v2128_v57 = vld [vmem:[%s2838_s0 + $0x2c4] ss:$16 sps:$4 sm:$0xff]  }
  0x6b   :  { %1182 = vmatprep.mubr.bf16.mxu0 %v2034_v58  ;;  %v2130_v58 = vld [vmem:[%s2838_s0 + $0x2cc] ss:$16 sps:$4 sm:$0xff]  }
  0x71   :  { %951 = vmatmul.mubr.bf16.gmra.mrb[24].mxu1 %v2036_v59  ;;  %v2132_v59 = vld [vmem:[%s2838_s0 + $0x2c0] ss:$16 sps:$4 sm:$0xff]  }
  0x72   :  { %1183 = vmatmul.mubr.bf16.gmra.mrb[24].mxu0 %v2037_v60  ;;  %958 = vmatprep.mubr.bf16.mxu1 %v2038_v61  ;;  %v2133_v60 = vld [vmem:[%s2838_s0 + $0x2c8] ss:$16 sps:$4 sm:$0xff]   ;;  %v2134_v61 = vld [vmem:[%s2838_s0 + $0x2e4] ss:$16 sps:$4 sm:$0xff]  }
  0x73   :  { %1190 = vmatprep.mubr.bf16.mxu0 %v2040_v62  ;;  %v2136_v62 = vld [vmem:[%s2838_s0 + $0x2ec] ss:$16 sps:$4 sm:$0xff]  }
  0x79   :  { %959 = vmatmul.mubr.bf16.gmra.mrb[28].mxu1 %v2042_v63  ;;  %v111_v63 = vld [vmem:[%s2838_s0 + $0x300] sm:$0xff] }
  0x7a   :  { %1191 = vmatmul.mubr.bf16.gmra.mrb[28].mxu0 %v2043_v0  ;;  %966 = vmatprep.mubr.bf16.mxu1 %v2044_v1  ;;  %v112_v0 = vld [vmem:[%s2838_s0 + $0x308] sm:$0xff]  ;;  %v2138_v1 = vld [vmem:[%s2838_s0 + $0x2e0] ss:$16 sps:$4 sm:$0xff]  }
  0x7b   :  { %1198 = vmatprep.mubr.bf16.mxu0 %v2046_v2  ;;  %v2139_v2 = vld [vmem:[%s2838_s0 + $0x2e8] ss:$16 sps:$4 sm:$0xff]  }
  0x81   :  { %967 = vmatmul.mubr.bf16.gmra.mrb[32].mxu1 %v2048_v3  ;;  %v1732_v3 = vcombine.high %v111_v63, %v111_v63 }
  0x82   :  { %1199 = vmatmul.mubr.bf16.gmra.mrb[32].mxu0 %v2049_v4  ;;  %974 = vmatprep.mubr.bf16.mxu1 %v2050_v5  ;;  %v1734_v4 = vcombine.high %v112_v0, %v112_v0  ;;  %v1731_v5 = vcombine.low %v111_v63, %v111_v63 }
  0x83   :  { %1206 = vmatprep.mubr.bf16.mxu0 %v2052_v6  ;;  %v1733_v6 = vcombine.low %v112_v0, %v112_v0 }
  0x89   :  { %975 = vmatmul.mubr.bf16.gmra.mrb[36].mxu1 %v2054_v7  ;;  %v2590_v7 = vld [vmem:[%s2839_s2] ss:$0 sm:$0xff] }
  0x8a   :  { %1207 = vmatmul.mubr.bf16.gmra.mrb[36].mxu0 %v2055_v8  ;;  %982 = vmatprep.mubr.bf16.mxu1 %v2056_v9 }
  0x8b   :  { %1214 = vmatprep.mubr.bf16.mxu0 %v2058_v10 }
  0x91   :  { %983 = vmatmul.mubr.bf16.gmra.mrb[40].mxu1 %v2060_v11 }
  0x92   :  { %1215 = vmatmul.mubr.bf16.gmra.mrb[40].mxu0 %v2061_v12  ;;  %990 = vmatprep.mubr.bf16.mxu1 %v2062_v13 }
  0x93   :  { %1222 = vmatprep.mubr.bf16.mxu0 %v2064_v14 }
  0x99   :  { %991 = vmatmul.mubr.bf16.gmra.mrb[44].mxu1 %v2066_v15 }
  0x9a   :  { %1223 = vmatmul.mubr.bf16.gmra.mrb[44].mxu0 %v2067_v16  ;;  %998 = vmatprep.mubr.bf16.mxu1 %v2068_v17 }
  0x9b   :  { %1230 = vmatprep.mubr.bf16.mxu0 %v2070_v18 }
  0xa1   :  { %999 = vmatmul.mubr.bf16.gmra.mrb[48].mxu1 %v2072_v19 }
  0xa2   :  { %1231 = vmatmul.mubr.bf16.gmra.mrb[48].mxu0 %v2073_v20  ;;  %1006 = vmatprep.mubr.bf16.mxu1 %v2074_v21 }
  0xa3   :  { %1238 = vmatprep.mubr.bf16.mxu0 %v2076_v22 }
  0xa9   :  { %1007 = vmatmul.mubr.bf16.gmra.mrb[52].mxu1 %v2078_v23 }
  0xaa   :  { %1239 = vmatmul.mubr.bf16.gmra.mrb[52].mxu0 %v2079_v24  ;;  %1014 = vmatprep.mubr.bf16.mxu1 %v2080_v25 }
  0xab   :  { %1246 = vmatprep.mubr.bf16.mxu0 %v2082_v26 }
  0xb1   :  { %1015 = vmatmul.mubr.bf16.gmra.mrb[56].mxu1 %v2084_v27 }
  0xb2   :  { %1247 = vmatmul.mubr.bf16.gmra.mrb[56].mxu0 %v2085_v28  ;;  %1022 = vmatprep.mubr.bf16.mxu1 %v2086_v29 }
  0xb3   :  { %1254 = vmatprep.mubr.bf16.mxu0 %v2088_v30 }
  0xb9   :  { %1023 = vmatmul.mubr.bf16.gmra.mrb[60].mxu1 %v2090_v31 }
  0xba   :  { %1255 = vmatmul.mubr.bf16.gmra.mrb[60].mxu0 %v2091_v32  ;;  %1030 = vmatprep.mubr.bf16.mxu1 %v2092_v33 }
  0xbb   :  { %1262 = vmatprep.mubr.bf16.mxu0 %v2094_v34 }
  0xc1   :  { %1031 = vmatmul.mubr.bf16.gmra.mrb[64].mxu1 %v2096_v35 }
  0xc2   :  { %1263 = vmatmul.mubr.bf16.gmra.mrb[64].mxu0 %v2097_v36  ;;  %1038 = vmatprep.mubr.bf16.mxu1 %v2098_v37 }
  0xc3   :  { %1270 = vmatprep.mubr.bf16.mxu0 %v2100_v38 }
  0xc9   :  { %1039 = vmatmul.mubr.bf16.gmra.mrb[68].mxu1 %v2102_v39 }
  0xca   :  { %1271 = vmatmul.mubr.bf16.gmra.mrb[68].mxu0 %v2103_v40  ;;  %1046 = vmatprep.mubr.bf16.mxu1 %v2104_v41 }
  0xcb   :  { %1278 = vmatprep.mubr.bf16.mxu0 %v2106_v42 }
  0xd1   :  { %1047 = vmatmul.mubr.bf16.gmra.mrb[72].mxu1 %v2108_v43 }
  0xd2   :  { %1279 = vmatmul.mubr.bf16.gmra.mrb[72].mxu0 %v2109_v44  ;;  %1054 = vmatprep.mubr.bf16.mxu1 %v2110_v45 }
  0xd3   :  { %1286 = vmatprep.mubr.bf16.mxu0 %v2112_v46 }
  0xd9   :  { %1055 = vmatmul.mubr.bf16.gmra.mrb[76].mxu1 %v2114_v47 }
  0xda   :  { %1287 = vmatmul.mubr.bf16.gmra.mrb[76].mxu0 %v2115_v48  ;;  %1062 = vmatprep.mubr.bf16.mxu1 %v2116_v49 }
  0xdb   :  { %1294 = vmatprep.mubr.bf16.mxu0 %v2118_v50 }
  0xe1   :  { %1063 = vmatmul.mubr.bf16.gmra.mrb[80].mxu1 %v2120_v51 }
  0xe2   :  { %1295 = vmatmul.mubr.bf16.gmra.mrb[80].mxu0 %v2121_v52  ;;  %1070 = vmatprep.mubr.bf16.mxu1 %v2122_v53 }
  0xe3   :  { %1302 = vmatprep.mubr.bf16.mxu0 %v2124_v54 }
  0xe9   :  { %1071 = vmatmul.mubr.bf16.gmra.mrb[84].mxu1 %v2126_v55 }
  0xea   :  { %1303 = vmatmul.mubr.bf16.gmra.mrb[84].mxu0 %v2127_v56  ;;  %1078 = vmatprep.mubr.bf16.mxu1 %v2128_v57 }
  0xeb   :  { %1310 = vmatprep.mubr.bf16.mxu0 %v2130_v58 }
  0xf1   :  { %1079 = vmatmul.mubr.bf16.gmra.mrb[88].mxu1 %v2132_v59 }
  0xf2   :  { %1311 = vmatmul.mubr.bf16.gmra.mrb[88].mxu0 %v2133_v60  ;;  %1086 = vmatprep.mubr.bf16.mxu1 %v2134_v61 }
  0xf3   :  { %1318 = vmatprep.mubr.bf16.mxu0 %v2136_v62 }
  0xf9   :  { %1087 = vmatmul.mubr.bf16.gmra.mrb[92].mxu1 %v2138_v1 }
  0xfa   :  { %1319 = vmatmul.mubr.bf16.gmra.mrb[92].mxu0 %v2139_v2  ;;  %1094 = vmatprep.mubr.bf16.mxu1 %v1732_v3 }
  0xfb   :  { %1326 = vmatprep.mubr.bf16.mxu0 %v1734_v4 }
 0x101   :  { %1095 = vmatmul.mubr.bf16.gmra.mrb[96].mxu1 %v1731_v5 }
 0x102   :  { %1327 = vmatmul.mubr.bf16.gmra.mrb[96].mxu0 %v1733_v6 }
 0x114   :  { %v904_v8 = vpop.f32.mrb[0].mxu1 }
 0x115   :  { %v905_v9 = vadd.f32 %v2590_v7, %v904_v8  ;;  %v1136_v10 = vpop.f32.mrb[0].mxu0  ;;  %v906_v11 = vpop.f32.mrb[1].mxu1 }
 0x116   :  { %v1138_v12 = vpop.f32.mrb[1].mxu0  ;;  %v907_v13 = vpop.f32.mrb[2].mxu1 }
 0x117   :  { %v1137_v14 = vadd.f32 %v1136_v10, %v905_v9  ;;  %v908_v15 = vadd.f32 %v2590_v7, %v907_v13  ;;  %v1139_v16 = vpop.f32.mrb[2].mxu0  ;;  %v909_v17 = vpop.f32.mrb[3].mxu1 }
 0x118   :  { %v1141_v18 = vpop.f32.mrb[3].mxu0 }
 0x119   :  { %v1334_v19 = vmax.f32 %v1137_v14, 0.0  ;;  %v1140_v20 = vadd.f32 %v1139_v16, %v908_v15 }
 0x11b   :  { %v1816_v21 = vpack.c.bf16 %v1334_v19, %v1334_v19  ;;  %v1335_v22 = vmax.f32 %v1140_v20, 0.0 }
 0x11c   :  { %v912_v23 = vpop.f32.mrb[4].mxu1 }
 0x11d   :  { %1581 = vst.msk [vmem:[%s2840_s3] sm:$0xf] %vm1580_vm0, %v1816_v21  ;;  %v1817_v24 = vpack.c.bf16 %v1335_v22, %v1335_v22  ;;  %v913_v25 = vadd.f32 %v2590_v7, %v912_v23  ;;  %v1144_v26 = vpop.f32.mrb[4].mxu0  ;;  %v914_v27 = vpop.f32.mrb[5].mxu1 }
 0x11e   :  { %v1146_v28 = vpop.f32.mrb[5].mxu0  ;;  %v915_v29 = vpop.f32.mrb[6].mxu1 }
 0x11f   :  { %1582 = vst.msk [vmem:[%s2840_s3 + $0x4] sm:$0xf] %vm1580_vm0, %v1817_v24  ;;  %v1145_v30 = vadd.f32 %v1144_v26, %v913_v25  ;;  %v916_v31 = vadd.f32 %v2590_v7, %v915_v29  ;;  %v1147_v32 = vpop.f32.mrb[6].mxu0  ;;  %v917_v33 = vpop.f32.mrb[7].mxu1 }
 0x120   :  { %v1149_v34 = vpop.f32.mrb[7].mxu0 }
 0x121   :  { %v1336_v35 = vmax.f32 %v1145_v30, 0.0  ;;  %v1148_v36 = vadd.f32 %v1147_v32, %v916_v31 }
 0x123   :  { %v1818_v37 = vpack.c.bf16 %v1336_v35, %v1336_v35  ;;  %v1337_v38 = vmax.f32 %v1148_v36, 0.0 }
 0x124   :  { %v920_v39 = vpop.f32.mrb[8].mxu1 }
 0x125   :  { %1583 = vst.msk [vmem:[%s2840_s3 + $0x8] sm:$0xf] %vm1580_vm0, %v1818_v37  ;;  %v1819_v40 = vpack.c.bf16 %v1337_v38, %v1337_v38  ;;  %v921_v41 = vadd.f32 %v2590_v7, %v920_v39  ;;  %v1152_v42 = vpop.f32.mrb[8].mxu0  ;;  %v922_v43 = vpop.f32.mrb[9].mxu1 }
 0x126   :  { %v1154_v44 = vpop.f32.mrb[9].mxu0  ;;  %v923_v45 = vpop.f32.mrb[10].mxu1 }
 0x127   :  { %1584 = vst.msk [vmem:[%s2840_s3 + $0xc] sm:$0xf] %vm1580_vm0, %v1819_v40  ;;  %v1153_v46 = vadd.f32 %v1152_v42, %v921_v41  ;;  %v924_v47 = vadd.f32 %v2590_v7, %v923_v45  ;;  %v1155_v48 = vpop.f32.mrb[10].mxu0  ;;  %v925_v49 = vpop.f32.mrb[11].mxu1 }
 0x128   :  { %v1157_v50 = vpop.f32.mrb[11].mxu0 }
 0x129   :  { %v1338_v51 = vmax.f32 %v1153_v46, 0.0  ;;  %v1156_v52 = vadd.f32 %v1155_v48, %v924_v47 }
 0x12b   :  { %v1820_v53 = vpack.c.bf16 %v1338_v51, %v1338_v51  ;;  %v1339_v54 = vmax.f32 %v1156_v52, 0.0 }
 0x12c   :  { %v928_v55 = vpop.f32.mrb[12].mxu1 }
 0x12d   :  { %1585 = vst.msk [vmem:[%s2840_s3 + $0x10] sm:$0xf] %vm1580_vm0, %v1820_v53  ;;  %v1821_v56 = vpack.c.bf16 %v1339_v54, %v1339_v54  ;;  %v929_v57 = vadd.f32 %v2590_v7, %v928_v55  ;;  %v1160_v58 = vpop.f32.mrb[12].mxu0  ;;  %v930_v59 = vpop.f32.mrb[13].mxu1 }
 0x12e   :  { %v1162_v60 = vpop.f32.mrb[13].mxu0  ;;  %v931_v61 = vpop.f32.mrb[14].mxu1 }
 0x12f   :  { %1586 = vst.msk [vmem:[%s2840_s3 + $0x14] sm:$0xf] %vm1580_vm0, %v1821_v56  ;;  %v1161_v62 = vadd.f32 %v1160_v58, %v929_v57  ;;  %v932_v63 = vadd.f32 %v2590_v7, %v931_v61  ;;  %v1163_v0 = vpop.f32.mrb[14].mxu0  ;;  %v933_v1 = vpop.f32.mrb[15].mxu1 }
 0x130   :  { %v1165_v2 = vpop.f32.mrb[15].mxu0 }
 0x131   :  { %v1340_v3 = vmax.f32 %v1161_v62, 0.0  ;;  %v1164_v4 = vadd.f32 %v1163_v0, %v932_v63 }
 0x133   :  { %v1822_v5 = vpack.c.bf16 %v1340_v3, %v1340_v3  ;;  %v1341_v6 = vmax.f32 %v1164_v4, 0.0 }
 0x134   :  { %v936_v8 = vpop.f32.mrb[16].mxu1 }
 0x135   :  { %1587 = vst.msk [vmem:[%s2840_s3 + $0x18] sm:$0xf] %vm1580_vm0, %v1822_v5  ;;  %v1823_v9 = vpack.c.bf16 %v1341_v6, %v1341_v6  ;;  %v937_v10 = vadd.f32 %v2590_v7, %v936_v8  ;;  %v1168_v11 = vpop.f32.mrb[16].mxu0  ;;  %v938_v12 = vpop.f32.mrb[17].mxu1 }
 0x136   :  { %v1170_v13 = vpop.f32.mrb[17].mxu0  ;;  %v939_v14 = vpop.f32.mrb[18].mxu1 }
 0x137   :  { %1588 = vst.msk [vmem:[%s2840_s3 + $0x1c] sm:$0xf] %vm1580_vm0, %v1823_v9  ;;  %v1169_v15 = vadd.f32 %v1168_v11, %v937_v10  ;;  %v940_v16 = vadd.f32 %v2590_v7, %v939_v14  ;;  %v1171_v17 = vpop.f32.mrb[18].mxu0  ;;  %v941_v18 = vpop.f32.mrb[19].mxu1 }
 0x138   :  { %v1173_v19 = vpop.f32.mrb[19].mxu0 }
 0x139   :  { %v1342_v20 = vmax.f32 %v1169_v15, 0.0  ;;  %v1172_v21 = vadd.f32 %v1171_v17, %v940_v16 }
 0x13b   :  { %v1824_v22 = vpack.c.bf16 %v1342_v20, %v1342_v20  ;;  %v1343_v23 = vmax.f32 %v1172_v21, 0.0 }
 0x13c   :  { %v944_v24 = vpop.f32.mrb[20].mxu1 }
 0x13d   :  { %1589 = vst.msk [vmem:[%s2840_s3 + $0x20] sm:$0xf] %vm1580_vm0, %v1824_v22  ;;  %v1825_v25 = vpack.c.bf16 %v1343_v23, %v1343_v23  ;;  %v945_v26 = vadd.f32 %v2590_v7, %v944_v24  ;;  %v1176_v27 = vpop.f32.mrb[20].mxu0  ;;  %v946_v28 = vpop.f32.mrb[21].mxu1 }
 0x13e   :  { %v1178_v29 = vpop.f32.mrb[21].mxu0  ;;  %v947_v30 = vpop.f32.mrb[22].mxu1 }
 0x13f   :  { %1590 = vst.msk [vmem:[%s2840_s3 + $0x24] sm:$0xf] %vm1580_vm0, %v1825_v25  ;;  %v1177_v31 = vadd.f32 %v1176_v27, %v945_v26  ;;  %v948_v32 = vadd.f32 %v2590_v7, %v947_v30  ;;  %v1179_v33 = vpop.f32.mrb[22].mxu0  ;;  %v949_v34 = vpop.f32.mrb[23].mxu1 }
 0x140   :  { %v1181_v35 = vpop.f32.mrb[23].mxu0 }
 0x141   :  { %v1344_v36 = vmax.f32 %v1177_v31, 0.0  ;;  %v1180_v37 = vadd.f32 %v1179_v33, %v948_v32 }
 0x143   :  { %v1826_v38 = vpack.c.bf16 %v1344_v36, %v1344_v36  ;;  %v1345_v39 = vmax.f32 %v1180_v37, 0.0 }
 0x144   :  { %v952_v40 = vpop.f32.mrb[24].mxu1 }
 0x145   :  { %1591 = vst.msk [vmem:[%s2840_s3 + $0x28] sm:$0xf] %vm1580_vm0, %v1826_v38  ;;  %v1827_v41 = vpack.c.bf16 %v1345_v39, %v1345_v39  ;;  %v953_v42 = vadd.f32 %v2590_v7, %v952_v40  ;;  %v1184_v43 = vpop.f32.mrb[24].mxu0  ;;  %v954_v44 = vpop.f32.mrb[25].mxu1 }
 0x146   :  { %v1186_v45 = vpop.f32.mrb[25].mxu0  ;;  %v955_v46 = vpop.f32.mrb[26].mxu1 }
 0x147   :  { %1592 = vst.msk [vmem:[%s2840_s3 + $0x2c] sm:$0xf] %vm1580_vm0, %v1827_v41  ;;  %v1185_v47 = vadd.f32 %v1184_v43, %v953_v42  ;;  %v956_v48 = vadd.f32 %v2590_v7, %v955_v46  ;;  %v1187_v49 = vpop.f32.mrb[26].mxu0  ;;  %v957_v50 = vpop.f32.mrb[27].mxu1 }
 0x148   :  { %v1189_v51 = vpop.f32.mrb[27].mxu0 }
 0x149   :  { %v1346_v52 = vmax.f32 %v1185_v47, 0.0  ;;  %v1188_v53 = vadd.f32 %v1187_v49, %v956_v48 }
 0x14b   :  { %v1828_v54 = vpack.c.bf16 %v1346_v52, %v1346_v52  ;;  %v1347_v55 = vmax.f32 %v1188_v53, 0.0 }
 0x14c   :  { %v960_v56 = vpop.f32.mrb[28].mxu1 }
 0x14d   :  { %1593 = vst.msk [vmem:[%s2840_s3 + $0x30] sm:$0xf] %vm1580_vm0, %v1828_v54  ;;  %v1829_v57 = vpack.c.bf16 %v1347_v55, %v1347_v55  ;;  %v961_v58 = vadd.f32 %v2590_v7, %v960_v56  ;;  %v1192_v59 = vpop.f32.mrb[28].mxu0  ;;  %v962_v60 = vpop.f32.mrb[29].mxu1 }
 0x14e   :  { %v1194_v61 = vpop.f32.mrb[29].mxu0  ;;  %v963_v62 = vpop.f32.mrb[30].mxu1 }
 0x14f   :  { %1594 = vst.msk [vmem:[%s2840_s3 + $0x34] sm:$0xf] %vm1580_vm0, %v1829_v57  ;;  %v1193_v63 = vadd.f32 %v1192_v59, %v961_v58  ;;  %v964_v0 = vadd.f32 %v2590_v7, %v963_v62  ;;  %v1195_v1 = vpop.f32.mrb[30].mxu0  ;;  %v965_v2 = vpop.f32.mrb[31].mxu1 }
 0x150   :  { %v1197_v3 = vpop.f32.mrb[31].mxu0 }
 0x151   :  { %v1348_v4 = vmax.f32 %v1193_v63, 0.0  ;;  %v1196_v5 = vadd.f32 %v1195_v1, %v964_v0 }
 0x153   :  { %v1830_v6 = vpack.c.bf16 %v1348_v4, %v1348_v4  ;;  %v1349_v8 = vmax.f32 %v1196_v5, 0.0 }
 0x154   :  { %v968_v9 = vpop.f32.mrb[32].mxu1 }
 0x155   :  { %1595 = vst.msk [vmem:[%s2840_s3 + $0x38] sm:$0xf] %vm1580_vm0, %v1830_v6  ;;  %v1831_v10 = vpack.c.bf16 %v1349_v8, %v1349_v8  ;;  %v969_v11 = vadd.f32 %v2590_v7, %v968_v9  ;;  %v1200_v12 = vpop.f32.mrb[32].mxu0  ;;  %v970_v13 = vpop.f32.mrb[33].mxu1 }
 0x156   :  { %v1202_v14 = vpop.f32.mrb[33].mxu0  ;;  %v971_v15 = vpop.f32.mrb[34].mxu1 }
 0x157   :  { %1596 = vst.msk [vmem:[%s2840_s3 + $0x3c] sm:$0xf] %vm1580_vm0, %v1831_v10  ;;  %v1201_v16 = vadd.f32 %v1200_v12, %v969_v11  ;;  %v972_v17 = vadd.f32 %v2590_v7, %v971_v15  ;;  %v1203_v18 = vpop.f32.mrb[34].mxu0  ;;  %v973_v19 = vpop.f32.mrb[35].mxu1 }
 0x158   :  { %v1205_v20 = vpop.f32.mrb[35].mxu0 }
 0x159   :  { %v1350_v21 = vmax.f32 %v1201_v16, 0.0  ;;  %v1204_v22 = vadd.f32 %v1203_v18, %v972_v17 }
 0x15b   :  { %v1832_v23 = vpack.c.bf16 %v1350_v21, %v1350_v21  ;;  %v1351_v24 = vmax.f32 %v1204_v22, 0.0 }
 0x15c   :  { %v976_v25 = vpop.f32.mrb[36].mxu1 }
 0x15d   :  { %1597 = vst.msk [vmem:[%s2840_s3 + $0x40] sm:$0xf] %vm1580_vm0, %v1832_v23  ;;  %v1833_v26 = vpack.c.bf16 %v1351_v24, %v1351_v24  ;;  %v977_v27 = vadd.f32 %v2590_v7, %v976_v25  ;;  %v1208_v28 = vpop.f32.mrb[36].mxu0  ;;  %v978_v29 = vpop.f32.mrb[37].mxu1 }
 0x15e   :  { %v1210_v30 = vpop.f32.mrb[37].mxu0  ;;  %v979_v31 = vpop.f32.mrb[38].mxu1 }
 0x15f   :  { %1598 = vst.msk [vmem:[%s2840_s3 + $0x44] sm:$0xf] %vm1580_vm0, %v1833_v26  ;;  %v1209_v32 = vadd.f32 %v1208_v28, %v977_v27  ;;  %v980_v33 = vadd.f32 %v2590_v7, %v979_v31  ;;  %v1211_v34 = vpop.f32.mrb[38].mxu0  ;;  %v981_v35 = vpop.f32.mrb[39].mxu1 }
 0x160   :  { %v1213_v36 = vpop.f32.mrb[39].mxu0 }
 0x161   :  { %v1352_v37 = vmax.f32 %v1209_v32, 0.0  ;;  %v1212_v38 = vadd.f32 %v1211_v34, %v980_v33 }
 0x163   :  { %v1834_v39 = vpack.c.bf16 %v1352_v37, %v1352_v37  ;;  %v1353_v40 = vmax.f32 %v1212_v38, 0.0 }
 0x164   :  { %v984_v41 = vpop.f32.mrb[40].mxu1 }
 0x165   :  { %1599 = vst.msk [vmem:[%s2840_s3 + $0x48] sm:$0xf] %vm1580_vm0, %v1834_v39  ;;  %v1835_v42 = vpack.c.bf16 %v1353_v40, %v1353_v40  ;;  %v985_v43 = vadd.f32 %v2590_v7, %v984_v41  ;;  %v1216_v44 = vpop.f32.mrb[40].mxu0  ;;  %v986_v45 = vpop.f32.mrb[41].mxu1 }
 0x166   :  { %v1218_v46 = vpop.f32.mrb[41].mxu0  ;;  %v987_v47 = vpop.f32.mrb[42].mxu1 }
 0x167   :  { %1600 = vst.msk [vmem:[%s2840_s3 + $0x4c] sm:$0xf] %vm1580_vm0, %v1835_v42  ;;  %v1217_v48 = vadd.f32 %v1216_v44, %v985_v43  ;;  %v988_v49 = vadd.f32 %v2590_v7, %v987_v47  ;;  %v1219_v50 = vpop.f32.mrb[42].mxu0  ;;  %v989_v51 = vpop.f32.mrb[43].mxu1 }
 0x168   :  { %v1221_v52 = vpop.f32.mrb[43].mxu0 }
 0x169   :  { %v1354_v53 = vmax.f32 %v1217_v48, 0.0  ;;  %v1220_v54 = vadd.f32 %v1219_v50, %v988_v49 }
 0x16b   :  { %v1836_v55 = vpack.c.bf16 %v1354_v53, %v1354_v53  ;;  %v1355_v56 = vmax.f32 %v1220_v54, 0.0 }
 0x16c   :  { %v992_v57 = vpop.f32.mrb[44].mxu1 }
 0x16d   :  { %1601 = vst.msk [vmem:[%s2840_s3 + $0x50] sm:$0xf] %vm1580_vm0, %v1836_v55  ;;  %v1837_v58 = vpack.c.bf16 %v1355_v56, %v1355_v56  ;;  %v993_v59 = vadd.f32 %v2590_v7, %v992_v57  ;;  %v1224_v60 = vpop.f32.mrb[44].mxu0  ;;  %v994_v61 = vpop.f32.mrb[45].mxu1 }
 0x16e   :  { %v1226_v62 = vpop.f32.mrb[45].mxu0  ;;  %v995_v63 = vpop.f32.mrb[46].mxu1 }
 0x16f   :  { %1602 = vst.msk [vmem:[%s2840_s3 + $0x54] sm:$0xf] %vm1580_vm0, %v1837_v58  ;;  %v1225_v0 = vadd.f32 %v1224_v60, %v993_v59  ;;  %v996_v1 = vadd.f32 %v2590_v7, %v995_v63  ;;  %v1227_v2 = vpop.f32.mrb[46].mxu0  ;;  %v997_v3 = vpop.f32.mrb[47].mxu1 }
 0x170   :  { %v1229_v4 = vpop.f32.mrb[47].mxu0 }
 0x171   :  { %v1356_v5 = vmax.f32 %v1225_v0, 0.0  ;;  %v1228_v6 = vadd.f32 %v1227_v2, %v996_v1 }
 0x173   :  { %v1838_v8 = vpack.c.bf16 %v1356_v5, %v1356_v5  ;;  %v1357_v9 = vmax.f32 %v1228_v6, 0.0 }
 0x174   :  { %v1000_v10 = vpop.f32.mrb[48].mxu1 }
 0x175   :  { %1603 = vst.msk [vmem:[%s2840_s3 + $0x58] sm:$0xf] %vm1580_vm0, %v1838_v8  ;;  %v1839_v11 = vpack.c.bf16 %v1357_v9, %v1357_v9  ;;  %v1001_v12 = vadd.f32 %v2590_v7, %v1000_v10  ;;  %v1232_v13 = vpop.f32.mrb[48].mxu0  ;;  %v1002_v14 = vpop.f32.mrb[49].mxu1 }
 0x176   :  { %v1234_v15 = vpop.f32.mrb[49].mxu0  ;;  %v1003_v16 = vpop.f32.mrb[50].mxu1 }
 0x177   :  { %1604 = vst.msk [vmem:[%s2840_s3 + $0x5c] sm:$0xf] %vm1580_vm0, %v1839_v11  ;;  %v1233_v17 = vadd.f32 %v1232_v13, %v1001_v12  ;;  %v1004_v18 = vadd.f32 %v2590_v7, %v1003_v16  ;;  %v1235_v19 = vpop.f32.mrb[50].mxu0  ;;  %v1005_v20 = vpop.f32.mrb[51].mxu1 }
 0x178   :  { %v1237_v21 = vpop.f32.mrb[51].mxu0 }
 0x179   :  { %v1358_v22 = vmax.f32 %v1233_v17, 0.0  ;;  %v1236_v23 = vadd.f32 %v1235_v19, %v1004_v18 }
 0x17b   :  { %v1840_v24 = vpack.c.bf16 %v1358_v22, %v1358_v22  ;;  %v1359_v25 = vmax.f32 %v1236_v23, 0.0 }
 0x17c   :  { %v1008_v26 = vpop.f32.mrb[52].mxu1 }
 0x17d   :  { %1605 = vst.msk [vmem:[%s2840_s3 + $0x60] sm:$0xf] %vm1580_vm0, %v1840_v24  ;;  %v1841_v27 = vpack.c.bf16 %v1359_v25, %v1359_v25  ;;  %v1009_v28 = vadd.f32 %v2590_v7, %v1008_v26  ;;  %v1240_v29 = vpop.f32.mrb[52].mxu0  ;;  %v1010_v30 = vpop.f32.mrb[53].mxu1 }
 0x17e   :  { %v1242_v31 = vpop.f32.mrb[53].mxu0  ;;  %v1011_v32 = vpop.f32.mrb[54].mxu1 }
 0x17f   :  { %1606 = vst.msk [vmem:[%s2840_s3 + $0x64] sm:$0xf] %vm1580_vm0, %v1841_v27  ;;  %v1241_v33 = vadd.f32 %v1240_v29, %v1009_v28  ;;  %v1012_v34 = vadd.f32 %v2590_v7, %v1011_v32  ;;  %v1243_v35 = vpop.f32.mrb[54].mxu0  ;;  %v1013_v36 = vpop.f32.mrb[55].mxu1 }
 0x180   :  { %v1245_v37 = vpop.f32.mrb[55].mxu0 }
 0x181   :  { %v1360_v38 = vmax.f32 %v1241_v33, 0.0  ;;  %v1244_v39 = vadd.f32 %v1243_v35, %v1012_v34 }
 0x183   :  { %v1842_v40 = vpack.c.bf16 %v1360_v38, %v1360_v38  ;;  %v1361_v41 = vmax.f32 %v1244_v39, 0.0 }
 0x184   :  { %v1016_v42 = vpop.f32.mrb[56].mxu1 }
 0x185   :  { %1607 = vst.msk [vmem:[%s2840_s3 + $0x68] sm:$0xf] %vm1580_vm0, %v1842_v40  ;;  %v1843_v43 = vpack.c.bf16 %v1361_v41, %v1361_v41  ;;  %v1017_v44 = vadd.f32 %v2590_v7, %v1016_v42  ;;  %v1248_v45 = vpop.f32.mrb[56].mxu0  ;;  %v1018_v46 = vpop.f32.mrb[57].mxu1 }
 0x186   :  { %v1250_v47 = vpop.f32.mrb[57].mxu0  ;;  %v1019_v48 = vpop.f32.mrb[58].mxu1 }
 0x187   :  { %1608 = vst.msk [vmem:[%s2840_s3 + $0x6c] sm:$0xf] %vm1580_vm0, %v1843_v43  ;;  %v1249_v49 = vadd.f32 %v1248_v45, %v1017_v44  ;;  %v1020_v50 = vadd.f32 %v2590_v7, %v1019_v48  ;;  %v1251_v51 = vpop.f32.mrb[58].mxu0  ;;  %v1021_v52 = vpop.f32.mrb[59].mxu1 }
 0x188   :  { %v1253_v53 = vpop.f32.mrb[59].mxu0 }
 0x189   :  { %v1362_v54 = vmax.f32 %v1249_v49, 0.0  ;;  %v1252_v55 = vadd.f32 %v1251_v51, %v1020_v50 }
 0x18b   :  { %v1844_v56 = vpack.c.bf16 %v1362_v54, %v1362_v54  ;;  %v1363_v57 = vmax.f32 %v1252_v55, 0.0 }
 0x18c   :  { %v1024_v58 = vpop.f32.mrb[60].mxu1 }
 0x18d   :  { %1609 = vst.msk [vmem:[%s2840_s3 + $0x70] sm:$0xf] %vm1580_vm0, %v1844_v56  ;;  %v1845_v59 = vpack.c.bf16 %v1363_v57, %v1363_v57  ;;  %v1025_v60 = vadd.f32 %v2590_v7, %v1024_v58  ;;  %v1256_v61 = vpop.f32.mrb[60].mxu0  ;;  %v1026_v62 = vpop.f32.mrb[61].mxu1 }
 0x18e   :  { %v1258_v63 = vpop.f32.mrb[61].mxu0  ;;  %v1027_v0 = vpop.f32.mrb[62].mxu1 }
 0x18f   :  { %1610 = vst.msk [vmem:[%s2840_s3 + $0x74] sm:$0xf] %vm1580_vm0, %v1845_v59  ;;  %v1257_v1 = vadd.f32 %v1256_v61, %v1025_v60  ;;  %v1028_v2 = vadd.f32 %v2590_v7, %v1027_v0  ;;  %v1259_v3 = vpop.f32.mrb[62].mxu0  ;;  %v1029_v4 = vpop.f32.mrb[63].mxu1 }
 0x190   :  { %v1261_v5 = vpop.f32.mrb[63].mxu0 }
 0x191   :  { %v1364_v6 = vmax.f32 %v1257_v1, 0.0  ;;  %v1260_v8 = vadd.f32 %v1259_v3, %v1028_v2 }
 0x193   :  { %v1846_v9 = vpack.c.bf16 %v1364_v6, %v1364_v6  ;;  %v1365_v10 = vmax.f32 %v1260_v8, 0.0 }
 0x194   :  { %v1032_v11 = vpop.f32.mrb[64].mxu1 }
 0x195   :  { %1611 = vst.msk [vmem:[%s2840_s3 + $0x78] sm:$0xf] %vm1580_vm0, %v1846_v9  ;;  %v1847_v12 = vpack.c.bf16 %v1365_v10, %v1365_v10  ;;  %v1033_v13 = vadd.f32 %v2590_v7, %v1032_v11  ;;  %v1264_v14 = vpop.f32.mrb[64].mxu0  ;;  %v1034_v15 = vpop.f32.mrb[65].mxu1 }
 0x196   :  { %v1266_v16 = vpop.f32.mrb[65].mxu0  ;;  %v1035_v17 = vpop.f32.mrb[66].mxu1 }
 0x197   :  { %1612 = vst.msk [vmem:[%s2840_s3 + $0x7c] sm:$0xf] %vm1580_vm0, %v1847_v12  ;;  %v1265_v18 = vadd.f32 %v1264_v14, %v1033_v13  ;;  %v1036_v19 = vadd.f32 %v2590_v7, %v1035_v17  ;;  %v1267_v20 = vpop.f32.mrb[66].mxu0  ;;  %v1037_v21 = vpop.f32.mrb[67].mxu1 }
 0x198   :  { %v1269_v22 = vpop.f32.mrb[67].mxu0 }
 0x199   :  { %v1366_v23 = vmax.f32 %v1265_v18, 0.0  ;;  %v1268_v24 = vadd.f32 %v1267_v20, %v1036_v19 }
 0x19b   :  { %v1848_v25 = vpack.c.bf16 %v1366_v23, %v1366_v23  ;;  %v1367_v26 = vmax.f32 %v1268_v24, 0.0 }
 0x19c   :  { %v1040_v27 = vpop.f32.mrb[68].mxu1 }
 0x19d   :  { %1613 = vst.msk [vmem:[%s2840_s3 + $0x80] sm:$0xf] %vm1580_vm0, %v1848_v25  ;;  %v1849_v28 = vpack.c.bf16 %v1367_v26, %v1367_v26  ;;  %v1041_v29 = vadd.f32 %v2590_v7, %v1040_v27  ;;  %v1272_v30 = vpop.f32.mrb[68].mxu0  ;;  %v1042_v31 = vpop.f32.mrb[69].mxu1 }
 0x19e   :  { %v1274_v32 = vpop.f32.mrb[69].mxu0  ;;  %v1043_v33 = vpop.f32.mrb[70].mxu1 }
 0x19f   :  { %1614 = vst.msk [vmem:[%s2840_s3 + $0x84] sm:$0xf] %vm1580_vm0, %v1849_v28  ;;  %v1273_v34 = vadd.f32 %v1272_v30, %v1041_v29  ;;  %v1044_v35 = vadd.f32 %v2590_v7, %v1043_v33  ;;  %v1275_v36 = vpop.f32.mrb[70].mxu0  ;;  %v1045_v37 = vpop.f32.mrb[71].mxu1 }
 0x1a0   :  { %v1277_v38 = vpop.f32.mrb[71].mxu0 }
 0x1a1   :  { %v1368_v39 = vmax.f32 %v1273_v34, 0.0  ;;  %v1276_v40 = vadd.f32 %v1275_v36, %v1044_v35 }
 0x1a3   :  { %v1850_v41 = vpack.c.bf16 %v1368_v39, %v1368_v39  ;;  %v1369_v42 = vmax.f32 %v1276_v40, 0.0 }
 0x1a4   :  { %v1048_v43 = vpop.f32.mrb[72].mxu1 }
 0x1a5   :  { %1615 = vst.msk [vmem:[%s2840_s3 + $0x88] sm:$0xf] %vm1580_vm0, %v1850_v41  ;;  %v1851_v44 = vpack.c.bf16 %v1369_v42, %v1369_v42  ;;  %v1049_v45 = vadd.f32 %v2590_v7, %v1048_v43  ;;  %v1280_v46 = vpop.f32.mrb[72].mxu0  ;;  %v1050_v47 = vpop.f32.mrb[73].mxu1 }
 0x1a6   :  { %v1282_v48 = vpop.f32.mrb[73].mxu0  ;;  %v1051_v49 = vpop.f32.mrb[74].mxu1 }
 0x1a7   :  { %1616 = vst.msk [vmem:[%s2840_s3 + $0x8c] sm:$0xf] %vm1580_vm0, %v1851_v44  ;;  %v1281_v50 = vadd.f32 %v1280_v46, %v1049_v45  ;;  %v1052_v51 = vadd.f32 %v2590_v7, %v1051_v49  ;;  %v1283_v52 = vpop.f32.mrb[74].mxu0  ;;  %v1053_v53 = vpop.f32.mrb[75].mxu1 }
 0x1a8   :  { %v1285_v54 = vpop.f32.mrb[75].mxu0 }
 0x1a9   :  { %v1370_v55 = vmax.f32 %v1281_v50, 0.0  ;;  %v1284_v56 = vadd.f32 %v1283_v52, %v1052_v51 }
 0x1ab   :  { %v1852_v57 = vpack.c.bf16 %v1370_v55, %v1370_v55  ;;  %v1371_v58 = vmax.f32 %v1284_v56, 0.0 }
 0x1ac   :  { %v1056_v59 = vpop.f32.mrb[76].mxu1 }
 0x1ad   :  { %1617 = vst.msk [vmem:[%s2840_s3 + $0x90] sm:$0xf] %vm1580_vm0, %v1852_v57  ;;  %v1853_v60 = vpack.c.bf16 %v1371_v58, %v1371_v58  ;;  %v1057_v61 = vadd.f32 %v2590_v7, %v1056_v59  ;;  %v1288_v62 = vpop.f32.mrb[76].mxu0  ;;  %v1058_v63 = vpop.f32.mrb[77].mxu1 }
 0x1ae   :  { %v1290_v0 = vpop.f32.mrb[77].mxu0  ;;  %v1059_v1 = vpop.f32.mrb[78].mxu1 }
 0x1af   :  { %1618 = vst.msk [vmem:[%s2840_s3 + $0x94] sm:$0xf] %vm1580_vm0, %v1853_v60  ;;  %v1289_v2 = vadd.f32 %v1288_v62, %v1057_v61  ;;  %v1060_v3 = vadd.f32 %v2590_v7, %v1059_v1  ;;  %v1291_v4 = vpop.f32.mrb[78].mxu0  ;;  %v1061_v5 = vpop.f32.mrb[79].mxu1 }
 0x1b0   :  { %v1293_v6 = vpop.f32.mrb[79].mxu0 }
 0x1b1   :  { %v1372_v8 = vmax.f32 %v1289_v2, 0.0  ;;  %v1292_v9 = vadd.f32 %v1291_v4, %v1060_v3 }
 0x1b3   :  { %v1854_v10 = vpack.c.bf16 %v1372_v8, %v1372_v8  ;;  %v1373_v11 = vmax.f32 %v1292_v9, 0.0 }
 0x1b4   :  { %v1064_v12 = vpop.f32.mrb[80].mxu1 }
 0x1b5   :  { %1619 = vst.msk [vmem:[%s2840_s3 + $0x98] sm:$0xf] %vm1580_vm0, %v1854_v10  ;;  %v1855_v13 = vpack.c.bf16 %v1373_v11, %v1373_v11  ;;  %v1065_v14 = vadd.f32 %v2590_v7, %v1064_v12  ;;  %v1296_v15 = vpop.f32.mrb[80].mxu0  ;;  %v1066_v16 = vpop.f32.mrb[81].mxu1 }
 0x1b6   :  { %v1298_v17 = vpop.f32.mrb[81].mxu0  ;;  %v1067_v18 = vpop.f32.mrb[82].mxu1 }
 0x1b7   :  { %1620 = vst.msk [vmem:[%s2840_s3 + $0x9c] sm:$0xf] %vm1580_vm0, %v1855_v13  ;;  %v1297_v19 = vadd.f32 %v1296_v15, %v1065_v14  ;;  %v1068_v20 = vadd.f32 %v2590_v7, %v1067_v18  ;;  %v1299_v21 = vpop.f32.mrb[82].mxu0  ;;  %v1069_v22 = vpop.f32.mrb[83].mxu1 }
 0x1b8   :  { %v1301_v23 = vpop.f32.mrb[83].mxu0 }
 0x1b9   :  { %v1374_v24 = vmax.f32 %v1297_v19, 0.0  ;;  %v1300_v25 = vadd.f32 %v1299_v21, %v1068_v20 }
 0x1bb   :  { %v1856_v26 = vpack.c.bf16 %v1374_v24, %v1374_v24  ;;  %v1375_v27 = vmax.f32 %v1300_v25, 0.0 }
 0x1bc   :  { %v1072_v28 = vpop.f32.mrb[84].mxu1 }
 0x1bd   :  { %1621 = vst.msk [vmem:[%s2840_s3 + $0xa0] sm:$0xf] %vm1580_vm0, %v1856_v26  ;;  %v1857_v29 = vpack.c.bf16 %v1375_v27, %v1375_v27  ;;  %v1073_v30 = vadd.f32 %v2590_v7, %v1072_v28  ;;  %v1304_v31 = vpop.f32.mrb[84].mxu0  ;;  %v1074_v32 = vpop.f32.mrb[85].mxu1 }
 0x1be   :  { %v1306_v33 = vpop.f32.mrb[85].mxu0  ;;  %v1075_v34 = vpop.f32.mrb[86].mxu1 }
 0x1bf   :  { %1622 = vst.msk [vmem:[%s2840_s3 + $0xa4] sm:$0xf] %vm1580_vm0, %v1857_v29  ;;  %v1305_v35 = vadd.f32 %v1304_v31, %v1073_v30  ;;  %v1076_v36 = vadd.f32 %v2590_v7, %v1075_v34  ;;  %v1307_v37 = vpop.f32.mrb[86].mxu0  ;;  %v1077_v38 = vpop.f32.mrb[87].mxu1 }
 0x1c0   :  { %v1309_v39 = vpop.f32.mrb[87].mxu0 }
 0x1c1   :  { %v1376_v40 = vmax.f32 %v1305_v35, 0.0  ;;  %v1308_v41 = vadd.f32 %v1307_v37, %v1076_v36 }
 0x1c3   :  { %v1858_v42 = vpack.c.bf16 %v1376_v40, %v1376_v40  ;;  %v1377_v43 = vmax.f32 %v1308_v41, 0.0 }
 0x1c4   :  { %v1080_v44 = vpop.f32.mrb[88].mxu1 }
 0x1c5   :  { %1623 = vst.msk [vmem:[%s2840_s3 + $0xa8] sm:$0xf] %vm1580_vm0, %v1858_v42  ;;  %v1859_v45 = vpack.c.bf16 %v1377_v43, %v1377_v43  ;;  %v1081_v46 = vadd.f32 %v2590_v7, %v1080_v44  ;;  %v1312_v47 = vpop.f32.mrb[88].mxu0  ;;  %v1082_v48 = vpop.f32.mrb[89].mxu1 }
 0x1c6   :  { %v1314_v49 = vpop.f32.mrb[89].mxu0  ;;  %v1083_v50 = vpop.f32.mrb[90].mxu1 }
 0x1c7   :  { %1624 = vst.msk [vmem:[%s2840_s3 + $0xac] sm:$0xf] %vm1580_vm0, %v1859_v45  ;;  %v1313_v51 = vadd.f32 %v1312_v47, %v1081_v46  ;;  %v1084_v52 = vadd.f32 %v2590_v7, %v1083_v50  ;;  %v1315_v53 = vpop.f32.mrb[90].mxu0  ;;  %v1085_v54 = vpop.f32.mrb[91].mxu1 }
 0x1c8   :  { %v1317_v55 = vpop.f32.mrb[91].mxu0 }
 0x1c9   :  { %v1378_v56 = vmax.f32 %v1313_v51, 0.0  ;;  %v1316_v57 = vadd.f32 %v1315_v53, %v1084_v52 }
 0x1cb   :  { %v1860_v58 = vpack.c.bf16 %v1378_v56, %v1378_v56  ;;  %v1379_v59 = vmax.f32 %v1316_v57, 0.0 }
 0x1cc   :  { %v1088_v60 = vpop.f32.mrb[92].mxu1 }
 0x1cd   :  { %1625 = vst.msk [vmem:[%s2840_s3 + $0xb0] sm:$0xf] %vm1580_vm0, %v1860_v58  ;;  %v1861_v61 = vpack.c.bf16 %v1379_v59, %v1379_v59  ;;  %v1089_v62 = vadd.f32 %v2590_v7, %v1088_v60  ;;  %v1320_v63 = vpop.f32.mrb[92].mxu0  ;;  %v1090_v0 = vpop.f32.mrb[93].mxu1 }
 0x1ce   :  { %v1322_v1 = vpop.f32.mrb[93].mxu0  ;;  %v1091_v2 = vpop.f32.mrb[94].mxu1 }
 0x1cf   :  { %1626 = vst.msk [vmem:[%s2840_s3 + $0xb4] sm:$0xf] %vm1580_vm0, %v1861_v61  ;;  %v1321_v3 = vadd.f32 %v1320_v63, %v1089_v62  ;;  %v1092_v4 = vadd.f32 %v2590_v7, %v1091_v2  ;;  %v1323_v5 = vpop.f32.mrb[94].mxu0  ;;  %v1093_v6 = vpop.f32.mrb[95].mxu1 }
 0x1d0   :  { %v1325_v8 = vpop.f32.mrb[95].mxu0 }
 0x1d1   :  { %v1380_v9 = vmax.f32 %v1321_v3, 0.0  ;;  %v1324_v10 = vadd.f32 %v1323_v5, %v1092_v4 }
 0x1d3   :  { %v1862_v11 = vpack.c.bf16 %v1380_v9, %v1380_v9  ;;  %v1381_v12 = vmax.f32 %v1324_v10, 0.0 }
 0x1d4   :  { %v1096_v13 = vpop.f32.mrb[96].mxu1 }
 0x1d5   :  { %1627 = vst.msk [vmem:[%s2840_s3 + $0xb8] sm:$0xf] %vm1580_vm0, %v1862_v11  ;;  %v1863_v14 = vpack.c.bf16 %v1381_v12, %v1381_v12  ;;  %v1097_v15 = vadd.f32 %v2590_v7, %v1096_v13  ;;  %v1328_v16 = vpop.f32.mrb[96].mxu0  ;;  %v1098_v17 = vpop.f32.mrb[97].mxu1 }
 0x1d6   :  { %v1330_v18 = vpop.f32.mrb[97].mxu0  ;;  %v1099_v19 = vpop.f32.mrb[98].mxu1 }
 0x1d7   :  { %1628 = vst.msk [vmem:[%s2840_s3 + $0xbc] sm:$0xf] %vm1580_vm0, %v1863_v14  ;;  %v1329_v20 = vadd.f32 %v1328_v16, %v1097_v15  ;;  %v1331_v21 = vpop.f32.mrb[98].mxu0  ;;  %v1100_v22 = vpop.f32.mrb[99].mxu1 }
 0x1d8   :  { %v1332_v23 = vpop.f32.mrb[99].mxu0 }
 0x1d9   :  { %v1382_v24 = vmax.f32 %v1329_v20, 0.0 }
 0x1db   :  { %v1864_v25 = vpack.c.bf16 %v1382_v24, %v1382_v24 }
 0x1dd   :  { %1629 = vst.msk [vmem:[%s2840_s3 + $0xc0] sm:$0xf] %vm1580_vm0, %v1864_v25 }

// kernel: encoder_forward.6
= control target key start
LH: loop header
LB: loop body
LE: loop exit
PB: predicated region body
PF: predicated region fallthrough
CT: control target
= control target key end

     0   :  { %s1883_s1 = inlined_call_operand.vmem [shape: bf16[1024,128], index: 1, kind: input, shape index: {}]   ;;  %s1884_s0 = inlined_call_operand.vmem [shape: bf16[72,1024], index: 0, kind: input, shape index: {}]   ;;  %s1885_s2 = inlined_call_operand.vmem [shape: f32[1,128], index: 2, kind: input, shape index: {}]   ;;  %s1886_s3 = inlined_call_operand.vmem [shape: bf16[72,128], index: 3, kind: output, shape index: {}]  }
   0x1   :  { %v1435_v0 = vld [vmem:[%s1883_s1 + $0x40] sm:$0xff]   ;;  %v1439_v4 = vld [vmem:[%s1883_s1 + $0x48] sm:$0xff]   ;;  %v1443_v8 = vld [vmem:[%s1883_s1 + $0x50] sm:$0xff]  }
   0x2   :  { %v1436_v1 = vld [vmem:[%s1883_s1 + $0xc0] sm:$0xff]   ;;  %1251 = vmatprep.subr.bf16.mxu0 %v1435_v0  ;;  %v1440_v5 = vld [vmem:[%s1883_s1 + $0xc8] sm:$0xff]   ;;  %v1444_v9 = vld [vmem:[%s1883_s1 + $0xd0] sm:$0xff]  }
   0x3   :  { %v1437_v2 = vld [vmem:[%s1883_s1] sm:$0xff]   ;;  %1297 = vmatprep.subr.bf16.mxu1 %v1436_v1  ;;  %v1441_v6 = vld [vmem:[%s1883_s1 + $0x8] sm:$0xff]   ;;  %v1445_v10 = vld [vmem:[%s1883_s1 + $0x10] sm:$0xff]  }
   0x4   :  { %v1438_v3 = vld [vmem:[%s1883_s1 + $0x80] sm:$0xff]   ;;  %1252 = vmatpush3.bf16.msra.mxu0 %v1437_v2  ;;  %v1442_v7 = vld [vmem:[%s1883_s1 + $0x88] sm:$0xff]   ;;  %v1446_v11 = vld [vmem:[%s1883_s1 + $0x90] sm:$0xff]  }
   0x5   :  { %1298 = vmatpush3.bf16.msra.mxu1 %v1438_v3  ;;  %1253 = vmatprep.subr.bf16.mxu0 %v1439_v4  ;;  %v1447_v12 = vld [vmem:[%s1883_s1 + $0x58] sm:$0xff]   ;;  %v1451_v16 = vld [vmem:[%s1883_s1 + $0x60] sm:$0xff]   ;;  %v1455_v20 = vld [vmem:[%s1883_s1 + $0x68] sm:$0xff]  }
   0x6   :  { %1299 = vmatprep.subr.bf16.mxu1 %v1440_v5  ;;  %v1448_v13 = vld [vmem:[%s1883_s1 + $0xd8] sm:$0xff]   ;;  %v1452_v17 = vld [vmem:[%s1883_s1 + $0xe0] sm:$0xff]   ;;  %v1456_v21 = vld [vmem:[%s1883_s1 + $0xe8] sm:$0xff]  }
   0x7   :  { %v1449_v14 = vld [vmem:[%s1883_s1 + $0x18] sm:$0xff]   ;;  %v1453_v18 = vld [vmem:[%s1883_s1 + $0x20] sm:$0xff]   ;;  %v1457_v22 = vld [vmem:[%s1883_s1 + $0x28] sm:$0xff]  }
   0x8   :  { %1254 = vmatpush3.bf16.msra.mxu0 %v1441_v6  ;;  %v1450_v15 = vld [vmem:[%s1883_s1 + $0x98] sm:$0xff]   ;;  %v1454_v19 = vld [vmem:[%s1883_s1 + $0xa0] sm:$0xff]   ;;  %v1458_v23 = vld [vmem:[%s1883_s1 + $0xa8] sm:$0xff]  }
   0x9   :  { %1300 = vmatpush3.bf16.msra.mxu1 %v1442_v7  ;;  %1255 = vmatprep.subr.bf16.mxu0 %v1443_v8  ;;  %v1459_v24 = vld [vmem:[%s1883_s1 + $0x70] sm:$0xff]   ;;  %v1463_v28 = vld [vmem:[%s1883_s1 + $0x78] sm:$0xff]   ;;  %v15_v32 = vld [vmem:[%s1884_s0] sm:$0xff] }
   0xa   :  { %1301 = vmatprep.subr.bf16.mxu1 %v1444_v9  ;;  %v1460_v25 = vld [vmem:[%s1883_s1 + $0xf0] sm:$0xff]   ;;  %v1464_v29 = vld [vmem:[%s1883_s1 + $0xf8] sm:$0xff]   ;;  %v19_v33 = vld [vmem:[%s1884_s0 + $0x20] sm:$0xff] }
   0xb   :  { %v1461_v26 = vld [vmem:[%s1883_s1 + $0x30] sm:$0xff]   ;;  %v1465_v30 = vld [vmem:[%s1883_s1 + $0x38] sm:$0xff]   ;;  %v16_v34 = vld [vmem:[%s1884_s0 + $0x8] sm:$0xff]  ;;  %v1106_v35 = vcombine.low %v15_v32, %v19_v33  ;;  %v1107_v36 = vcombine.high %v15_v32, %v19_v33 }
   0xc   :  { %1256 = vmatpush3.bf16.msra.mxu0 %v1445_v10  ;;  %v1462_v27 = vld [vmem:[%s1883_s1 + $0xb0] sm:$0xff]   ;;  %v1466_v31 = vld [vmem:[%s1883_s1 + $0xb8] sm:$0xff]   ;;  %v20_v37 = vld [vmem:[%s1884_s0 + $0x28] sm:$0xff] }
   0xd   :  { %1302 = vmatpush3.bf16.msra.mxu1 %v1446_v11  ;;  %1257 = vmatprep.subr.bf16.mxu0 %v1447_v12  ;;  %v1108_v38 = vcombine.low %v16_v34, %v20_v37  ;;  %v1109_v39 = vcombine.high %v16_v34, %v20_v37  ;;  %v1467_v40 = vld [vmem:[%s1883_s1 + $0x140] sm:$0xff]   ;;  %v1471_v44 = vld [vmem:[%s1883_s1 + $0x148] sm:$0xff]   ;;  %v1475_v56 = vld [vmem:[%s1883_s1 + $0x150] sm:$0xff]  }
   0xe   :  { %1303 = vmatprep.subr.bf16.mxu1 %v1448_v13  ;;  %790 = vmatprep.mubr.bf16.mxu0 %v1107_v36  ;;  %v1468_v41 = vld [vmem:[%s1883_s1 + $0x100] sm:$0xff]   ;;  %v1472_v45 = vld [vmem:[%s1883_s1 + $0x108] sm:$0xff]   ;;  %v1476_v57 = vld [vmem:[%s1883_s1 + $0x110] sm:$0xff]  }
   0xf   :  { %862 = vmatprep.mubr.bf16.mxu1 %v1109_v39  ;;  %v1469_v42 = vld [vmem:[%s1883_s1 + $0x1c0] sm:$0xff]   ;;  %v24_v49 = vld [vmem:[%s1884_s0 + $0x48] sm:$0xff]  ;;  %v1477_v58 = vld [vmem:[%s1883_s1 + $0x1d0] sm:$0xff]  }
  0x10   :  { %1258 = vmatpush3.bf16.msra.mxu0 %v1449_v14  ;;  %v1470_v43 = vld [vmem:[%s1883_s1 + $0x180] sm:$0xff]   ;;  %v28_v50 = vld [vmem:[%s1884_s0 + $0x68] sm:$0xff]  ;;  %v1478_v59 = vld [vmem:[%s1883_s1 + $0x190] sm:$0xff]  }
  0x11   :  { %1304 = vmatpush3.bf16.msra.mxu1 %v1450_v15  ;;  %1259 = vmatprep.subr.bf16.mxu0 %v1451_v16  ;;  %v23_v46 = vld [vmem:[%s1884_s0 + $0x40] sm:$0xff]  ;;  %v1117_v52 = vcombine.high %v24_v49, %v28_v50  ;;  %v1473_v53 = vld [vmem:[%s1883_s1 + $0x1c8] sm:$0xff]   ;;  %v1116_v54 = vcombine.low %v24_v49, %v28_v50  ;;  %v1479_v2 = vld [vmem:[%s1883_s1 + $0x158] sm:$0xff]  }
  0x12   :  { %1305 = vmatprep.subr.bf16.mxu1 %v1452_v17  ;;  %v27_v47 = vld [vmem:[%s1884_s0 + $0x60] sm:$0xff]  ;;  %v1474_v55 = vld [vmem:[%s1883_s1 + $0x188] sm:$0xff]   ;;  %v1480_v5 = vld [vmem:[%s1883_s1 + $0x118] sm:$0xff]  }
  0x13   :  { %v1115_v48 = vcombine.high %v23_v46, %v27_v47  ;;  %v1114_v51 = vcombine.low %v23_v46, %v27_v47  ;;  %v31_v60 = vld [vmem:[%s1884_s0 + $0x80] sm:$0xff]  ;;  %v32_v62 = vld [vmem:[%s1884_s0 + $0x88] sm:$0xff]  ;;  %v1481_v6 = vld [vmem:[%s1883_s1 + $0x1d8] sm:$0xff]  }
  0x14   :  { %1260 = vmatpush3.bf16.msra.mxu0 %v1453_v18  ;;  %v35_v61 = vld [vmem:[%s1884_s0 + $0xa0] sm:$0xff]  ;;  %v36_v63 = vld [vmem:[%s1884_s0 + $0xa8] sm:$0xff]  ;;  %v1482_v7 = vld [vmem:[%s1883_s1 + $0x198] sm:$0xff]  }
  0x15   :  { %1306 = vmatpush3.bf16.msra.mxu1 %v1454_v19  ;;  %1261 = vmatprep.subr.bf16.mxu0 %v1455_v20  ;;  %v1123_v0 = vcombine.high %v31_v60, %v35_v61  ;;  %v1125_v1 = vcombine.high %v32_v62, %v36_v63  ;;  %v1122_v3 = vcombine.low %v31_v60, %v35_v61  ;;  %v1483_v8 = vld [vmem:[%s1883_s1 + $0x160] sm:$0xff]   ;;  %v40_v13 = vld [vmem:[%s1884_s0 + $0xc8] sm:$0xff]  ;;  %v1498_v33 = vld [vmem:[%s1883_s1 + $0x1b0] sm:$0xff]  }
  0x16   :  { %1307 = vmatprep.subr.bf16.mxu1 %v1456_v21  ;;  %v1124_v4 = vcombine.low %v32_v62, %v36_v63  ;;  %v1484_v9 = vld [vmem:[%s1883_s1 + $0x120] sm:$0xff]   ;;  %v44_v15 = vld [vmem:[%s1884_s0 + $0xe8] sm:$0xff]  ;;  %v1499_v34 = vld [vmem:[%s1883_s1 + $0x178] sm:$0xff]  }
  0x17   :  { %v1485_v10 = vld [vmem:[%s1883_s1 + $0x1e0] sm:$0xff]   ;;  %v1133_v17 = vcombine.high %v40_v13, %v44_v15  ;;  %v1132_v19 = vcombine.low %v40_v13, %v44_v15  ;;  %v1487_v20 = vld [vmem:[%s1883_s1 + $0x168] sm:$0xff]   ;;  %v1501_v36 = vld [vmem:[%s1883_s1 + $0x1f8] sm:$0xff]  }
  0x18   :  { %1262 = vmatpush3.bf16.msra.mxu0 %v1457_v22  ;;  %v39_v11 = vld [vmem:[%s1884_s0 + $0xc0] sm:$0xff]  ;;  %v1488_v21 = vld [vmem:[%s1883_s1 + $0x128] sm:$0xff]   ;;  %v1502_v37 = vld [vmem:[%s1883_s1 + $0x1b8] sm:$0xff]  }
  0x19   :  { %1308 = vmatpush3.bf16.msra.mxu1 %v1458_v23  ;;  %1263 = vmatprep.subr.bf16.mxu0 %v1459_v24  ;;  %v43_v12 = vld [vmem:[%s1884_s0 + $0xe0] sm:$0xff]  ;;  %v1489_v22 = vld [vmem:[%s1883_s1 + $0x1e8] sm:$0xff]   ;;  %v1491_v24 = vld [vmem:[%s1883_s1 + $0x170] sm:$0xff]  }
  0x1a   :  { %1309 = vmatprep.subr.bf16.mxu1 %v1460_v25  ;;  %v1131_v14 = vcombine.high %v39_v11, %v43_v12  ;;  %v1130_v16 = vcombine.low %v39_v11, %v43_v12  ;;  %v1486_v18 = vld [vmem:[%s1883_s1 + $0x1a0] sm:$0xff]   ;;  %v1490_v23 = vld [vmem:[%s1883_s1 + $0x1a8] sm:$0xff]   ;;  %v21_v39 = vld [vmem:[%s1884_s0 + $0x30] sm:$0xff] }
  0x1b   :  { %v47_v25 = vld [vmem:[%s1884_s0 + $0x100] sm:$0xff]  ;;  %v26_v47 = vld [vmem:[%s1884_s0 + $0x58] sm:$0xff]  ;;  %v41_v60 = vld [vmem:[%s1884_s0 + $0xd0] sm:$0xff] }
  0x1c   :  { %1264 = vmatpush3.bf16.msra.mxu0 %v1461_v26  ;;  %v48_v26 = vld [vmem:[%s1884_s0 + $0x108] sm:$0xff]  ;;  %v45_v61 = vld [vmem:[%s1884_s0 + $0xf0] sm:$0xff]  ;;  %v42_v62 = vld [vmem:[%s1884_s0 + $0xd8] sm:$0xff] }
  0x1d   :  { %1310 = vmatpush3.bf16.msra.mxu1 %v1462_v27  ;;  %1265 = vmatprep.subr.bf16.mxu0 %v1463_v28  ;;  %v1139_v27 = vcombine.high %v47_v25, %v47_v25  ;;  %v1141_v28 = vcombine.high %v48_v26, %v48_v26  ;;  %v1140_v32 = vcombine.low %v48_v26, %v48_v26  ;;  %v46_v63 = vld [vmem:[%s1884_s0 + $0xf8] sm:$0xff] }
  0x1e   :  { %1311 = vmatprep.subr.bf16.mxu1 %v1464_v29  ;;  %v1494_v29 = vld [vmem:[%s1883_s1 + $0x130] sm:$0xff]  }
  0x20   :  { %1266 = vmatpush3.bf16.msra.mxu0 %v1465_v30  ;;  %v1138_v30 = vcombine.low %v47_v25, %v47_v25 }
  0x21   :  { %1312 = vmatpush3.bf16.msra.mxu1 %v1466_v31  ;;  %1343 = vmatprep.subr.bf16.mxu0 %v1467_v40  ;;  %v1497_v31 = vld [vmem:[%s1883_s1 + $0x1f0] sm:$0xff]   ;;  %v18_v40 = vld [vmem:[%s1884_s0 + $0x18] sm:$0xff] }
  0x22   :  { %1389 = vmatprep.subr.bf16.mxu1 %v1469_v42  ;;  %v22_v42 = vld [vmem:[%s1884_s0 + $0x38] sm:$0xff] }
  0x23   :  { %791 = vmatmul.mubr.bf16.vlgmr.msra.gmra.mrb[0].mxu0 %v1106_v35  ;;  %v1500_v35 = vld [vmem:[%s1883_s1 + $0x138] sm:$0xff]   ;;  %v1113_v46 = vcombine.high %v18_v40, %v22_v42  ;;  %v1112_v49 = vcombine.low %v18_v40, %v22_v42 }
  0x24   :  { %863 = vmatmul.mubr.bf16.vlgmr.msra.gmra.mrb[0].mxu1 %v1108_v38  ;;  %1344 = vmatpush3.bf16.msra.mxu0 %v1468_v41  ;;  %v17_v38 = vld [vmem:[%s1884_s0 + $0x10] sm:$0xff] }
  0x25   :  { %1390 = vmatpush3.bf16.msra.mxu1 %v1470_v43  ;;  %1345 = vmatprep.subr.bf16.mxu0 %v1471_v44  ;;  %v1111_v41 = vcombine.high %v17_v38, %v21_v39  ;;  %v25_v43 = vld [vmem:[%s1884_s0 + $0x50] sm:$0xff] }
  0x26   :  { %798 = vmatprep.mubr.bf16.mxu0 %v1115_v48  ;;  %870 = vmatprep.mubr.bf16.mxu1 %v1117_v52  ;;  %v29_v44 = vld [vmem:[%s1884_s0 + $0x70] sm:$0xff]  ;;  %v30_v48 = vld [vmem:[%s1884_s0 + $0x78] sm:$0xff] }
  0x27   :  { %1391 = vmatprep.subr.bf16.mxu1 %v1473_v53  ;;  %v1119_v50 = vcombine.high %v25_v43, %v29_v44  ;;  %v33_v52 = vld [vmem:[%s1884_s0 + $0x90] sm:$0xff] }
  0x28   :  { %1346 = vmatpush3.bf16.msra.mxu0 %v1472_v45  ;;  %v1110_v45 = vcombine.low %v17_v38, %v21_v39  ;;  %v37_v53 = vld [vmem:[%s1884_s0 + $0xb0] sm:$0xff] }
  0x29   :  { %1392 = vmatpush3.bf16.msra.mxu1 %v1474_v55  ;;  %1347 = vmatprep.subr.bf16.mxu0 %v1475_v56  ;;  %v38_v55 = vld [vmem:[%s1884_s0 + $0xb8] sm:$0xff]  ;;  %v1118_v56 = vcombine.low %v25_v43, %v29_v44 }
  0x2a   :  { %1393 = vmatprep.subr.bf16.mxu1 %v1477_v58  ;;  %v1127_v58 = vcombine.high %v33_v52, %v37_v53 }
  0x2b   :  { %799 = vmatmul.mubr.bf16.gmra.mrb[4].mxu0 %v1114_v51  ;;  %v1121_v51 = vcombine.high %v26_v47, %v30_v48 }
  0x2c   :  { %871 = vmatmul.mubr.bf16.gmra.mrb[4].mxu1 %v1116_v54  ;;  %1348 = vmatpush3.bf16.msra.mxu0 %v1476_v57  ;;  %v34_v54 = vld [vmem:[%s1884_s0 + $0x98] sm:$0xff]  ;;  %v1120_v57 = vcombine.low %v26_v47, %v30_v48 }
  0x2d   :  { %1394 = vmatpush3.bf16.msra.mxu1 %v1478_v59  ;;  %806 = vmatprep.mubr.bf16.mxu0 %v1123_v0  ;;  %v1129_v59 = vcombine.high %v34_v54, %v38_v55  ;;  %v1126_v0 = vcombine.low %v33_v52, %v37_v53 }
  0x2e   :  { %878 = vmatprep.mubr.bf16.mxu1 %v1125_v1  ;;  %1349 = vmatprep.subr.bf16.mxu0 %v1479_v2  ;;  %v1128_v1 = vcombine.low %v34_v54, %v38_v55  ;;  %v1135_v2 = vcombine.high %v41_v60, %v45_v61 }
  0x2f   :  { %1395 = vmatprep.subr.bf16.mxu1 %v1481_v6  ;;  %v1134_v6 = vcombine.low %v41_v60, %v45_v61 }
  0x30   :  { %1350 = vmatpush3.bf16.msra.mxu0 %v1480_v5  ;;  %v50_v5 = vld [vmem:[%s1884_s0 + $0x118] sm:$0xff] }
  0x31   :  { %1396 = vmatpush3.bf16.msra.mxu1 %v1482_v7  ;;  %1351 = vmatprep.subr.bf16.mxu0 %v1483_v8  ;;  %v1136_v7 = vcombine.low %v42_v62, %v46_v63  ;;  %v1144_v11 = vcombine.low %v50_v5, %v50_v5 }
  0x32   :  { %1397 = vmatprep.subr.bf16.mxu1 %v1485_v10 }
  0x33   :  { %807 = vmatmul.mubr.bf16.gmra.mrb[8].mxu0 %v1122_v3  ;;  %v1137_v3 = vcombine.high %v42_v62, %v46_v63 }
  0x34   :  { %879 = vmatmul.mubr.bf16.gmra.mrb[8].mxu1 %v1124_v4  ;;  %1352 = vmatpush3.bf16.msra.mxu0 %v1484_v9  ;;  %v49_v4 = vld [vmem:[%s1884_s0 + $0x110] sm:$0xff]  ;;  %v1145_v9 = vcombine.high %v50_v5, %v50_v5 }
  0x35   :  { %814 = vmatprep.mubr.bf16.mxu0 %v1131_v14  ;;  %886 = vmatprep.mubr.bf16.mxu1 %v1133_v17  ;;  %v1143_v8 = vcombine.high %v49_v4, %v49_v4  ;;  %v1142_v10 = vcombine.low %v49_v4, %v49_v4  ;;  %v1830_v14 = vld [vmem:[%s1885_s2] ss:$0 sm:$0xff] }
  0x36   :  { %1398 = vmatpush3.bf16.msra.mxu1 %v1486_v18  ;;  %1353 = vmatprep.subr.bf16.mxu0 %v1487_v20 }
  0x37   :  { %1399 = vmatprep.subr.bf16.mxu1 %v1489_v22 }
  0x38   :  { %1354 = vmatpush3.bf16.msra.mxu0 %v1488_v21 }
  0x39   :  { %1355 = vmatprep.subr.bf16.mxu0 %v1491_v24 }
  0x3a   :  { %1400 = vmatpush3.bf16.msra.mxu1 %v1490_v23 }
  0x3b   :  { %815 = vmatmul.mubr.bf16.gmra.mrb[12].mxu0 %v1130_v16  ;;  %1401 = vmatprep.subr.bf16.mxu1 %v1497_v31 }
  0x3c   :  { %887 = vmatmul.mubr.bf16.gmra.mrb[12].mxu1 %v1132_v19  ;;  %822 = vmatprep.mubr.bf16.mxu0 %v1139_v27 }
  0x3d   :  { %894 = vmatprep.mubr.bf16.mxu1 %v1141_v28  ;;  %1356 = vmatpush3.bf16.msra.mxu0 %v1494_v29 }
  0x3e   :  { %1402 = vmatpush3.bf16.msra.mxu1 %v1498_v33  ;;  %1357 = vmatprep.subr.bf16.mxu0 %v1499_v34 }
  0x3f   :  { %1403 = vmatprep.subr.bf16.mxu1 %v1501_v36 }
  0x41   :  { %1358 = vmatpush3.bf16.msra.mxu0 %v1500_v35 }
  0x42   :  { %1404 = vmatpush3.bf16.msra.mxu1 %v1502_v37 }
  0x43   :  { %823 = vmatmul.mubr.bf16.gmra.mrb[16].mxu0 %v1138_v30 }
  0x44   :  { %895 = vmatmul.mubr.bf16.gmra.mrb[16].mxu1 %v1140_v32  ;;  %934 = vmatprep.mubr.bf16.mxu0 %v1111_v41 }
  0x45   :  { %1006 = vmatprep.mubr.bf16.mxu1 %v1113_v46 }
  0x4b   :  { %935 = vmatmul.mubr.bf16.vlgmr.msra.gmra.mrb[20].mxu0 %v1110_v45 }
  0x4c   :  { %1007 = vmatmul.mubr.bf16.vlgmr.msra.gmra.mrb[20].mxu1 %v1112_v49  ;;  %942 = vmatprep.mubr.bf16.mxu0 %v1119_v50 }
  0x4d   :  { %1014 = vmatprep.mubr.bf16.mxu1 %v1121_v51 }
  0x53   :  { %943 = vmatmul.mubr.bf16.gmra.mrb[24].mxu0 %v1118_v56 }
  0x54   :  { %1015 = vmatmul.mubr.bf16.gmra.mrb[24].mxu1 %v1120_v57  ;;  %950 = vmatprep.mubr.bf16.mxu0 %v1127_v58 }
  0x55   :  { %1022 = vmatprep.mubr.bf16.mxu1 %v1129_v59 }
  0x5b   :  { %951 = vmatmul.mubr.bf16.gmra.mrb[28].mxu0 %v1126_v0 }
  0x5c   :  { %1023 = vmatmul.mubr.bf16.gmra.mrb[28].mxu1 %v1128_v1  ;;  %958 = vmatprep.mubr.bf16.mxu0 %v1135_v2 }
  0x5d   :  { %1030 = vmatprep.mubr.bf16.mxu1 %v1137_v3 }
  0x63   :  { %959 = vmatmul.mubr.bf16.gmra.mrb[32].mxu0 %v1134_v6 }
  0x64   :  { %1031 = vmatmul.mubr.bf16.gmra.mrb[32].mxu1 %v1136_v7  ;;  %966 = vmatprep.mubr.bf16.mxu0 %v1143_v8 }
  0x65   :  { %1038 = vmatprep.mubr.bf16.mxu1 %v1145_v9 }
  0x6b   :  { %967 = vmatmul.mubr.bf16.gmra.mrb[36].mxu0 %v1142_v10 }
  0x6c   :  { %1039 = vmatmul.mubr.bf16.gmra.mrb[36].mxu1 %v1144_v11 }
  0xf6   :  { %v1267_v12 = vpop.f32.mrb[0].mxu0 }
  0xf7   :  { %v1313_v13 = vpop.f32.mrb[0].mxu1  ;;  %v1268_v15 = vpop.f32.mrb[1].mxu0 }
  0xf8   :  { %v1269_v16 = vadd.f32 %v1268_v15, %v1267_v12  ;;  %v1314_v17 = vpop.f32.mrb[1].mxu1  ;;  %v1270_v18 = vpop.f32.mrb[2].mxu0 }
  0xf9   :  { %v1315_v19 = vadd.f32 %v1314_v17, %v1313_v13  ;;  %v1316_v20 = vpop.f32.mrb[2].mxu1  ;;  %v1271_v21 = vpop.f32.mrb[3].mxu0 }
  0xfa   :  { %v793_v22 = vadd.f32 %v1269_v16, %v1830_v14  ;;  %v1272_v23 = vadd.f32 %v1271_v21, %v1270_v18  ;;  %v1317_v24 = vpop.f32.mrb[3].mxu1 }
  0xfb   :  { %v1318_v25 = vadd.f32 %v1317_v24, %v1316_v20 }
  0xfc   :  { %v1833_v26 = vadd.f32 %v1315_v19, %v793_v22  ;;  %v796_v27 = vadd.f32 %v1272_v23, %v1830_v14 }
  0xfe   :  { %v1836_v28 = vadd.f32 %v1318_v25, %v796_v27  ;;  %v1273_v29 = vpop.f32.mrb[4].mxu0 }
  0xff   :  { %v1319_v30 = vpop.f32.mrb[4].mxu1  ;;  %v1274_v31 = vpop.f32.mrb[5].mxu0 }
 0x100   :  { %v1275_v32 = vadd.f32 %v1274_v31, %v1273_v29  ;;  %v1320_v33 = vpop.f32.mrb[5].mxu1  ;;  %v1276_v34 = vpop.f32.mrb[6].mxu0 }
 0x101   :  { %v1321_v35 = vadd.f32 %v1320_v33, %v1319_v30  ;;  %v1322_v36 = vpop.f32.mrb[6].mxu1  ;;  %v1277_v37 = vpop.f32.mrb[7].mxu0 }
 0x102   :  { %v801_v38 = vadd.f32 %v1275_v32, %v1830_v14  ;;  %v1278_v39 = vadd.f32 %v1277_v37, %v1276_v34  ;;  %v1323_v40 = vpop.f32.mrb[7].mxu1 }
 0x103   :  { %v1324_v41 = vadd.f32 %v1323_v40, %v1322_v36 }
 0x104   :  { %v1839_v42 = vadd.f32 %v1321_v35, %v801_v38  ;;  %v804_v43 = vadd.f32 %v1278_v39, %v1830_v14 }
 0x106   :  { %v1842_v44 = vadd.f32 %v1324_v41, %v804_v43  ;;  %v1279_v45 = vpop.f32.mrb[8].mxu0 }
 0x107   :  { %v1325_v46 = vpop.f32.mrb[8].mxu1  ;;  %v1280_v47 = vpop.f32.mrb[9].mxu0 }
 0x108   :  { %v1281_v48 = vadd.f32 %v1280_v47, %v1279_v45  ;;  %v1326_v49 = vpop.f32.mrb[9].mxu1  ;;  %v1282_v50 = vpop.f32.mrb[10].mxu0 }
 0x109   :  { %v1327_v51 = vadd.f32 %v1326_v49, %v1325_v46  ;;  %v1328_v52 = vpop.f32.mrb[10].mxu1  ;;  %v1283_v53 = vpop.f32.mrb[11].mxu0 }
 0x10a   :  { %v809_v54 = vadd.f32 %v1281_v48, %v1830_v14  ;;  %v1284_v55 = vadd.f32 %v1283_v53, %v1282_v50  ;;  %v1329_v56 = vpop.f32.mrb[11].mxu1 }
 0x10b   :  { %v1330_v57 = vadd.f32 %v1329_v56, %v1328_v52 }
 0x10c   :  { %v1845_v58 = vadd.f32 %v1327_v51, %v809_v54  ;;  %v812_v59 = vadd.f32 %v1284_v55, %v1830_v14 }
 0x10e   :  { %v1848_v60 = vadd.f32 %v1330_v57, %v812_v59  ;;  %v1285_v61 = vpop.f32.mrb[12].mxu0 }
 0x10f   :  { %v1331_v62 = vpop.f32.mrb[12].mxu1  ;;  %v1286_v63 = vpop.f32.mrb[13].mxu0 }
 0x110   :  { %v1287_v0 = vadd.f32 %v1286_v63, %v1285_v61  ;;  %v1332_v1 = vpop.f32.mrb[13].mxu1  ;;  %v1288_v2 = vpop.f32.mrb[14].mxu0 }
 0x111   :  { %v1333_v3 = vadd.f32 %v1332_v1, %v1331_v62  ;;  %v1334_v4 = vpop.f32.mrb[14].mxu1  ;;  %v1289_v5 = vpop.f32.mrb[15].mxu0 }
 0x112   :  { %v817_v6 = vadd.f32 %v1287_v0, %v1830_v14  ;;  %v1290_v7 = vadd.f32 %v1289_v5, %v1288_v2  ;;  %v1335_v8 = vpop.f32.mrb[15].mxu1 }
 0x113   :  { %v1336_v9 = vadd.f32 %v1335_v8, %v1334_v4 }
 0x114   :  { %v1851_v10 = vadd.f32 %v1333_v3, %v817_v6  ;;  %v820_v11 = vadd.f32 %v1290_v7, %v1830_v14 }
 0x116   :  { %v1854_v12 = vadd.f32 %v1336_v9, %v820_v11  ;;  %v1291_v13 = vpop.f32.mrb[16].mxu0 }
 0x117   :  { %v1337_v15 = vpop.f32.mrb[16].mxu1  ;;  %v1292_v16 = vpop.f32.mrb[17].mxu0 }
 0x118   :  { %v1293_v17 = vadd.f32 %v1292_v16, %v1291_v13  ;;  %v1338_v18 = vpop.f32.mrb[17].mxu1  ;;  %v1294_v19 = vpop.f32.mrb[18].mxu0 }
 0x119   :  { %v1339_v20 = vadd.f32 %v1338_v18, %v1337_v15  ;;  %v1340_v21 = vpop.f32.mrb[18].mxu1  ;;  %v1295_v22 = vpop.f32.mrb[19].mxu0 }
 0x11a   :  { %v825_v23 = vadd.f32 %v1293_v17, %v1830_v14  ;;  %v1341_v24 = vpop.f32.mrb[19].mxu1 }
 0x11c   :  { %v1857_v25 = vadd.f32 %v1339_v20, %v825_v23 }
 0x11e   :  { %v1359_v27 = vpop.f32.mrb[20].mxu0 }
 0x11f   :  { %v1405_v29 = vpop.f32.mrb[20].mxu1  ;;  %v1360_v30 = vpop.f32.mrb[21].mxu0 }
 0x120   :  { %v1361_v31 = vadd.f32 %v1360_v30, %v1359_v27  ;;  %v1406_v32 = vpop.f32.mrb[21].mxu1  ;;  %v1362_v33 = vpop.f32.mrb[22].mxu0 }
 0x121   :  { %v1407_v34 = vadd.f32 %v1406_v32, %v1405_v29  ;;  %v1408_v35 = vpop.f32.mrb[22].mxu1  ;;  %v1363_v36 = vpop.f32.mrb[23].mxu0 }
 0x122   :  { %v937_v37 = vadd.f32 %v1361_v31, %v1833_v26  ;;  %v1364_v38 = vadd.f32 %v1363_v36, %v1362_v33  ;;  %v1409_v39 = vpop.f32.mrb[23].mxu1 }
 0x123   :  { %v1410_v40 = vadd.f32 %v1409_v39, %v1408_v35 }
 0x124   :  { %v1009_v41 = vadd.f32 %v1407_v34, %v937_v37  ;;  %v940_v14 = vadd.f32 %v1364_v38, %v1836_v28 }
 0x126   :  { %v1012_v43 = vadd.f32 %v1410_v40, %v940_v14  ;;  %v1365_v45 = vpop.f32.mrb[24].mxu0  ;;  %v1046_v48 = vmax.f32 %v1009_v41, 0.0 }
 0x127   :  { %v1411_v46 = vpop.f32.mrb[24].mxu1  ;;  %v1366_v47 = vpop.f32.mrb[25].mxu0 }
 0x128   :  { %v1047_v49 = vmax.f32 %v1012_v43, 0.0  ;;  %v1367_v50 = vadd.f32 %v1366_v47, %v1365_v45  ;;  %v1412_v51 = vpop.f32.mrb[25].mxu1  ;;  %v1368_v52 = vpop.f32.mrb[26].mxu0 }
 0x129   :  { %v1413_v53 = vadd.f32 %v1412_v51, %v1411_v46  ;;  %v1414_v54 = vpop.f32.mrb[26].mxu1  ;;  %v1369_v55 = vpop.f32.mrb[27].mxu0 }
 0x12a   :  { %v1231_v56 = vpack.c.bf16 %v1047_v49, %v1046_v48  ;;  %v945_v26 = vadd.f32 %v1367_v50, %v1839_v42  ;;  %v1370_v57 = vadd.f32 %v1369_v55, %v1368_v52  ;;  %v1415_v59 = vpop.f32.mrb[27].mxu1 }
 0x12b   :  { %v1416_v61 = vadd.f32 %v1415_v59, %v1414_v54 }
 0x12c   :  { %1232 = vst [vmem:[%s1886_s3] sm:$0xff] %v1231_v56   ;;  %v1017_v28 = vadd.f32 %v1413_v53, %v945_v26  ;;  %v948_v62 = vadd.f32 %v1370_v57, %v1842_v44 }
 0x12e   :  { %v1020_v63 = vadd.f32 %v1416_v61, %v948_v62  ;;  %v1371_v0 = vpop.f32.mrb[28].mxu0  ;;  %v1048_v3 = vmax.f32 %v1017_v28, 0.0 }
 0x12f   :  { %v1417_v1 = vpop.f32.mrb[28].mxu1  ;;  %v1372_v2 = vpop.f32.mrb[29].mxu0 }
 0x130   :  { %v1049_v4 = vmax.f32 %v1020_v63, 0.0  ;;  %v1373_v5 = vadd.f32 %v1372_v2, %v1371_v0  ;;  %v1418_v6 = vpop.f32.mrb[29].mxu1  ;;  %v1374_v7 = vpop.f32.mrb[30].mxu0 }
 0x131   :  { %v1419_v42 = vadd.f32 %v1418_v6, %v1417_v1  ;;  %v1420_v8 = vpop.f32.mrb[30].mxu1  ;;  %v1375_v9 = vpop.f32.mrb[31].mxu0 }
 0x132   :  { %v1236_v11 = vpack.c.bf16 %v1049_v4, %v1048_v3  ;;  %v953_v13 = vadd.f32 %v1373_v5, %v1845_v58  ;;  %v1376_v15 = vadd.f32 %v1375_v9, %v1374_v7  ;;  %v1421_v16 = vpop.f32.mrb[31].mxu1 }
 0x133   :  { %v1422_v17 = vadd.f32 %v1421_v16, %v1420_v8 }
 0x134   :  { %1248 = vst [vmem:[%s1886_s3 + $0x8] sm:$0xff] %v1236_v11   ;;  %v1025_v44 = vadd.f32 %v1419_v42, %v953_v13  ;;  %v956_v18 = vadd.f32 %v1376_v15, %v1848_v60 }
 0x136   :  { %v1028_v19 = vadd.f32 %v1422_v17, %v956_v18  ;;  %v1377_v20 = vpop.f32.mrb[32].mxu0  ;;  %v1050_v23 = vmax.f32 %v1025_v44, 0.0 }
 0x137   :  { %v1423_v21 = vpop.f32.mrb[32].mxu1  ;;  %v1378_v22 = vpop.f32.mrb[33].mxu0 }
 0x138   :  { %v1051_v24 = vmax.f32 %v1028_v19, 0.0  ;;  %v1379_v27 = vadd.f32 %v1378_v22, %v1377_v20  ;;  %v1424_v29 = vpop.f32.mrb[33].mxu1  ;;  %v1380_v30 = vpop.f32.mrb[34].mxu0 }
 0x139   :  { %v1425_v58 = vadd.f32 %v1424_v29, %v1423_v21  ;;  %v1426_v31 = vpop.f32.mrb[34].mxu1  ;;  %v1381_v32 = vpop.f32.mrb[35].mxu0 }
 0x13a   :  { %v1241_v33 = vpack.c.bf16 %v1051_v24, %v1050_v23  ;;  %v961_v34 = vadd.f32 %v1379_v27, %v1851_v10  ;;  %v1382_v35 = vadd.f32 %v1381_v32, %v1380_v30  ;;  %v1427_v36 = vpop.f32.mrb[35].mxu1 }
 0x13b   :  { %v1428_v37 = vadd.f32 %v1427_v36, %v1426_v31 }
 0x13c   :  { %1249 = vst [vmem:[%s1886_s3 + $0x10] sm:$0xff] %v1241_v33   ;;  %v1033_v60 = vadd.f32 %v1425_v58, %v961_v34  ;;  %v964_v38 = vadd.f32 %v1382_v35, %v1854_v12 }
 0x13e   :  { %v1036_v39 = vadd.f32 %v1428_v37, %v964_v38  ;;  %v1383_v40 = vpop.f32.mrb[36].mxu0  ;;  %v1052_v43 = vmax.f32 %v1033_v60, 0.0 }
 0x13f   :  { %v1429_v41 = vpop.f32.mrb[36].mxu1  ;;  %v1384_v14 = vpop.f32.mrb[37].mxu0 }
 0x140   :  { %v1053_v45 = vmax.f32 %v1036_v39, 0.0  ;;  %v1385_v46 = vadd.f32 %v1384_v14, %v1383_v40  ;;  %v1430_v47 = vpop.f32.mrb[37].mxu1  ;;  %v1386_v48 = vpop.f32.mrb[38].mxu0 }
 0x141   :  { %v1431_v10 = vadd.f32 %v1430_v47, %v1429_v41  ;;  %v1432_v49 = vpop.f32.mrb[38].mxu1  ;;  %v1387_v50 = vpop.f32.mrb[39].mxu0 }
 0x142   :  { %v1246_v51 = vpack.c.bf16 %v1053_v45, %v1052_v43  ;;  %v969_v52 = vadd.f32 %v1385_v46, %v1857_v25  ;;  %v1433_v53 = vpop.f32.mrb[39].mxu1 }
 0x144   :  { %1250 = vst [vmem:[%s1886_s3 + $0x18] sm:$0xff] %v1246_v51   ;;  %v1041_v12 = vadd.f32 %v1431_v10, %v969_v52 }
 0x146   :  { %v1054_v54 = vmax.f32 %v1041_v12, 0.0 }
 0x148   :  { %v1227_v55 = vpack.c.bf16 %v1054_v54, %v1054_v54 }
 0x14a   :  { %1100 = vst [vmem:[%s1886_s3 + $0x20] sm:$0xf] %v1227_v55 }

// kernel: encoder_forward.7
= control target key start
LH: loop header
LB: loop body
LE: loop exit
PB: predicated region body
PF: predicated region fallthrough
CT: control target
= control target key end

     0   :  { %15 = vsyncpa [#allocation3], 0  ;;  %s5056_s0 = inlined_call_operand.vmem [shape: bf16[8,2048], index: 0, kind: input, shape index: {}]   ;;  %s5057_s1 = inlined_call_operand.vmem [shape: bf16[2048,256], index: 1, kind: input, shape index: {}]   ;;  %s5058_s2 = inlined_call_operand.vmem [shape: f32[1,256], index: 2, kind: input, shape index: {}]   ;;  %s5059_s3 = inlined_call_operand.vmem [shape: bf16[4,256,18], index: 3, kind: input, shape index: {}]   ;;  %s5060_s4 = inlined_call_operand.vmem [shape: f32[1,18], index: 4, kind: input, shape index: {}]   ;;  %s5061_s5 = inlined_call_operand.vmem [shape: f32[2,8], index: 5, kind: input, shape index: {}]   ;;  %s5062_s6 = inlined_call_operand.hbm [shape: f32[2,2], index: 6, kind: output, shape index: {0}]   ;;  %s5063_s7 = inlined_call_operand.hbm [shape: f32[2,8], index: 7, kind: output, shape index: {1}]   ;;  %s5064_s8 = inlined_call_operand.hbm [shape: f32[2,8], index: 8, kind: output, shape index: {2}]   ;;  %s5065_s9 = inlined_call_operand.hbm [shape: f32[2,8], index: 9, kind: output, shape index: {3}]  }
   0x1   :  { %16 = vsyncpa [#allocation5], 0  ;;  %v3329_v0 = vld [vmem:[%s5057_s1 + $0x4] ss:$8 sps:$4 sm:$0xff]   ;;  %v3333_v2 = vld [vmem:[%s5057_s1] ss:$8 sps:$4 sm:$0xff]  }
   0x2   :  { %v3331_v1 = vld [vmem:[%s5057_s1 + $0x304] ss:$8 sps:$4 sm:$0xff]   ;;  %1643 = vmatprep.subr.bf16.mxu1 %v3329_v0  ;;  %v3334_v3 = vld [vmem:[%s5057_s1 + $0x300] ss:$8 sps:$4 sm:$0xff]   ;;  %v3335_v4 = vld [vmem:[%s5057_s1 + $0x14] ss:$8 sps:$4 sm:$0xff]  }
   0x3   :  { %1766 = vmatprep.subr.bf16.mxu0 %v3331_v1  ;;  %1644 = vmatpush1.bf16.msra.mxu1 %v3333_v2  ;;  %v3337_v5 = vld [vmem:[%s5057_s1 + $0x314] ss:$8 sps:$4 sm:$0xff]   ;;  %v3339_v6 = vld [vmem:[%s5057_s1 + $0x10] ss:$8 sps:$4 sm:$0xff]   ;;  %v3341_v8 = vld [vmem:[%s5057_s1 + $0x24] ss:$8 sps:$4 sm:$0xff]  }
   0x4   :  { %1767 = vmatpush1.bf16.msra.mxu0 %v3334_v3  ;;  %1645 = vmatprep.subr.bf16.mxu1 %v3335_v4  ;;  %v3340_v7 = vld [vmem:[%s5057_s1 + $0x310] ss:$8 sps:$4 sm:$0xff]   ;;  %v3343_v9 = vld [vmem:[%s5057_s1 + $0x324] ss:$8 sps:$4 sm:$0xff]   ;;  %v3345_v10 = vld [vmem:[%s5057_s1 + $0x20] ss:$8 sps:$4 sm:$0xff]  }
   0x5   :  { %1768 = vmatprep.subr.bf16.mxu0 %v3337_v5  ;;  %v3346_v11 = vld [vmem:[%s5057_s1 + $0x320] ss:$8 sps:$4 sm:$0xff]   ;;  %v3347_v12 = vld [vmem:[%s5057_s1 + $0x34] ss:$8 sps:$4 sm:$0xff]   ;;  %v3351_v14 = vld [vmem:[%s5057_s1 + $0x30] ss:$8 sps:$4 sm:$0xff]  }
   0x6   :  { %v3349_v13 = vld [vmem:[%s5057_s1 + $0x334] ss:$8 sps:$4 sm:$0xff]   ;;  %v3352_v15 = vld [vmem:[%s5057_s1 + $0x330] ss:$8 sps:$4 sm:$0xff]   ;;  %v3353_v16 = vld [vmem:[%s5057_s1 + $0x44] ss:$8 sps:$4 sm:$0xff]  }
   0x7   :  { %1646 = vmatpush1.bf16.msra.mxu1 %v3339_v6  ;;  %v3355_v17 = vld [vmem:[%s5057_s1 + $0x344] ss:$8 sps:$4 sm:$0xff]   ;;  %v3357_v18 = vld [vmem:[%s5057_s1 + $0x40] ss:$8 sps:$4 sm:$0xff]   ;;  %v3359_v20 = vld [vmem:[%s5057_s1 + $0x54] ss:$8 sps:$4 sm:$0xff]  }
   0x8   :  { %1769 = vmatpush1.bf16.msra.mxu0 %v3340_v7  ;;  %1647 = vmatprep.subr.bf16.mxu1 %v3341_v8  ;;  %v3358_v19 = vld [vmem:[%s5057_s1 + $0x340] ss:$8 sps:$4 sm:$0xff]   ;;  %v3361_v21 = vld [vmem:[%s5057_s1 + $0x354] ss:$8 sps:$4 sm:$0xff]   ;;  %v3363_v22 = vld [vmem:[%s5057_s1 + $0x50] ss:$8 sps:$4 sm:$0xff]  }
   0x9   :  { %1770 = vmatprep.subr.bf16.mxu0 %v3343_v9  ;;  %v3364_v23 = vld [vmem:[%s5057_s1 + $0x350] ss:$8 sps:$4 sm:$0xff]   ;;  %v3365_v24 = vld [vmem:[%s5057_s1 + $0x64] ss:$8 sps:$4 sm:$0xff]   ;;  %v3369_v26 = vld [vmem:[%s5057_s1 + $0x60] ss:$8 sps:$4 sm:$0xff]  }
   0xa   :  { %v3367_v25 = vld [vmem:[%s5057_s1 + $0x364] ss:$8 sps:$4 sm:$0xff]   ;;  %v3370_v27 = vld [vmem:[%s5057_s1 + $0x360] ss:$8 sps:$4 sm:$0xff]   ;;  %v3371_v28 = vld [vmem:[%s5057_s1 + $0x74] ss:$8 sps:$4 sm:$0xff]  }
   0xb   :  { %1648 = vmatpush1.bf16.msra.mxu1 %v3345_v10  ;;  %v3373_v29 = vld [vmem:[%s5057_s1 + $0x374] ss:$8 sps:$4 sm:$0xff]   ;;  %v3375_v30 = vld [vmem:[%s5057_s1 + $0x70] ss:$8 sps:$4 sm:$0xff]   ;;  %v3377_v32 = vld [vmem:[%s5057_s1 + $0x84] ss:$8 sps:$4 sm:$0xff]  }
   0xc   :  { %1771 = vmatpush1.bf16.msra.mxu0 %v3346_v11  ;;  %1649 = vmatprep.subr.bf16.mxu1 %v3347_v12  ;;  %v3376_v31 = vld [vmem:[%s5057_s1 + $0x370] ss:$8 sps:$4 sm:$0xff]   ;;  %v3379_v33 = vld [vmem:[%s5057_s1 + $0x384] ss:$8 sps:$4 sm:$0xff]   ;;  %v3381_v34 = vld [vmem:[%s5057_s1 + $0x80] ss:$8 sps:$4 sm:$0xff]  }
   0xd   :  { %1772 = vmatprep.subr.bf16.mxu0 %v3349_v13  ;;  %v3382_v35 = vld [vmem:[%s5057_s1 + $0x380] ss:$8 sps:$4 sm:$0xff]   ;;  %v3383_v36 = vld [vmem:[%s5057_s1 + $0x94] ss:$8 sps:$4 sm:$0xff]   ;;  %v3387_v38 = vld [vmem:[%s5057_s1 + $0x90] ss:$8 sps:$4 sm:$0xff]  }
   0xe   :  { %v3385_v37 = vld [vmem:[%s5057_s1 + $0x394] ss:$8 sps:$4 sm:$0xff]   ;;  %v3388_v39 = vld [vmem:[%s5057_s1 + $0x390] ss:$8 sps:$4 sm:$0xff]   ;;  %v3389_v40 = vld [vmem:[%s5057_s1 + $0xa4] ss:$8 sps:$4 sm:$0xff]  }
   0xf   :  { %1650 = vmatpush1.bf16.msra.mxu1 %v3351_v14  ;;  %v3391_v41 = vld [vmem:[%s5057_s1 + $0x3a4] ss:$8 sps:$4 sm:$0xff]   ;;  %v3393_v42 = vld [vmem:[%s5057_s1 + $0xa0] ss:$8 sps:$4 sm:$0xff]   ;;  %v3395_v44 = vld [vmem:[%s5057_s1 + $0xb4] ss:$8 sps:$4 sm:$0xff]  }
  0x10   :  { %1773 = vmatpush1.bf16.msra.mxu0 %v3352_v15  ;;  %1651 = vmatprep.subr.bf16.mxu1 %v3353_v16  ;;  %v3394_v43 = vld [vmem:[%s5057_s1 + $0x3a0] ss:$8 sps:$4 sm:$0xff]   ;;  %v3397_v45 = vld [vmem:[%s5057_s1 + $0x3b4] ss:$8 sps:$4 sm:$0xff]   ;;  %v3399_v47 = vld [vmem:[%s5057_s1 + $0xb0] ss:$8 sps:$4 sm:$0xff]  }
  0x11   :  { %1774 = vmatprep.subr.bf16.mxu0 %v3355_v17  ;;  %v31_v46 = vld [vmem:[%s5056_s0] sm:$0xff]  ;;  %v3400_v49 = vld [vmem:[%s5057_s1 + $0x3b0] ss:$8 sps:$4 sm:$0xff]   ;;  %v3407_v56 = vld [vmem:[%s5057_s1 + $0xd4] ss:$8 sps:$4 sm:$0xff]  }
  0x12   :  { %v2771_v48 = vcombine.high %v31_v46, %v31_v46  ;;  %v34_v50 = vld [vmem:[%s5056_s0 + $0x18] sm:$0xff]  ;;  %v3401_v51 = vld [vmem:[%s5057_s1 + $0xc4] ss:$8 sps:$4 sm:$0xff]   ;;  %v3405_v54 = vld [vmem:[%s5057_s1 + $0xc0] ss:$8 sps:$4 sm:$0xff]   ;;  %v2770_v6 = vcombine.low %v31_v46, %v31_v46 }
  0x13   :  { %1652 = vmatpush1.bf16.msra.mxu1 %v3357_v18  ;;  %v3403_v52 = vld [vmem:[%s5057_s1 + $0x3c4] ss:$8 sps:$4 sm:$0xff]   ;;  %v2777_v53 = vcombine.high %v34_v50, %v34_v50  ;;  %v3406_v55 = vld [vmem:[%s5057_s1 + $0x3c0] ss:$8 sps:$4 sm:$0xff]   ;;  %v3409_v57 = vld [vmem:[%s5057_s1 + $0x3d4] ss:$8 sps:$4 sm:$0xff]   ;;  %v2776_v7 = vcombine.low %v34_v50, %v34_v50 }
  0x14   :  { %1775 = vmatpush1.bf16.msra.mxu0 %v3358_v19  ;;  %1653 = vmatprep.subr.bf16.mxu1 %v3359_v20  ;;  %v3411_v58 = vld [vmem:[%s5057_s1 + $0xd0] ss:$8 sps:$4 sm:$0xff]   ;;  %v3413_v60 = vld [vmem:[%s5057_s1 + $0xe4] ss:$8 sps:$4 sm:$0xff]   ;;  %v3417_v62 = vld [vmem:[%s5057_s1 + $0xe0] ss:$8 sps:$4 sm:$0xff]  }
  0x15   :  { %1776 = vmatprep.subr.bf16.mxu0 %v3361_v21  ;;  %1675 = vmatprep.mubr.bf16.mxu1 %v2771_v48  ;;  %v3412_v59 = vld [vmem:[%s5057_s1 + $0x3d0] ss:$8 sps:$4 sm:$0xff]   ;;  %v3415_v61 = vld [vmem:[%s5057_s1 + $0x3e4] ss:$8 sps:$4 sm:$0xff]   ;;  %v3418_v63 = vld [vmem:[%s5057_s1 + $0x3e0] ss:$8 sps:$4 sm:$0xff]  }
  0x16   :  { %1798 = vmatprep.mubr.bf16.mxu0 %v2777_v53  ;;  %v3419_v0 = vld [vmem:[%s5057_s1 + $0xf4] ss:$8 sps:$4 sm:$0xff]   ;;  %v3423_v2 = vld [vmem:[%s5057_s1 + $0xf0] ss:$8 sps:$4 sm:$0xff]   ;;  %v3429_v4 = vld [vmem:[%s5057_s1 + $0x104] ss:$8 sps:$4 sm:$0xff]  }
  0x17   :  { %1654 = vmatpush1.bf16.msra.mxu1 %v3363_v22  ;;  %v3421_v1 = vld [vmem:[%s5057_s1 + $0x3f4] ss:$8 sps:$4 sm:$0xff]   ;;  %v3424_v3 = vld [vmem:[%s5057_s1 + $0x3f0] ss:$8 sps:$4 sm:$0xff]   ;;  %v3434_v5 = vld [vmem:[%s5057_s1 + $0x404] ss:$8 sps:$4 sm:$0xff]  }
  0x18   :  { %1777 = vmatpush1.bf16.msra.mxu0 %v3364_v23  ;;  %1655 = vmatprep.subr.bf16.mxu1 %v3365_v24  ;;  %v3427_v8 = vld [vmem:[%s5057_s1 + $0x100] ss:$8 sps:$4 sm:$0xff]   ;;  %v3437_v10 = vld [vmem:[%s5057_s1 + $0x114] ss:$8 sps:$4 sm:$0xff]   ;;  %v3435_v12 = vld [vmem:[%s5057_s1 + $0x110] ss:$8 sps:$4 sm:$0xff]  }
  0x19   :  { %1778 = vmatprep.subr.bf16.mxu0 %v3367_v25  ;;  %v3432_v9 = vld [vmem:[%s5057_s1 + $0x400] ss:$8 sps:$4 sm:$0xff]   ;;  %v3440_v11 = vld [vmem:[%s5057_s1 + $0x414] ss:$8 sps:$4 sm:$0xff]   ;;  %v3438_v13 = vld [vmem:[%s5057_s1 + $0x410] ss:$8 sps:$4 sm:$0xff]  }
  0x1a   :  { %v3443_v14 = vld [vmem:[%s5057_s1 + $0x124] ss:$8 sps:$4 sm:$0xff]   ;;  %v3441_v16 = vld [vmem:[%s5057_s1 + $0x120] ss:$8 sps:$4 sm:$0xff]   ;;  %v3449_v18 = vld [vmem:[%s5057_s1 + $0x134] ss:$8 sps:$4 sm:$0xff]  }
  0x1b   :  { %1656 = vmatpush1.bf16.msra.mxu1 %v3369_v26  ;;  %v3446_v15 = vld [vmem:[%s5057_s1 + $0x424] ss:$8 sps:$4 sm:$0xff]   ;;  %v3444_v17 = vld [vmem:[%s5057_s1 + $0x420] ss:$8 sps:$4 sm:$0xff]   ;;  %v3452_v19 = vld [vmem:[%s5057_s1 + $0x434] ss:$8 sps:$4 sm:$0xff]  }
  0x1c   :  { %1779 = vmatpush1.bf16.msra.mxu0 %v3370_v27  ;;  %1657 = vmatprep.subr.bf16.mxu1 %v3371_v28  ;;  %v3447_v20 = vld [vmem:[%s5057_s1 + $0x130] ss:$8 sps:$4 sm:$0xff]   ;;  %v3455_v22 = vld [vmem:[%s5057_s1 + $0x144] ss:$8 sps:$4 sm:$0xff]   ;;  %v3453_v24 = vld [vmem:[%s5057_s1 + $0x140] ss:$8 sps:$4 sm:$0xff]  }
  0x1d   :  { %1780 = vmatprep.subr.bf16.mxu0 %v3373_v29  ;;  %v3450_v21 = vld [vmem:[%s5057_s1 + $0x430] ss:$8 sps:$4 sm:$0xff]   ;;  %v3458_v23 = vld [vmem:[%s5057_s1 + $0x444] ss:$8 sps:$4 sm:$0xff]   ;;  %v3456_v25 = vld [vmem:[%s5057_s1 + $0x440] ss:$8 sps:$4 sm:$0xff]  }
  0x1e   :  { %v3461_v26 = vld [vmem:[%s5057_s1 + $0x154] ss:$8 sps:$4 sm:$0xff]   ;;  %v3459_v28 = vld [vmem:[%s5057_s1 + $0x150] ss:$8 sps:$4 sm:$0xff]   ;;  %v3491_v50 = vld [vmem:[%s5057_s1 + $0x1a4] ss:$8 sps:$4 sm:$0xff]  }
  0x1f   :  { %1658 = vmatpush1.bf16.msra.mxu1 %v3375_v30  ;;  %v3464_v27 = vld [vmem:[%s5057_s1 + $0x454] ss:$8 sps:$4 sm:$0xff]   ;;  %v3462_v29 = vld [vmem:[%s5057_s1 + $0x450] ss:$8 sps:$4 sm:$0xff]   ;;  %v3467_v30 = vld [vmem:[%s5057_s1 + $0x164] ss:$8 sps:$4 sm:$0xff]  }
  0x20   :  { %1781 = vmatpush1.bf16.msra.mxu0 %v3376_v31  ;;  %1659 = vmatprep.subr.bf16.mxu1 %v3377_v32  ;;  %v3470_v31 = vld [vmem:[%s5057_s1 + $0x464] ss:$8 sps:$4 sm:$0xff]   ;;  %v3485_v46 = vld [vmem:[%s5057_s1 + $0x194] ss:$8 sps:$4 sm:$0xff]   ;;  %v3483_v48 = vld [vmem:[%s5057_s1 + $0x190] ss:$8 sps:$4 sm:$0xff]  }
  0x21   :  { %1782 = vmatprep.subr.bf16.mxu0 %v3379_v33  ;;  %v4226_v32 = vld [vmem:[%s5056_s0 + $0x8] sm:$0xff] }
  0x22   :  { %v3465_v33 = vld [vmem:[%s5057_s1 + $0x160] ss:$8 sps:$4 sm:$0xff]  }
  0x23   :  { %1660 = vmatpush1.bf16.msra.mxu1 %v3381_v34  ;;  %v3468_v34 = vld [vmem:[%s5057_s1 + $0x460] ss:$8 sps:$4 sm:$0xff]  }
  0x24   :  { %1783 = vmatpush1.bf16.msra.mxu0 %v3382_v35  ;;  %1661 = vmatprep.subr.bf16.mxu1 %v3383_v36  ;;  %v2773_v35 = vcombine.high %v4226_v32, %v4226_v32  ;;  %v4239_v36 = vld [vmem:[%s5056_s0 + $0x20] sm:$0xff] }
  0x25   :  { %1784 = vmatprep.subr.bf16.mxu0 %v3385_v37  ;;  %v3473_v37 = vld [vmem:[%s5057_s1 + $0x174] ss:$8 sps:$4 sm:$0xff]   ;;  %v3492_v53 = vld [vmem:[%s5057_s1 + $0x4a0] ss:$8 sps:$4 sm:$0xff]  }
  0x27   :  { %1662 = vmatpush1.bf16.msra.mxu1 %v3387_v38  ;;  %v2779_v38 = vcombine.high %v4239_v36, %v4239_v36 }
  0x28   :  { %1785 = vmatpush1.bf16.msra.mxu0 %v3388_v39  ;;  %1663 = vmatprep.subr.bf16.mxu1 %v3389_v40  ;;  %v3476_v39 = vld [vmem:[%s5057_s1 + $0x474] ss:$8 sps:$4 sm:$0xff]   ;;  %v3471_v40 = vld [vmem:[%s5057_s1 + $0x170] ss:$8 sps:$4 sm:$0xff]  }
  0x29   :  { %1786 = vmatprep.subr.bf16.mxu0 %v3391_v41  ;;  %v3474_v41 = vld [vmem:[%s5057_s1 + $0x470] ss:$8 sps:$4 sm:$0xff]  }
  0x2b   :  { %1664 = vmatpush1.bf16.msra.mxu1 %v3393_v42  ;;  %v3479_v42 = vld [vmem:[%s5057_s1 + $0x184] ss:$8 sps:$4 sm:$0xff]  }
  0x2c   :  { %1787 = vmatpush1.bf16.msra.mxu0 %v3394_v43  ;;  %1665 = vmatprep.subr.bf16.mxu1 %v3395_v44  ;;  %v3482_v43 = vld [vmem:[%s5057_s1 + $0x484] ss:$8 sps:$4 sm:$0xff]   ;;  %v3477_v44 = vld [vmem:[%s5057_s1 + $0x180] ss:$8 sps:$4 sm:$0xff]  }
  0x2d   :  { %1788 = vmatprep.subr.bf16.mxu0 %v3397_v45  ;;  %v3480_v45 = vld [vmem:[%s5057_s1 + $0x480] ss:$8 sps:$4 sm:$0xff]  }
  0x2f   :  { %1666 = vmatpush1.bf16.msra.mxu1 %v3399_v47  ;;  %v3488_v47 = vld [vmem:[%s5057_s1 + $0x494] ss:$8 sps:$4 sm:$0xff]  }
  0x30   :  { %1789 = vmatpush1.bf16.msra.mxu0 %v3400_v49  ;;  %1667 = vmatprep.subr.bf16.mxu1 %v3401_v51  ;;  %v3486_v49 = vld [vmem:[%s5057_s1 + $0x490] ss:$8 sps:$4 sm:$0xff]   ;;  %v3494_v51 = vld [vmem:[%s5057_s1 + $0x4a4] ss:$8 sps:$4 sm:$0xff]  }
  0x31   :  { %1790 = vmatprep.subr.bf16.mxu0 %v3403_v52  ;;  %v3489_v52 = vld [vmem:[%s5057_s1 + $0x1a0] ss:$8 sps:$4 sm:$0xff]  }
  0x33   :  { %1668 = vmatpush1.bf16.msra.mxu1 %v3405_v54  ;;  %v3497_v54 = vld [vmem:[%s5057_s1 + $0x1b4] ss:$8 sps:$4 sm:$0xff]  }
  0x34   :  { %1791 = vmatpush1.bf16.msra.mxu0 %v3406_v55  ;;  %1669 = vmatprep.subr.bf16.mxu1 %v3407_v56  ;;  %v3500_v55 = vld [vmem:[%s5057_s1 + $0x4b4] ss:$8 sps:$4 sm:$0xff]   ;;  %v3495_v56 = vld [vmem:[%s5057_s1 + $0x1b0] ss:$8 sps:$4 sm:$0xff]  }
  0x35   :  { %1792 = vmatprep.subr.bf16.mxu0 %v3409_v57  ;;  %v3498_v57 = vld [vmem:[%s5057_s1 + $0x4b0] ss:$8 sps:$4 sm:$0xff]  }
  0x37   :  { %1670 = vmatpush1.bf16.msra.mxu1 %v3411_v58  ;;  %v3503_v58 = vld [vmem:[%s5057_s1 + $0x1c4] ss:$8 sps:$4 sm:$0xff]  }
  0x38   :  { %1793 = vmatpush1.bf16.msra.mxu0 %v3412_v59  ;;  %1671 = vmatprep.subr.bf16.mxu1 %v3413_v60  ;;  %v3506_v59 = vld [vmem:[%s5057_s1 + $0x4c4] ss:$8 sps:$4 sm:$0xff]   ;;  %v3501_v60 = vld [vmem:[%s5057_s1 + $0x1c0] ss:$8 sps:$4 sm:$0xff]  }
  0x39   :  { %1794 = vmatprep.subr.bf16.mxu0 %v3415_v61  ;;  %v3504_v61 = vld [vmem:[%s5057_s1 + $0x4c0] ss:$8 sps:$4 sm:$0xff]  }
  0x3b   :  { %1672 = vmatpush1.bf16.msra.mxu1 %v3417_v62  ;;  %v3509_v62 = vld [vmem:[%s5057_s1 + $0x1d4] ss:$8 sps:$4 sm:$0xff]  }
  0x3c   :  { %1795 = vmatpush1.bf16.msra.mxu0 %v3418_v63  ;;  %1673 = vmatprep.subr.bf16.mxu1 %v3419_v0  ;;  %v3512_v63 = vld [vmem:[%s5057_s1 + $0x4d4] ss:$8 sps:$4 sm:$0xff]   ;;  %v3507_v0 = vld [vmem:[%s5057_s1 + $0x1d0] ss:$8 sps:$4 sm:$0xff]  }
  0x3d   :  { %1796 = vmatprep.subr.bf16.mxu0 %v3421_v1  ;;  %v3510_v1 = vld [vmem:[%s5057_s1 + $0x4d0] ss:$8 sps:$4 sm:$0xff]  }
  0x3f   :  { %1674 = vmatpush1.bf16.msra.mxu1 %v3423_v2  ;;  %v3515_v2 = vld [vmem:[%s5057_s1 + $0x1e4] ss:$8 sps:$4 sm:$0xff]  }
  0x40   :  { %1797 = vmatpush1.bf16.msra.mxu0 %v3424_v3  ;;  %1684 = vmatprep.subr.bf16.mxu1 %v3429_v4  ;;  %v3518_v3 = vld [vmem:[%s5057_s1 + $0x4e4] ss:$8 sps:$4 sm:$0xff]   ;;  %v3513_v4 = vld [vmem:[%s5057_s1 + $0x1e0] ss:$8 sps:$4 sm:$0xff]  }
  0x41   :  { %1807 = vmatprep.subr.bf16.mxu0 %v3434_v5  ;;  %v3516_v5 = vld [vmem:[%s5057_s1 + $0x4e0] ss:$8 sps:$4 sm:$0xff]  }
  0x42   :  { %1676 = vmatmul.mubr.bf16.vlgmr.msra.gmra.mrb[0].mxu1 %v2770_v6  ;;  %v3521_v6 = vld [vmem:[%s5057_s1 + $0x1f4] ss:$8 sps:$4 sm:$0xff]  }
  0x43   :  { %1799 = vmatmul.mubr.bf16.vlgmr.msra.gmra.mrb[0].mxu0 %v2776_v7  ;;  %1685 = vmatpush1.bf16.msra.mxu1 %v3427_v8  ;;  %v3524_v7 = vld [vmem:[%s5057_s1 + $0x4f4] ss:$8 sps:$4 sm:$0xff]   ;;  %v3519_v8 = vld [vmem:[%s5057_s1 + $0x1f0] ss:$8 sps:$4 sm:$0xff]  }
  0x44   :  { %1808 = vmatpush1.bf16.msra.mxu0 %v3432_v9  ;;  %1686 = vmatprep.subr.bf16.mxu1 %v3437_v10  ;;  %v3522_v9 = vld [vmem:[%s5057_s1 + $0x4f0] ss:$8 sps:$4 sm:$0xff]   ;;  %v3529_v10 = vld [vmem:[%s5057_s1 + $0x204] ss:$8 sps:$4 sm:$0xff]  }
  0x45   :  { %1809 = vmatprep.subr.bf16.mxu0 %v3440_v11  ;;  %1716 = vmatprep.mubr.bf16.mxu1 %v2773_v35  ;;  %v3534_v11 = vld [vmem:[%s5057_s1 + $0x504] ss:$8 sps:$4 sm:$0xff]   ;;  %v3556_v35 = vld [vmem:[%s5057_s1 + $0x540] ss:$8 sps:$4 sm:$0xff]  }
  0x46   :  { %1839 = vmatprep.mubr.bf16.mxu0 %v2779_v38  ;;  %v3559_v38 = vld [vmem:[%s5057_s1 + $0x250] ss:$8 sps:$4 sm:$0xff]  }
  0x47   :  { %1687 = vmatpush1.bf16.msra.mxu1 %v3435_v12  ;;  %v2772_v12 = vcombine.low %v4226_v32, %v4226_v32  ;;  %v3555_v32 = vld [vmem:[%s5057_s1 + $0x244] ss:$8 sps:$4 sm:$0xff]  }
  0x48   :  { %1810 = vmatpush1.bf16.msra.mxu0 %v3438_v13  ;;  %1688 = vmatprep.subr.bf16.mxu1 %v3443_v14  ;;  %v3527_v13 = vld [vmem:[%s5057_s1 + $0x200] ss:$8 sps:$4 sm:$0xff]   ;;  %v2778_v14 = vcombine.low %v4239_v36, %v4239_v36  ;;  %v3561_v36 = vld [vmem:[%s5057_s1 + $0x254] ss:$8 sps:$4 sm:$0xff]  }
  0x49   :  { %1811 = vmatprep.subr.bf16.mxu0 %v3446_v15  ;;  %v3532_v15 = vld [vmem:[%s5057_s1 + $0x500] ss:$8 sps:$4 sm:$0xff]  }
  0x4b   :  { %1689 = vmatpush1.bf16.msra.mxu1 %v3441_v16  ;;  %v3537_v16 = vld [vmem:[%s5057_s1 + $0x214] ss:$8 sps:$4 sm:$0xff]  }
  0x4c   :  { %1812 = vmatpush1.bf16.msra.mxu0 %v3444_v17  ;;  %1690 = vmatprep.subr.bf16.mxu1 %v3449_v18  ;;  %v3540_v17 = vld [vmem:[%s5057_s1 + $0x514] ss:$8 sps:$4 sm:$0xff]  }
  0x4d   :  { %1813 = vmatprep.subr.bf16.mxu0 %v3452_v19  ;;  %v4376_v18 = vld [vmem:[%s5056_s0 + $0x10] sm:$0xff]  ;;  %v4381_v19 = vld [vmem:[%s5056_s0 + $0x28] sm:$0xff] }
  0x4f   :  { %1691 = vmatpush1.bf16.msra.mxu1 %v3447_v20  ;;  %v2775_v20 = vcombine.high %v4376_v18, %v4376_v18 }
  0x50   :  { %1814 = vmatpush1.bf16.msra.mxu0 %v3450_v21  ;;  %1692 = vmatprep.subr.bf16.mxu1 %v3455_v22  ;;  %v2781_v21 = vcombine.high %v4381_v19, %v4381_v19  ;;  %v3535_v22 = vld [vmem:[%s5057_s1 + $0x210] ss:$8 sps:$4 sm:$0xff]  }
  0x51   :  { %1815 = vmatprep.subr.bf16.mxu0 %v3458_v23  ;;  %v3538_v23 = vld [vmem:[%s5057_s1 + $0x510] ss:$8 sps:$4 sm:$0xff]  }
  0x53   :  { %1693 = vmatpush1.bf16.msra.mxu1 %v3453_v24  ;;  %v3543_v24 = vld [vmem:[%s5057_s1 + $0x224] ss:$8 sps:$4 sm:$0xff]  }
  0x54   :  { %1816 = vmatpush1.bf16.msra.mxu0 %v3456_v25  ;;  %1694 = vmatprep.subr.bf16.mxu1 %v3461_v26  ;;  %v3546_v25 = vld [vmem:[%s5057_s1 + $0x524] ss:$8 sps:$4 sm:$0xff]   ;;  %v3541_v26 = vld [vmem:[%s5057_s1 + $0x220] ss:$8 sps:$4 sm:$0xff]  }
  0x55   :  { %1817 = vmatprep.subr.bf16.mxu0 %v3464_v27  ;;  %v3544_v27 = vld [vmem:[%s5057_s1 + $0x520] ss:$8 sps:$4 sm:$0xff]  }
  0x57   :  { %1695 = vmatpush1.bf16.msra.mxu1 %v3459_v28  ;;  %v3549_v28 = vld [vmem:[%s5057_s1 + $0x234] ss:$8 sps:$4 sm:$0xff]  }
  0x58   :  { %1818 = vmatpush1.bf16.msra.mxu0 %v3462_v29  ;;  %1696 = vmatprep.subr.bf16.mxu1 %v3467_v30  ;;  %v3552_v29 = vld [vmem:[%s5057_s1 + $0x534] ss:$8 sps:$4 sm:$0xff]   ;;  %v3547_v30 = vld [vmem:[%s5057_s1 + $0x230] ss:$8 sps:$4 sm:$0xff]  }
  0x59   :  { %1819 = vmatprep.subr.bf16.mxu0 %v3470_v31  ;;  %v3550_v31 = vld [vmem:[%s5057_s1 + $0x530] ss:$8 sps:$4 sm:$0xff]  }
  0x5b   :  { %1697 = vmatpush1.bf16.msra.mxu1 %v3465_v33  ;;  %v3558_v33 = vld [vmem:[%s5057_s1 + $0x544] ss:$8 sps:$4 sm:$0xff]  }
  0x5c   :  { %1820 = vmatpush1.bf16.msra.mxu0 %v3468_v34  ;;  %1698 = vmatprep.subr.bf16.mxu1 %v3473_v37  ;;  %v3553_v34 = vld [vmem:[%s5057_s1 + $0x240] ss:$8 sps:$4 sm:$0xff]   ;;  %v3564_v37 = vld [vmem:[%s5057_s1 + $0x554] ss:$8 sps:$4 sm:$0xff]  }
  0x5d   :  { %1821 = vmatprep.subr.bf16.mxu0 %v3476_v39  ;;  %v3562_v39 = vld [vmem:[%s5057_s1 + $0x550] ss:$8 sps:$4 sm:$0xff]  }
  0x5f   :  { %1699 = vmatpush1.bf16.msra.mxu1 %v3471_v40  ;;  %v3567_v40 = vld [vmem:[%s5057_s1 + $0x264] ss:$8 sps:$4 sm:$0xff]  }
  0x60   :  { %1822 = vmatpush1.bf16.msra.mxu0 %v3474_v41  ;;  %1700 = vmatprep.subr.bf16.mxu1 %v3479_v42  ;;  %v3570_v41 = vld [vmem:[%s5057_s1 + $0x564] ss:$8 sps:$4 sm:$0xff]   ;;  %v3565_v42 = vld [vmem:[%s5057_s1 + $0x260] ss:$8 sps:$4 sm:$0xff]  }
  0x61   :  { %1823 = vmatprep.subr.bf16.mxu0 %v3482_v43  ;;  %v3568_v43 = vld [vmem:[%s5057_s1 + $0x560] ss:$8 sps:$4 sm:$0xff]  }
  0x63   :  { %1701 = vmatpush1.bf16.msra.mxu1 %v3477_v44  ;;  %v3573_v44 = vld [vmem:[%s5057_s1 + $0x274] ss:$8 sps:$4 sm:$0xff]  }
  0x64   :  { %1824 = vmatpush1.bf16.msra.mxu0 %v3480_v45  ;;  %1702 = vmatprep.subr.bf16.mxu1 %v3485_v46  ;;  %v3576_v45 = vld [vmem:[%s5057_s1 + $0x574] ss:$8 sps:$4 sm:$0xff]   ;;  %v3571_v46 = vld [vmem:[%s5057_s1 + $0x270] ss:$8 sps:$4 sm:$0xff]  }
  0x65   :  { %1825 = vmatprep.subr.bf16.mxu0 %v3488_v47  ;;  %v3574_v47 = vld [vmem:[%s5057_s1 + $0x570] ss:$8 sps:$4 sm:$0xff]  }
  0x67   :  { %1703 = vmatpush1.bf16.msra.mxu1 %v3483_v48  ;;  %v3579_v48 = vld [vmem:[%s5057_s1 + $0x284] ss:$8 sps:$4 sm:$0xff]  }
  0x68   :  { %1826 = vmatpush1.bf16.msra.mxu0 %v3486_v49  ;;  %1704 = vmatprep.subr.bf16.mxu1 %v3491_v50  ;;  %v3582_v49 = vld [vmem:[%s5057_s1 + $0x584] ss:$8 sps:$4 sm:$0xff]   ;;  %v3577_v50 = vld [vmem:[%s5057_s1 + $0x280] ss:$8 sps:$4 sm:$0xff]  }
  0x69   :  { %1827 = vmatprep.subr.bf16.mxu0 %v3494_v51  ;;  %v3580_v51 = vld [vmem:[%s5057_s1 + $0x580] ss:$8 sps:$4 sm:$0xff]  }
  0x6b   :  { %1705 = vmatpush1.bf16.msra.mxu1 %v3489_v52  ;;  %v3585_v52 = vld [vmem:[%s5057_s1 + $0x294] ss:$8 sps:$4 sm:$0xff]  }
  0x6c   :  { %1828 = vmatpush1.bf16.msra.mxu0 %v3492_v53  ;;  %1706 = vmatprep.subr.bf16.mxu1 %v3497_v54  ;;  %v3588_v53 = vld [vmem:[%s5057_s1 + $0x594] ss:$8 sps:$4 sm:$0xff]   ;;  %v3583_v54 = vld [vmem:[%s5057_s1 + $0x290] ss:$8 sps:$4 sm:$0xff]  }
  0x6d   :  { %1829 = vmatprep.subr.bf16.mxu0 %v3500_v55  ;;  %v3586_v55 = vld [vmem:[%s5057_s1 + $0x590] ss:$8 sps:$4 sm:$0xff]  }
  0x6f   :  { %1707 = vmatpush1.bf16.msra.mxu1 %v3495_v56  ;;  %v3591_v56 = vld [vmem:[%s5057_s1 + $0x2a4] ss:$8 sps:$4 sm:$0xff]  }
  0x70   :  { %1830 = vmatpush1.bf16.msra.mxu0 %v3498_v57  ;;  %1708 = vmatprep.subr.bf16.mxu1 %v3503_v58  ;;  %v3594_v57 = vld [vmem:[%s5057_s1 + $0x5a4] ss:$8 sps:$4 sm:$0xff]   ;;  %v3589_v58 = vld [vmem:[%s5057_s1 + $0x2a0] ss:$8 sps:$4 sm:$0xff]  }
  0x71   :  { %1831 = vmatprep.subr.bf16.mxu0 %v3506_v59  ;;  %v3592_v59 = vld [vmem:[%s5057_s1 + $0x5a0] ss:$8 sps:$4 sm:$0xff]  }
  0x73   :  { %1709 = vmatpush1.bf16.msra.mxu1 %v3501_v60  ;;  %v3597_v60 = vld [vmem:[%s5057_s1 + $0x2b4] ss:$8 sps:$4 sm:$0xff]  }
  0x74   :  { %1832 = vmatpush1.bf16.msra.mxu0 %v3504_v61  ;;  %1710 = vmatprep.subr.bf16.mxu1 %v3509_v62  ;;  %v3600_v61 = vld [vmem:[%s5057_s1 + $0x5b4] ss:$8 sps:$4 sm:$0xff]   ;;  %v3595_v62 = vld [vmem:[%s5057_s1 + $0x2b0] ss:$8 sps:$4 sm:$0xff]  }
  0x75   :  { %1833 = vmatprep.subr.bf16.mxu0 %v3512_v63  ;;  %v3598_v63 = vld [vmem:[%s5057_s1 + $0x5b0] ss:$8 sps:$4 sm:$0xff]  }
  0x77   :  { %1711 = vmatpush1.bf16.msra.mxu1 %v3507_v0  ;;  %v3603_v0 = vld [vmem:[%s5057_s1 + $0x2c4] ss:$8 sps:$4 sm:$0xff]  }
  0x78   :  { %1834 = vmatpush1.bf16.msra.mxu0 %v3510_v1  ;;  %1712 = vmatprep.subr.bf16.mxu1 %v3515_v2  ;;  %v3606_v1 = vld [vmem:[%s5057_s1 + $0x5c4] ss:$8 sps:$4 sm:$0xff]   ;;  %v3601_v2 = vld [vmem:[%s5057_s1 + $0x2c0] ss:$8 sps:$4 sm:$0xff]  }
  0x79   :  { %1835 = vmatprep.subr.bf16.mxu0 %v3518_v3  ;;  %v3604_v3 = vld [vmem:[%s5057_s1 + $0x5c0] ss:$8 sps:$4 sm:$0xff]  }
  0x7b   :  { %1713 = vmatpush1.bf16.msra.mxu1 %v3513_v4  ;;  %v3609_v4 = vld [vmem:[%s5057_s1 + $0x2d4] ss:$8 sps:$4 sm:$0xff]  }
  0x7c   :  { %1836 = vmatpush1.bf16.msra.mxu0 %v3516_v5  ;;  %1714 = vmatprep.subr.bf16.mxu1 %v3521_v6  ;;  %v3612_v5 = vld [vmem:[%s5057_s1 + $0x5d4] ss:$8 sps:$4 sm:$0xff]   ;;  %v3607_v6 = vld [vmem:[%s5057_s1 + $0x2d0] ss:$8 sps:$4 sm:$0xff]  }
  0x7d   :  { %1837 = vmatprep.subr.bf16.mxu0 %v3524_v7  ;;  %v3610_v7 = vld [vmem:[%s5057_s1 + $0x5d0] ss:$8 sps:$4 sm:$0xff]  }
  0x7f   :  { %1715 = vmatpush1.bf16.msra.mxu1 %v3519_v8  ;;  %v3615_v8 = vld [vmem:[%s5057_s1 + $0x2e4] ss:$8 sps:$4 sm:$0xff]  }
  0x80   :  { %1838 = vmatpush1.bf16.msra.mxu0 %v3522_v9  ;;  %1725 = vmatprep.subr.bf16.mxu1 %v3529_v10  ;;  %v3618_v9 = vld [vmem:[%s5057_s1 + $0x5e4] ss:$8 sps:$4 sm:$0xff]   ;;  %v3613_v10 = vld [vmem:[%s5057_s1 + $0x2e0] ss:$8 sps:$4 sm:$0xff]  }
  0x81   :  { %1848 = vmatprep.subr.bf16.mxu0 %v3534_v11  ;;  %v3616_v11 = vld [vmem:[%s5057_s1 + $0x5e0] ss:$8 sps:$4 sm:$0xff]  }
  0x82   :  { %1717 = vmatmul.mubr.bf16.vlgmr.msra.gmra.mrb[0].mxu1 %v2772_v12  ;;  %v3621_v12 = vld [vmem:[%s5057_s1 + $0x2f4] ss:$8 sps:$4 sm:$0xff]  }
  0x83   :  { %1840 = vmatmul.mubr.bf16.vlgmr.msra.gmra.mrb[0].mxu0 %v2778_v14  ;;  %1726 = vmatpush1.bf16.msra.mxu1 %v3527_v13  ;;  %v3624_v13 = vld [vmem:[%s5057_s1 + $0x5f4] ss:$8 sps:$4 sm:$0xff]   ;;  %v3619_v14 = vld [vmem:[%s5057_s1 + $0x2f0] ss:$8 sps:$4 sm:$0xff]  }
  0x84   :  { %1849 = vmatpush1.bf16.msra.mxu0 %v3532_v15  ;;  %1727 = vmatprep.subr.bf16.mxu1 %v3537_v16  ;;  %v3622_v15 = vld [vmem:[%s5057_s1 + $0x5f0] ss:$8 sps:$4 sm:$0xff]   ;;  %v3631_v16 = vld [vmem:[%s5057_s1 + $0x604] ss:$8 sps:$4 sm:$0xff]  }
  0x85   :  { %1850 = vmatprep.subr.bf16.mxu0 %v3540_v17  ;;  %1757 = vmatprep.mubr.bf16.mxu1 %v2775_v20  ;;  %v4567_v17 = vld [vmem:[%s5056_s0 + $0x30] sm:$0xff]  ;;  %v3629_v20 = vld [vmem:[%s5057_s1 + $0x600] ss:$8 sps:$4 sm:$0xff]  }
  0x86   :  { %1880 = vmatprep.mubr.bf16.mxu0 %v2781_v21  ;;  %v2774_v21 = vcombine.low %v4376_v18, %v4376_v18  ;;  %v3637_v18 = vld [vmem:[%s5057_s1 + $0x624] ss:$8 sps:$4 sm:$0xff]  }
  0x87   :  { %1728 = vmatpush1.bf16.msra.mxu1 %v3535_v22  ;;  %v2780_v22 = vcombine.low %v4381_v19, %v4381_v19  ;;  %v3635_v19 = vld [vmem:[%s5057_s1 + $0x620] ss:$8 sps:$4 sm:$0xff]  }
  0x88   :  { %1851 = vmatpush1.bf16.msra.mxu0 %v3538_v23  ;;  %1729 = vmatprep.subr.bf16.mxu1 %v3543_v24  ;;  %v3634_v23 = vld [vmem:[%s5057_s1 + $0x614] ss:$8 sps:$4 sm:$0xff]   ;;  %v2783_v24 = vcombine.high %v4567_v17, %v4567_v17 }
  0x89   :  { %1852 = vmatprep.subr.bf16.mxu0 %v3546_v25  ;;  %v3632_v25 = vld [vmem:[%s5057_s1 + $0x610] ss:$8 sps:$4 sm:$0xff]  }
  0x8b   :  { %1730 = vmatpush1.bf16.msra.mxu1 %v3541_v26  ;;  %v3640_v26 = vld [vmem:[%s5057_s1 + $0x634] ss:$8 sps:$4 sm:$0xff]  }
  0x8c   :  { %1853 = vmatpush1.bf16.msra.mxu0 %v3544_v27  ;;  %1731 = vmatprep.subr.bf16.mxu1 %v3549_v28  ;;  %v3638_v27 = vld [vmem:[%s5057_s1 + $0x630] ss:$8 sps:$4 sm:$0xff]   ;;  %v3643_v28 = vld [vmem:[%s5057_s1 + $0x644] ss:$8 sps:$4 sm:$0xff]  }
  0x8d   :  { %1854 = vmatprep.subr.bf16.mxu0 %v3552_v29  ;;  %v3641_v29 = vld [vmem:[%s5057_s1 + $0x640] ss:$8 sps:$4 sm:$0xff]  }
  0x8f   :  { %1732 = vmatpush1.bf16.msra.mxu1 %v3547_v30  ;;  %v3646_v30 = vld [vmem:[%s5057_s1 + $0x654] ss:$8 sps:$4 sm:$0xff]  }
  0x90   :  { %1855 = vmatpush1.bf16.msra.mxu0 %v3550_v31  ;;  %1733 = vmatprep.subr.bf16.mxu1 %v3555_v32  ;;  %v3644_v31 = vld [vmem:[%s5057_s1 + $0x650] ss:$8 sps:$4 sm:$0xff]   ;;  %v3649_v32 = vld [vmem:[%s5057_s1 + $0x664] ss:$8 sps:$4 sm:$0xff]  }
  0x91   :  { %1856 = vmatprep.subr.bf16.mxu0 %v3558_v33  ;;  %v3647_v33 = vld [vmem:[%s5057_s1 + $0x660] ss:$8 sps:$4 sm:$0xff]  }
  0x93   :  { %1734 = vmatpush1.bf16.msra.mxu1 %v3553_v34  ;;  %v3652_v34 = vld [vmem:[%s5057_s1 + $0x674] ss:$8 sps:$4 sm:$0xff]  }
  0x94   :  { %1857 = vmatpush1.bf16.msra.mxu0 %v3556_v35  ;;  %1735 = vmatprep.subr.bf16.mxu1 %v3561_v36 }
  0x95   :  { %1858 = vmatprep.subr.bf16.mxu0 %v3564_v37 }
  0x97   :  { %1736 = vmatpush1.bf16.msra.mxu1 %v3559_v38 }
  0x98   :  { %1859 = vmatpush1.bf16.msra.mxu0 %v3562_v39  ;;  %1737 = vmatprep.subr.bf16.mxu1 %v3567_v40 }
  0x99   :  { %1860 = vmatprep.subr.bf16.mxu0 %v3570_v41 }
  0x9b   :  { %1738 = vmatpush1.bf16.msra.mxu1 %v3565_v42 }
  0x9c   :  { %1861 = vmatpush1.bf16.msra.mxu0 %v3568_v43  ;;  %1739 = vmatprep.subr.bf16.mxu1 %v3573_v44 }
  0x9d   :  { %1862 = vmatprep.subr.bf16.mxu0 %v3576_v45 }
  0x9f   :  { %1740 = vmatpush1.bf16.msra.mxu1 %v3571_v46 }
  0xa0   :  { %1863 = vmatpush1.bf16.msra.mxu0 %v3574_v47  ;;  %1741 = vmatprep.subr.bf16.mxu1 %v3579_v48 }
  0xa1   :  { %1864 = vmatprep.subr.bf16.mxu0 %v3582_v49 }
  0xa3   :  { %1742 = vmatpush1.bf16.msra.mxu1 %v3577_v50 }
  0xa4   :  { %1865 = vmatpush1.bf16.msra.mxu0 %v3580_v51  ;;  %1743 = vmatprep.subr.bf16.mxu1 %v3585_v52 }
  0xa5   :  { %1866 = vmatprep.subr.bf16.mxu0 %v3588_v53 }
  0xa7   :  { %1744 = vmatpush1.bf16.msra.mxu1 %v3583_v54 }
  0xa8   :  { %1867 = vmatpush1.bf16.msra.mxu0 %v3586_v55  ;;  %1745 = vmatprep.subr.bf16.mxu1 %v3591_v56 }
  0xa9   :  { %1868 = vmatprep.subr.bf16.mxu0 %v3594_v57 }
  0xab   :  { %1746 = vmatpush1.bf16.msra.mxu1 %v3589_v58 }
  0xac   :  { %1869 = vmatpush1.bf16.msra.mxu0 %v3592_v59  ;;  %1747 = vmatprep.subr.bf16.mxu1 %v3597_v60 }
  0xad   :  { %1870 = vmatprep.subr.bf16.mxu0 %v3600_v61 }
  0xaf   :  { %1748 = vmatpush1.bf16.msra.mxu1 %v3595_v62 }
  0xb0   :  { %1871 = vmatpush1.bf16.msra.mxu0 %v3598_v63  ;;  %1749 = vmatprep.subr.bf16.mxu1 %v3603_v0 }
  0xb1   :  { %1872 = vmatprep.subr.bf16.mxu0 %v3606_v1 }
  0xb3   :  { %1750 = vmatpush1.bf16.msra.mxu1 %v3601_v2 }
  0xb4   :  { %1873 = vmatpush1.bf16.msra.mxu0 %v3604_v3  ;;  %1751 = vmatprep.subr.bf16.mxu1 %v3609_v4 }
  0xb5   :  { %1874 = vmatprep.subr.bf16.mxu0 %v3612_v5 }
  0xb7   :  { %1752 = vmatpush1.bf16.msra.mxu1 %v3607_v6 }
  0xb8   :  { %1875 = vmatpush1.bf16.msra.mxu0 %v3610_v7  ;;  %1753 = vmatprep.subr.bf16.mxu1 %v3615_v8 }
  0xb9   :  { %1876 = vmatprep.subr.bf16.mxu0 %v3618_v9 }
  0xbb   :  { %1754 = vmatpush1.bf16.msra.mxu1 %v3613_v10 }
  0xbc   :  { %1877 = vmatpush1.bf16.msra.mxu0 %v3616_v11  ;;  %1755 = vmatprep.subr.bf16.mxu1 %v3621_v12 }
  0xbd   :  { %1878 = vmatprep.subr.bf16.mxu0 %v3624_v13 }
  0xbf   :  { %1756 = vmatpush1.bf16.msra.mxu1 %v3619_v14 }
  0xc0   :  { %1879 = vmatpush1.bf16.msra.mxu0 %v3622_v15 }
  0xc1   :  { %1889 = vmatprep.subr.bf16.mxu0 %v3631_v16 }
  0xc2   :  { %1758 = vmatmul.mubr.bf16.vlgmr.msra.gmra.mrb[0].mxu1 %v2774_v21 }
  0xc3   :  { %1881 = vmatmul.mubr.bf16.vlgmr.msra.gmra.mrb[0].mxu0 %v2780_v22 }
  0xc4   :  { %1890 = vmatpush1.bf16.msra.mxu0 %v3629_v20  ;;  %1921 = vmatprep.mubr.bf16.mxu0 %v2783_v24 }
  0xc5   :  { %1891 = vmatprep.subr.bf16.mxu0 %v3634_v23 }
  0xc8   :  { %1892 = vmatpush1.bf16.msra.mxu0 %v3632_v25 }
  0xc9   :  { %1893 = vmatprep.subr.bf16.mxu0 %v3637_v18 }
  0xcc   :  { %1894 = vmatpush1.bf16.msra.mxu0 %v3635_v19 }
  0xcd   :  { %1895 = vmatprep.subr.bf16.mxu0 %v3640_v26 }
  0xd0   :  { %1896 = vmatpush1.bf16.msra.mxu0 %v3638_v27 }
  0xd1   :  { %1897 = vmatprep.subr.bf16.mxu0 %v3643_v28 }
  0xd4   :  { %1898 = vmatpush1.bf16.msra.mxu0 %v3641_v29 }
  0xd5   :  { %1899 = vmatprep.subr.bf16.mxu0 %v3646_v30 }
  0xd8   :  { %1900 = vmatpush1.bf16.msra.mxu0 %v3644_v31 }
  0xd9   :  { %1901 = vmatprep.subr.bf16.mxu0 %v3649_v32 }
  0xda   :  { %17 = vsyncpa [#allocation8], 0  ;;  %v3650_v35 = vld [vmem:[%s5057_s1 + $0x670] ss:$8 sps:$4 sm:$0xff]   ;;  %v3655_v36 = vld [vmem:[%s5057_s1 + $0x684] ss:$8 sps:$4 sm:$0xff]   ;;  %v2782_v54 = vcombine.low %v4567_v17, %v4567_v17 }
  0xdb   :  { %v3653_v37 = vld [vmem:[%s5057_s1 + $0x680] ss:$8 sps:$4 sm:$0xff]   ;;  %v3658_v38 = vld [vmem:[%s5057_s1 + $0x694] ss:$8 sps:$4 sm:$0xff]   ;;  %v3656_v39 = vld [vmem:[%s5057_s1 + $0x690] ss:$8 sps:$4 sm:$0xff]  }
  0xdc   :  { %1902 = vmatpush1.bf16.msra.mxu0 %v3647_v33  ;;  %v3661_v40 = vld [vmem:[%s5057_s1 + $0x6a4] ss:$8 sps:$4 sm:$0xff]   ;;  %v3659_v41 = vld [vmem:[%s5057_s1 + $0x6a0] ss:$8 sps:$4 sm:$0xff]   ;;  %v3664_v42 = vld [vmem:[%s5057_s1 + $0x6b4] ss:$8 sps:$4 sm:$0xff]  }
  0xdd   :  { %1903 = vmatprep.subr.bf16.mxu0 %v3652_v34  ;;  %v3662_v43 = vld [vmem:[%s5057_s1 + $0x6b0] ss:$8 sps:$4 sm:$0xff]   ;;  %v3667_v44 = vld [vmem:[%s5057_s1 + $0x6c4] ss:$8 sps:$4 sm:$0xff]   ;;  %v3665_v45 = vld [vmem:[%s5057_s1 + $0x6c0] ss:$8 sps:$4 sm:$0xff]  }
  0xde   :  { %v3670_v46 = vld [vmem:[%s5057_s1 + $0x6d4] ss:$8 sps:$4 sm:$0xff]   ;;  %v3668_v47 = vld [vmem:[%s5057_s1 + $0x6d0] ss:$8 sps:$4 sm:$0xff]   ;;  %v3673_v48 = vld [vmem:[%s5057_s1 + $0x6e4] ss:$8 sps:$4 sm:$0xff]  }
  0xdf   :  { %v3671_v49 = vld [vmem:[%s5057_s1 + $0x6e0] ss:$8 sps:$4 sm:$0xff]   ;;  %v3676_v50 = vld [vmem:[%s5057_s1 + $0x6f4] ss:$8 sps:$4 sm:$0xff]   ;;  %v3674_v51 = vld [vmem:[%s5057_s1 + $0x6f0] ss:$8 sps:$4 sm:$0xff]  }
  0xe0   :  { %1904 = vmatpush1.bf16.msra.mxu0 %v3650_v35  ;;  %v3681_v52 = vld [vmem:[%s5057_s1 + $0x704] ss:$8 sps:$4 sm:$0xff]   ;;  %v4674_v53 = vld [vmem:[%s5056_s0 + $0x38] sm:$0xff]  ;;  %v3679_v55 = vld [vmem:[%s5057_s1 + $0x700] ss:$8 sps:$4 sm:$0xff]   ;;  %vm2677_vm0 = vcmask 9216  }
  0xe1   :  { %1905 = vmatprep.subr.bf16.mxu0 %v3655_v36  ;;  %v2785_v56 = vcombine.high %v4674_v53, %v4674_v53  ;;  %v3684_v57 = vld [vmem:[%s5057_s1 + $0x714] ss:$8 sps:$4 sm:$0xff]   ;;  %v3682_v58 = vld [vmem:[%s5057_s1 + $0x710] ss:$8 sps:$4 sm:$0xff]   ;;  %v3687_v59 = vld [vmem:[%s5057_s1 + $0x724] ss:$8 sps:$4 sm:$0xff]   ;;  %v2784_v35 = vcombine.low %v4674_v53, %v4674_v53 }
  0xe2   :  { %v3685_v60 = vld [vmem:[%s5057_s1 + $0x720] ss:$8 sps:$4 sm:$0xff]   ;;  %v3690_v61 = vld [vmem:[%s5057_s1 + $0x734] ss:$8 sps:$4 sm:$0xff]   ;;  %v3688_v62 = vld [vmem:[%s5057_s1 + $0x730] ss:$8 sps:$4 sm:$0xff]  }
  0xe3   :  { %v3693_v63 = vld [vmem:[%s5057_s1 + $0x744] ss:$8 sps:$4 sm:$0xff]   ;;  %v3691_v0 = vld [vmem:[%s5057_s1 + $0x740] ss:$8 sps:$4 sm:$0xff]   ;;  %v3696_v1 = vld [vmem:[%s5057_s1 + $0x754] ss:$8 sps:$4 sm:$0xff]  }
  0xe4   :  { %1906 = vmatpush1.bf16.msra.mxu0 %v3653_v37  ;;  %v3694_v2 = vld [vmem:[%s5057_s1 + $0x750] ss:$8 sps:$4 sm:$0xff]   ;;  %v3699_v3 = vld [vmem:[%s5057_s1 + $0x764] ss:$8 sps:$4 sm:$0xff]   ;;  %v3697_v4 = vld [vmem:[%s5057_s1 + $0x760] ss:$8 sps:$4 sm:$0xff]  }
  0xe5   :  { %1907 = vmatprep.subr.bf16.mxu0 %v3658_v38  ;;  %v3702_v5 = vld [vmem:[%s5057_s1 + $0x774] ss:$8 sps:$4 sm:$0xff]   ;;  %v3729_v6 = vld [vmem:[%s5059_s3 + $0x40] sm:$0xff]   ;;  %v3731_v8 = vld [vmem:[%s5059_s3 + $0x48] sm:$0xff]   ;;  %vm2698_vm1 = vcmask 58368   ;;  %s3894_s24 = smov [#allocation4]  }
  0xe6   :  { %v3730_v7 = vld [vmem:[%s5059_s3] sm:$0xff]   ;;  %3203 = vmatprep.subr.bf16.mxu1 %v3729_v6  ;;  %v3700_v9 = vld [vmem:[%s5057_s1 + $0x770] ss:$8 sps:$4 sm:$0xff]   ;;  %v3732_v10 = vld [vmem:[%s5059_s3 + $0x8] sm:$0xff]   ;;  %s2731_s25 = sshll.u32 %s3894_s24, 4  ;;  %s2732_s25 = int_to_ptr.vmem [resolvable:$true] %s2731_s25 }
  0xe7   :  { %3204 = vmatpush3.bf16.msra.mxu1 %v3730_v7  ;;  %v3705_v11 = vld [vmem:[%s5057_s1 + $0x784] ss:$8 sps:$4 sm:$0xff]   ;;  %v3733_v12 = vld [vmem:[%s5059_s3 + $0x50] sm:$0xff]   ;;  %v3703_v13 = vld [vmem:[%s5057_s1 + $0x780] ss:$8 sps:$4 sm:$0xff]  }
  0xe8   :  { %1908 = vmatpush1.bf16.msra.mxu0 %v3656_v39  ;;  %3205 = vmatprep.subr.bf16.mxu1 %v3731_v8  ;;  %v3734_v14 = vld [vmem:[%s5059_s3 + $0x10] sm:$0xff]   ;;  %v3735_v16 = vld [vmem:[%s5059_s3 + $0x58] sm:$0xff]   ;;  %v3711_v21 = vld [vmem:[%s5057_s1 + $0x7a4] ss:$8 sps:$4 sm:$0xff]  }
  0xe9   :  { %1909 = vmatprep.subr.bf16.mxu0 %v3661_v40  ;;  %v3708_v15 = vld [vmem:[%s5057_s1 + $0x794] ss:$8 sps:$4 sm:$0xff]   ;;  %v3706_v17 = vld [vmem:[%s5057_s1 + $0x790] ss:$8 sps:$4 sm:$0xff]   ;;  %v3737_v22 = vld [vmem:[%s5059_s3 + $0x60] sm:$0xff]  }
  0xea   :  { %v3736_v20 = vld [vmem:[%s5059_s3 + $0x18] sm:$0xff]   ;;  %v3709_v23 = vld [vmem:[%s5057_s1 + $0x7a0] ss:$8 sps:$4 sm:$0xff]   ;;  %v3717_v27 = vld [vmem:[%s5057_s1 + $0x7c4] ss:$8 sps:$4 sm:$0xff]  }
  0xeb   :  { %3206 = vmatpush3.bf16.msra.mxu1 %v3732_v10  ;;  %v3738_v24 = vld [vmem:[%s5059_s3 + $0x20] sm:$0xff]   ;;  %v3714_v25 = vld [vmem:[%s5057_s1 + $0x7b4] ss:$8 sps:$4 sm:$0xff]   ;;  %v3739_v18 = vld [vmem:[%s5059_s3 + $0x68] sm:$0xff]  }
  0xec   :  { %1910 = vmatpush1.bf16.msra.mxu0 %v3659_v41  ;;  %3207 = vmatprep.subr.bf16.mxu1 %v3733_v12  ;;  %v3712_v19 = vld [vmem:[%s5057_s1 + $0x7b0] ss:$8 sps:$4 sm:$0xff]   ;;  %v3740_v26 = vld [vmem:[%s5059_s3 + $0x28] sm:$0xff]   ;;  %v3720_v29 = vld [vmem:[%s5057_s1 + $0x7d4] ss:$8 sps:$4 sm:$0xff]  }
  0xed   :  { %1911 = vmatprep.subr.bf16.mxu0 %v3664_v42  ;;  %v3715_v28 = vld [vmem:[%s5057_s1 + $0x7c0] ss:$8 sps:$4 sm:$0xff]   ;;  %v3718_v30 = vld [vmem:[%s5057_s1 + $0x7d0] ss:$8 sps:$4 sm:$0xff]   ;;  %v3723_v31 = vld [vmem:[%s5057_s1 + $0x7e4] ss:$8 sps:$4 sm:$0xff]  }
  0xee   :  { %v3721_v32 = vld [vmem:[%s5057_s1 + $0x7e0] ss:$8 sps:$4 sm:$0xff]   ;;  %v3726_v33 = vld [vmem:[%s5057_s1 + $0x7f4] ss:$8 sps:$4 sm:$0xff]   ;;  %v3724_v34 = vld [vmem:[%s5057_s1 + $0x7f0] ss:$8 sps:$4 sm:$0xff]  }
  0xef   :  { %3208 = vmatpush3.bf16.msra.mxu1 %v3734_v14  ;;  %v3741_v36 = vld [vmem:[%s5059_s3 + $0x70] sm:$0xff]   ;;  %v3743_v41 = vld [vmem:[%s5059_s3 + $0x78] sm:$0xff]   ;;  %v3753_v8 = vld [vmem:[%s5059_s3 + $0xe0] sm:$0xff]  }
  0xf0   :  { %1912 = vmatpush1.bf16.msra.mxu0 %v3662_v43  ;;  %3209 = vmatprep.subr.bf16.mxu1 %v3735_v16  ;;  %v3742_v37 = vld [vmem:[%s5059_s3 + $0x30] sm:$0xff]   ;;  %v3744_v43 = vld [vmem:[%s5059_s3 + $0x38] sm:$0xff]   ;;  %v3755_v10 = vld [vmem:[%s5059_s3 + $0xe8] sm:$0xff]  }
  0xf1   :  { %1913 = vmatprep.subr.bf16.mxu0 %v3667_v44  ;;  %v3745_v44 = vld [vmem:[%s5059_s3 + $0xc0] sm:$0xff]   ;;  %v3751_v6 = vld [vmem:[%s5059_s3 + $0xd8] sm:$0xff]   ;;  %v3757_v12 = vld [vmem:[%s5059_s3 + $0xf0] sm:$0xff]  }
  0xf2   :  { %v3752_v7 = vld [vmem:[%s5059_s3 + $0x98] sm:$0xff]   ;;  %v3761_v16 = vld [vmem:[%s5059_s3 + $0x140] sm:$0xff]  }
  0xf3   :  { %3210 = vmatpush3.bf16.msra.mxu1 %v3736_v20  ;;  %v3759_v14 = vld [vmem:[%s5059_s3 + $0xf8] sm:$0xff]  }
  0xf4   :  { %1914 = vmatpush1.bf16.msra.mxu0 %v3665_v45  ;;  %3211 = vmatprep.subr.bf16.mxu1 %v3737_v22  ;;  %v297_v45 = vlaneseq }
  0xf5   :  { %1915 = vmatprep.subr.bf16.mxu0 %v3670_v46 }
  0xf6   :  { %v298_v46 = vshrl.u32 %v297_v45, 7  ;;  %v3786_v45 = vld [vmem:[%s5059_s3 + $0x1a0] sm:$0xff]  }
  0xf7   :  { %3212 = vmatpush3.bf16.msra.mxu1 %v3738_v24  ;;  %v3765_v24 = vld [vmem:[%s5059_s3 + $0x150] sm:$0xff]  }
  0xf8   :  { %1916 = vmatpush1.bf16.msra.mxu0 %v3668_v47  ;;  %3213 = vmatprep.subr.bf16.mxu1 %v3739_v18  ;;  %v299_v47 = vsub.s32 0, %v298_v46  ;;  %v3767_v18 = vld [vmem:[%s5059_s3 + $0x158] sm:$0xff]  }
  0xf9   :  { %1917 = vmatprep.subr.bf16.mxu0 %v3673_v48  ;;  %v295_v48 = vld [vmem:[%s5058_s2] sm:$0x3]  ;;  %s3893_s2 = smov [#allocation7]  }
  0xfa   :  { %s2751_s23 = sshll.u32 %s3893_s2, 4  ;;  %s2752_s23 = int_to_ptr.vmem [resolvable:$true] %s2751_s23 }
  0xfb   :  { %3214 = vmatpush3.bf16.msra.mxu1 %v3740_v26  ;;  %v3769_v26 = vld [vmem:[%s5059_s3 + $0x160] sm:$0xff]   ;;  %s3797_s26 = scalar_lea.vmem %s2752_s23, 32  ;;  %p3802_p1 = scmp.lt.s32.totalorder %s2752_s23, %s2752_s23 }
  0xfc   :  { %1918 = vmatpush1.bf16.msra.mxu0 %v3671_v49  ;;  %3215 = vmatprep.subr.bf16.mxu1 %v3741_v36  ;;  %v303_v49 = vsub.s32 1, %v298_v46  ;;  %v3787_v46 = vld [vmem:[%s5059_s3 + $0x1e8] sm:$0xff]   ;;  %p3798_p0 = scmp.ne.s32.totalorder %s2752_s23, %s3797_s26  ;;  %p3803_p2 = scmp.lt.s32.totalorder %s3797_s26, %s3797_s26 }
  0xfd   :  { %1919 = vmatprep.subr.bf16.mxu0 %v3676_v50  ;;  %v300_v50 = vrot.slane %v295_v48, %v299_v47  ;;  %v3788_v47 = vld [vmem:[%s5059_s3 + $0x1a8] sm:$0xff]  }
  0xfe   :  { %p3804_p3 = por %p3803_p2, %p3802_p1 }
  0xff   :  { %3216 = vmatpush3.bf16.msra.mxu1 %v3742_v37  ;;  %v3779_v37 = vld [vmem:[%s5059_s3 + $0x1c8] sm:$0xff]  }
 0x100   :  { %1920 = vmatpush1.bf16.msra.mxu0 %v3674_v51  ;;  %3217 = vmatprep.subr.bf16.mxu1 %v3743_v41  ;;  %v304_v51 = vrot.slane %v295_v48, %v303_v49  ;;  %v3782_v41 = vld [vmem:[%s5059_s3 + $0x190] sm:$0xff]   ;;  %p3805_p4 = pnand %p3804_p3, %p3798_p0 }
 0x101   :  { %1930 = vmatprep.subr.bf16.mxu0 %v3681_v52  ;;  %v3789_v48 = vld [vmem:[%s5059_s3 + $0x1f0] sm:$0xff]  }
 0x102   :  { %v3790_v49 = vld [vmem:[%s5059_s3 + $0x1b0] sm:$0xff]  }
 0x103   :  { %1922 = vmatmul.mubr.bf16.vlgmr.msra.gmra.mrb[0].mxu0 %v2782_v54  ;;  %3218 = vmatpush3.bf16.msra.mxu1 %v3744_v43  ;;  %v3784_v43 = vld [vmem:[%s5059_s3 + $0x198] sm:$0xff]  }
 0x104   :  { %1931 = vmatpush1.bf16.msra.mxu0 %v3679_v55  ;;  %1962 = vmatprep.mubr.bf16.mxu0 %v2785_v56 }
 0x105   :  { %1932 = vmatprep.subr.bf16.mxu0 %v3684_v57  ;;  %3225 = vmatprep.subr.bf16.mxu1 %v3745_v44  ;;  %v3785_v44 = vld [vmem:[%s5059_s3 + $0x1e0] sm:$0xff]  }
 0x108   :  { %1933 = vmatpush1.bf16.msra.mxu0 %v3682_v58 }
 0x109   :  { %1934 = vmatprep.subr.bf16.mxu0 %v3687_v59 }
 0x10c   :  { %1935 = vmatpush1.bf16.msra.mxu0 %v3685_v60 }
 0x10d   :  { %1936 = vmatprep.subr.bf16.mxu0 %v3690_v61 }
 0x110   :  { %1937 = vmatpush1.bf16.msra.mxu0 %v3688_v62 }
 0x111   :  { %1938 = vmatprep.subr.bf16.mxu0 %v3693_v63  ;;  %v3746_v63 = vld [vmem:[%s5059_s3 + $0x80] sm:$0xff]  }
 0x114   :  { %1939 = vmatpush1.bf16.msra.mxu0 %v3691_v0 }
 0x115   :  { %1940 = vmatprep.subr.bf16.mxu0 %v3696_v1  ;;  %v3747_v1 = vld [vmem:[%s5059_s3 + $0xc8] sm:$0xff]  }
 0x118   :  { %1941 = vmatpush1.bf16.msra.mxu0 %v3694_v2 }
 0x119   :  { %1942 = vmatprep.subr.bf16.mxu0 %v3699_v3  ;;  %v3748_v3 = vld [vmem:[%s5059_s3 + $0x88] sm:$0xff]  }
 0x11c   :  { %1943 = vmatpush1.bf16.msra.mxu0 %v3697_v4  ;;  %v3749_v4 = vld [vmem:[%s5059_s3 + $0xd0] sm:$0xff]  }
 0x11d   :  { %1944 = vmatprep.subr.bf16.mxu0 %v3702_v5  ;;  %v3750_v5 = vld [vmem:[%s5059_s3 + $0x90] sm:$0xff]  }
 0x120   :  { %1945 = vmatpush1.bf16.msra.mxu0 %v3700_v9  ;;  %v3754_v9 = vld [vmem:[%s5059_s3 + $0xa0] sm:$0xff]  }
 0x121   :  { %1946 = vmatprep.subr.bf16.mxu0 %v3705_v11  ;;  %v3756_v11 = vld [vmem:[%s5059_s3 + $0xa8] sm:$0xff]  }
 0x124   :  { %1947 = vmatpush1.bf16.msra.mxu0 %v3703_v13  ;;  %v3758_v13 = vld [vmem:[%s5059_s3 + $0xb0] sm:$0xff]  }
 0x125   :  { %1948 = vmatprep.subr.bf16.mxu0 %v3708_v15  ;;  %v3760_v15 = vld [vmem:[%s5059_s3 + $0xb8] sm:$0xff]  }
 0x128   :  { %1949 = vmatpush1.bf16.msra.mxu0 %v3706_v17  ;;  %v3762_v17 = vld [vmem:[%s5059_s3 + $0x100] sm:$0xff]  }
 0x129   :  { %1950 = vmatprep.subr.bf16.mxu0 %v3711_v21  ;;  %v3763_v21 = vld [vmem:[%s5059_s3 + $0x148] sm:$0xff]  }
 0x12c   :  { %1951 = vmatpush1.bf16.msra.mxu0 %v3709_v23  ;;  %v3764_v23 = vld [vmem:[%s5059_s3 + $0x108] sm:$0xff]  }
 0x12d   :  { %1952 = vmatprep.subr.bf16.mxu0 %v3714_v25  ;;  %v3766_v25 = vld [vmem:[%s5059_s3 + $0x110] sm:$0xff]  }
 0x130   :  { %1953 = vmatpush1.bf16.msra.mxu0 %v3712_v19  ;;  %v3768_v19 = vld [vmem:[%s5059_s3 + $0x118] sm:$0xff]  }
 0x131   :  { %1954 = vmatprep.subr.bf16.mxu0 %v3717_v27  ;;  %v3770_v27 = vld [vmem:[%s5059_s3 + $0x120] sm:$0xff]  }
 0x134   :  { %1955 = vmatpush1.bf16.msra.mxu0 %v3715_v28  ;;  %v3771_v28 = vld [vmem:[%s5059_s3 + $0x168] sm:$0xff]  }
 0x135   :  { %1956 = vmatprep.subr.bf16.mxu0 %v3720_v29  ;;  %v3772_v29 = vld [vmem:[%s5059_s3 + $0x128] sm:$0xff]  }
 0x138   :  { %1957 = vmatpush1.bf16.msra.mxu0 %v3718_v30  ;;  %v3773_v30 = vld [vmem:[%s5059_s3 + $0x170] sm:$0xff]  }
 0x139   :  { %1958 = vmatprep.subr.bf16.mxu0 %v3723_v31  ;;  %v3774_v31 = vld [vmem:[%s5059_s3 + $0x130] sm:$0xff]  }
 0x13c   :  { %1959 = vmatpush1.bf16.msra.mxu0 %v3721_v32  ;;  %v3775_v32 = vld [vmem:[%s5059_s3 + $0x178] sm:$0xff]  }
 0x13d   :  { %1960 = vmatprep.subr.bf16.mxu0 %v3726_v33  ;;  %v3776_v33 = vld [vmem:[%s5059_s3 + $0x138] sm:$0xff]  }
 0x140   :  { %1961 = vmatpush1.bf16.msra.mxu0 %v3724_v34  ;;  %v3777_v34 = vld [vmem:[%s5059_s3 + $0x1c0] sm:$0xff]  }
 0x143   :  { %1963 = vmatmul.mubr.bf16.vlgmr.msra.gmra.mrb[0].mxu0 %v2784_v35  ;;  %v3778_v35 = vld [vmem:[%s5059_s3 + $0x180] sm:$0xff]  }
 0x195   :  { %v1759_v38 = vpop.f32.mrb[0].mxu1 }
 0x196   :  { %v1761_v39 = vpop.f32.mrb[1].mxu1  ;;  %v3291_v52 = vadd.f32 %v1759_v38, %v300_v50  ;;  %v3791_v50 = vld [vmem:[%s5059_s3 + $0x1f8] sm:$0xff]  }
 0x197   :  { %v1763_v40 = vpop.f32.mrb[2].mxu1  ;;  %v3293_v53 = vadd.f32 %v1761_v39, %v304_v51  ;;  %v3780_v39 = vld [vmem:[%s5059_s3 + $0x188] sm:$0xff]   ;;  %v3792_v51 = vld [vmem:[%s5059_s3 + $0x1b8] sm:$0xff]  }
 0x198   :  { %v1764_v42 = vpop.f32.mrb[3].mxu1  ;;  %v3781_v40 = vld [vmem:[%s5059_s3 + $0x1d0] sm:$0xff]  }
 0x199   :  { %v3783_v42 = vld [vmem:[%s5059_s3 + $0x1d8] sm:$0xff]   ;;  %s3891_s3 = smov 126  }
 0x216   :  { %v1964_v54 = vpop.f32.mrb[0].mxu0 }
 0x217   :  { %v3292_v55 = vadd.f32 %v3291_v52, %v1964_v54  ;;  %v1966_v56 = vpop.f32.mrb[1].mxu0 }
 0x218   :  { %v3294_v57 = vadd.f32 %v3293_v53, %v1966_v56  ;;  %v1968_v58 = vpop.f32.mrb[2].mxu0 }
 0x219   :  { %v1971_v59 = vmax.f32 %v3292_v55, 0.0  ;;  %v1969_v60 = vpop.f32.mrb[3].mxu0  ;;  %v3042_v58 = vld [vmem:[%s5060_s4] ss:$0 sm:$0xff]  ;;  %s3892_s4 = smov 118  }
 0x21a   :  { %v1972_v61 = vmax.f32 %v3294_v57, 0.0 }
 0x21b   :  { %v4834_v0 = vpack.c.bf16 %v1971_v59, %v1971_v59 }
 0x21c   :  { %v4829_v62 = vpack.c.bf16 %v1972_v61, %v1972_v61 }
 0x21d   :  { %v2187_v20 = vrot.slane %v4834_v0, 1  ;;  %v2361_v36 = vrot.slane %v4834_v0, 2  ;;  %v2535_v52 = vrot.slane %v4834_v0, 3 }
 0x21e   :  { %2143 = vmatprep.mubr.bf16.mxu1 %v4829_v62  ;;  %v2188_v2 = vrot.slane %v4829_v62, 1  ;;  %v2362_v22 = vrot.slane %v4829_v62, 2  ;;  %v2536_v38 = vrot.slane %v4829_v62, 3 }
 0x21f   :  { %2144 = vmatmul.mubr.bf16.vlgmr.msra.gmra.mrb[4].mxu1 %v4834_v0 }
 0x220   :  { %3226 = vmatpush3.bf16.msra.mxu1 %v3746_v63  ;;  %2319 = vmatprep.mubr.bf16.mxu1 %v2188_v2 }
 0x221   :  { %3227 = vmatprep.subr.bf16.mxu1 %v3747_v1 }
 0x224   :  { %3228 = vmatpush3.bf16.msra.mxu1 %v3748_v3 }
 0x225   :  { %3229 = vmatprep.subr.bf16.mxu1 %v3749_v4 }
 0x228   :  { %3230 = vmatpush3.bf16.msra.mxu1 %v3750_v5 }
 0x229   :  { %3231 = vmatprep.subr.bf16.mxu1 %v3751_v6 }
 0x22c   :  { %3232 = vmatpush3.bf16.msra.mxu1 %v3752_v7 }
 0x22d   :  { %3233 = vmatprep.subr.bf16.mxu1 %v3753_v8 }
 0x230   :  { %3234 = vmatpush3.bf16.msra.mxu1 %v3754_v9 }
 0x231   :  { %3235 = vmatprep.subr.bf16.mxu1 %v3755_v10 }
 0x234   :  { %3236 = vmatpush3.bf16.msra.mxu1 %v3756_v11 }
 0x235   :  { %3237 = vmatprep.subr.bf16.mxu1 %v3757_v12 }
 0x238   :  { %3238 = vmatpush3.bf16.msra.mxu1 %v3758_v13 }
 0x239   :  { %3239 = vmatprep.subr.bf16.mxu1 %v3759_v14 }
 0x23c   :  { %3240 = vmatpush3.bf16.msra.mxu1 %v3760_v15 }
 0x23d   :  { %3247 = vmatprep.subr.bf16.mxu1 %v3761_v16 }
 0x23f   :  { %2320 = vmatmul.mubr.bf16.vlgmr.msra.gmra.mrb[8].mxu1 %v2187_v20 }
 0x240   :  { %3248 = vmatpush3.bf16.msra.mxu1 %v3762_v17  ;;  %2493 = vmatprep.mubr.bf16.mxu1 %v2362_v22 }
 0x241   :  { %3249 = vmatprep.subr.bf16.mxu1 %v3763_v21 }
 0x244   :  { %3250 = vmatpush3.bf16.msra.mxu1 %v3764_v23 }
 0x245   :  { %3251 = vmatprep.subr.bf16.mxu1 %v3765_v24 }
 0x248   :  { %3252 = vmatpush3.bf16.msra.mxu1 %v3766_v25  ;;  %v2704_v25 = vld [vmem:[%s5061_s5] sm:$0x3] }
 0x249   :  { %3253 = vmatprep.subr.bf16.mxu1 %v3767_v18 }
 0x24c   :  { %3254 = vmatpush3.bf16.msra.mxu1 %v3768_v19 }
 0x24d   :  { %3255 = vmatprep.subr.bf16.mxu1 %v3769_v26 }
 0x250   :  { %3256 = vmatpush3.bf16.msra.mxu1 %v3770_v27 }
 0x251   :  { %3257 = vmatprep.subr.bf16.mxu1 %v3771_v28 }
 0x254   :  { %3258 = vmatpush3.bf16.msra.mxu1 %v3772_v29 }
 0x255   :  { %3259 = vmatprep.subr.bf16.mxu1 %v3773_v30 }
 0x258   :  { %3260 = vmatpush3.bf16.msra.mxu1 %v3774_v31 }
 0x259   :  { %3261 = vmatprep.subr.bf16.mxu1 %v3775_v32 }
 0x25c   :  { %3262 = vmatpush3.bf16.msra.mxu1 %v3776_v33 }
 0x25d   :  { %3269 = vmatprep.subr.bf16.mxu1 %v3777_v34 }
 0x25f   :  { %2494 = vmatmul.mubr.bf16.vlgmr.msra.gmra.mrb[12].mxu1 %v2361_v36 }
 0x260   :  { %3270 = vmatpush3.bf16.msra.mxu1 %v3778_v35  ;;  %2667 = vmatprep.mubr.bf16.mxu1 %v2536_v38 }
 0x261   :  { %3271 = vmatprep.subr.bf16.mxu1 %v3779_v37 }
 0x264   :  { %3272 = vmatpush3.bf16.msra.mxu1 %v3780_v39 }
 0x265   :  { %3273 = vmatprep.subr.bf16.mxu1 %v3781_v40 }
 0x268   :  { %3274 = vmatpush3.bf16.msra.mxu1 %v3782_v41 }
 0x269   :  { %3275 = vmatprep.subr.bf16.mxu1 %v3783_v42 }
 0x26c   :  { %3276 = vmatpush3.bf16.msra.mxu1 %v3784_v43 }
 0x26d   :  { %3277 = vmatprep.subr.bf16.mxu1 %v3785_v44 }
 0x270   :  { %3278 = vmatpush3.bf16.msra.mxu1 %v3786_v45 }
 0x271   :  { %3279 = vmatprep.subr.bf16.mxu1 %v3787_v46 }
 0x274   :  { %3280 = vmatpush3.bf16.msra.mxu1 %v3788_v47 }
 0x275   :  { %3281 = vmatprep.subr.bf16.mxu1 %v3789_v48 }
 0x278   :  { %3282 = vmatpush3.bf16.msra.mxu1 %v3790_v49 }
 0x279   :  { %3283 = vmatprep.subr.bf16.mxu1 %v3791_v50 }
 0x27c   :  { %3284 = vmatpush3.bf16.msra.mxu1 %v3792_v51 }
 0x27f   :  { %2668 = vmatmul.mubr.bf16.vlgmr.msra.gmra.mrb[16].mxu1 %v2535_v52 }
 0x2f2   :  { %v3219_v53 = vpop.f32.mrb[4].mxu1 }
 0x2f3   :  { %v3220_v54 = vpop.f32.mrb[5].mxu1 }
 0x2f4   :  { %v3221_v55 = vadd.f32 %v3220_v54, %v3219_v53  ;;  %v3222_v56 = vpop.f32.mrb[6].mxu1 }
 0x2f5   :  { %v3223_v57 = vpop.f32.mrb[7].mxu1 }
 0x2f6   :  { %v2151_v61 = vadd.f32 %v3221_v55, %v3042_v58 }
 0x312   :  { %v3241_v59 = vpop.f32.mrb[8].mxu1 }
 0x313   :  { %v3242_v60 = vpop.f32.mrb[9].mxu1 }
 0x314   :  { %v3243_v62 = vadd.f32 %v3242_v60, %v3241_v59  ;;  %v3244_v63 = vpop.f32.mrb[10].mxu1 }
 0x315   :  { %v3245_v1 = vpop.f32.mrb[11].mxu1 }
 0x316   :  { %v2327_v2 = vadd.f32 %v3243_v62, %v2151_v61 }
 0x332   :  { %v3263_v3 = vpop.f32.mrb[12].mxu1 }
 0x333   :  { %v3264_v4 = vpop.f32.mrb[13].mxu1 }
 0x334   :  { %v3265_v0 = vadd.f32 %v3264_v4, %v3263_v3  ;;  %v3266_v5 = vpop.f32.mrb[14].mxu1 }
 0x335   :  { %v3267_v6 = vpop.f32.mrb[15].mxu1 }
 0x336   :  { %v2501_v7 = vadd.f32 %v3265_v0, %v2327_v2 }
 0x352   :  { %v3285_v8 = vpop.f32.mrb[16].mxu1 }
 0x353   :  { %v3286_v9 = vpop.f32.mrb[17].mxu1 }
 0x354   :  { %v3287_v10 = vadd.f32 %v3286_v9, %v3285_v8  ;;  %v3288_v11 = vpop.f32.mrb[18].mxu1 }
 0x355   :  { %v3289_v12 = vpop.f32.mrb[19].mxu1 }
 0x356   :  { %v4985_v13 = vadd.f32 %v3287_v10, %v2501_v7 }
 0x358   :  { %2695 = vrot.lane.b32.xlu1 %v4985_v13, %s3891_s3  ;;  %v2676_v14 = vmul.f32 %v4985_v13, %v4985_v13  ;;  %v2705_v16 = vmul.f32 0.5, %v4985_v13 }
 0x35a   :  { %v2678_v15 = vsel %vm2677_vm0, %v2676_v14, 0.0  ;;  %v2706_v17 = vmul.f32 1.442695, %v2705_v16 }
 0x35b   :  { %2679 = vadd.xlane.f32.xlu0 %v2678_v15 }
 0x35c   :  { %2700 = vrot.lane.b32.xlu1 %v4985_v13, %s3892_s4  ;;  %3793 = vpow2.f32 %v2706_v17 }
 0x366   :  { %v3794_v20 = vpop.eup %3793 }
 0x371   :  { %2709 = vrot.lane.b32.xlu0 %v3794_v20, %s3892_s4 }
 0x3ca   :  { %v2696_v21 = vpop.permute.xlu1 %2695 }
 0x3cb   :  { %2699 = vst.msk [vmem:[#allocation6] sm:$0x3] %vm2698_vm1, %v2696_v21 }
 0x3ce   :  { %v2701_v22 = vpop.permute.xlu1 %2700 }
 0x3cf   :  { %2703 = vst.msk [vmem:[#allocation7] sm:$0x3] %vm2698_vm1, %v2701_v22 }
 0x3e8   :  { %v2680_v23 = vpop.xlane.xlu0 %2679 }
 0x3e9   :  { %v2681_v24 = vrot.slane %v2680_v23, 4 }
 0x3eb   :  { %v2682_v18 = vadd.f32 %v2681_v24, %v2680_v23 }
 0x3ec   :  { %v2710_v19 = vpop.permute.xlu0 %2709 }
 0x3ed   :  { %3808 = shalt.err (!%p3805_p4)
}
 0x3ee   :  { %s3809_s29 = scalar_lea.hbm %s5065_s9, 32 }
 0x3ef   :  { %p3810_p5 = scmp.ne.s32.totalorder %s5065_s9, %s3809_s29  ;;  %p3813_p6 = scmp.lt.u32.totalorder %s3809_s29, %s5065_s9 }
 0x3f1   :  { %p3815_p7 = pnand %p3813_p6, %p3810_p5 }
 0x3f3   :  { %3818 = shalt.err (!%p3815_p7)
}
 0x3f4   :  { %2754 = dma.vmem_to_hbm [thread:$0]  %s2752_s23, 32, %s5065_s9, [#allocation8]   ;;  %v2683_v26 = vrot.slane %v2682_v18, 2  ;;  %v2712_v27 = vmul.f32 %v2710_v19, %v2704_v25 }
 0x3f5   :  { %s3895_s14 = smov [#allocation6]   ;;  %s3819_s15 = scalar_lea.vmem %s2732_s25, 32 }
 0x3f6   :  { %s2741_s1 = sshll.u32 %s3895_s14, 4  ;;  %v2684_v28 = vadd.f32 %v2683_v26, %v2682_v18  ;;  %v2713_v29 = vadd.f32 %v2712_v27, %v2696_v21  ;;  %p3820_p8 = scmp.ne.s32.totalorder %s2732_s25, %s3819_s15  ;;  %s5010_s1 = int_to_ptr.vmem [resolvable:$true] %s2741_s1 }
 0x3f7   :  { %p3824_p9 = scmp.lt.s32.totalorder %s2732_s25, %s2732_s25  ;;  %p3825_p10 = scmp.lt.s32.totalorder %s3819_s15, %s3819_s15 }
 0x3f8   :  { %v2685_v30 = vrot.slane %v2684_v28, 1  ;;  %2714 = vst.msk [vmem:[#allocation4] sm:$0x3] %vm2698_vm1, %v2713_v29 }
 0x3f9   :  { %p3826_p11 = por %p3825_p10, %p3824_p9 }
 0x3fb   :  { %p3827_p12 = pnand %p3826_p11, %p3820_p8 }
 0x3fd   :  { %3830 = shalt.err (!%p3827_p12)
}
 0x3fe   :  { %s3831_s0 = scalar_lea.hbm %s5063_s7, 32 }
 0x3ff   :  { %p3832_p13 = scmp.ne.s32.totalorder %s5063_s7, %s3831_s0  ;;  %p3835_p0 = scmp.lt.u32.totalorder %s3831_s0, %s5063_s7 }
 0x401   :  { %p3837_p1 = pnand %p3835_p0, %p3832_p13 }
 0x403   :  { %3840 = shalt.err (!%p3837_p1)
}
 0x404   :  { %2734 = dma.vmem_to_hbm [thread:$0]  %s2732_s25, 32, %s5063_s7, [#allocation5]   ;;  %v2686_v31 = vadd.f32 %v2685_v30, %v2684_v28 }
 0x405   :  { %s3841_s21 = scalar_lea.vmem %s5010_s1, 32  ;;  %p3846_p3 = scmp.lt.s32.totalorder %s5010_s1, %s5010_s1 }
 0x406   :  { %p3842_p2 = scmp.ne.s32.totalorder %s5010_s1, %s3841_s21  ;;  %p3847_p4 = scmp.lt.s32.totalorder %s3841_s21, %s3841_s21 }
 0x408   :  { %p3848_p5 = por %p3847_p4, %p3846_p3 }
 0x40a   :  { %p3849_p6 = pnand %p3848_p5, %p3842_p2 }
 0x40c   :  { %3852 = shalt.err (!%p3849_p6)
}
 0x40d   :  { %s3853_s23 = scalar_lea.hbm %s5064_s8, 32 }
 0x40e   :  { %p3854_p7 = scmp.ne.s32.totalorder %s5064_s8, %s3853_s23  ;;  %p3857_p8 = scmp.lt.u32.totalorder %s3853_s23, %s5064_s8 }
 0x410   :  { %p3859_p9 = pnand %p3857_p8, %p3854_p7 }
 0x412   :  { %3862 = shalt.err (!%p3859_p9)
}
 0x413   :  { %2744 = dma.vmem_to_hbm [thread:$0]  %s5010_s1, 32, %s5064_s8, [#allocation5]   ;;  %3319 = vpush %v2686_v31 }
 0x414   :  { %s3896_s30 = smov [#allocation2]  }
 0x415   :  { %s2721_s5 = sshll.u32 %s3896_s30, 4  ;;  %s2722_s5 = int_to_ptr.vmem [resolvable:$true] %s2721_s5 }
 0x416   :  { %s3863_s11 = scalar_lea.vmem %s2722_s5, 32  ;;  %p3868_p11 = scmp.lt.s32.totalorder %s2722_s5, %s2722_s5 }
 0x417   :  { %p3864_p10 = scmp.ne.s32.totalorder %s2722_s5, %s3863_s11  ;;  %p3869_p12 = scmp.lt.s32.totalorder %s3863_s11, %s3863_s11 }
 0x419   :  { %p3870_p13 = por %p3869_p12, %p3868_p11 }
 0x41b   :  { %p3871_p0 = pnand %p3870_p13, %p3864_p10 }
 0x444   :  { %s3320_s29 = spop %3319 }
 0x445   :  { %v2688_v32 = vstv %s3320_s29 }
 0x446   :  { %3795 = vrsqrt.f32 %v2688_v32 }
 0x450   :  { %v3796_v33 = vpop.eup %3795 }
 0x451   :  { %3321 = vpush %v3796_v33 }
 0x482   :  { %s3322_s10 = spop %3321 }
 0x483   :  { %v2691_v34 = vstv %s3322_s10 }
 0x484   :  { %v2692_v35 = vmul.f32 %v2691_v34, %v4985_v13 }
 0x486   :  { %2693 = vst.msk [vmem:[#allocation2] sm:$0x3] %vm2677_vm0, %v2692_v35 }
 0x487   :  { %3874 = shalt.err (!%p3871_p0)
}
 0x488   :  { %s3875_s13 = scalar_lea.hbm %s5062_s6, 32 }
 0x489   :  { %p3876_p1 = scmp.ne.s32.totalorder %s5062_s6, %s3875_s13  ;;  %p3879_p2 = scmp.lt.u32.totalorder %s3875_s13, %s5062_s6 }
 0x48b   :  { %p3881_p3 = pnand %p3879_p2, %p3876_p1 }
 0x48d   :  { %3884 = shalt.err (!%p3881_p3)
}
 0x48e   :  { %2724 = dma.vmem_to_hbm [thread:$0]  %s2722_s5, 32, %s5062_s6, [#allocation3]  }
 0x48f   :  { %3885 = dma.done.wait [#allocation3], 32  }
 0x490   :  { %3886 = vsyncadd [#allocation3], 4294967264 }
 0x491   :  { %3887 = dma.done.wait [#allocation5], 64  }
 0x492   :  { %3888 = vsyncadd [#allocation5], 4294967232 }
 0x493   :  { %3889 = dma.done.wait [#allocation8], 32  }
 0x494   :  { %3890 = vsyncadd [#allocation8], 4294967264 }
 0x495   :  { %2767 = vsyncpa [#allocation3], 1 }
 0x496   :  { %2768 = vsyncpa [#allocation5], 1 }
 0x497   :  { %2769 = vsyncpa [#allocation8], 1 }

</bundles_post_ra>
